<compile_context>
chip_gen: v7x
topology: tpu7x:2x2x1
jax: 0.10.0
libtpu: 0.0.40
codegen_flags: <defaults>
</compile_context>

<pallas_src>
import functools

import jax
import jax.numpy as jnp
from jax import lax
from jax.experimental import pallas as pl
from jax.experimental.pallas import tpu as pltpu


# ----------------------------------------------------------------------------
# Kernel A: ConvTranspose2d(kernel=2, stride=2) as a matmul.
# Output array layout (N, Hin, 2, Win, 2*Cup) so that a plain reshape gives
# (N, 2*Hin, 2*Win, Cup) — no XLA transpose pass.
# ----------------------------------------------------------------------------
def _deconv_kernel(x_ref, w_ref, b_ref, o_ref):
    # x_ref: (N*Hin*Win, Cin); w_ref: (1, Cin, 2*Cup); b_ref: (1, 2*Cup)
    # o_ref: (N, Hin, 1, Win, 2*Cup)
    up = jnp.dot(x_ref[...], w_ref[0], preferred_element_type=jnp.float32)
    up = up + b_ref[...]
    o_ref[...] = up.reshape(o_ref.shape)


def conv_transpose_2x2_s2(x, w, b):
    """x: (N,H,W,Cin), w: (Cin,Cout,2,2) torch layout, b: (Cout,) -> (N,2H,2W,Cout)."""
    N, H, W, Cin = x.shape
    Cup = w.shape[1]
    x_flat = x.reshape(N * H * W, Cin)
    # w_a[a, ci, b*Cup + co] = w[ci, co, a, b]
    w_a = jnp.transpose(w, (2, 0, 3, 1)).reshape(2, Cin, 2 * Cup)
    b2 = jnp.tile(b, 2).reshape(1, 2 * Cup)

    up_r = pl.pallas_call(
        _deconv_kernel,
        out_shape=jax.ShapeDtypeStruct((N, H, 2, W, 2 * Cup), jnp.float32),
        grid=(2,),
        in_specs=[
            pl.BlockSpec((N * H * W, Cin), lambda a: (0, 0)),
            pl.BlockSpec((1, Cin, 2 * Cup), lambda a: (a, 0, 0)),
            pl.BlockSpec((1, 2 * Cup), lambda a: (0, 0)),
        ],
        out_specs=pl.BlockSpec((N, H, 1, W, 2 * Cup), lambda a: (0, 0, a, 0, 0)),
        compiler_params=pltpu.CompilerParams(dimension_semantics=("parallel",)),
    )(x_flat, w_a, b2)
    return up_r.reshape(N, 2 * H, 2 * W, Cup)     # pure metadata reshape


# ----------------------------------------------------------------------------
# Kernel B: fused  concat -> conv3x3+BN+ReLU -> conv3x3+BN+ReLU -> CSE
# Everything per-image stays in VMEM (padded buffers are VMEM scratch).
# ----------------------------------------------------------------------------
def _fused_block_kernel(up_ref, sc_ref, w1u_ref, w1s_ref, s1_ref, sh1_ref,
                        w2_ref, s2_ref, sh2_ref, se1_ref, se2_ref,
                        o_ref, pad_u, pad_s, pad_y, *, Hs, Ws, Wp):
    Cup = up_ref.shape[-1]
    Cs = sc_ref.shape[-1]
    Cout = o_ref.shape[-1]

    # ---- build zero-padded inputs in VMEM (concat handled via split weights)
    pad_u[...] = jnp.zeros((Hs + 2, Wp, Cup), jnp.float32)
    pad_s[...] = jnp.zeros((Hs + 2, Wp, Cs), jnp.float32)
    pad_u[1:Hs + 1, 1:Ws + 1, :] = up_ref[0]
    pad_s[1:Hs + 1, 1:Ws + 1, :] = sc_ref[0]

    def conv3x3(srcs, scale, shift):
        # srcs: list of (padded_ref, weight_ref) ; weight_ref[kh]: (C, 3*Cout)
        acc = None
        for kh in range(3):
            d = None
            for pad_ref, w_ref in srcs:
                c = pad_ref.shape[-1]
                rows = pad_ref[kh:kh + Hs, :, :].reshape(Hs * Wp, c)
                t = jnp.dot(rows, w_ref[kh], preferred_element_type=jnp.float32)
                d = t if d is None else d + t                 # (Hs*Wp, 3*Cout)
            for kw in range(3):
                part = d[:, kw * Cout:(kw + 1) * Cout].reshape(Hs, Wp, Cout)
                contrib = part[:, kw:kw + Ws, :]
                acc = contrib if acc is None else acc + contrib
        return jnp.maximum(acc * scale + shift, 0.0)          # (Hs, Ws, Cout)

    # conv1 (concat input split into up / shortcut halves) + BN + ReLU
    y1 = conv3x3([(pad_u, w1u_ref), (pad_s, w1s_ref)], s1_ref[...], sh1_ref[...])

    # conv2 + BN + ReLU
    pad_y[...] = jnp.zeros((Hs + 2, Wp, Cout), jnp.float32)
    pad_y[1:Hs + 1, 1:Ws + 1, :] = y1
    y2 = conv3x3([(pad_y, w2_ref)], s2_ref[...], sh2_ref[...])

    # CSE: GAP -> 1x1 -> ReLU -> 1x1 -> sigmoid -> scale
    yf = y2.reshape(Hs * Ws, Cout)
    pooled = jnp.mean(yf, axis=0, keepdims=True)              # (1, Cout)
    h = jnp.maximum(
        jnp.dot(pooled, se1_ref[...], preferred_element_type=jnp.float32), 0.0)
    s = jax.nn.sigmoid(
        jnp.dot(h, se2_ref[...], preferred_element_type=jnp.float32))
    o_ref[...] = (y2 * s).reshape(1, Hs, Ws, Cout)


def fused_convs_cse(up, shortcut, params):
    N, Hs, Ws, Cup = up.shape
    Cs = shortcut.shape[-1]
    Cout = params["w1"].shape[-1]
    Cr = params["se_w1"].shape[-1]
    Wp = Ws + 8                                    # right pad to a multiple of 8

    # Re-pack conv weights: [kh, cin, kw*Cout + co]  (host side, tiny)
    w1 = params["w1"]                              # (3, 3, Cup+Cs, Cout) HWIO
    w1u = jnp.transpose(w1[:, :, :Cup, :], (0, 2, 1, 3)).reshape(3, Cup, 3 * Cout)
    w1s = jnp.transpose(w1[:, :, Cup:, :], (0, 2, 1, 3)).reshape(3, Cs, 3 * Cout)
    w2k = jnp.transpose(params["w2"], (0, 2, 1, 3)).reshape(3, Cout, 3 * Cout)
    s1 = params["scale1"].reshape(1, Cout)
    sh1 = params["shift1"].reshape(1, Cout)
    s2 = params["scale2"].reshape(1, Cout)
    sh2 = params["shift2"].reshape(1, Cout)

    kernel = functools.partial(_fused_block_kernel, Hs=Hs, Ws=Ws, Wp=Wp)
    return pl.pallas_call(
        kernel,
        out_shape=jax.ShapeDtypeStruct((N, Hs, Ws, Cout), jnp.float32),
        grid=(N,),
        in_specs=[
            pl.BlockSpec((1, Hs, Ws, Cup), lambda n: (n, 0, 0, 0)),
            pl.BlockSpec((1, Hs, Ws, Cs), lambda n: (n, 0, 0, 0)),
            pl.BlockSpec((3, Cup, 3 * Cout), lambda n: (0, 0, 0)),
            pl.BlockSpec((3, Cs, 3 * Cout), lambda n: (0, 0, 0)),
            pl.BlockSpec((1, Cout), lambda n: (0, 0)),
            pl.BlockSpec((1, Cout), lambda n: (0, 0)),
            pl.BlockSpec((3, Cout, 3 * Cout), lambda n: (0, 0, 0)),
            pl.BlockSpec((1, Cout), lambda n: (0, 0)),
            pl.BlockSpec((1, Cout), lambda n: (0, 0)),
            pl.BlockSpec((Cout, Cr), lambda n: (0, 0)),
            pl.BlockSpec((Cr, Cout), lambda n: (0, 0)),
        ],
        out_specs=pl.BlockSpec((1, Hs, Ws, Cout), lambda n: (n, 0, 0, 0)),
        scratch_shapes=[
            pltpu.VMEM((Hs + 2, Wp, Cup), jnp.float32),
            pltpu.VMEM((Hs + 2, Wp, Cs), jnp.float32),
            pltpu.VMEM((Hs + 2, Wp, Cout), jnp.float32),
        ],
        compiler_params=pltpu.CompilerParams(dimension_semantics=("parallel",)),
    )(up, shortcut, w1u, w1s, s1, sh1, w2k, s2, sh2,
      params["se_w1"], params["se_w2"])


# ----------------------------------------------------------------------------
# Up_Block_A forward (Pallas path)
# ----------------------------------------------------------------------------
def up_block_a_forward(x, shortcut, params):
    up = conv_transpose_2x2_s2(x, params["wt"], params["bt"])
    return fused_convs_cse(up, shortcut, params)


# ----------------------------------------------------------------------------
# Pure-JAX reference (lax.conv) for validation
# ----------------------------------------------------------------------------
def up_block_a_reference(x, shortcut, params):
    N, H, W, Cin = x.shape
    Cup = params["wt"].shape[1]
    up = jnp.einsum("nijc,cokl->nikjlo", x, params["wt"])
    up = up.reshape(N, 2 * H, 2 * W, Cup) + params["bt"]
    cat = jnp.concatenate([up, shortcut], axis=-1)

    def conv_bn_relu(z, w, scale, shift):
        z = lax.conv_general_dilated(
            z, w, window_strides=(1, 1), padding="SAME",
            dimension_numbers=("NHWC", "HWIO", "NHWC"))
        return jnp.maximum(z * scale + shift, 0.0)

    y = conv_bn_relu(cat, params["w1"], params["scale1"], params["shift1"])
    y = conv_bn_relu(y, params["w2"], params["scale2"], params["shift2"])
    pooled = jnp.mean(y, axis=(1, 2))
    s = jax.nn.sigmoid(
        jnp.maximum(pooled @ params["se_w1"], 0.0) @ params["se_w2"])
    return y * s[:, None, None, :]


# ----------------------------------------------------------------------------
def make_params(key, in_ch, up_ch, concat_ch, out_ch, reduce_ratio=4):
    ks = jax.random.split(key, 14)
    eps = 1e-5

    def bn(kg, kb, km, kv, c):
        gamma = 1.0 + 0.1 * jax.random.normal(kg, (c,), jnp.float32)
        beta = 0.1 * jax.random.normal(kb, (c,), jnp.float32)
        mean = 0.1 * jax.random.normal(km, (c,), jnp.float32)
        var = jax.random.uniform(kv, (c,), jnp.float32, 0.5, 1.5)
        scale = gamma / jnp.sqrt(var + eps)
        shift = beta - mean * scale
        return scale, shift

    p = {}
    p["wt"] = 0.2 * jax.random.normal(ks[0], (in_ch, up_ch, 2, 2), jnp.float32)
    p["bt"] = 0.1 * jax.random.normal(ks[1], (up_ch,), jnp.float32)
    p["w1"] = 0.2 * jax.random.normal(ks[2], (3, 3, concat_ch, out_ch), jnp.float32)
    p["scale1"], p["shift1"] = bn(ks[3], ks[4], ks[5], ks[6], out_ch)
    p["w2"] = 0.2 * jax.random.normal(ks[7], (3, 3, out_ch, out_ch), jnp.float32)
    p["scale2"], p["shift2"] = bn(ks[8], ks[9], ks[10], ks[11], out_ch)
    p["se_w1"] = 0.3 * jax.random.normal(
        ks[12], (out_ch, out_ch // reduce_ratio), jnp.float32)
    p["se_w2"] = 0.3 * jax.random.normal(
        ks[13], (out_ch // reduce_ratio, out_ch), jnp.float32)
    return p


if __name__ == "__main__":
    # Up_Block_A(in_channels=8, up_channels=8, concat_channels=16, out_channels=8)
    N, in_ch, up_ch, out_ch = 2, 8, 8, 8
    sc_ch = 8
    concat_ch = up_ch + sc_ch
    Hin = Win = 8                      # upsampled to 16x16

    key = jax.random.PRNGKey(0)
    kx, ksc, kp = jax.random.split(key, 3)
    x = jax.random.normal(kx, (N, Hin, Win, in_ch), jnp.float32)          # NHWC
    shortcut = jax.random.normal(ksc, (N, 2 * Hin, 2 * Win, sc_ch), jnp.float32)
    params = make_params(kp, in_ch, up_ch, concat_ch, out_ch)

    fwd = jax.jit(up_block_a_forward)
    out = jax.block_until_ready(fwd(x, shortcut, params))
    ref = jax.block_until_ready(up_block_a_reference(x, shortcut, params))

    assert out.shape == (N, 2 * Hin, 2 * Win, out_ch), out.shape
    assert jnp.allclose(out, ref, atol=1e-2, rtol=1e-2), float(
        jnp.max(jnp.abs(out - ref)))
    print("KERNEL_OK")
</pallas_src>

<mosaic_0001>
module attributes {stable_mosaic.version = 11 : i64} {
  func.func @_deconv_kernel(%arg0: i32, %arg1: memref<128x8xf32, #tpu.memory_space<vmem>>, %arg2: memref<1x8x16xf32, #tpu.memory_space<vmem>>, %arg3: memref<1x16xf32, #tpu.memory_space<vmem>>, %arg4: memref<2x8x1x8x16xf32, #tpu.memory_space<vmem>>) attributes {dimension_semantics = [#tpu.dimension_semantics<parallel>], iteration_bounds = array<i64: 2>, scalar_prefetch = 0 : i64, scratch_operands = 0 : i64, tpu.core_type = #tpu.core_type<tc>, window_params = [{pipeline_mode = #tpu.pipeline_mode<synchronous>, transform_indices = @transform_0, window_bounds = array<i64: 128, 8>}, {transform_indices = @transform_1, window_bounds = array<i64: 1, 8, 16>}, {pipeline_mode = #tpu.pipeline_mode<synchronous>, transform_indices = @transform_2, window_bounds = array<i64: 1, 16>}, {transform_indices = @transform_3, window_bounds = array<i64: 2, 8, 1, 8, 16>}]} {
    %c0 = arith.constant 0 : index
    %c0_0 = arith.constant 0 : index
    %0 = vector.load %arg1[%c0, %c0_0] : memref<128x8xf32, #tpu.memory_space<vmem>>, vector<128x8xf32>
    %c0_1 = arith.constant 0 : index
    %c0_2 = arith.constant 0 : index
    %c0_3 = arith.constant 0 : index
    %1 = vector.load %arg2[%c0_1, %c0_2, %c0_3] : memref<1x8x16xf32, #tpu.memory_space<vmem>>, vector<1x8x16xf32>
    %2 = vector.shape_cast %1 : vector<1x8x16xf32> to vector<8x16xf32>
    %cst = arith.constant dense<0.000000e+00> : vector<128x16xf32>
    %3 = tpu.matmul %0, %2, %cst {dimension_numbers = #tpu.dot_dimension_numbers<[1], [0], [0], [1], [0, 0, 1, 1], [], []>} : vector<128x8xf32>, vector<8x16xf32>, vector<128x16xf32> -> vector<128x16xf32>
    %c0_4 = arith.constant 0 : index
    %c0_5 = arith.constant 0 : index
    %4 = vector.load %arg3[%c0_4, %c0_5] : memref<1x16xf32, #tpu.memory_space<vmem>>, vector<1x16xf32>
    %5 = vector.broadcast %4 : vector<1x16xf32> to vector<128x16xf32>
    %6 = arith.addf %3, %5 : vector<128x16xf32>
    %7 = vector.shape_cast %6 : vector<128x16xf32> to vector<2x8x1x8x16xf32>
    %c0_6 = arith.constant 0 : index
    %c0_7 = arith.constant 0 : index
    %c0_8 = arith.constant 0 : index
    %c0_9 = arith.constant 0 : index
    %c0_10 = arith.constant 0 : index
    %8 = vector.load %arg4[%c0_6, %c0_7, %c0_8, %c0_9, %c0_10] : memref<2x8x1x8x16xf32, #tpu.memory_space<vmem>>, vector<2x8x1x8x16xf32>
    tpu.vector_store %arg4[%c0_6, %c0_7, %c0_8, %c0_9, %c0_10], %7 {strides = array<i32>} : memref<2x8x1x8x16xf32, #tpu.memory_space<vmem>>, vector<2x8x1x8x16xf32>,
    return
  }
  func.func @transform_0(%arg0: i32) -> (i32, i32) {
    %c0_i32 = arith.constant 0 : i32
    %c0_i32_0 = arith.constant 0 : i32
    %c0_i32_1 = arith.constant 0 : i32
    return %c0_i32, %c0_i32_0 : i32, i32
  }
  func.func @transform_1(%arg0: i32) -> (i32, i32, i32) {
    %c0_i32 = arith.constant 0 : i32
    %c0_i32_0 = arith.constant 0 : i32
    %c0_i32_1 = arith.constant 0 : i32
    return %arg0, %c0_i32, %c0_i32_0 : i32, i32, i32
  }
  func.func @transform_2(%arg0: i32) -> (i32, i32) {
    %c0_i32 = arith.constant 0 : i32
    %c0_i32_0 = arith.constant 0 : i32
    %c0_i32_1 = arith.constant 0 : i32
    return %c0_i32, %c0_i32_0 : i32, i32
  }
  func.func @transform_3(%arg0: i32) -> (i32, i32, i32, i32, i32) {
    %c0_i32 = arith.constant 0 : i32
    %c0_i32_0 = arith.constant 0 : i32
    %c0_i32_1 = arith.constant 0 : i32
    %c0_i32_2 = arith.constant 0 : i32
    %c0_i32_3 = arith.constant 0 : i32
    return %c0_i32, %c0_i32_0, %arg0, %c0_i32_1, %c0_i32_2 : i32, i32, i32, i32, i32
  }
}

module attributes {stable_mosaic.version = 11 : i64} {
  func.func @_fused_block_kernel(%arg0: i32, %arg1: memref<1x16x16x8xf32, #tpu.memory_space<vmem>>, %arg2: memref<1x16x16x8xf32, #tpu.memory_space<vmem>>, %arg3: memref<3x8x24xf32, #tpu.memory_space<vmem>>, %arg4: memref<3x8x24xf32, #tpu.memory_space<vmem>>, %arg5: memref<1x8xf32, #tpu.memory_space<vmem>>, %arg6: memref<1x8xf32, #tpu.memory_space<vmem>>, %arg7: memref<3x8x24xf32, #tpu.memory_space<vmem>>, %arg8: memref<1x8xf32, #tpu.memory_space<vmem>>, %arg9: memref<1x8xf32, #tpu.memory_space<vmem>>, %arg10: memref<8x2xf32, #tpu.memory_space<vmem>>, %arg11: memref<2x8xf32, #tpu.memory_space<vmem>>, %arg12: memref<1x16x16x8xf32, #tpu.memory_space<vmem>>, %arg13: memref<18x24x8xf32, #tpu.memory_space<vmem>>, %arg14: memref<18x24x8xf32, #tpu.memory_space<vmem>>, %arg15: memref<18x24x8xf32, #tpu.memory_space<vmem>>) attributes {dimension_semantics = [#tpu.dimension_semantics<parallel>], iteration_bounds = array<i64: 2>, scalar_prefetch = 0 : i64, scratch_operands = 3 : i64, tpu.core_type = #tpu.core_type<tc>, window_params = [{transform_indices = @transform_0, window_bounds = array<i64: 1, 16, 16, 8>}, {transform_indices = @transform_1, window_bounds = array<i64: 1, 16, 16, 8>}, {pipeline_mode = #tpu.pipeline_mode<synchronous>, transform_indices = @transform_2, window_bounds = array<i64: 3, 8, 24>}, {pipeline_mode = #tpu.pipeline_mode<synchronous>, transform_indices = @transform_3, window_bounds = array<i64: 3, 8, 24>}, {pipeline_mode = #tpu.pipeline_mode<synchronous>, transform_indices = @transform_4, window_bounds = array<i64: 1, 8>}, {pipeline_mode = #tpu.pipeline_mode<synchronous>, transform_indices = @transform_5, window_bounds = array<i64: 1, 8>}, {pipeline_mode = #tpu.pipeline_mode<synchronous>, transform_indices = @transform_6, window_bounds = array<i64: 3, 8, 24>}, {pipeline_mode = #tpu.pipeline_mode<synchronous>, transform_indices = @transform_7, window_bounds = array<i64: 1, 8>}, {pipeline_mode = #tpu.pipeline_mode<synchronous>, transform_indices = @transform_8, window_bounds = array<i64: 1, 8>}, {pipeline_mode = #tpu.pipeline_mode<synchronous>, transform_indices = @transform_9, window_bounds = array<i64: 8, 2>}, {pipeline_mode = #tpu.pipeline_mode<synchronous>, transform_indices = @transform_10, window_bounds = array<i64: 2, 8>}, {transform_indices = @transform_11, window_bounds = array<i64: 1, 16, 16, 8>}]} {
    %cst = arith.constant 0.000000e+00 : f32
    %0 = vector.broadcast %cst : f32 to vector<18x24x8xf32>
    %c0 = arith.constant 0 : index
    %c0_0 = arith.constant 0 : index
    %c0_1 = arith.constant 0 : index
    %1 = vector.load %arg13[%c0, %c0_0, %c0_1] : memref<18x24x8xf32, #tpu.memory_space<vmem>>, vector<18x24x8xf32>
    tpu.vector_store %arg13[%c0, %c0_0, %c0_1], %0 {strides = array<i32>} : memref<18x24x8xf32, #tpu.memory_space<vmem>>, vector<18x24x8xf32>,
    %cst_2 = arith.constant 0.000000e+00 : f32
    %2 = vector.broadcast %cst_2 : f32 to vector<18x24x8xf32>
    %c0_3 = arith.constant 0 : index
    %c0_4 = arith.constant 0 : index
    %c0_5 = arith.constant 0 : index
    %3 = vector.load %arg14[%c0_3, %c0_4, %c0_5] : memref<18x24x8xf32, #tpu.memory_space<vmem>>, vector<18x24x8xf32>
    tpu.vector_store %arg14[%c0_3, %c0_4, %c0_5], %2 {strides = array<i32>} : memref<18x24x8xf32, #tpu.memory_space<vmem>>, vector<18x24x8xf32>,
    %c0_6 = arith.constant 0 : index
    %c0_7 = arith.constant 0 : index
    %c0_8 = arith.constant 0 : index
    %c0_9 = arith.constant 0 : index
    %4 = vector.load %arg1[%c0_6, %c0_7, %c0_8, %c0_9] : memref<1x16x16x8xf32, #tpu.memory_space<vmem>>, vector<1x16x16x8xf32>
    %5 = vector.shape_cast %4 : vector<1x16x16x8xf32> to vector<16x16x8xf32>
    %c1 = arith.constant 1 : index
    %c1_10 = arith.constant 1 : index
    %c0_11 = arith.constant 0 : index
    %6 = vector.load %arg13[%c1, %c1_10, %c0_11] : memref<18x24x8xf32, #tpu.memory_space<vmem>>, vector<16x16x8xf32>
    tpu.vector_store %arg13[%c1, %c1_10, %c0_11], %5 {strides = array<i32>} : memref<18x24x8xf32, #tpu.memory_space<vmem>>, vector<16x16x8xf32>,
    %c0_12 = arith.constant 0 : index
    %c0_13 = arith.constant 0 : index
    %c0_14 = arith.constant 0 : index
    %c0_15 = arith.constant 0 : index
    %7 = vector.load %arg2[%c0_12, %c0_13, %c0_14, %c0_15] : memref<1x16x16x8xf32, #tpu.memory_space<vmem>>, vector<1x16x16x8xf32>
    %8 = vector.shape_cast %7 : vector<1x16x16x8xf32> to vector<16x16x8xf32>
    %c1_16 = arith.constant 1 : index
    %c1_17 = arith.constant 1 : index
    %c0_18 = arith.constant 0 : index
    %9 = vector.load %arg14[%c1_16, %c1_17, %c0_18] : memref<18x24x8xf32, #tpu.memory_space<vmem>>, vector<16x16x8xf32>
    tpu.vector_store %arg14[%c1_16, %c1_17, %c0_18], %8 {strides = array<i32>} : memref<18x24x8xf32, #tpu.memory_space<vmem>>, vector<16x16x8xf32>,
    %c0_19 = arith.constant 0 : index
    %c0_20 = arith.constant 0 : index
    %10 = vector.load %arg5[%c0_19, %c0_20] : memref<1x8xf32, #tpu.memory_space<vmem>>, vector<1x8xf32>
    %c0_21 = arith.constant 0 : index
    %c0_22 = arith.constant 0 : index
    %11 = vector.load %arg6[%c0_21, %c0_22] : memref<1x8xf32, #tpu.memory_space<vmem>>, vector<1x8xf32>
    %c0_23 = arith.constant 0 : index
    %c0_24 = arith.constant 0 : index
    %c0_25 = arith.constant 0 : index
    %12 = vector.load %arg13[%c0_23, %c0_24, %c0_25] : memref<18x24x8xf32, #tpu.memory_space<vmem>>, vector<16x24x8xf32>
    %13 = vector.shape_cast %12 : vector<16x24x8xf32> to vector<384x8xf32>
    %c0_26 = arith.constant 0 : index
    %c0_27 = arith.constant 0 : index
    %c0_28 = arith.constant 0 : index
    %14 = vector.load %arg3[%c0_26, %c0_27, %c0_28] : memref<3x8x24xf32, #tpu.memory_space<vmem>>, vector<1x8x24xf32>
    %15 = vector.shape_cast %14 : vector<1x8x24xf32> to vector<8x24xf32>
    %cst_29 = arith.constant dense<0.000000e+00> : vector<384x24xf32>
    %16 = tpu.matmul %13, %15, %cst_29 {dimension_numbers = #tpu.dot_dimension_numbers<[1], [0], [0], [1], [0, 0, 1, 1], [], []>} : vector<384x8xf32>, vector<8x24xf32>, vector<384x24xf32> -> vector<384x24xf32>
    %c0_30 = arith.constant 0 : index
    %c0_31 = arith.constant 0 : index
    %c0_32 = arith.constant 0 : index
    %17 = vector.load %arg14[%c0_30, %c0_31, %c0_32] : memref<18x24x8xf32, #tpu.memory_space<vmem>>, vector<16x24x8xf32>
    %18 = vector.shape_cast %17 : vector<16x24x8xf32> to vector<384x8xf32>
    %c0_33 = arith.constant 0 : index
    %c0_34 = arith.constant 0 : index
    %c0_35 = arith.constant 0 : index
    %19 = vector.load %arg4[%c0_33, %c0_34, %c0_35] : memref<3x8x24xf32, #tpu.memory_space<vmem>>, vector<1x8x24xf32>
    %20 = vector.shape_cast %19 : vector<1x8x24xf32> to vector<8x24xf32>
    %cst_36 = arith.constant dense<0.000000e+00> : vector<384x24xf32>
    %21 = tpu.matmul %18, %20, %cst_36 {dimension_numbers = #tpu.dot_dimension_numbers<[1], [0], [0], [1], [0, 0, 1, 1], [], []>} : vector<384x8xf32>, vector<8x24xf32>, vector<384x24xf32> -> vector<384x24xf32>
    %22 = arith.addf %16, %21 : vector<384x24xf32>
    %23 = vector.extract_strided_slice %22 {offsets = [0, 0], sizes = [384, 8], strides = [1, 1]} : vector<384x24xf32> to vector<384x8xf32>
    %24 = vector.shape_cast %23 : vector<384x8xf32> to vector<16x24x8xf32>
    %25 = vector.extract_strided_slice %24 {offsets = [0, 0, 0], sizes = [16, 16, 8], strides = [1, 1, 1]} : vector<16x24x8xf32> to vector<16x16x8xf32>
    %26 = vector.extract_strided_slice %22 {offsets = [0, 8], sizes = [384, 8], strides = [1, 1]} : vector<384x24xf32> to vector<384x8xf32>
    %27 = vector.shape_cast %26 : vector<384x8xf32> to vector<16x24x8xf32>
    %28 = vector.extract_strided_slice %27 {offsets = [0, 1, 0], sizes = [16, 16, 8], strides = [1, 1, 1]} : vector<16x24x8xf32> to vector<16x16x8xf32>
    %29 = arith.addf %25, %28 : vector<16x16x8xf32>
    %30 = vector.extract_strided_slice %22 {offsets = [0, 16], sizes = [384, 8], strides = [1, 1]} : vector<384x24xf32> to vector<384x8xf32>
    %31 = vector.shape_cast %30 : vector<384x8xf32> to vector<16x24x8xf32>
    %32 = vector.extract_strided_slice %31 {offsets = [0, 2, 0], sizes = [16, 16, 8], strides = [1, 1, 1]} : vector<16x24x8xf32> to vector<16x16x8xf32>
    %33 = arith.addf %29, %32 : vector<16x16x8xf32>
    %c1_37 = arith.constant 1 : index
    %c0_38 = arith.constant 0 : index
    %c0_39 = arith.constant 0 : index
    %34 = vector.load %arg13[%c1_37, %c0_38, %c0_39] : memref<18x24x8xf32, #tpu.memory_space<vmem>>, vector<16x24x8xf32>
    %35 = vector.shape_cast %34 : vector<16x24x8xf32> to vector<384x8xf32>
    %c1_40 = arith.constant 1 : index
    %c0_41 = arith.constant 0 : index
    %c0_42 = arith.constant 0 : index
    %36 = vector.load %arg3[%c1_40, %c0_41, %c0_42] : memref<3x8x24xf32, #tpu.memory_space<vmem>>, vector<1x8x24xf32>
    %37 = vector.shape_cast %36 : vector<1x8x24xf32> to vector<8x24xf32>
    %cst_43 = arith.constant dense<0.000000e+00> : vector<384x24xf32>
    %38 = tpu.matmul %35, %37, %cst_43 {dimension_numbers = #tpu.dot_dimension_numbers<[1], [0], [0], [1], [0, 0, 1, 1], [], []>} : vector<384x8xf32>, vector<8x24xf32>, vector<384x24xf32> -> vector<384x24xf32>
    %c1_44 = arith.constant 1 : index
    %c0_45 = arith.constant 0 : index
    %c0_46 = arith.constant 0 : index
    %39 = vector.load %arg14[%c1_44, %c0_45, %c0_46] : memref<18x24x8xf32, #tpu.memory_space<vmem>>, vector<16x24x8xf32>
    %40 = vector.shape_cast %39 : vector<16x24x8xf32> to vector<384x8xf32>
    %c1_47 = arith.constant 1 : index
    %c0_48 = arith.constant 0 : index
    %c0_49 = arith.constant 0 : index
    %41 = vector.load %arg4[%c1_47, %c0_48, %c0_49] : memref<3x8x24xf32, #tpu.memory_space<vmem>>, vector<1x8x24xf32>
    %42 = vector.shape_cast %41 : vector<1x8x24xf32> to vector<8x24xf32>
    %cst_50 = arith.constant dense<0.000000e+00> : vector<384x24xf32>
    %43 = tpu.matmul %40, %42, %cst_50 {dimension_numbers = #tpu.dot_dimension_numbers<[1], [0], [0], [1], [0, 0, 1, 1], [], []>} : vector<384x8xf32>, vector<8x24xf32>, vector<384x24xf32> -> vector<384x24xf32>
    %44 = arith.addf %38, %43 : vector<384x24xf32>
    %45 = vector.extract_strided_slice %44 {offsets = [0, 0], sizes = [384, 8], strides = [1, 1]} : vector<384x24xf32> to vector<384x8xf32>
    %46 = vector.shape_cast %45 : vector<384x8xf32> to vector<16x24x8xf32>
    %47 = vector.extract_strided_slice %46 {offsets = [0, 0, 0], sizes = [16, 16, 8], strides = [1, 1, 1]} : vector<16x24x8xf32> to vector<16x16x8xf32>
    %48 = arith.addf %33, %47 : vector<16x16x8xf32>
    %49 = vector.extract_strided_slice %44 {offsets = [0, 8], sizes = [384, 8], strides = [1, 1]} : vector<384x24xf32> to vector<384x8xf32>
    %50 = vector.shape_cast %49 : vector<384x8xf32> to vector<16x24x8xf32>
    %51 = vector.extract_strided_slice %50 {offsets = [0, 1, 0], sizes = [16, 16, 8], strides = [1, 1, 1]} : vector<16x24x8xf32> to vector<16x16x8xf32>
    %52 = arith.addf %48, %51 : vector<16x16x8xf32>
    %53 = vector.extract_strided_slice %44 {offsets = [0, 16], sizes = [384, 8], strides = [1, 1]} : vector<384x24xf32> to vector<384x8xf32>
    %54 = vector.shape_cast %53 : vector<384x8xf32> to vector<16x24x8xf32>
    %55 = vector.extract_strided_slice %54 {offsets = [0, 2, 0], sizes = [16, 16, 8], strides = [1, 1, 1]} : vector<16x24x8xf32> to vector<16x16x8xf32>
    %56 = arith.addf %52, %55 : vector<16x16x8xf32>
    %c2 = arith.constant 2 : index
    %c0_51 = arith.constant 0 : index
    %c0_52 = arith.constant 0 : index
    %57 = vector.load %arg13[%c2, %c0_51, %c0_52] : memref<18x24x8xf32, #tpu.memory_space<vmem>>, vector<16x24x8xf32>
    %58 = vector.shape_cast %57 : vector<16x24x8xf32> to vector<384x8xf32>
    %c2_53 = arith.constant 2 : index
    %c0_54 = arith.constant 0 : index
    %c0_55 = arith.constant 0 : index
    %59 = vector.load %arg3[%c2_53, %c0_54, %c0_55] : memref<3x8x24xf32, #tpu.memory_space<vmem>>, vector<1x8x24xf32>
    %60 = vector.shape_cast %59 : vector<1x8x24xf32> to vector<8x24xf32>
    %cst_56 = arith.constant dense<0.000000e+00> : vector<384x24xf32>
    %61 = tpu.matmul %58, %60, %cst_56 {dimension_numbers = #tpu.dot_dimension_numbers<[1], [0], [0], [1], [0, 0, 1, 1], [], []>} : vector<384x8xf32>, vector<8x24xf32>, vector<384x24xf32> -> vector<384x24xf32>
    %c2_57 = arith.constant 2 : index
    %c0_58 = arith.constant 0 : index
    %c0_59 = arith.constant 0 : index
    %62 = vector.load %arg14[%c2_57, %c0_58, %c0_59] : memref<18x24x8xf32, #tpu.memory_space<vmem>>, vector<16x24x8xf32>
    %63 = vector.shape_cast %62 : vector<16x24x8xf32> to vector<384x8xf32>
    %c2_60 = arith.constant 2 : index
    %c0_61 = arith.constant 0 : index
    %c0_62 = arith.constant 0 : index
    %64 = vector.load %arg4[%c2_60, %c0_61, %c0_62] : memref<3x8x24xf32, #tpu.memory_space<vmem>>, vector<1x8x24xf32>
    %65 = vector.shape_cast %64 : vector<1x8x24xf32> to vector<8x24xf32>
    %cst_63 = arith.constant dense<0.000000e+00> : vector<384x24xf32>
    %66 = tpu.matmul %63, %65, %cst_63 {dimension_numbers = #tpu.dot_dimension_numbers<[1], [0], [0], [1], [0, 0, 1, 1], [], []>} : vector<384x8xf32>, vector<8x24xf32>, vector<384x24xf32> -> vector<384x24xf32>
    %67 = arith.addf %61, %66 : vector<384x24xf32>
    %68 = vector.extract_strided_slice %67 {offsets = [0, 0], sizes = [384, 8], strides = [1, 1]} : vector<384x24xf32> to vector<384x8xf32>
    %69 = vector.shape_cast %68 : vector<384x8xf32> to vector<16x24x8xf32>
    %70 = vector.extract_strided_slice %69 {offsets = [0, 0, 0], sizes = [16, 16, 8], strides = [1, 1, 1]} : vector<16x24x8xf32> to vector<16x16x8xf32>
    %71 = arith.addf %56, %70 : vector<16x16x8xf32>
    %72 = vector.extract_strided_slice %67 {offsets = [0, 8], sizes = [384, 8], strides = [1, 1]} : vector<384x24xf32> to vector<384x8xf32>
    %73 = vector.shape_cast %72 : vector<384x8xf32> to vector<16x24x8xf32>
    %74 = vector.extract_strided_slice %73 {offsets = [0, 1, 0], sizes = [16, 16, 8], strides = [1, 1, 1]} : vector<16x24x8xf32> to vector<16x16x8xf32>
    %75 = arith.addf %71, %74 : vector<16x16x8xf32>
    %76 = vector.extract_strided_slice %67 {offsets = [0, 16], sizes = [384, 8], strides = [1, 1]} : vector<384x24xf32> to vector<384x8xf32>
    %77 = vector.shape_cast %76 : vector<384x8xf32> to vector<16x24x8xf32>
    %78 = vector.extract_strided_slice %77 {offsets = [0, 2, 0], sizes = [16, 16, 8], strides = [1, 1, 1]} : vector<16x24x8xf32> to vector<16x16x8xf32>
    %79 = arith.addf %75, %78 : vector<16x16x8xf32>
    %80 = vector.shape_cast %10 : vector<1x8xf32> to vector<1x1x8xf32>
    %81 = vector.broadcast %80 : vector<1x1x8xf32> to vector<16x16x8xf32>
    %82 = arith.mulf %79, %81 : vector<16x16x8xf32>
    %83 = vector.shape_cast %11 : vector<1x8xf32> to vector<1x1x8xf32>
    %84 = vector.broadcast %83 : vector<1x1x8xf32> to vector<16x16x8xf32>
    %85 = arith.addf %82, %84 : vector<16x16x8xf32>
    %cst_64 = arith.constant 0.000000e+00 : f32
    %86 = vector.broadcast %cst_64 : f32 to vector<16x16x8xf32>
    %87 = arith.maximumf %85, %86 : vector<16x16x8xf32>
    %cst_65 = arith.constant 0.000000e+00 : f32
    %88 = vector.broadcast %cst_65 : f32 to vector<18x24x8xf32>
    %c0_66 = arith.constant 0 : index
    %c0_67 = arith.constant 0 : index
    %c0_68 = arith.constant 0 : index
    %89 = vector.load %arg15[%c0_66, %c0_67, %c0_68] : memref<18x24x8xf32, #tpu.memory_space<vmem>>, vector<18x24x8xf32>
    tpu.vector_store %arg15[%c0_66, %c0_67, %c0_68], %88 {strides = array<i32>} : memref<18x24x8xf32, #tpu.memory_space<vmem>>, vector<18x24x8xf32>,
    %c1_69 = arith.constant 1 : index
    %c1_70 = arith.constant 1 : index
    %c0_71 = arith.constant 0 : index
    %90 = vector.load %arg15[%c1_69, %c1_70, %c0_71] : memref<18x24x8xf32, #tpu.memory_space<vmem>>, vector<16x16x8xf32>
    tpu.vector_store %arg15[%c1_69, %c1_70, %c0_71], %87 {strides = array<i32>} : memref<18x24x8xf32, #tpu.memory_space<vmem>>, vector<16x16x8xf32>,
    %c0_72 = arith.constant 0 : index
    %c0_73 = arith.constant 0 : index
    %91 = vector.load %arg8[%c0_72, %c0_73] : memref<1x8xf32, #tpu.memory_space<vmem>>, vector<1x8xf32>
    %c0_74 = arith.constant 0 : index
    %c0_75 = arith.constant 0 : index
    %92 = vector.load %arg9[%c0_74, %c0_75] : memref<1x8xf32, #tpu.memory_space<vmem>>, vector<1x8xf32>
    %c0_76 = arith.constant 0 : index
    %c0_77 = arith.constant 0 : index
    %c0_78 = arith.constant 0 : index
    %93 = vector.load %arg15[%c0_76, %c0_77, %c0_78] : memref<18x24x8xf32, #tpu.memory_space<vmem>>, vector<16x24x8xf32>
    %94 = vector.shape_cast %93 : vector<16x24x8xf32> to vector<384x8xf32>
    %c0_79 = arith.constant 0 : index
    %c0_80 = arith.constant 0 : index
    %c0_81 = arith.constant 0 : index
    %95 = vector.load %arg7[%c0_79, %c0_80, %c0_81] : memref<3x8x24xf32, #tpu.memory_space<vmem>>, vector<1x8x24xf32>
    %96 = vector.shape_cast %95 : vector<1x8x24xf32> to vector<8x24xf32>
    %cst_82 = arith.constant dense<0.000000e+00> : vector<384x24xf32>
    %97 = tpu.matmul %94, %96, %cst_82 {dimension_numbers = #tpu.dot_dimension_numbers<[1], [0], [0], [1], [0, 0, 1, 1], [], []>} : vector<384x8xf32>, vector<8x24xf32>, vector<384x24xf32> -> vector<384x24xf32>
    %98 = vector.extract_strided_slice %97 {offsets = [0, 0], sizes = [384, 8], strides = [1, 1]} : vector<384x24xf32> to vector<384x8xf32>
    %99 = vector.shape_cast %98 : vector<384x8xf32> to vector<16x24x8xf32>
    %100 = vector.extract_strided_slice %99 {offsets = [0, 0, 0], sizes = [16, 16, 8], strides = [1, 1, 1]} : vector<16x24x8xf32> to vector<16x16x8xf32>
    %101 = vector.extract_strided_slice %97 {offsets = [0, 8], sizes = [384, 8], strides = [1, 1]} : vector<384x24xf32> to vector<384x8xf32>
    %102 = vector.shape_cast %101 : vector<384x8xf32> to vector<16x24x8xf32>
    %103 = vector.extract_strided_slice %102 {offsets = [0, 1, 0], sizes = [16, 16, 8], strides = [1, 1, 1]} : vector<16x24x8xf32> to vector<16x16x8xf32>
    %104 = arith.addf %100, %103 : vector<16x16x8xf32>
    %105 = vector.extract_strided_slice %97 {offsets = [0, 16], sizes = [384, 8], strides = [1, 1]} : vector<384x24xf32> to vector<384x8xf32>
    %106 = vector.shape_cast %105 : vector<384x8xf32> to vector<16x24x8xf32>
    %107 = vector.extract_strided_slice %106 {offsets = [0, 2, 0], sizes = [16, 16, 8], strides = [1, 1, 1]} : vector<16x24x8xf32> to vector<16x16x8xf32>
    %108 = arith.addf %104, %107 : vector<16x16x8xf32>
    %c1_83 = arith.constant 1 : index
    %c0_84 = arith.constant 0 : index
    %c0_85 = arith.constant 0 : index
    %109 = vector.load %arg15[%c1_83, %c0_84, %c0_85] : memref<18x24x8xf32, #tpu.memory_space<vmem>>, vector<16x24x8xf32>
    %110 = vector.shape_cast %109 : vector<16x24x8xf32> to vector<384x8xf32>
    %c1_86 = arith.constant 1 : index
    %c0_87 = arith.constant 0 : index
    %c0_88 = arith.constant 0 : index
    %111 = vector.load %arg7[%c1_86, %c0_87, %c0_88] : memref<3x8x24xf32, #tpu.memory_space<vmem>>, vector<1x8x24xf32>
    %112 = vector.shape_cast %111 : vector<1x8x24xf32> to vector<8x24xf32>
    %cst_89 = arith.constant dense<0.000000e+00> : vector<384x24xf32>
    %113 = tpu.matmul %110, %112, %cst_89 {dimension_numbers = #tpu.dot_dimension_numbers<[1], [0], [0], [1], [0, 0, 1, 1], [], []>} : vector<384x8xf32>, vector<8x24xf32>, vector<384x24xf32> -> vector<384x24xf32>
    %114 = vector.extract_strided_slice %113 {offsets = [0, 0], sizes = [384, 8], strides = [1, 1]} : vector<384x24xf32> to vector<384x8xf32>
    %115 = vector.shape_cast %114 : vector<384x8xf32> to vector<16x24x8xf32>
    %116 = vector.extract_strided_slice %115 {offsets = [0, 0, 0], sizes = [16, 16, 8], strides = [1, 1, 1]} : vector<16x24x8xf32> to vector<16x16x8xf32>
    %117 = arith.addf %108, %116 : vector<16x16x8xf32>
    %118 = vector.extract_strided_slice %113 {offsets = [0, 8], sizes = [384, 8], strides = [1, 1]} : vector<384x24xf32> to vector<384x8xf32>
    %119 = vector.shape_cast %118 : vector<384x8xf32> to vector<16x24x8xf32>
    %120 = vector.extract_strided_slice %119 {offsets = [0, 1, 0], sizes = [16, 16, 8], strides = [1, 1, 1]} : vector<16x24x8xf32> to vector<16x16x8xf32>
    %121 = arith.addf %117, %120 : vector<16x16x8xf32>
    %122 = vector.extract_strided_slice %113 {offsets = [0, 16], sizes = [384, 8], strides = [1, 1]} : vector<384x24xf32> to vector<384x8xf32>
    %123 = vector.shape_cast %122 : vector<384x8xf32> to vector<16x24x8xf32>
    %124 = vector.extract_strided_slice %123 {offsets = [0, 2, 0], sizes = [16, 16, 8], strides = [1, 1, 1]} : vector<16x24x8xf32> to vector<16x16x8xf32>
    %125 = arith.addf %121, %124 : vector<16x16x8xf32>
    %c2_90 = arith.constant 2 : index
    %c0_91 = arith.constant 0 : index
    %c0_92 = arith.constant 0 : index
    %126 = vector.load %arg15[%c2_90, %c0_91, %c0_92] : memref<18x24x8xf32, #tpu.memory_space<vmem>>, vector<16x24x8xf32>
    %127 = vector.shape_cast %126 : vector<16x24x8xf32> to vector<384x8xf32>
    %c2_93 = arith.constant 2 : index
    %c0_94 = arith.constant 0 : index
    %c0_95 = arith.constant 0 : index
    %128 = vector.load %arg7[%c2_93, %c0_94, %c0_95] : memref<3x8x24xf32, #tpu.memory_space<vmem>>, vector<1x8x24xf32>
    %129 = vector.shape_cast %128 : vector<1x8x24xf32> to vector<8x24xf32>
    %cst_96 = arith.constant dense<0.000000e+00> : vector<384x24xf32>
    %130 = tpu.matmul %127, %129, %cst_96 {dimension_numbers = #tpu.dot_dimension_numbers<[1], [0], [0], [1], [0, 0, 1, 1], [], []>} : vector<384x8xf32>, vector<8x24xf32>, vector<384x24xf32> -> vector<384x24xf32>
    %131 = vector.extract_strided_slice %130 {offsets = [0, 0], sizes = [384, 8], strides = [1, 1]} : vector<384x24xf32> to vector<384x8xf32>
    %132 = vector.shape_cast %131 : vector<384x8xf32> to vector<16x24x8xf32>
    %133 = vector.extract_strided_slice %132 {offsets = [0, 0, 0], sizes = [16, 16, 8], strides = [1, 1, 1]} : vector<16x24x8xf32> to vector<16x16x8xf32>
    %134 = arith.addf %125, %133 : vector<16x16x8xf32>
    %135 = vector.extract_strided_slice %130 {offsets = [0, 8], sizes = [384, 8], strides = [1, 1]} : vector<384x24xf32> to vector<384x8xf32>
    %136 = vector.shape_cast %135 : vector<384x8xf32> to vector<16x24x8xf32>
    %137 = vector.extract_strided_slice %136 {offsets = [0, 1, 0], sizes = [16, 16, 8], strides = [1, 1, 1]} : vector<16x24x8xf32> to vector<16x16x8xf32>
    %138 = arith.addf %134, %137 : vector<16x16x8xf32>
    %139 = vector.extract_strided_slice %130 {offsets = [0, 16], sizes = [384, 8], strides = [1, 1]} : vector<384x24xf32> to vector<384x8xf32>
    %140 = vector.shape_cast %139 : vector<384x8xf32> to vector<16x24x8xf32>
    %141 = vector.extract_strided_slice %140 {offsets = [0, 2, 0], sizes = [16, 16, 8], strides = [1, 1, 1]} : vector<16x24x8xf32> to vector<16x16x8xf32>
    %142 = arith.addf %138, %141 : vector<16x16x8xf32>
    %143 = vector.shape_cast %91 : vector<1x8xf32> to vector<1x1x8xf32>
    %144 = vector.broadcast %143 : vector<1x1x8xf32> to vector<16x16x8xf32>
    %145 = arith.mulf %142, %144 : vector<16x16x8xf32>
    %146 = vector.shape_cast %92 : vector<1x8xf32> to vector<1x1x8xf32>
    %147 = vector.broadcast %146 : vector<1x1x8xf32> to vector<16x16x8xf32>
    %148 = arith.addf %145, %147 : vector<16x16x8xf32>
    %cst_97 = arith.constant 0.000000e+00 : f32
    %149 = vector.broadcast %cst_97 : f32 to vector<16x16x8xf32>
    %150 = arith.maximumf %148, %149 : vector<16x16x8xf32>
    %151 = vector.shape_cast %150 : vector<16x16x8xf32> to vector<256x8xf32>
    %cst_98 = arith.constant dense<0.000000e+00> : vector<8xf32>
    %152 = vector.multi_reduction <add>, %151, %cst_98 [0] : vector<256x8xf32> to vector<8xf32>
    %153 = vector.shape_cast %152 : vector<8xf32> to vector<1x8xf32>
    %cst_99 = arith.constant 2.560000e+02 : f32
    %154 = vector.broadcast %cst_99 : f32 to vector<1x8xf32>
    %155 = arith.divf %153, %154 : vector<1x8xf32>
    %c0_100 = arith.constant 0 : index
    %c0_101 = arith.constant 0 : index
    %156 = vector.load %arg10[%c0_100, %c0_101] : memref<8x2xf32, #tpu.memory_space<vmem>>, vector<8x2xf32>
    %cst_102 = arith.constant dense<0.000000e+00> : vector<1x2xf32>
    %157 = tpu.matmul %155, %156, %cst_102 {dimension_numbers = #tpu.dot_dimension_numbers<[1], [0], [0], [1], [0, 0, 1, 1], [], []>} : vector<1x8xf32>, vector<8x2xf32>, vector<1x2xf32> -> vector<1x2xf32>
    %cst_103 = arith.constant 0.000000e+00 : f32
    %158 = vector.broadcast %cst_103 : f32 to vector<1x2xf32>
    %159 = arith.maximumf %157, %158 : vector<1x2xf32>
    %c0_104 = arith.constant 0 : index
    %c0_105 = arith.constant 0 : index
    %160 = vector.load %arg11[%c0_104, %c0_105] : memref<2x8xf32, #tpu.memory_space<vmem>>, vector<2x8xf32>
    %cst_106 = arith.constant dense<0.000000e+00> : vector<1x8xf32>
    %161 = tpu.matmul %159, %160, %cst_106 {dimension_numbers = #tpu.dot_dimension_numbers<[1], [0], [0], [1], [0, 0, 1, 1], [], []>} : vector<1x2xf32>, vector<2x8xf32>, vector<1x8xf32> -> vector<1x8xf32>
    %162 = arith.negf %161 : vector<1x8xf32>
    %163 = math.exp %162 : vector<1x8xf32>
    %cst_107 = arith.constant 1.000000e+00 : f32
    %164 = vector.broadcast %cst_107 : f32 to vector<1x8xf32>
    %165 = arith.addf %164, %163 : vector<1x8xf32>
    %166 = arith.divf %164, %165 : vector<1x8xf32>
    %167 = vector.shape_cast %166 : vector<1x8xf32> to vector<1x1x8xf32>
    %168 = vector.broadcast %167 : vector<1x1x8xf32> to vector<16x16x8xf32>
    %169 = arith.mulf %150, %168 : vector<16x16x8xf32>
    %170 = vector.shape_cast %169 : vector<16x16x8xf32> to vector<1x16x16x8xf32>
    %c0_108 = arith.constant 0 : index
    %c0_109 = arith.constant 0 : index
    %c0_110 = arith.constant 0 : index
    %c0_111 = arith.constant 0 : index
    %171 = vector.load %arg12[%c0_108, %c0_109, %c0_110, %c0_111] : memref<1x16x16x8xf32, #tpu.memory_space<vmem>>, vector<1x16x16x8xf32>
    tpu.vector_store %arg12[%c0_108, %c0_109, %c0_110, %c0_111], %170 {strides = array<i32>} : memref<1x16x16x8xf32, #tpu.memory_space<vmem>>, vector<1x16x16x8xf32>,
    return
  }
  func.func @transform_0(%arg0: i32) -> (i32, i32, i32, i32) {
    %c0_i32 = arith.constant 0 : i32
    %c0_i32_0 = arith.constant 0 : i32
    %c0_i32_1 = arith.constant 0 : i32
    %c0_i32_2 = arith.constant 0 : i32
    return %arg0, %c0_i32, %c0_i32_0, %c0_i32_1 : i32, i32, i32, i32
  }
  func.func @transform_1(%arg0: i32) -> (i32, i32, i32, i32) {
    %c0_i32 = arith.constant 0 : i32
    %c0_i32_0 = arith.constant 0 : i32
    %c0_i32_1 = arith.constant 0 : i32
    %c0_i32_2 = arith.constant 0 : i32
    return %arg0, %c0_i32, %c0_i32_0, %c0_i32_1 : i32, i32, i32, i32
  }
  func.func @transform_2(%arg0: i32) -> (i32, i32, i32) {
    %c0_i32 = arith.constant 0 : i32
    %c0_i32_0 = arith.constant 0 : i32
    %c0_i32_1 = arith.constant 0 : i32
    %c0_i32_2 = arith.constant 0 : i32
    return %c0_i32, %c0_i32_0, %c0_i32_1 : i32, i32, i32
  }
  func.func @transform_3(%arg0: i32) -> (i32, i32, i32) {
    %c0_i32 = arith.constant 0 : i32
    %c0_i32_0 = arith.constant 0 : i32
    %c0_i32_1 = arith.constant 0 : i32
    %c0_i32_2 = arith.constant 0 : i32
    return %c0_i32, %c0_i32_0, %c0_i32_1 : i32, i32, i32
  }
  func.func @transform_4(%arg0: i32) -> (i32, i32) {
    %c0_i32 = arith.constant 0 : i32
    %c0_i32_0 = arith.constant 0 : i32
    %c0_i32_1 = arith.constant 0 : i32
    return %c0_i32, %c0_i32_0 : i32, i32
  }
  func.func @transform_5(%arg0: i32) -> (i32, i32) {
    %c0_i32 = arith.constant 0 : i32
    %c0_i32_0 = arith.constant 0 : i32
    %c0_i32_1 = arith.constant 0 : i32
    return %c0_i32, %c0_i32_0 : i32, i32
  }
  func.func @transform_6(%arg0: i32) -> (i32, i32, i32) {
    %c0_i32 = arith.constant 0 : i32
    %c0_i32_0 = arith.constant 0 : i32
    %c0_i32_1 = arith.constant 0 : i32
    %c0_i32_2 = arith.constant 0 : i32
    return %c0_i32, %c0_i32_0, %c0_i32_1 : i32, i32, i32
  }
  func.func @transform_7(%arg0: i32) -> (i32, i32) {
    %c0_i32 = arith.constant 0 : i32
    %c0_i32_0 = arith.constant 0 : i32
    %c0_i32_1 = arith.constant 0 : i32
    return %c0_i32, %c0_i32_0 : i32, i32
  }
  func.func @transform_8(%arg0: i32) -> (i32, i32) {
    %c0_i32 = arith.constant 0 : i32
    %c0_i32_0 = arith.constant 0 : i32
    %c0_i32_1 = arith.constant 0 : i32
    return %c0_i32, %c0_i32_0 : i32, i32
  }
  func.func @transform_9(%arg0: i32) -> (i32, i32) {
    %c0_i32 = arith.constant 0 : i32
    %c0_i32_0 = arith.constant 0 : i32
    %c0_i32_1 = arith.constant 0 : i32
    return %c0_i32, %c0_i32_0 : i32, i32
  }
  func.func @transform_10(%arg0: i32) -> (i32, i32) {
    %c0_i32 = arith.constant 0 : i32
    %c0_i32_0 = arith.constant 0 : i32
    %c0_i32_1 = arith.constant 0 : i32
    return %c0_i32, %c0_i32_0 : i32, i32
  }
  func.func @transform_11(%arg0: i32) -> (i32, i32, i32, i32) {
    %c0_i32 = arith.constant 0 : i32
    %c0_i32_0 = arith.constant 0 : i32
    %c0_i32_1 = arith.constant 0 : i32
    %c0_i32_2 = arith.constant 0 : i32
    return %arg0, %c0_i32, %c0_i32_0, %c0_i32_1 : i32, i32, i32, i32
  }
}

</mosaic_0001>

<bundles_post_ra>
// kernel: tile.9
= control target key start
LH: loop header
LB: loop body
LE: loop exit
PB: predicated region body
PF: predicated region fallthrough
CT: control target
= control target key end

     0   :  { %vm7_vm0 = vcmask 64512   ;;  %vm13_vm1 = vcmask 130112   ;;  %s39_s0 = inlined_call_operand.vmem [shape: f32[2,8], index: 0, kind: input, shape index: {}]   ;;  %s40_s1 = inlined_call_operand.vmem [shape: f32[1,16], index: 1, kind: output, shape index: {}]  }
   0x1   :  { %v4_v0 = vld [vmem:[%s39_s0] sm:$0x3]  ;;  %s22_s0 = smov 8  }
   0x2   :  { %5 = vst [vmem:[#allocation1] sm:$0x3] %v4_v0 }
   0x9   :  { %v10_v1 = vld [vmem:[#allocation1 + $0x1] sm:$0x1]   ;;  %v6_v2 = vld [vmem:[#allocation1] sm:$0x1]  }
   0xa   :  { %11 = vrot.lane.b32.xlu0 %v10_v1, %s22_s0  ;;  %8 = vst.msk [vmem:[#allocation0] sm:$0x1] %vm7_vm0, %v6_v2  }
  0x7c   :  { %v12_v3 = vpop.permute.xlu0 %11  }
  0x7d   :  { %14 = vst.msk [vmem:[#allocation0] sm:$0x1] %vm13_vm1, %v12_v3  }
  0x84   :  { %v18_v4 = vld [vmem:[#allocation0] sm:$0x1] }
  0x85   :  { %20 = vst [vmem:[%s40_s1] sm:$0x1] %v18_v4 }

// kernel: tile.8
= control target key start
LH: loop header
LB: loop body
LE: loop exit
PB: predicated region body
PF: predicated region fallthrough
CT: control target
= control target key end

     0   :  { %2 = vsyncpa [#allocation1], 0  ;;  %s44_s6 = smov [#allocation0]   ;;  %s70_s0 = inlined_call_operand.hbm [shape: f32[8], index: 0, kind: input, shape index: {}]   ;;  %s71_s1 = inlined_call_operand.vmem [shape: f32[2,8], index: 1, kind: output, shape index: {}]  }
   0x1   :  { %s9_s7 = sshll.u32 %s44_s6, 4  ;;  %s20_s10 = scalar_lea.hbm %s70_s0, 16  ;;  %s10_s7 = int_to_ptr.vmem [resolvable:$true] %s9_s7 }
   0x2   :  { %p21_p0 = scmp.ne.s32.totalorder %s70_s0, %s20_s10  ;;  %p24_p1 = scmp.lt.u32.totalorder %s20_s10, %s70_s0 }
   0x4   :  { %p26_p2 = pnand %p24_p1, %p21_p0 }
   0x6   :  { %29 = shalt.err (!%p26_p2)
}
   0x7   :  { %s30_s15 = scalar_lea.vmem %s10_s7, 16  ;;  %s34_s16 = scalar_lea.vmem %s10_s7, 32 }
   0x8   :  { %p31_p3 = scmp.ne.s32.totalorder %s10_s7, %s30_s15  ;;  %p35_p4 = scmp.lt.s32.totalorder %s10_s7, %s10_s7 }
   0x9   :  { %p36_p5 = scmp.lt.s32.totalorder %s34_s16, %s30_s15 }
   0xb   :  { %p37_p6 = por %p36_p5, %p35_p4 }
   0xd   :  { %p38_p7 = pnand %p37_p6, %p31_p3 }
   0xf   :  { %41 = shalt.err (!%p38_p7)
}
  0x10   :  { %12 = dma.hbm_to_vmem [thread:$0]  %s70_s0, 16, %s10_s7, [#allocation1]  }
  0x11   :  { %42 = dma.done.wait [#allocation1], 16  }
  0x12   :  { %43 = vsyncadd [#allocation1], 4294967280  ;;  %v16_v0 = vld [vmem:[#allocation0] ss:$0 sm:$0xff] }
  0x13   :  { %17 = vst [vmem:[%s71_s1] sm:$0x3] %v16_v0 }
  0x14   :  { %18 = vsyncpa [#allocation1], 1 }

// kernel: up_block_a_forward.2
= control target key start
LH: loop header
LB: loop body
LE: loop exit
PB: predicated region body
PF: predicated region fallthrough
CT: control target
= control target key end

     0   :  { %s689_s12 = smov 0   ;;  %s691_s13 = smov 0   ;;  %s857_s0 = inlined_call_operand.vmem [shape: f32[128,8], index: 0, kind: input, shape index: {}]   ;;  %s858_s1 = inlined_call_operand.vmem [shape: f32[2,8,16], index: 1, kind: input, shape index: {}]   ;;  %s859_s2 = inlined_call_operand.vmem [shape: f32[1,16], index: 2, kind: input, shape index: {}]   ;;  %s860_s3 = inlined_call_operand.vmem [shape: f32[2,8,2,8,16], index: 3, kind: output, shape index: {}]  }
   0x1   :  { %s693_s14 = smov 0  }
   0x2 LB: > { %s702_s15 = sadd.s32 4294967295, %s667_s14   ;;  %s704_s16 = sadd.s32 1, %s667_s14   ;;  %s667_s14 = sphi %s693_s14, %s864_s14   ;;  %s663_s13 = sphi %s691_s13, %s863_s13   ;;  %s659_s12 = sphi %s689_s12, %s862_s12  }
   0x3   : > { %s85_s17 = ssub.s32 %s667_s14, %s704_s16  ;;  %s88_s18 = sadd.s32 1, %s663_s13 }
   0x4   : > { %p86_p0 = scmp.eq.s32.totalorder %s85_s17, 0  ;;  %p98_p1 = scmp.ne.s32.totalorder %s663_s13, %s659_s12 }
   0x5   : > { %p99_p2 = scmp.eq.s32.totalorder %s702_s15, 1  ;;  %p552_p3 = scmp.ge.s32.totalorder %s667_s14, 1 }
   0x6   : > { %s712_s19 = scalar_select %p86_p0, %s663_s13, %s88_s18  }
   0x7   : > { %p714_p4 = por %p99_p2, %p98_p1  ;;  %p136_p5 = scmp.lt.s32.totalorder %s667_s14, 3 }
   0x9   : > { %p137_p6 = pnand %p552_p3, %p136_p5 }
   0xa   : > { %p158_p7 = scmp.lt.s32.totalorder (!%p137_p6), %s702_s15, 1  ;;  %v162_v0 = vld [vmem:[%s857_s0] sm:$0xff] (!%p137_p6)  ;;  %vm186_vm0 = vcmask (!%p137_p6), 64512   ;;  %v163_v3 = vld [vmem:[%s857_s0 + $0x8] sm:$0xff] (!%p137_p6)  ;;  %v164_v5 = vld [vmem:[%s857_s0 + $0x10] sm:$0xff] (!%p137_p6)  ;;  %s155_s10 = sand.u32 (!%p137_p6), 1, %s659_s12  }
   0xb   : > { %140 = sbr.rel (%p137_p6) target bundleno = 262 (0x106), region = 32  ;;  %v170_v1 = vld [vmem:[%s857_s0 + $0x40] sm:$0xff] (!%p137_p6)  ;;  %595 = vmatprep.mubr.msk.f32.mxu0 (!%p137_p6), %vm186_vm0, %v162_v0  ;;  %v171_v4 = vld [vmem:[%s857_s0 + $0x48] sm:$0xff] (!%p137_p6)  ;;  %v172_v6 = vld [vmem:[%s857_s0 + $0x50] sm:$0xff] (!%p137_p6)  ;;  %s553_s11 = sshll.u32 (!%p137_p6), %s155_s10, 7  ;;  %vm380_vm1 = vcmask (!%p137_p6), 130048  }
   0xc   : > { %607 = vmatprep.mubr.msk.f32.mxu1 (!%p137_p6), %vm186_vm0, %v170_v1  ;;  %v165_v7 = vld [vmem:[%s857_s0 + $0x18] sm:$0xff] (!%p137_p6)  ;;  %v166_v9 = vld [vmem:[%s857_s0 + $0x20] sm:$0xff] (!%p137_p6)  ;;  %v167_v11 = vld [vmem:[%s857_s0 + $0x28] sm:$0xff] (!%p137_p6)  ;;  %s791_s18 = scalar_lea.vmem (!%p137_p6), [#allocation2], %s553_s11 }
   0xd   : > { %v173_v8 = vld [vmem:[%s857_s0 + $0x58] sm:$0xff] (!%p137_p6)  ;;  %v174_v10 = vld [vmem:[%s857_s0 + $0x60] sm:$0xff] (!%p137_p6)  ;;  %v175_v12 = vld [vmem:[%s857_s0 + $0x68] sm:$0xff] (!%p137_p6) }
   0xe   : > { %v168_v13 = vld [vmem:[%s857_s0 + $0x30] sm:$0xff] (!%p137_p6)  ;;  %v169_v15 = vld [vmem:[%s857_s0 + $0x38] sm:$0xff] (!%p137_p6)  ;;  %v555_v17 = vld [vmem:[%s859_s2] ss:$0 sm:$0xff] (!%p137_p6) }
   0xf   : > { %v176_v14 = vld [vmem:[%s857_s0 + $0x70] sm:$0xff] (!%p137_p6)  ;;  %v177_v16 = vld [vmem:[%s857_s0 + $0x78] sm:$0xff] (!%p137_p6) }
  0x12   : > { %s159_s25 = scalar_select %p158_p7, %s702_s15, 1 }
  0x13   : > { %s573_s12 = sshll.u32 (%p714_p4), %s702_s15, 3 }
  0x14   : > { %s554_s26 = sshll.u32 %s159_s25, 3  ;;  %s405_s23 = scalar_lea.vmem (%p714_p4), %s860_s3, %s573_s12 }
  0x15   : > { %s161_s29 = scalar_lea.vmem %s858_s1, %s554_s26 }
  0x16   : > { %v178_v2 = vld [vmem:[%s161_s29] sm:$0xff] }
  0x17   : > { %593 = vmatprep.subr.mxu0 %v178_v2  ;;  %619 = vmatprep.subr.mxu1 %v178_v2 }
  0x18   : > { %594 = vmatpush3.msra.mxu0 %v178_v2  ;;  %620 = vmatpush3.msra.mxu1 %v178_v2 }
  0x19   : > { %596 = vmatmul.mubr.msk.f32.vlgmr.msra.gmra.mrb[0].mxu0 %vm186_vm0, %v163_v3  ;;  %608 = vmatmul.mubr.msk.f32.vlgmr.msra.gmra.mrb[0].mxu1 %vm186_vm0, %v171_v4 }
  0x1a   : > { %598 = vmatprep.mubr.msk.f32.mxu0 %vm186_vm0, %v164_v5  ;;  %610 = vmatprep.mubr.msk.f32.mxu1 %vm186_vm0, %v172_v6 }
  0x1d   : > { %599 = vmatmul.mubr.msk.f32.gmra.mrb[2].mxu0 %vm186_vm0, %v165_v7  ;;  %611 = vmatmul.mubr.msk.f32.gmra.mrb[2].mxu1 %vm186_vm0, %v173_v8 }
  0x1e   : > { %601 = vmatprep.mubr.msk.f32.mxu0 %vm186_vm0, %v166_v9  ;;  %613 = vmatprep.mubr.msk.f32.mxu1 %vm186_vm0, %v174_v10 }
  0x21   : > { %602 = vmatmul.mubr.msk.f32.gmra.mrb[4].mxu0 %vm186_vm0, %v167_v11  ;;  %614 = vmatmul.mubr.msk.f32.gmra.mrb[4].mxu1 %vm186_vm0, %v175_v12 }
  0x22   : > { %604 = vmatprep.mubr.msk.f32.mxu0 %vm186_vm0, %v168_v13  ;;  %616 = vmatprep.mubr.msk.f32.mxu1 %vm186_vm0, %v176_v14 }
  0x25   : > { %605 = vmatmul.mubr.msk.f32.gmra.mrb[6].mxu0 %vm186_vm0, %v169_v15  ;;  %617 = vmatmul.mubr.msk.f32.gmra.mrb[6].mxu1 %vm186_vm0, %v177_v16 }
  0xec   : > { %v597_v18 = vpop.f32.mrb[0].mxu0  ;;  %v609_v19 = vpop.f32.mrb[0].mxu1 }
  0xed   : > { %v307_v20 = vadd.f32 %v597_v18, %v555_v17  ;;  %v347_v21 = vadd.f32 %v609_v19, %v555_v17  ;;  %v301_v22 = vpop.f32.mrb[1].mxu0  ;;  %v341_v23 = vpop.f32.mrb[1].mxu1 }
  0xee   : > { %v302_v24 = vadd.f32 %v555_v17, %v301_v22  ;;  %v342_v25 = vadd.f32 %v555_v17, %v341_v23 }
  0xef   : > { %382 = vst.msk [vmem:[%s791_s18 + $0x8] sm:$0xff] %vm380_vm1, %v307_v20  ;;  %390 = vst.msk [vmem:[%s791_s18 + $0x48] sm:$0xff] %vm380_vm1, %v347_v21 }
  0xf0   : > { %381 = vst.msk [vmem:[%s791_s18] sm:$0xff] %vm380_vm1, %v302_v24  ;;  %389 = vst.msk [vmem:[%s791_s18 + $0x40] sm:$0xff] %vm380_vm1, %v342_v25  ;;  %v600_v26 = vpop.f32.mrb[2].mxu0  ;;  %v612_v27 = vpop.f32.mrb[2].mxu1 }
  0xf1   : > { %v317_v28 = vadd.f32 %v600_v26, %v555_v17  ;;  %v357_v29 = vadd.f32 %v612_v27, %v555_v17  ;;  %v311_v30 = vpop.f32.mrb[3].mxu0  ;;  %v351_v31 = vpop.f32.mrb[3].mxu1 }
  0xf2   : > { %v312_v32 = vadd.f32 %v555_v17, %v311_v30  ;;  %v352_v33 = vadd.f32 %v555_v17, %v351_v31 }
  0xf3   : > { %384 = vst.msk [vmem:[%s791_s18 + $0x18] sm:$0xff] %vm380_vm1, %v317_v28  ;;  %392 = vst.msk [vmem:[%s791_s18 + $0x58] sm:$0xff] %vm380_vm1, %v357_v29 }
  0xf4   : > { %383 = vst.msk [vmem:[%s791_s18 + $0x10] sm:$0xff] %vm380_vm1, %v312_v32  ;;  %391 = vst.msk [vmem:[%s791_s18 + $0x50] sm:$0xff] %vm380_vm1, %v352_v33  ;;  %v603_v34 = vpop.f32.mrb[4].mxu0  ;;  %v615_v35 = vpop.f32.mrb[4].mxu1 }
  0xf5   : > { %v327_v36 = vadd.f32 %v603_v34, %v555_v17  ;;  %v367_v37 = vadd.f32 %v615_v35, %v555_v17  ;;  %v321_v38 = vpop.f32.mrb[5].mxu0  ;;  %v361_v39 = vpop.f32.mrb[5].mxu1 }
  0xf6   : > { %v322_v40 = vadd.f32 %v555_v17, %v321_v38  ;;  %v362_v41 = vadd.f32 %v555_v17, %v361_v39  ;;  %403 = sbr.rel (!%p714_p4) target bundleno = 262 (0x106), region = 36  ;;  %v465_v51 = vld [vmem:[%s791_s18 + $0x8] sm:$0xff] (%p714_p4) }
  0xf7   : > { %386 = vst.msk [vmem:[%s791_s18 + $0x28] sm:$0xff] %vm380_vm1, %v327_v36  ;;  %394 = vst.msk [vmem:[%s791_s18 + $0x68] sm:$0xff] %vm380_vm1, %v367_v37  ;;  %v463_v50 = vld [vmem:[%s791_s18] sm:$0xff] (%p714_p4)  ;;  %v481_v59 = vld [vmem:[%s791_s18 + $0x48] sm:$0xff] (%p714_p4) }
  0xf8   : > { %385 = vst.msk [vmem:[%s791_s18 + $0x20] sm:$0xff] %vm380_vm1, %v322_v40  ;;  %393 = vst.msk [vmem:[%s791_s18 + $0x60] sm:$0xff] %vm380_vm1, %v362_v41  ;;  %v606_v42 = vpop.f32.mrb[6].mxu0  ;;  %v618_v43 = vpop.f32.mrb[6].mxu1  ;;  %v479_v58 = vld [vmem:[%s791_s18 + $0x40] sm:$0xff] (%p714_p4) }
  0xf9   : > { %v337_v44 = vadd.f32 %v606_v42, %v555_v17  ;;  %v377_v45 = vadd.f32 %v618_v43, %v555_v17  ;;  %v331_v46 = vpop.f32.mrb[7].mxu0  ;;  %v371_v47 = vpop.f32.mrb[7].mxu1  ;;  %464 = vst [vmem:[%s405_s23] sm:$0xff] (%p714_p4), %v463_v50  ;;  %466 = vst [vmem:[%s405_s23 + $0x10] sm:$0xff] (%p714_p4), %v465_v51 }
  0xfa   : > { %v332_v48 = vadd.f32 %v555_v17, %v331_v46  ;;  %v372_v49 = vadd.f32 %v555_v17, %v371_v47  ;;  %v469_v53 = vld [vmem:[%s791_s18 + $0x18] sm:$0xff] (%p714_p4)  ;;  %480 = vst [vmem:[%s405_s23 + $0x80] sm:$0xff] (%p714_p4), %v479_v58  ;;  %482 = vst [vmem:[%s405_s23 + $0x90] sm:$0xff] (%p714_p4), %v481_v59 }
  0xfb   : > { %388 = vst.msk [vmem:[%s791_s18 + $0x38] sm:$0xff] %vm380_vm1, %v337_v44  ;;  %396 = vst.msk [vmem:[%s791_s18 + $0x78] sm:$0xff] %vm380_vm1, %v377_v45  ;;  %v467_v52 = vld [vmem:[%s791_s18 + $0x10] sm:$0xff] (%p714_p4)  ;;  %v485_v61 = vld [vmem:[%s791_s18 + $0x58] sm:$0xff] (%p714_p4) }
  0xfc   : > { %387 = vst.msk [vmem:[%s791_s18 + $0x30] sm:$0xff] %vm380_vm1, %v332_v48  ;;  %395 = vst.msk [vmem:[%s791_s18 + $0x70] sm:$0xff] %vm380_vm1, %v372_v49  ;;  %v483_v60 = vld [vmem:[%s791_s18 + $0x50] sm:$0xff] (%p714_p4) }
  0xfd   : > { %468 = vst [vmem:[%s405_s23 + $0x20] sm:$0xff] %v467_v52  ;;  %470 = vst [vmem:[%s405_s23 + $0x30] sm:$0xff] %v469_v53 }
  0xfe   : > { %v473_v55 = vld [vmem:[%s791_s18 + $0x28] sm:$0xff]  ;;  %484 = vst [vmem:[%s405_s23 + $0xa0] sm:$0xff] %v483_v60  ;;  %486 = vst [vmem:[%s405_s23 + $0xb0] sm:$0xff] %v485_v61 }
  0xff   : > { %v471_v54 = vld [vmem:[%s791_s18 + $0x20] sm:$0xff]  ;;  %474 = vst [vmem:[%s405_s23 + $0x50] sm:$0xff] %v473_v55  ;;  %v489_v63 = vld [vmem:[%s791_s18 + $0x68] sm:$0xff] }
 0x100   : > { %472 = vst [vmem:[%s405_s23 + $0x40] sm:$0xff] %v471_v54  ;;  %v487_v62 = vld [vmem:[%s791_s18 + $0x60] sm:$0xff]  ;;  %490 = vst [vmem:[%s405_s23 + $0xd0] sm:$0xff] %v489_v63 }
 0x101   : > { %488 = vst [vmem:[%s405_s23 + $0xc0] sm:$0xff] %v487_v62 }
 0x102   : > { %v477_v57 = vld [vmem:[%s791_s18 + $0x38] sm:$0xff] }
 0x103   : > { %v475_v56 = vld [vmem:[%s791_s18 + $0x30] sm:$0xff]  ;;  %478 = vst [vmem:[%s405_s23 + $0x70] sm:$0xff] %v477_v57  ;;  %v493_v1 = vld [vmem:[%s791_s18 + $0x78] sm:$0xff] }
 0x104   : > { %476 = vst [vmem:[%s405_s23 + $0x60] sm:$0xff] %v475_v56  ;;  %v491_v0 = vld [vmem:[%s791_s18 + $0x70] sm:$0xff]  ;;  %494 = vst [vmem:[%s405_s23 + $0xf0] sm:$0xff] %v493_v1 }
 0x105   : > { %492 = vst [vmem:[%s405_s23 + $0xe0] sm:$0xff] %v491_v0 }
 0x106 PF: > { %p10_p8 = scmp.ge.s32.totalorder %s704_s16, 4   ;;  %s862_s12 = smov %s663_s13 }
 0x107   : > { %s863_s13 = smov %s712_s19  ;;  %s864_s14 = smov %s704_s16 }
 0x108   :  { %12 = sbr.rel (!%p10_p8) target bundleno = 2 (0x2), region = 100 }

// kernel: up_block_a_forward.3
= control target key start
LH: loop header
LB: loop body
LE: loop exit
PB: predicated region body
PF: predicated region fallthrough
CT: control target
= control target key end

     0   :  { %s10541_s17 = smov 0   ;;  %s15997_s0 = inlined_call_operand.vmem [shape: f32[2,16,16,8], index: 0, kind: input, shape index: {}]   ;;  %s15998_s1 = inlined_call_operand.vmem [shape: f32[2,16,16,8], index: 1, kind: input, shape index: {}]   ;;  %s15999_s2 = inlined_call_operand.vmem [shape: f32[3,8,24], index: 2, kind: input, shape index: {}]   ;;  %s16000_s3 = inlined_call_operand.vmem [shape: f32[3,8,24], index: 3, kind: input, shape index: {}]   ;;  %s16001_s4 = inlined_call_operand.vmem [shape: f32[1,8], index: 4, kind: input, shape index: {}]   ;;  %s16002_s5 = inlined_call_operand.vmem [shape: f32[1,8], index: 5, kind: input, shape index: {}]   ;;  %s16003_s6 = inlined_call_operand.vmem [shape: f32[3,8,24], index: 6, kind: input, shape index: {}]   ;;  %s16004_s7 = inlined_call_operand.vmem [shape: f32[1,8], index: 7, kind: input, shape index: {}]   ;;  %s16005_s8 = inlined_call_operand.vmem [shape: f32[1,8], index: 8, kind: input, shape index: {}]   ;;  %s16006_s9 = inlined_call_operand.vmem [shape: f32[8,2], index: 9, kind: input, shape index: {}]   ;;  %s16007_s10 = inlined_call_operand.vmem [shape: f32[2,8], index: 10, kind: input, shape index: {}]   ;;  %s16008_s11 = inlined_call_operand.vmem [shape: f32[2,16,16,8], index: 11, kind: output, shape index: {}]  }
   0x1 LB: > { %s8724_s18 = sadd.s32 4294967295, %s10475_s17   ;;  %p8728_p0 = scmp.ge.s32.totalorder %s10475_s17, 1  ;;  %s10475_s17 = sphi %s10541_s17, %s21_s17  }
   0x2   : > { %p347_p1 = scmp.lt.s32.totalorder %s10475_s17, 3 }
   0x4   : > { %p348_p2 = pnand %p8728_p0, %p347_p1 }
   0x6   : > { %351 = sbr.rel (%p348_p2) target bundleno = 1964 (0x7ac), region = 64 }
   0xd   : > { %v10552_v0 = vld [vmem:[%s16000_s3] sm:$0xff]  ;;  %vm407_vm0 = vcmask 64512   ;;  %p10561_p3 = scmp.lt.s32.totalorder %s8724_s18, 1  ;;  %v10568_v2 = vld [vmem:[%s16000_s3 + $0x8] sm:$0xff]  ;;  %v16009_v3 = vmov 0.0   ;;  %v10924_v10 = vld [vmem:[%s16000_s3 + $0x10] sm:$0xff] }
   0xe   : > { %v10557_v1 = vld [vmem:[%s15999_s2] sm:$0xff]  ;;  %9631 = vmatprep.subr.mxu0 %v10552_v0  ;;  %462 = vst.msk [vmem:[#allocation3] sm:$0xff] %vm407_vm0, %v16009_v3  ;;  %408 = vst.msk [vmem:[#allocation2] sm:$0xff] %vm407_vm0, %v16009_v3  ;;  %10307 = vmatprep.subr.mxu1 %v10552_v0  ;;  %v10981_v34 = vld [vmem:[%s15999_s2 + $0x8] sm:$0xff]  ;;  %vm1692_vm1 = vcmask 1046528   ;;  %vm1901_vm2 = vcmask 1045504  }
   0xf   : > { %409 = vst.msk [vmem:[#allocation2 + $0x8] sm:$0xff] %vm407_vm0, %v16009_v3  ;;  %410 = vst.msk [vmem:[#allocation2 + $0x10] sm:$0xff] %vm407_vm0, %v16009_v3  ;;  %9632 = vmatpush3.msra.mxu0 %v10552_v0  ;;  %10308 = vmatpush3.msra.mxu1 %v10552_v0  ;;  %s16868_s18 = smov (!%p10561_p3, %s8724_s18), 1  ;;  %s10478_s21 = smov 120   ;;  %vm10480_vm3 = vmmov 0   ;;  %vm8509_vm4 = vcmask 1041408  }
  0x10   : > { %411 = vst.msk [vmem:[#allocation2 + $0x18] sm:$0xff] %vm407_vm0, %v16009_v3  ;;  %412 = vst.msk [vmem:[#allocation2 + $0x20] sm:$0xff] %vm407_vm0, %v16009_v3  ;;  %9705 = vmatprep.subr.mxu0 %v10557_v1  ;;  %9779 = vmatprep.subr.mxu1 %v10568_v2  ;;  %s10904_s26 = sshll.u32 %s16868_s18, 8  ;;  %s10479_s22 = smov 112   ;;  %vm8505_vm5 = vcmask 15360  }
  0x11   : > { %413 = vst.msk [vmem:[#allocation2 + $0x28] sm:$0xff] %vm407_vm0, %v16009_v3  ;;  %414 = vst.msk [vmem:[#allocation2 + $0x30] sm:$0xff] %vm407_vm0, %v16009_v3  ;;  %s10910_s29 = scalar_lea.vmem %s15998_s1, %s10904_s26  ;;  %s11040_s18 = scalar_lea.vmem %s15997_s0, %s10904_s26 }
  0x12   : > { %415 = vst.msk [vmem:[#allocation2 + $0x38] sm:$0xff] %vm407_vm0, %v16009_v3  ;;  %416 = vst.msk [vmem:[#allocation2 + $0x40] sm:$0xff] %vm407_vm0, %v16009_v3  ;;  %v581_v4 = vld [vmem:[%s10910_s29] sm:$0xff]  ;;  %v596_v5 = vld [vmem:[%s10910_s29 + $0x78] sm:$0xff]  ;;  %s15864_s27 = scalar_lea.vmem %s16008_s11, %s10904_s26 }
  0x13   : > { %417 = vst.msk [vmem:[#allocation2 + $0x48] sm:$0xff] %vm407_vm0, %v16009_v3  ;;  %418 = vst.msk [vmem:[#allocation2 + $0x50] sm:$0xff] %vm407_vm0, %v16009_v3  ;;  %v597_v6 = vld [vmem:[%s10910_s29 + $0x80] sm:$0xff]  ;;  %v582_v7 = vld [vmem:[%s10910_s29 + $0x8] sm:$0xff] }
  0x14   : > { %419 = vst.msk [vmem:[#allocation2 + $0x58] sm:$0xff] %vm407_vm0, %v16009_v3  ;;  %420 = vst.msk [vmem:[#allocation2 + $0x60] sm:$0xff] %vm407_vm0, %v16009_v3  ;;  %v598_v8 = vld [vmem:[%s10910_s29 + $0x88] sm:$0xff]  ;;  %v583_v9 = vld [vmem:[%s10910_s29 + $0x10] sm:$0xff] }
  0x15   : > { %421 = vst.msk [vmem:[#allocation2 + $0x68] sm:$0xff] %vm407_vm0, %v16009_v3  ;;  %422 = vst.msk [vmem:[#allocation2 + $0x70] sm:$0xff] %vm407_vm0, %v16009_v3  ;;  %v697_v11 = vld [vmem:[#allocation3] sm:$0xff]  ;;  %v584_v14 = vld [vmem:[%s10910_s29 + $0x18] sm:$0xff] }
  0x16   : > { %423 = vst.msk [vmem:[#allocation2 + $0x78] sm:$0xff] %vm407_vm0, %v16009_v3  ;;  %424 = vst.msk [vmem:[#allocation2 + $0x80] sm:$0xff] %vm407_vm0, %v16009_v3  ;;  %9633 = vmatprep.mubr.msk.f32.mxu0 %vm407_vm0, %v697_v11  ;;  %v599_v15 = vld [vmem:[%s10910_s29 + $0x90] sm:$0xff]  ;;  %v600_v16 = vld [vmem:[%s10910_s29 + $0x98] sm:$0xff] }
  0x17   : > { %425 = vst.msk [vmem:[#allocation2 + $0x88] sm:$0xff] %vm407_vm0, %v16009_v3  ;;  %426 = vst.msk [vmem:[#allocation2 + $0x90] sm:$0xff] %vm407_vm0, %v16009_v3  ;;  %v585_v17 = vld [vmem:[%s10910_s29 + $0x20] sm:$0xff]  ;;  %v586_v19 = vld [vmem:[%s10910_s29 + $0x28] sm:$0xff] }
  0x18   : > { %427 = vst.msk [vmem:[#allocation2 + $0x98] sm:$0xff] %vm407_vm0, %v16009_v3  ;;  %428 = vst.msk [vmem:[#allocation2 + $0xa0] sm:$0xff] %vm407_vm0, %v16009_v3  ;;  %v601_v18 = vld [vmem:[%s10910_s29 + $0xa0] sm:$0xff]  ;;  %v602_v20 = vld [vmem:[%s10910_s29 + $0xa8] sm:$0xff] }
  0x19   : > { %429 = vst.msk [vmem:[#allocation2 + $0xa8] sm:$0xff] %vm407_vm0, %v16009_v3  ;;  %430 = vst.msk [vmem:[#allocation2 + $0xb0] sm:$0xff] %vm407_vm0, %v16009_v3  ;;  %v587_v21 = vld [vmem:[%s10910_s29 + $0x30] sm:$0xff]  ;;  %v588_v22 = vld [vmem:[%s10910_s29 + $0x38] sm:$0xff] }
  0x1a   : > { %431 = vst.msk [vmem:[#allocation2 + $0xb8] sm:$0xff] %vm407_vm0, %v16009_v3  ;;  %432 = vst.msk [vmem:[#allocation2 + $0xc0] sm:$0xff] %vm407_vm0, %v16009_v3  ;;  %v603_v23 = vld [vmem:[%s10910_s29 + $0xb0] sm:$0xff]  ;;  %v604_v24 = vld [vmem:[%s10910_s29 + $0xb8] sm:$0xff] }
  0x1b   : > { %433 = vst.msk [vmem:[#allocation2 + $0xc8] sm:$0xff] %vm407_vm0, %v16009_v3  ;;  %434 = vst.msk [vmem:[#allocation2 + $0xd0] sm:$0xff] %vm407_vm0, %v16009_v3  ;;  %v589_v25 = vld [vmem:[%s10910_s29 + $0x40] sm:$0xff]  ;;  %v590_v27 = vld [vmem:[%s10910_s29 + $0x48] sm:$0xff] }
  0x1c   : > { %435 = vst.msk [vmem:[#allocation2 + $0xd8] sm:$0xff] %vm407_vm0, %v16009_v3  ;;  %436 = vst.msk [vmem:[#allocation2 + $0xe0] sm:$0xff] %vm407_vm0, %v16009_v3  ;;  %v605_v26 = vld [vmem:[%s10910_s29 + $0xc0] sm:$0xff]  ;;  %v606_v28 = vld [vmem:[%s10910_s29 + $0xc8] sm:$0xff] }
  0x1d   : > { %437 = vst.msk [vmem:[#allocation2 + $0xe8] sm:$0xff] %vm407_vm0, %v16009_v3  ;;  %438 = vst.msk [vmem:[#allocation2 + $0xf0] sm:$0xff] %vm407_vm0, %v16009_v3  ;;  %v591_v36 = vld [vmem:[%s10910_s29 + $0x50] sm:$0xff]  ;;  %v592_v48 = vld [vmem:[%s10910_s29 + $0x58] sm:$0xff] }
  0x1e   : > { %439 = vst.msk [vmem:[#allocation2 + $0xf8] sm:$0xff] %vm407_vm0, %v16009_v3  ;;  %440 = vst.msk [vmem:[#allocation2 + $0x100] sm:$0xff] %vm407_vm0, %v16009_v3  ;;  %v607_v49 = vld [vmem:[%s10910_s29 + $0xd0] sm:$0xff]  ;;  %v608_v50 = vld [vmem:[%s10910_s29 + $0xd8] sm:$0xff] }
  0x1f   : > { %441 = vst.msk [vmem:[#allocation2 + $0x108] sm:$0xff] %vm407_vm0, %v16009_v3  ;;  %442 = vst.msk [vmem:[#allocation2 + $0x110] sm:$0xff] %vm407_vm0, %v16009_v3  ;;  %v593_v52 = vld [vmem:[%s10910_s29 + $0x60] sm:$0xff]  ;;  %v594_v54 = vld [vmem:[%s10910_s29 + $0x68] sm:$0xff] }
  0x20   : > { %443 = vst.msk [vmem:[#allocation2 + $0x118] sm:$0xff] %vm407_vm0, %v16009_v3  ;;  %444 = vst.msk [vmem:[#allocation2 + $0x120] sm:$0xff] %vm407_vm0, %v16009_v3  ;;  %v609_v53 = vld [vmem:[%s10910_s29 + $0xe0] sm:$0xff]  ;;  %v610_v56 = vld [vmem:[%s10910_s29 + $0xe8] sm:$0xff] }
  0x21   : > { %445 = vst.msk [vmem:[#allocation2 + $0x128] sm:$0xff] %vm407_vm0, %v16009_v3  ;;  %446 = vst.msk [vmem:[#allocation2 + $0x130] sm:$0xff] %vm407_vm0, %v16009_v3  ;;  %v595_v57 = vld [vmem:[%s10910_s29 + $0x70] sm:$0xff]  ;;  %v516_v60 = vld [vmem:[%s11040_s18] sm:$0xff] }
  0x22   : > { %447 = vst.msk [vmem:[#allocation2 + $0x138] sm:$0xff] %vm407_vm0, %v16009_v3  ;;  %448 = vst.msk [vmem:[#allocation2 + $0x140] sm:$0xff] %vm407_vm0, %v16009_v3  ;;  %v517_v61 = vld [vmem:[%s11040_s18 + $0x8] sm:$0xff]  ;;  %v518_v62 = vld [vmem:[%s11040_s18 + $0x10] sm:$0xff] }
  0x23   : > { %449 = vst.msk [vmem:[#allocation2 + $0x148] sm:$0xff] %vm407_vm0, %v16009_v3  ;;  %450 = vst.msk [vmem:[#allocation2 + $0x150] sm:$0xff] %vm407_vm0, %v16009_v3  ;;  %v519_v63 = vld [vmem:[%s11040_s18 + $0x18] sm:$0xff]  ;;  %v528_v11 = vld [vmem:[%s11040_s18 + $0x60] sm:$0xff] }
  0x24   : > { %451 = vst.msk [vmem:[#allocation2 + $0x158] sm:$0xff] %vm407_vm0, %v16009_v3  ;;  %452 = vst.msk [vmem:[#allocation2 + $0x160] sm:$0xff] %vm407_vm0, %v16009_v3 }
  0x25   : > { %453 = vst.msk [vmem:[#allocation2 + $0x168] sm:$0xff] %vm407_vm0, %v16009_v3  ;;  %454 = vst.msk [vmem:[#allocation2 + $0x170] sm:$0xff] %vm407_vm0, %v16009_v3 }
  0x26   : > { %455 = vst.msk [vmem:[#allocation2 + $0x178] sm:$0xff] %vm407_vm0, %v16009_v3  ;;  %456 = vst.msk [vmem:[#allocation2 + $0x180] sm:$0xff] %vm407_vm0, %v16009_v3 }
  0x27   : > { %457 = vst.msk [vmem:[#allocation2 + $0x188] sm:$0xff] %vm407_vm0, %v16009_v3  ;;  %458 = vst.msk [vmem:[#allocation2 + $0x190] sm:$0xff] %vm407_vm0, %v16009_v3 }
  0x28   : > { %459 = vst.msk [vmem:[#allocation2 + $0x198] sm:$0xff] %vm407_vm0, %v16009_v3  ;;  %460 = vst.msk [vmem:[#allocation2 + $0x1a0] sm:$0xff] %vm407_vm0, %v16009_v3 }
  0x29   : > { %461 = vst.msk [vmem:[#allocation2 + $0x1a8] sm:$0xff] %vm407_vm0, %v16009_v3  ;;  %463 = vst.msk [vmem:[#allocation3 + $0x8] sm:$0xff] %vm407_vm0, %v16009_v3 }
  0x2a   : > { %464 = vst.msk [vmem:[#allocation3 + $0x10] sm:$0xff] %vm407_vm0, %v16009_v3  ;;  %465 = vst.msk [vmem:[#allocation3 + $0x18] sm:$0xff] %vm407_vm0, %v16009_v3 }
  0x2b   : > { %466 = vst.msk [vmem:[#allocation3 + $0x20] sm:$0xff] %vm407_vm0, %v16009_v3  ;;  %467 = vst.msk [vmem:[#allocation3 + $0x28] sm:$0xff] %vm407_vm0, %v16009_v3 }
  0x2c   : > { %468 = vst.msk [vmem:[#allocation3 + $0x30] sm:$0xff] %vm407_vm0, %v16009_v3  ;;  %469 = vst.msk [vmem:[#allocation3 + $0x38] sm:$0xff] %vm407_vm0, %v16009_v3 }
  0x2d   : > { %470 = vst.msk [vmem:[#allocation3 + $0x40] sm:$0xff] %vm407_vm0, %v16009_v3  ;;  %471 = vst.msk [vmem:[#allocation3 + $0x48] sm:$0xff] %vm407_vm0, %v16009_v3 }
  0x2e   : > { %472 = vst.msk [vmem:[#allocation3 + $0x50] sm:$0xff] %vm407_vm0, %v16009_v3  ;;  %473 = vst.msk [vmem:[#allocation3 + $0x58] sm:$0xff] %vm407_vm0, %v16009_v3 }
  0x2f   : > { %474 = vst.msk [vmem:[#allocation3 + $0x60] sm:$0xff] %vm407_vm0, %v16009_v3  ;;  %475 = vst.msk [vmem:[#allocation3 + $0x68] sm:$0xff] %vm407_vm0, %v16009_v3 }
  0x30   : > { %476 = vst.msk [vmem:[#allocation3 + $0x70] sm:$0xff] %vm407_vm0, %v16009_v3  ;;  %477 = vst.msk [vmem:[#allocation3 + $0x78] sm:$0xff] %vm407_vm0, %v16009_v3  ;;  %v698_v12 = vld [vmem:[#allocation3 + $0x8] sm:$0xff] }
  0x31   : > { %478 = vst.msk [vmem:[#allocation3 + $0x80] sm:$0xff] %vm407_vm0, %v16009_v3  ;;  %479 = vst.msk [vmem:[#allocation3 + $0x88] sm:$0xff] %vm407_vm0, %v16009_v3  ;;  %v699_v13 = vld [vmem:[#allocation3 + $0x10] sm:$0xff]  ;;  %9634 = vmatmul.mubr.msk.f32.vlgmr.msra.gmra.mrb[0].mxu0 %vm407_vm0, %v698_v12 }
  0x32   : > { %480 = vst.msk [vmem:[#allocation3 + $0x90] sm:$0xff] %vm407_vm0, %v16009_v3  ;;  %481 = vst.msk [vmem:[#allocation3 + $0x98] sm:$0xff] %vm407_vm0, %v16009_v3  ;;  %9706 = vmatpush3.msra.mxu0 %v10557_v1  ;;  %9636 = vmatprep.mubr.msk.f32.mxu0 %vm407_vm0, %v699_v13  ;;  %v520_v1 = vld [vmem:[%s11040_s18 + $0x20] sm:$0xff] }
  0x33   : > { %482 = vst.msk [vmem:[#allocation3 + $0xa0] sm:$0xff] %vm407_vm0, %v16009_v3  ;;  %483 = vst.msk [vmem:[#allocation3 + $0xa8] sm:$0xff] %vm407_vm0, %v16009_v3  ;;  %9927 = vmatprep.subr.mxu0 %v10924_v10 }
  0x34   : > { %484 = vst.msk [vmem:[#allocation3 + $0xb0] sm:$0xff] %vm407_vm0, %v16009_v3  ;;  %485 = vst.msk [vmem:[#allocation3 + $0xb8] sm:$0xff] %vm407_vm0, %v16009_v3 }
  0x35   : > { %486 = vst.msk [vmem:[#allocation3 + $0xc0] sm:$0xff] %vm407_vm0, %v16009_v3  ;;  %487 = vst.msk [vmem:[#allocation3 + $0xc8] sm:$0xff] %vm407_vm0, %v16009_v3 }
  0x36   : > { %488 = vst.msk [vmem:[#allocation3 + $0xd0] sm:$0xff] %vm407_vm0, %v16009_v3  ;;  %489 = vst.msk [vmem:[#allocation3 + $0xd8] sm:$0xff] %vm407_vm0, %v16009_v3 }
  0x37   : > { %490 = vst.msk [vmem:[#allocation3 + $0xe0] sm:$0xff] %vm407_vm0, %v16009_v3  ;;  %491 = vst.msk [vmem:[#allocation3 + $0xe8] sm:$0xff] %vm407_vm0, %v16009_v3 }
  0x38   : > { %492 = vst.msk [vmem:[#allocation3 + $0xf0] sm:$0xff] %vm407_vm0, %v16009_v3  ;;  %493 = vst.msk [vmem:[#allocation3 + $0xf8] sm:$0xff] %vm407_vm0, %v16009_v3 }
  0x39   : > { %494 = vst.msk [vmem:[#allocation3 + $0x100] sm:$0xff] %vm407_vm0, %v16009_v3  ;;  %495 = vst.msk [vmem:[#allocation3 + $0x108] sm:$0xff] %vm407_vm0, %v16009_v3 }
  0x3a   : > { %496 = vst.msk [vmem:[#allocation3 + $0x110] sm:$0xff] %vm407_vm0, %v16009_v3  ;;  %497 = vst.msk [vmem:[#allocation3 + $0x118] sm:$0xff] %vm407_vm0, %v16009_v3 }
  0x3b   : > { %498 = vst.msk [vmem:[#allocation3 + $0x120] sm:$0xff] %vm407_vm0, %v16009_v3  ;;  %499 = vst.msk [vmem:[#allocation3 + $0x128] sm:$0xff] %vm407_vm0, %v16009_v3 }
  0x3c   : > { %500 = vst.msk [vmem:[#allocation3 + $0x130] sm:$0xff] %vm407_vm0, %v16009_v3  ;;  %501 = vst.msk [vmem:[#allocation3 + $0x138] sm:$0xff] %vm407_vm0, %v16009_v3 }
  0x3d   : > { %502 = vst.msk [vmem:[#allocation3 + $0x140] sm:$0xff] %vm407_vm0, %v16009_v3  ;;  %503 = vst.msk [vmem:[#allocation3 + $0x148] sm:$0xff] %vm407_vm0, %v16009_v3 }
  0x3e   : > { %504 = vst.msk [vmem:[#allocation3 + $0x150] sm:$0xff] %vm407_vm0, %v16009_v3  ;;  %505 = vst.msk [vmem:[#allocation3 + $0x158] sm:$0xff] %vm407_vm0, %v16009_v3 }
  0x3f   : > { %506 = vst.msk [vmem:[#allocation3 + $0x160] sm:$0xff] %vm407_vm0, %v16009_v3  ;;  %507 = vst.msk [vmem:[#allocation3 + $0x168] sm:$0xff] %vm407_vm0, %v16009_v3 }
  0x40   : > { %508 = vst.msk [vmem:[#allocation3 + $0x170] sm:$0xff] %vm407_vm0, %v16009_v3  ;;  %509 = vst.msk [vmem:[#allocation3 + $0x178] sm:$0xff] %vm407_vm0, %v16009_v3 }
  0x41   : > { %510 = vst.msk [vmem:[#allocation3 + $0x180] sm:$0xff] %vm407_vm0, %v16009_v3  ;;  %511 = vst.msk [vmem:[#allocation3 + $0x188] sm:$0xff] %vm407_vm0, %v16009_v3 }
  0x42   : > { %512 = vst.msk [vmem:[#allocation3 + $0x190] sm:$0xff] %vm407_vm0, %v16009_v3  ;;  %513 = vst.msk [vmem:[#allocation3 + $0x198] sm:$0xff] %vm407_vm0, %v16009_v3 }
  0x43   : > { %514 = vst.msk [vmem:[#allocation3 + $0x1a0] sm:$0xff] %vm407_vm0, %v16009_v3  ;;  %515 = vst.msk [vmem:[#allocation3 + $0x1a8] sm:$0xff] %vm407_vm0, %v16009_v3 }
  0x44   : > { %5208 = vst.msk [vmem:[#allocation4] sm:$0xff] %vm407_vm0, %v16009_v3  ;;  %5209 = vst.msk [vmem:[#allocation4 + $0x8] sm:$0xff] %vm407_vm0, %v16009_v3 }
  0x45   : > { %5210 = vst.msk [vmem:[#allocation4 + $0x10] sm:$0xff] %vm407_vm0, %v16009_v3  ;;  %5211 = vst.msk [vmem:[#allocation4 + $0x18] sm:$0xff] %vm407_vm0, %v16009_v3 }
  0x46   : > { %5212 = vst.msk [vmem:[#allocation4 + $0x20] sm:$0xff] %vm407_vm0, %v16009_v3  ;;  %5213 = vst.msk [vmem:[#allocation4 + $0x28] sm:$0xff] %vm407_vm0, %v16009_v3 }
  0x47   : > { %5214 = vst.msk [vmem:[#allocation4 + $0x30] sm:$0xff] %vm407_vm0, %v16009_v3  ;;  %5215 = vst.msk [vmem:[#allocation4 + $0x38] sm:$0xff] %vm407_vm0, %v16009_v3 }
  0x48   : > { %5216 = vst.msk [vmem:[#allocation4 + $0x40] sm:$0xff] %vm407_vm0, %v16009_v3  ;;  %5217 = vst.msk [vmem:[#allocation4 + $0x48] sm:$0xff] %vm407_vm0, %v16009_v3 }
  0x49   : > { %5218 = vst.msk [vmem:[#allocation4 + $0x50] sm:$0xff] %vm407_vm0, %v16009_v3  ;;  %5219 = vst.msk [vmem:[#allocation4 + $0x58] sm:$0xff] %vm407_vm0, %v16009_v3 }
  0x4a   : > { %5220 = vst.msk [vmem:[#allocation4 + $0x60] sm:$0xff] %vm407_vm0, %v16009_v3  ;;  %5221 = vst.msk [vmem:[#allocation4 + $0x68] sm:$0xff] %vm407_vm0, %v16009_v3 }
  0x4b   : > { %5222 = vst.msk [vmem:[#allocation4 + $0x70] sm:$0xff] %vm407_vm0, %v16009_v3  ;;  %5223 = vst.msk [vmem:[#allocation4 + $0x78] sm:$0xff] %vm407_vm0, %v16009_v3 }
  0x4c   : > { %5224 = vst.msk [vmem:[#allocation4 + $0x80] sm:$0xff] %vm407_vm0, %v16009_v3  ;;  %5225 = vst.msk [vmem:[#allocation4 + $0x88] sm:$0xff] %vm407_vm0, %v16009_v3 }
  0x4d   : > { %5226 = vst.msk [vmem:[#allocation4 + $0x90] sm:$0xff] %vm407_vm0, %v16009_v3  ;;  %5227 = vst.msk [vmem:[#allocation4 + $0x98] sm:$0xff] %vm407_vm0, %v16009_v3 }
  0x4e   : > { %5228 = vst.msk [vmem:[#allocation4 + $0xa0] sm:$0xff] %vm407_vm0, %v16009_v3  ;;  %5229 = vst.msk [vmem:[#allocation4 + $0xa8] sm:$0xff] %vm407_vm0, %v16009_v3 }
  0x4f   : > { %5230 = vst.msk [vmem:[#allocation4 + $0xb0] sm:$0xff] %vm407_vm0, %v16009_v3  ;;  %5231 = vst.msk [vmem:[#allocation4 + $0xb8] sm:$0xff] %vm407_vm0, %v16009_v3 }
  0x50   : > { %5232 = vst.msk [vmem:[#allocation4 + $0xc0] sm:$0xff] %vm407_vm0, %v16009_v3  ;;  %5233 = vst.msk [vmem:[#allocation4 + $0xc8] sm:$0xff] %vm407_vm0, %v16009_v3 }
  0x51   : > { %5234 = vst.msk [vmem:[#allocation4 + $0xd0] sm:$0xff] %vm407_vm0, %v16009_v3  ;;  %5235 = vst.msk [vmem:[#allocation4 + $0xd8] sm:$0xff] %vm407_vm0, %v16009_v3 }
  0x52   : > { %5236 = vst.msk [vmem:[#allocation4 + $0xe0] sm:$0xff] %vm407_vm0, %v16009_v3  ;;  %5237 = vst.msk [vmem:[#allocation4 + $0xe8] sm:$0xff] %vm407_vm0, %v16009_v3 }
  0x53   : > { %5238 = vst.msk [vmem:[#allocation4 + $0xf0] sm:$0xff] %vm407_vm0, %v16009_v3  ;;  %5239 = vst.msk [vmem:[#allocation4 + $0xf8] sm:$0xff] %vm407_vm0, %v16009_v3 }
  0x54   : > { %5240 = vst.msk [vmem:[#allocation4 + $0x100] sm:$0xff] %vm407_vm0, %v16009_v3  ;;  %5241 = vst.msk [vmem:[#allocation4 + $0x108] sm:$0xff] %vm407_vm0, %v16009_v3 }
  0x55   : > { %5242 = vst.msk [vmem:[#allocation4 + $0x110] sm:$0xff] %vm407_vm0, %v16009_v3  ;;  %5243 = vst.msk [vmem:[#allocation4 + $0x118] sm:$0xff] %vm407_vm0, %v16009_v3 }
  0x56   : > { %5244 = vst.msk [vmem:[#allocation4 + $0x120] sm:$0xff] %vm407_vm0, %v16009_v3  ;;  %5245 = vst.msk [vmem:[#allocation4 + $0x128] sm:$0xff] %vm407_vm0, %v16009_v3 }
  0x57   : > { %5246 = vst.msk [vmem:[#allocation4 + $0x130] sm:$0xff] %vm407_vm0, %v16009_v3  ;;  %5247 = vst.msk [vmem:[#allocation4 + $0x138] sm:$0xff] %vm407_vm0, %v16009_v3 }
  0x58   : > { %5248 = vst.msk [vmem:[#allocation4 + $0x140] sm:$0xff] %vm407_vm0, %v16009_v3  ;;  %5249 = vst.msk [vmem:[#allocation4 + $0x148] sm:$0xff] %vm407_vm0, %v16009_v3 }
  0x59   : > { %5250 = vst.msk [vmem:[#allocation4 + $0x150] sm:$0xff] %vm407_vm0, %v16009_v3  ;;  %5251 = vst.msk [vmem:[#allocation4 + $0x158] sm:$0xff] %vm407_vm0, %v16009_v3 }
  0x5a   : > { %5252 = vst.msk [vmem:[#allocation4 + $0x160] sm:$0xff] %vm407_vm0, %v16009_v3  ;;  %5253 = vst.msk [vmem:[#allocation4 + $0x168] sm:$0xff] %vm407_vm0, %v16009_v3 }
  0x5b   : > { %5254 = vst.msk [vmem:[#allocation4 + $0x170] sm:$0xff] %vm407_vm0, %v16009_v3  ;;  %5255 = vst.msk [vmem:[#allocation4 + $0x178] sm:$0xff] %vm407_vm0, %v16009_v3 }
  0x5c   : > { %5256 = vst.msk [vmem:[#allocation4 + $0x180] sm:$0xff] %vm407_vm0, %v16009_v3  ;;  %5257 = vst.msk [vmem:[#allocation4 + $0x188] sm:$0xff] %vm407_vm0, %v16009_v3 }
  0x5d   : > { %5258 = vst.msk [vmem:[#allocation4 + $0x190] sm:$0xff] %vm407_vm0, %v16009_v3  ;;  %5259 = vst.msk [vmem:[#allocation4 + $0x198] sm:$0xff] %vm407_vm0, %v16009_v3 }
  0x5e   : > { %5260 = vst.msk [vmem:[#allocation4 + $0x1a0] sm:$0xff] %vm407_vm0, %v16009_v3  ;;  %5261 = vst.msk [vmem:[#allocation4 + $0x1a8] sm:$0xff] %vm407_vm0, %v16009_v3 }
  0x5f   : > { %614 = vst.msk [vmem:[#allocation3 + $0x19] sm:$0xff] %vm407_vm0, %v581_v4  ;;  %629 = vst.msk [vmem:[#allocation3 + $0xc9] sm:$0xff] %vm407_vm0, %v596_v5  ;;  %v522_v4 = vld [vmem:[%s11040_s18 + $0x30] sm:$0xff]  ;;  %v523_v5 = vld [vmem:[%s11040_s18 + $0x38] sm:$0xff] }
  0x60   : > { %630 = vst.msk [vmem:[#allocation3 + $0xd9] sm:$0xff] %vm407_vm0, %v597_v6  ;;  %615 = vst.msk [vmem:[#allocation3 + $0x21] sm:$0xff] %vm407_vm0, %v582_v7  ;;  %v524_v6 = vld [vmem:[%s11040_s18 + $0x40] sm:$0xff]  ;;  %v525_v7 = vld [vmem:[%s11040_s18 + $0x48] sm:$0xff] }
  0x61   : > { %631 = vst.msk [vmem:[#allocation3 + $0xe1] sm:$0xff] %vm407_vm0, %v598_v8  ;;  %616 = vst.msk [vmem:[#allocation3 + $0x31] sm:$0xff] %vm407_vm0, %v583_v9  ;;  %v526_v8 = vld [vmem:[%s11040_s18 + $0x50] sm:$0xff]  ;;  %v527_v9 = vld [vmem:[%s11040_s18 + $0x58] sm:$0xff] }
  0x62   : > { %617 = vst.msk [vmem:[#allocation3 + $0x39] sm:$0xff] %vm407_vm0, %v584_v14  ;;  %632 = vst.msk [vmem:[#allocation3 + $0xf1] sm:$0xff] %vm407_vm0, %v599_v15 }
  0x63   : > { %633 = vst.msk [vmem:[#allocation3 + $0xf9] sm:$0xff] %vm407_vm0, %v600_v16  ;;  %618 = vst.msk [vmem:[#allocation3 + $0x49] sm:$0xff] %vm407_vm0, %v585_v17 }
  0x64   : > { %634 = vst.msk [vmem:[#allocation3 + $0x109] sm:$0xff] %vm407_vm0, %v601_v18  ;;  %619 = vst.msk [vmem:[#allocation3 + $0x51] sm:$0xff] %vm407_vm0, %v586_v19 }
  0x65   : > { %635 = vst.msk [vmem:[#allocation3 + $0x111] sm:$0xff] %vm407_vm0, %v602_v20  ;;  %620 = vst.msk [vmem:[#allocation3 + $0x61] sm:$0xff] %vm407_vm0, %v587_v21 }
  0x66   : > { %621 = vst.msk [vmem:[#allocation3 + $0x69] sm:$0xff] %vm407_vm0, %v588_v22  ;;  %636 = vst.msk [vmem:[#allocation3 + $0x121] sm:$0xff] %vm407_vm0, %v603_v23  ;;  %v10961_v29 = vld [vmem:[#allocation3 + $0x18] sm:$0xff]  ;;  %v10963_v30 = vld [vmem:[#allocation3 + $0xd0] sm:$0xff] }
  0x67   : > { %637 = vst.msk [vmem:[#allocation3 + $0x129] sm:$0xff] %vm407_vm0, %v604_v24  ;;  %622 = vst.msk [vmem:[#allocation3 + $0x79] sm:$0xff] %vm407_vm0, %v589_v25  ;;  %v10965_v31 = vld [vmem:[#allocation3 + $0xd8] sm:$0xff]  ;;  %9637 = vmatmul.mubr.msk.f32.gmra.mrb[2].mxu0 %vm407_vm0, %v10961_v29  ;;  %9672 = vmatprep.mubr.msk.f32.mxu1 %vm407_vm0, %v10963_v30  ;;  %v10974_v32 = vld [vmem:[#allocation3 + $0x20] sm:$0xff] }
  0x68   : > { %16166 = vst [vmem:[#allocation5_spill] sm:$0xff] %v10963_v30  ;;  %16167 = vst [vmem:[#allocation6_spill] sm:$0xff] %v10965_v31  ;;  %v10976_v33 = vld [vmem:[#allocation3 + $0xe0] sm:$0xff]  ;;  %9673 = vmatmul.mubr.msk.f32.vlgmr.msra.gmra.mrb[0].mxu1 %vm407_vm0, %v10965_v31  ;;  %9639 = vmatprep.mubr.msk.f32.mxu0 %vm407_vm0, %v10974_v32  ;;  %v10987_v35 = vld [vmem:[#allocation3 + $0x28] sm:$0xff] }
  0x69   : > { %638 = vst.msk [vmem:[#allocation3 + $0x139] sm:$0xff] %vm407_vm0, %v605_v26  ;;  %623 = vst.msk [vmem:[#allocation3 + $0x81] sm:$0xff] %vm407_vm0, %v590_v27  ;;  %9675 = vmatprep.mubr.msk.f32.mxu1 %vm407_vm0, %v10976_v33  ;;  %v10992_v37 = vld [vmem:[#allocation3 + $0xe8] sm:$0xff]  ;;  %v10994_v38 = vld [vmem:[#allocation3 + $0x30] sm:$0xff]  ;;  %9780 = vmatpush3.msra.mxu1 %v10568_v2 }
  0x6a   : > { %639 = vst.msk [vmem:[#allocation3 + $0x141] sm:$0xff] %vm407_vm0, %v606_v28  ;;  %16168 = vst [vmem:[#allocation7_spill] sm:$0xff] %v10976_v33  ;;  %v10998_v39 = vld [vmem:[#allocation3 + $0xf0] sm:$0xff]  ;;  %9853 = vmatprep.subr.mxu1 %v10981_v34  ;;  %v11007_v40 = vld [vmem:[#allocation3 + $0x38] sm:$0xff] }
  0x6b   : > { %624 = vst.msk [vmem:[#allocation3 + $0x91] sm:$0xff] %vm407_vm0, %v591_v36  ;;  %16169 = vst [vmem:[#allocation8_spill] sm:$0xff] %v10998_v39  ;;  %9640 = vmatmul.mubr.msk.f32.gmra.mrb[4].mxu0 %vm407_vm0, %v10987_v35  ;;  %v11011_v41 = vld [vmem:[#allocation3 + $0xf8] sm:$0xff]  ;;  %v11013_v42 = vld [vmem:[#allocation3 + $0x40] sm:$0xff] }
  0x6c   : > { %9676 = vmatmul.mubr.msk.f32.gmra.mrb[2].mxu1 %vm407_vm0, %v10992_v37  ;;  %9642 = vmatprep.mubr.msk.f32.mxu0 %vm407_vm0, %v10994_v38  ;;  %16170 = vst [vmem:[#allocation9_spill] sm:$0xff] %v11011_v41  ;;  %v11015_v43 = vld [vmem:[#allocation3 + $0x100] sm:$0xff]  ;;  %v11019_v44 = vld [vmem:[#allocation3 + $0x48] sm:$0xff]  ;;  %v11027_v46 = vld [vmem:[#allocation3 + $0x50] sm:$0xff] }
  0x6d   : > { %9678 = vmatprep.mubr.msk.f32.mxu1 %vm407_vm0, %v10998_v39  ;;  %16171 = vst [vmem:[#allocation10_spill] sm:$0xff] %v11015_v43  ;;  %v11025_v45 = vld [vmem:[#allocation3 + $0x108] sm:$0xff]  ;;  %v11029_v47 = vld [vmem:[#allocation3 + $0x110] sm:$0xff]  ;;  %v11042_v51 = vld [vmem:[#allocation3 + $0x58] sm:$0xff] }
  0x6e   : > { %16172 = vst [vmem:[#allocation11_spill] sm:$0xff] %v11025_v45  ;;  %16173 = vst [vmem:[#allocation12_spill] sm:$0xff] %v11029_v47  ;;  %v11052_v55 = vld [vmem:[#allocation3 + $0x118] sm:$0xff]  ;;  %v11063_v58 = vld [vmem:[#allocation3 + $0x60] sm:$0xff] }
  0x6f   : > { %9643 = vmatmul.mubr.msk.f32.gmra.mrb[6].mxu0 %vm407_vm0, %v11007_v40  ;;  %625 = vst.msk [vmem:[#allocation3 + $0x99] sm:$0xff] %vm407_vm0, %v592_v48  ;;  %640 = vst.msk [vmem:[#allocation3 + $0x151] sm:$0xff] %vm407_vm0, %v607_v49  ;;  %v11065_v59 = vld [vmem:[#allocation3 + $0x120] sm:$0xff]  ;;  %v11076_v0 = vld [vmem:[#allocation3 + $0x68] sm:$0xff] }
  0x70   : > { %9679 = vmatmul.mubr.msk.f32.gmra.mrb[4].mxu1 %vm407_vm0, %v11011_v41  ;;  %9645 = vmatprep.mubr.msk.f32.mxu0 %vm407_vm0, %v11013_v42  ;;  %641 = vst.msk [vmem:[#allocation3 + $0x159] sm:$0xff] %vm407_vm0, %v608_v50  ;;  %16174 = vst [vmem:[#allocation13_spill] sm:$0xff] %v11052_v55  ;;  %v521_v2 = vld [vmem:[%s11040_s18 + $0x28] sm:$0xff]  ;;  %v11104_v12 = vld [vmem:[#allocation3 + $0x128] sm:$0xff] }
  0x71   : > { %9681 = vmatprep.mubr.msk.f32.mxu1 %vm407_vm0, %v11015_v43  ;;  %626 = vst.msk [vmem:[#allocation3 + $0xa9] sm:$0xff] %vm407_vm0, %v593_v52  ;;  %642 = vst.msk [vmem:[#allocation3 + $0x169] sm:$0xff] %vm407_vm0, %v609_v53  ;;  %v11106_v13 = vld [vmem:[#allocation3 + $0x70] sm:$0xff]  ;;  %v11119_v15 = vld [vmem:[#allocation3 + $0x78] sm:$0xff] }
  0x72   : > { %627 = vst.msk [vmem:[#allocation3 + $0xb1] sm:$0xff] %vm407_vm0, %v594_v54  ;;  %16175 = vst [vmem:[#allocation14_spill] sm:$0xff] %v11065_v59  ;;  %v11111_v14 = vld [vmem:[#allocation3 + $0x130] sm:$0xff]  ;;  %v11123_v16 = vld [vmem:[#allocation3 + $0x138] sm:$0xff] }
  0x73   : > { %9646 = vmatmul.mubr.msk.f32.gmra.mrb[8].mxu0 %vm407_vm0, %v11019_v44  ;;  %643 = vst.msk [vmem:[#allocation3 + $0x171] sm:$0xff] %vm407_vm0, %v610_v56  ;;  %628 = vst.msk [vmem:[#allocation3 + $0xc1] sm:$0xff] %vm407_vm0, %v595_v57  ;;  %v11125_v17 = vld [vmem:[#allocation3 + $0x80] sm:$0xff]  ;;  %v11135_v19 = vld [vmem:[#allocation3 + $0x88] sm:$0xff] }
  0x74   : > { %9682 = vmatmul.mubr.msk.f32.gmra.mrb[6].mxu1 %vm407_vm0, %v11025_v45  ;;  %9648 = vmatprep.mubr.msk.f32.mxu0 %vm407_vm0, %v11027_v46  ;;  %549 = vst.msk [vmem:[#allocation2 + $0x19] sm:$0xff] %vm407_vm0, %v516_v60  ;;  %550 = vst.msk [vmem:[#allocation2 + $0x21] sm:$0xff] %vm407_vm0, %v517_v61  ;;  %v11127_v18 = vld [vmem:[#allocation3 + $0x140] sm:$0xff]  ;;  %v11139_v20 = vld [vmem:[#allocation3 + $0x148] sm:$0xff] }
  0x75   : > { %9684 = vmatprep.mubr.msk.f32.mxu1 %vm407_vm0, %v11029_v47  ;;  %551 = vst.msk [vmem:[#allocation2 + $0x31] sm:$0xff] %vm407_vm0, %v518_v62  ;;  %552 = vst.msk [vmem:[#allocation2 + $0x39] sm:$0xff] %vm407_vm0, %v519_v63  ;;  %v11141_v21 = vld [vmem:[#allocation3 + $0x90] sm:$0xff]  ;;  %v529_v26 = vld [vmem:[%s11040_s18 + $0x68] sm:$0xff] }
  0x76   : > { %553 = vst.msk [vmem:[#allocation2 + $0x49] sm:$0xff] %vm407_vm0, %v520_v1  ;;  %554 = vst.msk [vmem:[#allocation2 + $0x51] sm:$0xff] %vm407_vm0, %v521_v2  ;;  %v11143_v22 = vld [vmem:[#allocation3 + $0x98] sm:$0xff]  ;;  %v11145_v23 = vld [vmem:[#allocation3 + $0x150] sm:$0xff] }
  0x77   : > { %9649 = vmatmul.mubr.msk.f32.gmra.mrb[10].mxu0 %vm407_vm0, %v11042_v51  ;;  %555 = vst.msk [vmem:[#allocation2 + $0x61] sm:$0xff] %vm407_vm0, %v522_v4  ;;  %556 = vst.msk [vmem:[#allocation2 + $0x69] sm:$0xff] %vm407_vm0, %v523_v5  ;;  %v11149_v24 = vld [vmem:[#allocation3 + $0x158] sm:$0xff]  ;;  %v11151_v25 = vld [vmem:[#allocation3 + $0xa0] sm:$0xff] }
  0x78   : > { %9685 = vmatmul.mubr.msk.f32.gmra.mrb[8].mxu1 %vm407_vm0, %v11052_v55  ;;  %9651 = vmatprep.mubr.msk.f32.mxu0 %vm407_vm0, %v11063_v58  ;;  %557 = vst.msk [vmem:[#allocation2 + $0x79] sm:$0xff] %vm407_vm0, %v524_v6  ;;  %558 = vst.msk [vmem:[#allocation2 + $0x81] sm:$0xff] %vm407_vm0, %v525_v7  ;;  %v11158_v27 = vld [vmem:[#allocation3 + $0x160] sm:$0xff]  ;;  %v531_v36 = vld [vmem:[%s11040_s18 + $0x78] sm:$0xff] }
  0x79   : > { %9687 = vmatprep.mubr.msk.f32.mxu1 %vm407_vm0, %v11065_v59  ;;  %16176 = vst [vmem:[#allocation15_spill] sm:$0xff] %v11104_v12  ;;  %559 = vst.msk [vmem:[#allocation2 + $0x91] sm:$0xff] %vm407_vm0, %v526_v8  ;;  %v530_v28 = vld [vmem:[%s11040_s18 + $0x70] sm:$0xff]  ;;  %v532_v48 = vld [vmem:[%s11040_s18 + $0x80] sm:$0xff] }
  0x7a   : > { %560 = vst.msk [vmem:[#allocation2 + $0x99] sm:$0xff] %vm407_vm0, %v527_v9  ;;  %561 = vst.msk [vmem:[#allocation2 + $0xa9] sm:$0xff] %vm407_vm0, %v528_v11  ;;  %v533_v49 = vld [vmem:[%s11040_s18 + $0x88] sm:$0xff]  ;;  %v534_v50 = vld [vmem:[%s11040_s18 + $0x90] sm:$0xff] }
  0x7b   : > { %16177 = vst [vmem:[#allocation16_spill] sm:$0xff] %v11111_v14  ;;  %9652 = vmatmul.mubr.msk.f32.gmra.mrb[12].mxu0 %vm407_vm0, %v11076_v0  ;;  %16178 = vst [vmem:[#allocation17_spill] sm:$0xff] %v11123_v16  ;;  %v535_v52 = vld [vmem:[%s11040_s18 + $0x98] sm:$0xff]  ;;  %v536_v54 = vld [vmem:[%s11040_s18 + $0xa0] sm:$0xff] }
  0x7c   : > { %9688 = vmatmul.mubr.msk.f32.gmra.mrb[10].mxu1 %vm407_vm0, %v11104_v12  ;;  %9654 = vmatprep.mubr.msk.f32.mxu0 %vm407_vm0, %v11106_v13  ;;  %16179 = vst [vmem:[#allocation18_spill] sm:$0xff] %v11127_v18  ;;  %16180 = vst [vmem:[#allocation19_spill] sm:$0xff] %v11139_v20  ;;  %v11172_v53 = vld [vmem:[#allocation3 + $0xa8] sm:$0xff]  ;;  %v537_v56 = vld [vmem:[%s11040_s18 + $0xa8] sm:$0xff] }
  0x7d   : > { %9690 = vmatprep.mubr.msk.f32.mxu1 %vm407_vm0, %v11111_v14  ;;  %16181 = vst [vmem:[#allocation20_spill] sm:$0xff] %v11145_v23  ;;  %16182 = vst [vmem:[#allocation21_spill] sm:$0xff] %v11149_v24  ;;  %v538_v57 = vld [vmem:[%s11040_s18 + $0xb0] sm:$0xff]  ;;  %v11182_v60 = vld [vmem:[#allocation3 + $0x168] sm:$0xff] }
  0x7e   : > { %16183 = vst [vmem:[#allocation22_spill] sm:$0xff] %v11158_v27  ;;  %562 = vst.msk [vmem:[#allocation2 + $0xb1] sm:$0xff] %vm407_vm0, %v529_v26  ;;  %v11184_v61 = vld [vmem:[#allocation3 + $0xb0] sm:$0xff]  ;;  %v539_v62 = vld [vmem:[%s11040_s18 + $0xb8] sm:$0xff] }
  0x7f   : > { %9655 = vmatmul.mubr.msk.f32.gmra.mrb[14].mxu0 %vm407_vm0, %v11119_v15  ;;  %563 = vst.msk [vmem:[#allocation2 + $0xc1] sm:$0xff] %vm407_vm0, %v530_v28  ;;  %564 = vst.msk [vmem:[#allocation2 + $0xc9] sm:$0xff] %vm407_vm0, %v531_v36  ;;  %v540_v63 = vld [vmem:[%s11040_s18 + $0xc0] sm:$0xff]  ;;  %v541_v1 = vld [vmem:[%s11040_s18 + $0xc8] sm:$0xff] }
  0x80   : > { %9691 = vmatmul.mubr.msk.f32.gmra.mrb[12].mxu1 %vm407_vm0, %v11123_v16  ;;  %9657 = vmatprep.mubr.msk.f32.mxu0 %vm407_vm0, %v11125_v17  ;;  %565 = vst.msk [vmem:[#allocation2 + $0xd9] sm:$0xff] %vm407_vm0, %v532_v48  ;;  %566 = vst.msk [vmem:[#allocation2 + $0xe1] sm:$0xff] %vm407_vm0, %v533_v49  ;;  %v542_v2 = vld [vmem:[%s11040_s18 + $0xd0] sm:$0xff]  ;;  %v543_v4 = vld [vmem:[%s11040_s18 + $0xd8] sm:$0xff] }
  0x81   : > { %9693 = vmatprep.mubr.msk.f32.mxu1 %vm407_vm0, %v11127_v18  ;;  %567 = vst.msk [vmem:[#allocation2 + $0xf1] sm:$0xff] %vm407_vm0, %v534_v50  ;;  %568 = vst.msk [vmem:[#allocation2 + $0xf9] sm:$0xff] %vm407_vm0, %v535_v52  ;;  %v611_v5 = vld [vmem:[%s10910_s29 + $0xf0] sm:$0xff]  ;;  %v544_v6 = vld [vmem:[%s11040_s18 + $0xe0] sm:$0xff] }
  0x82   : > { %16184 = vst [vmem:[#allocation23_spill] sm:$0xff] %v11182_v60  ;;  %569 = vst.msk [vmem:[#allocation2 + $0x109] sm:$0xff] %vm407_vm0, %v536_v54  ;;  %v612_v7 = vld [vmem:[%s10910_s29 + $0xf8] sm:$0xff]  ;;  %v545_v8 = vld [vmem:[%s11040_s18 + $0xe8] sm:$0xff] }
  0x83   : > { %9658 = vmatmul.mubr.msk.f32.gmra.mrb[16].mxu0 %vm407_vm0, %v11135_v19  ;;  %570 = vst.msk [vmem:[#allocation2 + $0x111] sm:$0xff] %vm407_vm0, %v537_v56  ;;  %571 = vst.msk [vmem:[#allocation2 + $0x121] sm:$0xff] %vm407_vm0, %v538_v57  ;;  %v11210_v9 = vld [vmem:[#allocation3 + $0x170] sm:$0xff]  ;;  %v11221_v11 = vld [vmem:[#allocation3 + $0xb8] sm:$0xff] }
  0x84   : > { %9694 = vmatmul.mubr.msk.f32.gmra.mrb[14].mxu1 %vm407_vm0, %v11139_v20  ;;  %9660 = vmatprep.mubr.msk.f32.mxu0 %vm407_vm0, %v11141_v21  ;;  %572 = vst.msk [vmem:[#allocation2 + $0x129] sm:$0xff] %vm407_vm0, %v539_v62  ;;  %573 = vst.msk [vmem:[#allocation2 + $0x139] sm:$0xff] %vm407_vm0, %v540_v63  ;;  %v11225_v26 = vld [vmem:[#allocation3 + $0x178] sm:$0xff]  ;;  %v11227_v28 = vld [vmem:[#allocation3 + $0xc0] sm:$0xff] }
  0x85   : > { %9696 = vmatprep.mubr.msk.f32.mxu1 %vm407_vm0, %v11145_v23  ;;  %574 = vst.msk [vmem:[#allocation2 + $0x141] sm:$0xff] %vm407_vm0, %v541_v1  ;;  %575 = vst.msk [vmem:[#allocation2 + $0x151] sm:$0xff] %vm407_vm0, %v542_v2  ;;  %v11235_v36 = vld [vmem:[#allocation3 + $0xc8] sm:$0xff]  ;;  %v648_v48 = vld [vmem:[#allocation2] sm:$0xff] }
  0x86   : > { %576 = vst.msk [vmem:[#allocation2 + $0x159] sm:$0xff] %vm407_vm0, %v543_v4  ;;  %644 = vst.msk [vmem:[#allocation3 + $0x181] sm:$0xff] %vm407_vm0, %v611_v5  ;;  %v649_v49 = vld [vmem:[#allocation2 + $0x8] sm:$0xff]  ;;  %v650_v50 = vld [vmem:[#allocation2 + $0x10] sm:$0xff] }
  0x87   : > { %9661 = vmatmul.mubr.msk.f32.gmra.mrb[18].mxu0 %vm407_vm0, %v11143_v22  ;;  %16185 = vst [vmem:[#allocation24_spill] sm:$0xff] %v11210_v9  ;;  %577 = vst.msk [vmem:[#allocation2 + $0x169] sm:$0xff] %vm407_vm0, %v544_v6  ;;  %v11280_v52 = vld [vmem:[#allocation2 + $0x40] sm:$0xff]  ;;  %v11288_v54 = vld [vmem:[#allocation2 + $0x48] sm:$0xff] }
  0x88   : > { %9697 = vmatmul.mubr.msk.f32.gmra.mrb[16].mxu1 %vm407_vm0, %v11149_v24  ;;  %9663 = vmatprep.mubr.msk.f32.mxu0 %vm407_vm0, %v11151_v25  ;;  %645 = vst.msk [vmem:[#allocation3 + $0x189] sm:$0xff] %vm407_vm0, %v612_v7  ;;  %578 = vst.msk [vmem:[#allocation2 + $0x171] sm:$0xff] %vm407_vm0, %v545_v8  ;;  %v11292_v56 = vld [vmem:[#allocation2 + $0x50] sm:$0xff]  ;;  %v11300_v57 = vld [vmem:[#allocation2 + $0x58] sm:$0xff] }
  0x89   : > { %9699 = vmatprep.mubr.msk.f32.mxu1 %vm407_vm0, %v11158_v27  ;;  %16186 = vst [vmem:[#allocation25_spill] sm:$0xff] %v11225_v26  ;;  %16187 = vst [vmem:[#allocation26_spill] sm:$0xff] %v11227_v28  ;;  %v11304_v62 = vld [vmem:[#allocation2 + $0x60] sm:$0xff]  ;;  %v11312_v63 = vld [vmem:[#allocation2 + $0x68] sm:$0xff] }
  0x8a   : > { %16188 = vst [vmem:[#allocation27_spill] sm:$0xff] %v11235_v36  ;;  %v11316_v1 = vld [vmem:[#allocation2 + $0x70] sm:$0xff]  ;;  %v11324_v2 = vld [vmem:[#allocation2 + $0x78] sm:$0xff]  ;;  %v11333_v5 = vld [vmem:[#allocation2 + $0x80] sm:$0xff] }
  0x8b   : > { %9664 = vmatmul.mubr.msk.f32.gmra.mrb[20].mxu0 %vm407_vm0, %v11172_v53  ;;  %v11329_v4 = vld [vmem:[%s15999_s2 + $0x10] sm:$0xff]  ;;  %v11342_v6 = vld [vmem:[#allocation2 + $0x88] sm:$0xff]  ;;  %v11354_v8 = vld [vmem:[#allocation2 + $0x98] sm:$0xff] }
  0x8c   : > { %9700 = vmatmul.mubr.msk.f32.gmra.mrb[18].mxu1 %vm407_vm0, %v11182_v60  ;;  %9666 = vmatprep.mubr.msk.f32.mxu0 %vm407_vm0, %v11184_v61  ;;  %v11346_v7 = vld [vmem:[#allocation2 + $0x90] sm:$0xff]  ;;  %v11378_v3 = vld [vmem:[#allocation2 + $0xb8] sm:$0xff] }
  0x8d   : > { %9702 = vmatprep.mubr.msk.f32.mxu1 %vm407_vm0, %v11210_v9 }
  0x8f   : > { %9667 = vmatmul.mubr.msk.f32.gmra.mrb[22].mxu0 %vm407_vm0, %v11221_v11 }
  0x90   : > { %9703 = vmatmul.mubr.msk.f32.gmra.mrb[20].mxu1 %vm407_vm0, %v11225_v26  ;;  %9669 = vmatprep.mubr.msk.f32.mxu0 %vm407_vm0, %v11227_v28 }
  0x91   : > { %9781 = vmatprep.mubr.msk.f32.mxu1 %vm407_vm0, %v10961_v29  ;;  %v11251_v29 = vld [vmem:[#allocation2 + $0x18] sm:$0xff] }
  0x93   : > { %9670 = vmatmul.mubr.msk.f32.gmra.mrb[24].mxu0 %vm407_vm0, %v11235_v36 }
  0x94   : > { %9782 = vmatmul.mubr.msk.f32.vlgmr.msra.gmra.mrb[22].mxu1 %vm407_vm0, %v10974_v32  ;;  %9707 = vmatprep.mubr.msk.f32.mxu0 %vm407_vm0, %v648_v48  ;;  %v11255_v32 = vld [vmem:[#allocation2 + $0x20] sm:$0xff] }
  0x95   : > { %9784 = vmatprep.mubr.msk.f32.mxu1 %vm407_vm0, %v10987_v35  ;;  %9854 = vmatpush3.msra.mxu1 %v10981_v34  ;;  %v11264_v34 = vld [vmem:[#allocation2 + $0x28] sm:$0xff]  ;;  %v11268_v35 = vld [vmem:[#allocation2 + $0x30] sm:$0xff]  ;;  %v11358_v48 = vld [vmem:[#allocation2 + $0xa0] sm:$0xff] }
  0x97   : > { %9708 = vmatmul.mubr.msk.f32.vlgmr.msra.gmra.mrb[0].mxu0 %vm407_vm0, %v649_v49  ;;  %v11366_v49 = vld [vmem:[#allocation2 + $0xa8] sm:$0xff] }
  0x98   : > { %9785 = vmatmul.mubr.msk.f32.gmra.mrb[24].mxu1 %vm407_vm0, %v10994_v38  ;;  %9710 = vmatprep.mubr.msk.f32.mxu0 %vm407_vm0, %v650_v50  ;;  %v11370_v50 = vld [vmem:[#allocation2 + $0xb0] sm:$0xff] }
  0x99   : > { %9787 = vmatprep.mubr.msk.f32.mxu1 %vm407_vm0, %v11007_v40  ;;  %9928 = vmatpush3.msra.mxu0 %v10924_v10  ;;  %v11276_v10 = vld [vmem:[#allocation2 + $0x38] sm:$0xff]  ;;  %16189 = vst [vmem:[#allocation28_spill] sm:$0xff] %v11370_v50 }
  0x9a   : > { %10001 = vmatprep.subr.mxu0 %v11329_v4 }
  0x9b   : > { %9711 = vmatmul.mubr.msk.f32.gmra.mrb[2].mxu0 %vm407_vm0, %v11251_v29 }
  0x9c   : > { %9788 = vmatmul.mubr.msk.f32.gmra.mrb[26].mxu1 %vm407_vm0, %v11013_v42  ;;  %9713 = vmatprep.mubr.msk.f32.mxu0 %vm407_vm0, %v11255_v32 }
  0x9d   : > { %9790 = vmatprep.mubr.msk.f32.mxu1 %vm407_vm0, %v11019_v44 }
  0x9f   : > { %9714 = vmatmul.mubr.msk.f32.gmra.mrb[4].mxu0 %vm407_vm0, %v11264_v34 }
  0xa0   : > { %9791 = vmatmul.mubr.msk.f32.gmra.mrb[28].mxu1 %vm407_vm0, %v11027_v46  ;;  %9716 = vmatprep.mubr.msk.f32.mxu0 %vm407_vm0, %v11268_v35 }
  0xa1   : > { %9793 = vmatprep.mubr.msk.f32.mxu1 %vm407_vm0, %v11042_v51 }
  0xa3   : > { %9717 = vmatmul.mubr.msk.f32.gmra.mrb[6].mxu0 %vm407_vm0, %v11276_v10 }
  0xa4   : > { %9794 = vmatmul.mubr.msk.f32.gmra.mrb[30].mxu1 %vm407_vm0, %v11063_v58  ;;  %9719 = vmatprep.mubr.msk.f32.mxu0 %vm407_vm0, %v11280_v52 }
  0xa5   : > { %9796 = vmatprep.mubr.msk.f32.mxu1 %vm407_vm0, %v11076_v0 }
  0xa7   : > { %9720 = vmatmul.mubr.msk.f32.gmra.mrb[8].mxu0 %vm407_vm0, %v11288_v54 }
  0xa8   : > { %9797 = vmatmul.mubr.msk.f32.gmra.mrb[32].mxu1 %vm407_vm0, %v11106_v13  ;;  %9722 = vmatprep.mubr.msk.f32.mxu0 %vm407_vm0, %v11292_v56 }
  0xa9   : > { %9799 = vmatprep.mubr.msk.f32.mxu1 %vm407_vm0, %v11119_v15 }
  0xab   : > { %9723 = vmatmul.mubr.msk.f32.gmra.mrb[10].mxu0 %vm407_vm0, %v11300_v57 }
  0xac   : > { %9800 = vmatmul.mubr.msk.f32.gmra.mrb[34].mxu1 %vm407_vm0, %v11125_v17  ;;  %9725 = vmatprep.mubr.msk.f32.mxu0 %vm407_vm0, %v11304_v62 }
  0xad   : > { %9802 = vmatprep.mubr.msk.f32.mxu1 %vm407_vm0, %v11135_v19 }
  0xaf   : > { %9726 = vmatmul.mubr.msk.f32.gmra.mrb[12].mxu0 %vm407_vm0, %v11312_v63 }
  0xb0   : > { %9803 = vmatmul.mubr.msk.f32.gmra.mrb[36].mxu1 %vm407_vm0, %v11141_v21  ;;  %9728 = vmatprep.mubr.msk.f32.mxu0 %vm407_vm0, %v11316_v1 }
  0xb1   : > { %9805 = vmatprep.mubr.msk.f32.mxu1 %vm407_vm0, %v11143_v22 }
  0xb3   : > { %9729 = vmatmul.mubr.msk.f32.gmra.mrb[14].mxu0 %vm407_vm0, %v11324_v2 }
  0xb4   : > { %9806 = vmatmul.mubr.msk.f32.gmra.mrb[38].mxu1 %vm407_vm0, %v11151_v25  ;;  %9731 = vmatprep.mubr.msk.f32.mxu0 %vm407_vm0, %v11333_v5 }
  0xb5   : > { %9808 = vmatprep.mubr.msk.f32.mxu1 %vm407_vm0, %v11172_v53 }
  0xb7   : > { %9732 = vmatmul.mubr.msk.f32.gmra.mrb[16].mxu0 %vm407_vm0, %v11342_v6 }
  0xb8   : > { %9809 = vmatmul.mubr.msk.f32.gmra.mrb[40].mxu1 %vm407_vm0, %v11184_v61  ;;  %9734 = vmatprep.mubr.msk.f32.mxu0 %vm407_vm0, %v11346_v7 }
  0xb9   : > { %9811 = vmatprep.mubr.msk.f32.mxu1 %vm407_vm0, %v11221_v11 }
  0xbb   : > { %9735 = vmatmul.mubr.msk.f32.gmra.mrb[18].mxu0 %vm407_vm0, %v11354_v8 }
  0xbc   : > { %9812 = vmatmul.mubr.msk.f32.gmra.mrb[42].mxu1 %vm407_vm0, %v11227_v28  ;;  %9737 = vmatprep.mubr.msk.f32.mxu0 %vm407_vm0, %v11358_v48  ;;  %v11382_v28 = vld [vmem:[#allocation2 + $0xc0] sm:$0xff] }
  0xbd   : > { %9814 = vmatprep.mubr.msk.f32.mxu1 %vm407_vm0, %v11235_v36  ;;  %v546_v36 = vld [vmem:[%s11040_s18 + $0xf0] sm:$0xff] }
  0xbe   : > { %579 = vst.msk [vmem:[#allocation2 + $0x181] sm:$0xff] %vm407_vm0, %v546_v36  ;;  %v11410_v36 = vld [vmem:[#allocation2 + $0xe0] sm:$0xff] }
  0xbf   : > { %9738 = vmatmul.mubr.msk.f32.gmra.mrb[20].mxu0 %vm407_vm0, %v11366_v49 }
  0xc0   : > { %9815 = vmatmul.mubr.msk.f32.gmra.mrb[44].mxu1 %vm407_vm0, %v10963_v30  ;;  %9740 = vmatprep.mubr.msk.f32.mxu0 %vm407_vm0, %v11370_v50  ;;  %v11391_v30 = vld [vmem:[#allocation2 + $0xc8] sm:$0xff]  ;;  %v547_v50 = vld [vmem:[%s11040_s18 + $0xf8] sm:$0xff] }
  0xc1   : > { %9817 = vmatprep.mubr.msk.f32.mxu1 %vm407_vm0, %v10965_v31  ;;  %v11396_v31 = vld [vmem:[#allocation2 + $0xd0] sm:$0xff]  ;;  %580 = vst.msk [vmem:[#allocation2 + $0x189] sm:$0xff] %vm407_vm0, %v547_v50  ;;  %v11418_v50 = vld [vmem:[#allocation2 + $0xe8] sm:$0xff] }
  0xc3   : > { %9741 = vmatmul.mubr.msk.f32.gmra.mrb[22].mxu0 %vm407_vm0, %v11378_v3 }
  0xc4   : > { %9818 = vmatmul.mubr.msk.f32.gmra.mrb[46].mxu1 %vm407_vm0, %v10976_v33  ;;  %9743 = vmatprep.mubr.msk.f32.mxu0 %vm407_vm0, %v11382_v28  ;;  %v11406_v33 = vld [vmem:[#allocation2 + $0xd8] sm:$0xff] }
  0xc5   : > { %9820 = vmatprep.mubr.msk.f32.mxu1 %vm407_vm0, %v10992_v37 }
  0xc7   : > { %9744 = vmatmul.mubr.msk.f32.gmra.mrb[24].mxu0 %vm407_vm0, %v11391_v30 }
  0xc8   : > { %9821 = vmatmul.mubr.msk.f32.gmra.mrb[48].mxu1 %vm407_vm0, %v10998_v39  ;;  %9746 = vmatprep.mubr.msk.f32.mxu0 %vm407_vm0, %v11396_v31  ;;  %v11422_v39 = vld [vmem:[#allocation2 + $0xf0] sm:$0xff] }
  0xc9   : > { %9823 = vmatprep.mubr.msk.f32.mxu1 %vm407_vm0, %v11011_v41  ;;  %v11434_v41 = vld [vmem:[#allocation2 + $0x100] sm:$0xff] }
  0xcb   : > { %9747 = vmatmul.mubr.msk.f32.gmra.mrb[26].mxu0 %vm407_vm0, %v11406_v33 }
  0xcc   : > { %9824 = vmatmul.mubr.msk.f32.gmra.mrb[50].mxu1 %vm407_vm0, %v11015_v43  ;;  %9749 = vmatprep.mubr.msk.f32.mxu0 %vm407_vm0, %v11410_v36  ;;  %v11430_v43 = vld [vmem:[#allocation2 + $0xf8] sm:$0xff] }
  0xcd   : > { %9826 = vmatprep.mubr.msk.f32.mxu1 %vm407_vm0, %v11025_v45  ;;  %v11446_v45 = vld [vmem:[#allocation2 + $0x110] sm:$0xff] }
  0xcf   : > { %9750 = vmatmul.mubr.msk.f32.gmra.mrb[28].mxu0 %vm407_vm0, %v11418_v50 }
  0xd0   : > { %9827 = vmatmul.mubr.msk.f32.gmra.mrb[52].mxu1 %vm407_vm0, %v11029_v47  ;;  %9752 = vmatprep.mubr.msk.f32.mxu0 %vm407_vm0, %v11422_v39  ;;  %v11442_v47 = vld [vmem:[#allocation2 + $0x108] sm:$0xff] }
  0xd1   : > { %9829 = vmatprep.mubr.msk.f32.mxu1 %vm407_vm0, %v11052_v55  ;;  %v11458_v55 = vld [vmem:[#allocation2 + $0x120] sm:$0xff] }
  0xd3   : > { %9753 = vmatmul.mubr.msk.f32.gmra.mrb[30].mxu0 %vm407_vm0, %v11430_v43 }
  0xd4   : > { %9830 = vmatmul.mubr.msk.f32.gmra.mrb[54].mxu1 %vm407_vm0, %v11065_v59  ;;  %9755 = vmatprep.mubr.msk.f32.mxu0 %vm407_vm0, %v11434_v41  ;;  %v11454_v59 = vld [vmem:[#allocation2 + $0x118] sm:$0xff] }
  0xd5   : > { %9832 = vmatprep.mubr.msk.f32.mxu1 %vm407_vm0, %v11104_v12  ;;  %v11470_v12 = vld [vmem:[#allocation2 + $0x130] sm:$0xff] }
  0xd7   : > { %9756 = vmatmul.mubr.msk.f32.gmra.mrb[32].mxu0 %vm407_vm0, %v11442_v47 }
  0xd8   : > { %9833 = vmatmul.mubr.msk.f32.gmra.mrb[56].mxu1 %vm407_vm0, %v11111_v14  ;;  %9758 = vmatprep.mubr.msk.f32.mxu0 %vm407_vm0, %v11446_v45  ;;  %v11466_v14 = vld [vmem:[#allocation2 + $0x128] sm:$0xff] }
  0xd9   : > { %9835 = vmatprep.mubr.msk.f32.mxu1 %vm407_vm0, %v11123_v16  ;;  %v11482_v16 = vld [vmem:[#allocation2 + $0x140] sm:$0xff] }
  0xda   : > { %16190 = vst [vmem:[#allocation29_spill] sm:$0xff] %v11482_v16 }
  0xdb   : > { %9759 = vmatmul.mubr.msk.f32.gmra.mrb[34].mxu0 %vm407_vm0, %v11454_v59 }
  0xdc   : > { %9836 = vmatmul.mubr.msk.f32.gmra.mrb[58].mxu1 %vm407_vm0, %v11127_v18  ;;  %9761 = vmatprep.mubr.msk.f32.mxu0 %vm407_vm0, %v11458_v55  ;;  %v11478_v18 = vld [vmem:[#allocation2 + $0x138] sm:$0xff] }
  0xdd   : > { %9838 = vmatprep.mubr.msk.f32.mxu1 %vm407_vm0, %v11139_v20  ;;  %v11494_v20 = vld [vmem:[#allocation2 + $0x150] sm:$0xff] }
  0xde   : > { %16191 = vst [vmem:[#allocation30_spill] sm:$0xff] %v11494_v20 }
  0xdf   : > { %9762 = vmatmul.mubr.msk.f32.gmra.mrb[36].mxu0 %vm407_vm0, %v11466_v14 }
  0xe0   : > { %9839 = vmatmul.mubr.msk.f32.gmra.mrb[60].mxu1 %vm407_vm0, %v11145_v23  ;;  %9764 = vmatprep.mubr.msk.f32.mxu0 %vm407_vm0, %v11470_v12  ;;  %v11490_v23 = vld [vmem:[#allocation2 + $0x148] sm:$0xff] }
  0xe1   : > { %9841 = vmatprep.mubr.msk.f32.mxu1 %vm407_vm0, %v11149_v24  ;;  %v11506_v24 = vld [vmem:[#allocation3 + $0x180] sm:$0xff] }
  0xe2   : > { %16192 = vst [vmem:[#allocation31_spill] sm:$0xff] %v11506_v24 }
  0xe3   : > { %9765 = vmatmul.mubr.msk.f32.gmra.mrb[38].mxu0 %vm407_vm0, %v11478_v18 }
  0xe4   : > { %9842 = vmatmul.mubr.msk.f32.gmra.mrb[62].mxu1 %vm407_vm0, %v11158_v27  ;;  %9767 = vmatprep.mubr.msk.f32.mxu0 %vm407_vm0, %v11482_v16  ;;  %v11502_v27 = vld [vmem:[#allocation2 + $0x158] sm:$0xff]  ;;  %v11508_v16 = vld [vmem:[#allocation2 + $0x160] sm:$0xff] }
  0xe5   : > { %9844 = vmatprep.mubr.msk.f32.mxu1 %vm407_vm0, %v11182_v60  ;;  %v11510_v60 = vld [vmem:[#allocation3 + $0x188] sm:$0xff] }
  0xe7   : > { %9768 = vmatmul.mubr.msk.f32.gmra.mrb[40].mxu0 %vm407_vm0, %v11490_v23 }
  0xe8   : > { %9845 = vmatmul.mubr.msk.f32.gmra.mrb[64].mxu1 %vm407_vm0, %v11210_v9  ;;  %9770 = vmatprep.mubr.msk.f32.mxu0 %vm407_vm0, %v11494_v20  ;;  %v11518_v9 = vld [vmem:[#allocation2 + $0x168] sm:$0xff]  ;;  %v11524_v20 = vld [vmem:[#allocation2 + $0x170] sm:$0xff] }
  0xe9   : > { %9847 = vmatprep.mubr.msk.f32.mxu1 %vm407_vm0, %v11225_v26  ;;  %v11522_v26 = vld [vmem:[#allocation3 + $0x190] sm:$0xff] }
  0xeb   : > { %9771 = vmatmul.mubr.msk.f32.gmra.mrb[42].mxu0 %vm407_vm0, %v11502_v27 }
  0xec   : > { %9848 = vmatmul.mubr.msk.f32.gmra.mrb[66].mxu1 %vm407_vm0, %v11506_v24  ;;  %9773 = vmatprep.mubr.msk.f32.mxu0 %vm407_vm0, %v11508_v16  ;;  %v11532_v24 = vld [vmem:[#allocation2 + $0x178] sm:$0xff] }
  0xed   : > { %9850 = vmatprep.mubr.msk.f32.mxu1 %vm407_vm0, %v11510_v60 }
  0xef   : > { %9774 = vmatmul.mubr.msk.f32.gmra.mrb[44].mxu0 %vm407_vm0, %v11518_v9 }
  0xf0   : > { %9851 = vmatmul.mubr.msk.f32.gmra.mrb[68].mxu1 %vm407_vm0, %v11522_v26  ;;  %9776 = vmatprep.mubr.msk.f32.mxu0 %vm407_vm0, %v11524_v20 }
  0xf1   : > { %9855 = vmatprep.mubr.msk.f32.mxu1 %vm407_vm0, %v11251_v29  ;;  %v16211_v29 = vld [vmem:[#allocation29_spill] sm:$0xff] }
  0xf3   : > { %9777 = vmatmul.mubr.msk.f32.gmra.mrb[46].mxu0 %vm407_vm0, %v11532_v24 }
  0xf4   : > { %9856 = vmatmul.mubr.msk.f32.vlgmr.msra.gmra.mrb[22].mxu1 %vm407_vm0, %v11255_v32  ;;  %9929 = vmatprep.mubr.msk.f32.mxu0 %vm407_vm0, %v10994_v38  ;;  %v16193_v38 = vld [vmem:[#allocation28_spill] sm:$0xff] }
  0xf5   : > { %9858 = vmatprep.mubr.msk.f32.mxu1 %vm407_vm0, %v11264_v34  ;;  %v16212_v32 = vld [vmem:[#allocation20_spill] sm:$0xff] }
  0xf7   : > { %9930 = vmatmul.mubr.msk.f32.vlgmr.msra.gmra.mrb[48].mxu0 %vm407_vm0, %v11007_v40  ;;  %v16194_v40 = vld [vmem:[#allocation26_spill] sm:$0xff] }
  0xf8   : > { %9859 = vmatmul.mubr.msk.f32.gmra.mrb[24].mxu1 %vm407_vm0, %v11268_v35  ;;  %9932 = vmatprep.mubr.msk.f32.mxu0 %vm407_vm0, %v11013_v42  ;;  %v16195_v42 = vld [vmem:[#allocation27_spill] sm:$0xff] }
  0xf9   : > { %9861 = vmatprep.mubr.msk.f32.mxu1 %vm407_vm0, %v11276_v10  ;;  %10002 = vmatpush3.msra.mxu0 %v11329_v4  ;;  %v16213_v4 = vld [vmem:[#allocation21_spill] sm:$0xff] }
  0xfb   : > { %9933 = vmatmul.mubr.msk.f32.gmra.mrb[50].mxu0 %vm407_vm0, %v11019_v44  ;;  %v16196_v44 = vld [vmem:[#allocation5_spill] sm:$0xff] }
  0xfc   : > { %9862 = vmatmul.mubr.msk.f32.gmra.mrb[26].mxu1 %vm407_vm0, %v11280_v52  ;;  %9935 = vmatprep.mubr.msk.f32.mxu0 %vm407_vm0, %v11027_v46  ;;  %v16197_v46 = vld [vmem:[#allocation6_spill] sm:$0xff] }
  0xfd   : > { %9864 = vmatprep.mubr.msk.f32.mxu1 %vm407_vm0, %v11288_v54 }
  0xff   : > { %9936 = vmatmul.mubr.msk.f32.gmra.mrb[52].mxu0 %vm407_vm0, %v11042_v51  ;;  %v16198_v51 = vld [vmem:[#allocation7_spill] sm:$0xff] }
 0x100   : > { %9865 = vmatmul.mubr.msk.f32.gmra.mrb[28].mxu1 %vm407_vm0, %v11292_v56  ;;  %9938 = vmatprep.mubr.msk.f32.mxu0 %vm407_vm0, %v11063_v58  ;;  %v16199_v58 = vld [vmem:[#allocation8_spill] sm:$0xff] }
 0x101   : > { %9867 = vmatprep.mubr.msk.f32.mxu1 %vm407_vm0, %v11300_v57 }
 0x103   : > { %9939 = vmatmul.mubr.msk.f32.gmra.mrb[54].mxu0 %vm407_vm0, %v11076_v0  ;;  %v16200_v0 = vld [vmem:[#allocation9_spill] sm:$0xff] }
 0x104   : > { %9868 = vmatmul.mubr.msk.f32.gmra.mrb[30].mxu1 %vm407_vm0, %v11304_v62  ;;  %9941 = vmatprep.mubr.msk.f32.mxu0 %vm407_vm0, %v11106_v13  ;;  %v16201_v13 = vld [vmem:[#allocation10_spill] sm:$0xff] }
 0x105   : > { %9870 = vmatprep.mubr.msk.f32.mxu1 %vm407_vm0, %v11312_v63 }
 0x107   : > { %9942 = vmatmul.mubr.msk.f32.gmra.mrb[56].mxu0 %vm407_vm0, %v11119_v15  ;;  %v16203_v15 = vld [vmem:[#allocation12_spill] sm:$0xff] }
 0x108   : > { %9871 = vmatmul.mubr.msk.f32.gmra.mrb[32].mxu1 %vm407_vm0, %v11316_v1  ;;  %9944 = vmatprep.mubr.msk.f32.mxu0 %vm407_vm0, %v11125_v17  ;;  %v16204_v17 = vld [vmem:[#allocation13_spill] sm:$0xff] }
 0x109   : > { %9873 = vmatprep.mubr.msk.f32.mxu1 %vm407_vm0, %v11324_v2 }
 0x10b   : > { %9945 = vmatmul.mubr.msk.f32.gmra.mrb[58].mxu0 %vm407_vm0, %v11135_v19  ;;  %v16205_v19 = vld [vmem:[#allocation14_spill] sm:$0xff] }
 0x10c   : > { %9874 = vmatmul.mubr.msk.f32.gmra.mrb[34].mxu1 %vm407_vm0, %v11333_v5  ;;  %9947 = vmatprep.mubr.msk.f32.mxu0 %vm407_vm0, %v11141_v21  ;;  %v16206_v21 = vld [vmem:[#allocation15_spill] sm:$0xff] }
 0x10d   : > { %9876 = vmatprep.mubr.msk.f32.mxu1 %vm407_vm0, %v11342_v6 }
 0x10f   : > { %9948 = vmatmul.mubr.msk.f32.gmra.mrb[60].mxu0 %vm407_vm0, %v11143_v22  ;;  %v16207_v22 = vld [vmem:[#allocation16_spill] sm:$0xff] }
 0x110   : > { %9877 = vmatmul.mubr.msk.f32.gmra.mrb[36].mxu1 %vm407_vm0, %v11346_v7  ;;  %9950 = vmatprep.mubr.msk.f32.mxu0 %vm407_vm0, %v11151_v25  ;;  %v16208_v25 = vld [vmem:[#allocation17_spill] sm:$0xff] }
 0x111   : > { %9879 = vmatprep.mubr.msk.f32.mxu1 %vm407_vm0, %v11354_v8 }
 0x113   : > { %9951 = vmatmul.mubr.msk.f32.gmra.mrb[62].mxu0 %vm407_vm0, %v11172_v53  ;;  %v16209_v53 = vld [vmem:[#allocation18_spill] sm:$0xff] }
 0x114   : > { %9880 = vmatmul.mubr.msk.f32.gmra.mrb[38].mxu1 %vm407_vm0, %v11358_v48  ;;  %9953 = vmatprep.mubr.msk.f32.mxu0 %vm407_vm0, %v11184_v61  ;;  %v16210_v61 = vld [vmem:[#allocation19_spill] sm:$0xff] }
 0x115   : > { %9882 = vmatprep.mubr.msk.f32.mxu1 %vm407_vm0, %v11366_v49 }
 0x117   : > { %9954 = vmatmul.mubr.msk.f32.gmra.mrb[64].mxu0 %vm407_vm0, %v11221_v11 }
 0x118   : > { %9883 = vmatmul.mubr.msk.f32.gmra.mrb[40].mxu1 %vm407_vm0, %v16193_v38  ;;  %9956 = vmatprep.mubr.msk.f32.mxu0 %vm407_vm0, %v16194_v40 }
 0x119   : > { %9885 = vmatprep.mubr.msk.f32.mxu1 %vm407_vm0, %v11378_v3 }
 0x11b   : > { %9957 = vmatmul.mubr.msk.f32.gmra.mrb[66].mxu0 %vm407_vm0, %v16195_v42  ;;  %v16214_v42 = vld [vmem:[#allocation30_spill] sm:$0xff] }
 0x11c   : > { %9886 = vmatmul.mubr.msk.f32.gmra.mrb[42].mxu1 %vm407_vm0, %v11382_v28  ;;  %9959 = vmatprep.mubr.msk.f32.mxu0 %vm407_vm0, %v16196_v44  ;;  %v16215_v44 = vld [vmem:[#allocation22_spill] sm:$0xff] }
 0x11d   : > { %9888 = vmatprep.mubr.msk.f32.mxu1 %vm407_vm0, %v11391_v30 }
 0x11f   : > { %9960 = vmatmul.mubr.msk.f32.gmra.mrb[68].mxu0 %vm407_vm0, %v16197_v46 }
 0x120   : > { %9889 = vmatmul.mubr.msk.f32.gmra.mrb[44].mxu1 %vm407_vm0, %v11396_v31  ;;  %9962 = vmatprep.mubr.msk.f32.mxu0 %vm407_vm0, %v16198_v51  ;;  %v16216_v51 = vld [vmem:[#allocation23_spill] sm:$0xff] }
 0x121   : > { %9891 = vmatprep.mubr.msk.f32.mxu1 %vm407_vm0, %v11406_v33 }
 0x123   : > { %9963 = vmatmul.mubr.msk.f32.gmra.mrb[70].mxu0 %vm407_vm0, %v10992_v37  ;;  %v16202_v37 = vld [vmem:[#allocation11_spill] sm:$0xff] }
 0x124   : > { %9892 = vmatmul.mubr.msk.f32.gmra.mrb[46].mxu1 %vm407_vm0, %v11410_v36  ;;  %9965 = vmatprep.mubr.msk.f32.mxu0 %vm407_vm0, %v16199_v58 }
 0x125   : > { %9894 = vmatprep.mubr.msk.f32.mxu1 %vm407_vm0, %v11418_v50 }
 0x127   : > { %9966 = vmatmul.mubr.msk.f32.gmra.mrb[72].mxu0 %vm407_vm0, %v16200_v0  ;;  %v16217_v0 = vld [vmem:[#allocation24_spill] sm:$0xff] }
 0x128   : > { %9895 = vmatmul.mubr.msk.f32.gmra.mrb[48].mxu1 %vm407_vm0, %v11422_v39  ;;  %9968 = vmatprep.mubr.msk.f32.mxu0 %vm407_vm0, %v16201_v13 }
 0x129   : > { %9897 = vmatprep.mubr.msk.f32.mxu1 %vm407_vm0, %v11430_v43 }
 0x12b   : > { %9969 = vmatmul.mubr.msk.f32.gmra.mrb[74].mxu0 %vm407_vm0, %v16202_v37  ;;  %v16218_v37 = vld [vmem:[#allocation25_spill] sm:$0xff] }
 0x12c   : > { %9898 = vmatmul.mubr.msk.f32.gmra.mrb[50].mxu1 %vm407_vm0, %v11434_v41  ;;  %9971 = vmatprep.mubr.msk.f32.mxu0 %vm407_vm0, %v16203_v15 }
 0x12d   : > { %9900 = vmatprep.mubr.msk.f32.mxu1 %vm407_vm0, %v11442_v47 }
 0x12f   : > { %9972 = vmatmul.mubr.msk.f32.gmra.mrb[76].mxu0 %vm407_vm0, %v16204_v17  ;;  %v16219_v17 = vld [vmem:[#allocation31_spill] sm:$0xff] }
 0x130   : > { %9901 = vmatmul.mubr.msk.f32.gmra.mrb[52].mxu1 %vm407_vm0, %v11446_v45  ;;  %9974 = vmatprep.mubr.msk.f32.mxu0 %vm407_vm0, %v16205_v19 }
 0x131   : > { %9903 = vmatprep.mubr.msk.f32.mxu1 %vm407_vm0, %v11454_v59 }
 0x133   : > { %9975 = vmatmul.mubr.msk.f32.gmra.mrb[78].mxu0 %vm407_vm0, %v16206_v21  ;;  %v11729_v21 = vld [vmem:[#allocation2 + $0x180] sm:$0xff] }
 0x134   : > { %9904 = vmatmul.mubr.msk.f32.gmra.mrb[54].mxu1 %vm407_vm0, %v11458_v55  ;;  %9977 = vmatprep.mubr.msk.f32.mxu0 %vm407_vm0, %v16207_v22  ;;  %v11731_v22 = vld [vmem:[#allocation2 + $0x188] sm:$0xff] }
 0x135   : > { %9906 = vmatprep.mubr.msk.f32.mxu1 %vm407_vm0, %v11466_v14 }
 0x137   : > { %9978 = vmatmul.mubr.msk.f32.gmra.mrb[80].mxu0 %vm407_vm0, %v16208_v25 }
 0x138   : > { %9907 = vmatmul.mubr.msk.f32.gmra.mrb[56].mxu1 %vm407_vm0, %v11470_v12  ;;  %9980 = vmatprep.mubr.msk.f32.mxu0 %vm407_vm0, %v16209_v53  ;;  %v3701_v53 = vld [vmem:[#allocation3 + $0x198] sm:$0xff] }
 0x139   : > { %9909 = vmatprep.mubr.msk.f32.mxu1 %vm407_vm0, %v11478_v18 }
 0x13b   : > { %9981 = vmatmul.mubr.msk.f32.gmra.mrb[82].mxu0 %vm407_vm0, %v16210_v61  ;;  %v11683_v11 = vpop.f32.mrb[0].mxu1 }
 0x13c   : > { %9910 = vmatmul.mubr.msk.f32.gmra.mrb[58].mxu1 %vm407_vm0, %v16211_v29  ;;  %9983 = vmatprep.mubr.msk.f32.mxu0 %vm407_vm0, %v16212_v32  ;;  %v11689_v34 = vpop.f32.mrb[1].mxu1  ;;  %v11745_v32 = vld [vmem:[#allocation2 + $0x190] sm:$0xff] }
 0x13d   : > { %9912 = vmatprep.mubr.msk.f32.mxu1 %vm407_vm0, %v11490_v23 }
 0x13f   : > { %9984 = vmatmul.mubr.msk.f32.gmra.mrb[84].mxu0 %vm407_vm0, %v16213_v4  ;;  %v11695_v40 = vpop.f32.mrb[2].mxu1  ;;  %v3702_v4 = vld [vmem:[#allocation3 + $0x1a0] sm:$0xff] }
 0x140   : > { %9913 = vmatmul.mubr.msk.f32.gmra.mrb[60].mxu1 %vm407_vm0, %v16214_v42  ;;  %9986 = vmatprep.mubr.msk.f32.mxu0 %vm407_vm0, %v16215_v44  ;;  %v11701_v46 = vpop.f32.mrb[3].mxu1  ;;  %v3703_v44 = vld [vmem:[#allocation3 + $0x1a8] sm:$0xff] }
 0x141   : > { %9915 = vmatprep.mubr.msk.f32.mxu1 %vm407_vm0, %v11502_v27 }
 0x143   : > { %9987 = vmatmul.mubr.msk.f32.gmra.mrb[86].mxu0 %vm407_vm0, %v16216_v51  ;;  %v11707_v58 = vpop.f32.mrb[4].mxu1 }
 0x144   : > { %9916 = vmatmul.mubr.msk.f32.gmra.mrb[62].mxu1 %vm407_vm0, %v11508_v16  ;;  %9989 = vmatprep.mubr.msk.f32.mxu0 %vm407_vm0, %v16217_v0  ;;  %v11713_v13 = vpop.f32.mrb[5].mxu1 }
 0x145   : > { %9918 = vmatprep.mubr.msk.f32.mxu1 %vm407_vm0, %v11518_v9 }
 0x147   : > { %9990 = vmatmul.mubr.msk.f32.gmra.mrb[88].mxu0 %vm407_vm0, %v16218_v37  ;;  %v11719_v15 = vpop.f32.mrb[6].mxu1 }
 0x148   : > { %9919 = vmatmul.mubr.msk.f32.gmra.mrb[64].mxu1 %vm407_vm0, %v11524_v20  ;;  %9992 = vmatprep.mubr.msk.f32.mxu0 %vm407_vm0, %v16219_v17  ;;  %v11725_v19 = vpop.f32.mrb[7].mxu1 }
 0x149   : > { %9921 = vmatprep.mubr.msk.f32.mxu1 %vm407_vm0, %v11532_v24 }
 0x14b   : > { %9993 = vmatmul.mubr.msk.f32.gmra.mrb[90].mxu0 %vm407_vm0, %v11510_v60  ;;  %v11735_v25 = vpop.f32.mrb[8].mxu1 }
 0x14c   : > { %9922 = vmatmul.mubr.msk.f32.gmra.mrb[66].mxu1 %vm407_vm0, %v11729_v21  ;;  %9995 = vmatprep.mubr.msk.f32.mxu0 %vm407_vm0, %v11522_v26  ;;  %v11741_v61 = vpop.f32.mrb[9].mxu1 }
 0x14d   : > { %9924 = vmatprep.mubr.msk.f32.mxu1 %vm407_vm0, %v11731_v22 }
 0x14f   : > { %9996 = vmatmul.mubr.msk.f32.gmra.mrb[92].mxu0 %vm407_vm0, %v3701_v53  ;;  %v11748_v60 = vpop.f32.mrb[10].mxu1 }
 0x150   : > { %9925 = vmatmul.mubr.msk.f32.gmra.mrb[68].mxu1 %vm407_vm0, %v11745_v32  ;;  %9998 = vmatprep.mubr.msk.f32.mxu0 %vm407_vm0, %v3702_v4  ;;  %v11753_v26 = vpop.f32.mrb[11].mxu1 }
 0x153   : > { %9999 = vmatmul.mubr.msk.f32.gmra.mrb[94].mxu0 %vm407_vm0, %v3703_v44  ;;  %v11756_v51 = vpop.f32.mrb[12].mxu1 }
 0x154   : > { %10003 = vmatprep.mubr.msk.f32.mxu0 %vm407_vm0, %v11268_v35  ;;  %v11760_v0 = vpop.f32.mrb[13].mxu1 }
 0x157   : > { %10004 = vmatmul.mubr.msk.f32.vlgmr.msra.gmra.mrb[48].mxu0 %vm407_vm0, %v11276_v10  ;;  %v11764_v37 = vpop.f32.mrb[14].mxu1 }
 0x158   : > { %10006 = vmatprep.mubr.msk.f32.mxu0 %vm407_vm0, %v11280_v52  ;;  %v11768_v17 = vpop.f32.mrb[15].mxu1 }
 0x15b   : > { %10007 = vmatmul.mubr.msk.f32.gmra.mrb[50].mxu0 %vm407_vm0, %v11288_v54  ;;  %v11772_v53 = vpop.f32.mrb[16].mxu1 }
 0x15c   : > { %10009 = vmatprep.mubr.msk.f32.mxu0 %vm407_vm0, %v11292_v56  ;;  %v11776_v35 = vpop.f32.mrb[17].mxu1 }
 0x15f   : > { %10010 = vmatmul.mubr.msk.f32.gmra.mrb[52].mxu0 %vm407_vm0, %v11300_v57  ;;  %v11780_v10 = vpop.f32.mrb[18].mxu1 }
 0x160   : > { %16220 = vst [vmem:[#allocation28_spill] sm:$0xff] %v11780_v10  ;;  %10012 = vmatprep.mubr.msk.f32.mxu0 %vm407_vm0, %v11304_v62  ;;  %v11784_v52 = vpop.f32.mrb[19].mxu1 }
 0x161   : > { %16221 = vst [vmem:[#allocation26_spill] sm:$0xff] %v11784_v52 }
 0x163   : > { %10013 = vmatmul.mubr.msk.f32.gmra.mrb[54].mxu0 %vm407_vm0, %v11312_v63  ;;  %v11788_v54 = vpop.f32.mrb[20].mxu1 }
 0x164   : > { %16222 = vst [vmem:[#allocation27_spill] sm:$0xff] %v11788_v54  ;;  %10015 = vmatprep.mubr.msk.f32.mxu0 %vm407_vm0, %v11316_v1  ;;  %v11792_v56 = vpop.f32.mrb[21].mxu1 }
 0x165   : > { %16223 = vst [vmem:[#allocation5_spill] sm:$0xff] %v11792_v56 }
 0x167   : > { %10016 = vmatmul.mubr.msk.f32.gmra.mrb[56].mxu0 %vm407_vm0, %v11324_v2 }
 0x168   : > { %10018 = vmatprep.mubr.msk.f32.mxu0 %vm407_vm0, %v11333_v5 }
 0x16a   : > { %v11798_v57 = vpop.f32.mrb[0].mxu0 }
 0x16b   : > { %16224 = vst [vmem:[#allocation6_spill] sm:$0xff] %v11798_v57  ;;  %v1694_v62 = vrot.slane %v11798_v57, 1  ;;  %v1903_v4 = vrot.slane %v11798_v57, 2  ;;  %v11802_v63 = vpop.f32.mrb[1].mxu0  ;;  %10019 = vmatmul.mubr.msk.f32.gmra.mrb[58].mxu0 %vm407_vm0, %v11342_v6 }
 0x16c   : > { %16225 = vst [vmem:[#allocation7_spill] sm:$0xff] %v11802_v63  ;;  %v1693_v1 = vrot.slane %v11802_v63, 1  ;;  %v1902_v2 = vrot.slane %v11802_v63, 2  ;;  %10021 = vmatprep.mubr.msk.f32.mxu0 %vm407_vm0, %v11346_v7 }
 0x16e   : > { %v11810_v5 = vpop.f32.mrb[2].mxu0  ;;  %v1695_v44 = vsel %vm1692_vm1, %v1693_v1, %v1694_v62  ;;  %v1904_v57 = vsel %vm1901_vm2, %v1902_v2, %v1903_v4 }
 0x16f   : > { %1773 = vrot.lane.b32.xlu0 %v1695_v44, %s10478_s21  ;;  %v1415_v56 = vpop.f32.mrb[3].mxu0  ;;  %10022 = vmatmul.mubr.msk.f32.gmra.mrb[60].mxu0 %vm407_vm0, %v11354_v8  ;;  %v1698_v8 = vrot.slane %v11810_v5, 1 }
 0x170   : > { %v1696_v6 = vrot.slane %v1415_v56, 1  ;;  %v1905_v54 = vrot.slane %v1415_v56, 2  ;;  %10024 = vmatprep.mubr.msk.f32.mxu0 %vm407_vm0, %v11358_v48  ;;  %v1907_v56 = vrot.slane %v11810_v5, 2 }
 0x172   : > { %v9715_v63 = vpop.f32.mrb[4].mxu0  ;;  %v1697_v7 = vsel %vm1692_vm1, %v1694_v62, %v1696_v6  ;;  %v1906_v52 = vsel %vm1901_vm2, %v1903_v4, %v1905_v54 }
 0x173   : > { %v1701_v1 = vrot.slane %v9715_v63, 1  ;;  %v1910_v10 = vrot.slane %v9715_v63, 2  ;;  %1982 = vrot.lane.b32.xlu0 %v1904_v57, %s10479_s22  ;;  %10025 = vmatmul.mubr.msk.f32.gmra.mrb[62].mxu0 %vm407_vm0, %v11366_v49  ;;  %v11824_v2 = vpop.f32.mrb[5].mxu0 }
 0x174   : > { %1775 = vrot.lane.b32.xlu1 %v1697_v7, %s10478_s21  ;;  %v1699_v48 = vrot.slane %v11824_v2, 1  ;;  %v1908_v54 = vrot.slane %v11824_v2, 2  ;;  %10027 = vmatprep.mubr.msk.f32.mxu0 %vm407_vm0, %v16193_v38 }
 0x176   : > { %v11833_v62 = vpop.f32.mrb[6].mxu0  ;;  %v1702_v57 = vsel %vm1692_vm1, %v1699_v48, %v1701_v1  ;;  %v1909_v49 = vsel %vm1901_vm2, %v1907_v56, %v1908_v54  ;;  %v1700_v4 = vsel %vm1692_vm1, %v1698_v8, %v1699_v48  ;;  %v1911_v63 = vsel %vm1901_vm2, %v1908_v54, %v1910_v10 }
 0x177   : > { %v1704_v44 = vrot.slane %v11833_v62, 1  ;;  %v1913_v6 = vrot.slane %v11833_v62, 2  ;;  %10028 = vmatmul.mubr.msk.f32.gmra.mrb[64].mxu0 %vm407_vm0, %v11378_v3  ;;  %1779 = vrot.lane.b32.xlu0 %v1702_v57, %s10478_s21  ;;  %v11844_v38 = vpop.f32.mrb[7].mxu0 }
 0x178   : > { %1984 = vrot.lane.b32.xlu1 %v1906_v52, %s10479_s22  ;;  %v1703_v7 = vrot.slane %v11844_v38, 1  ;;  %v1912_v1 = vrot.slane %v11844_v38, 2  ;;  %10030 = vmatprep.mubr.msk.f32.mxu0 %vm407_vm0, %v11382_v28 }
 0x17a   : > { %v11851_v10 = vpop.f32.mrb[8].mxu0  ;;  %v1914_v8 = vsel %vm1901_vm2, %v1912_v1, %v1913_v6  ;;  %v1705_v56 = vsel %vm1692_vm1, %v1703_v7, %v1704_v44 }
 0x17b   : > { %10031 = vmatmul.mubr.msk.f32.gmra.mrb[66].mxu0 %vm407_vm0, %v11391_v30  ;;  %1986 = vrot.lane.b32.xlu0 %v1909_v49, %s10479_s22  ;;  %v1445_v3 = vpop.f32.mrb[9].mxu0  ;;  %v1708_v49 = vrot.slane %v11851_v10, 1 }
 0x17c   : > { %1777 = vrot.lane.b32.xlu1 %v1700_v4, %s10478_s21  ;;  %v1706_v52 = vrot.slane %v1445_v3, 1  ;;  %v1915_v48 = vrot.slane %v1445_v3, 2  ;;  %10033 = vmatprep.mubr.msk.f32.mxu0 %vm407_vm0, %v11396_v31  ;;  %v1917_v4 = vrot.slane %v11851_v10, 2 }
 0x17e   : > { %v9724_v28 = vpop.f32.mrb[10].mxu0  ;;  %v1707_v54 = vsel %vm1692_vm1, %v1704_v44, %v1706_v52  ;;  %v1916_v57 = vsel %vm1901_vm2, %v1913_v6, %v1915_v48 }
 0x17f   : > { %v1711_v1 = vrot.slane %v9724_v28, 1  ;;  %v1920_v7 = vrot.slane %v9724_v28, 2  ;;  %10034 = vmatmul.mubr.msk.f32.gmra.mrb[68].mxu0 %vm407_vm0, %v11406_v33  ;;  %1988 = vrot.lane.b32.xlu0 %v1911_v63, %s10479_s22  ;;  %v11866_v30 = vpop.f32.mrb[11].mxu0 }
 0x180   : > { %1990 = vrot.lane.b32.xlu1 %v1914_v8, %s10479_s22  ;;  %v1709_v31 = vrot.slane %v11866_v30, 1  ;;  %v1918_v44 = vrot.slane %v11866_v30, 2  ;;  %10036 = vmatprep.mubr.msk.f32.mxu0 %vm407_vm0, %v11410_v36 }
 0x182   : > { %v11875_v6 = vpop.f32.mrb[12].mxu0  ;;  %v1710_v33 = vsel %vm1692_vm1, %v1708_v49, %v1709_v31  ;;  %v1712_v63 = vsel %vm1692_vm1, %v1709_v31, %v1711_v1  ;;  %v1921_v3 = vsel %vm1901_vm2, %v1918_v44, %v1920_v7  ;;  %v1919_v52 = vsel %vm1901_vm2, %v1917_v4, %v1918_v44 }
 0x183   : > { %v1714_v48 = vrot.slane %v11875_v6, 1  ;;  %v1923_v8 = vrot.slane %v11875_v6, 2  ;;  %10037 = vmatmul.mubr.msk.f32.gmra.mrb[70].mxu0 %vm407_vm0, %v11418_v50  ;;  %1781 = vrot.lane.b32.xlu0 %v1705_v56, %s10478_s21  ;;  %v11886_v36 = vpop.f32.mrb[13].mxu0 }
 0x184   : > { %1785 = vrot.lane.b32.xlu1 %v1710_v33, %s10478_s21  ;;  %v1713_v28 = vrot.slane %v11886_v36, 1  ;;  %v1922_v1 = vrot.slane %v11886_v36, 2  ;;  %10039 = vmatprep.mubr.msk.f32.mxu0 %vm407_vm0, %v11422_v39 }
 0x186   : > { %v11893_v7 = vpop.f32.mrb[14].mxu0  ;;  %v1924_v49 = vsel %vm1901_vm2, %v1922_v1, %v1923_v8  ;;  %v1715_v4 = vsel %vm1692_vm1, %v1713_v28, %v1714_v48 }
 0x187   : > { %16226 = vst [vmem:[#allocation8_spill] sm:$0xff] %v11893_v7  ;;  %10040 = vmatmul.mubr.msk.f32.gmra.mrb[72].mxu0 %vm407_vm0, %v11430_v43  ;;  %1783 = vrot.lane.b32.xlu0 %v1707_v54, %s10478_s21  ;;  %v1475_v50 = vpop.f32.mrb[15].mxu0  ;;  %v1718_v54 = vrot.slane %v11893_v7, 1 }
 0x188   : > { %1787 = vrot.lane.b32.xlu1 %v1712_v63, %s10478_s21  ;;  %v1716_v56 = vrot.slane %v1475_v50, 1  ;;  %v1925_v31 = vrot.slane %v1475_v50, 2  ;;  %10042 = vmatprep.mubr.msk.f32.mxu0 %vm407_vm0, %v11434_v41  ;;  %v1927_v63 = vrot.slane %v11893_v7, 2  ;;  %v5297_v7 = vld [vmem:[#allocation4] sm:$0xff] }
 0x189   : > { %10077 = vmatprep.mubr.msk.f32.mxu1 %vm407_vm0, %v5297_v7 }
 0x18a   : > { %v9733_v39 = vpop.f32.mrb[16].mxu0  ;;  %v1717_v44 = vsel %vm1692_vm1, %v1714_v48, %v1716_v56  ;;  %v11905_v33 = vsel %vm1901_vm2, %v1923_v8, %v1925_v31 }
 0x18b   : > { %v1721_v28 = vrot.slane %v9733_v39, 1  ;;  %v1930_v1 = vrot.slane %v9733_v39, 2  ;;  %10043 = vmatmul.mubr.msk.f32.gmra.mrb[74].mxu0 %vm407_vm0, %v11442_v47  ;;  %1992 = vrot.lane.b32.xlu0 %v1916_v57, %s10479_s22  ;;  %v11910_v43 = vpop.f32.mrb[17].mxu0  ;;  %v5345_v47 = vld [vmem:[%s16003_s6] sm:$0xff] }
 0x18c   : > { %1996 = vrot.lane.b32.xlu1 %v1921_v3, %s10479_s22  ;;  %v1719_v41 = vrot.slane %v11910_v43, 1  ;;  %v1928_v48 = vrot.slane %v11910_v43, 2  ;;  %10045 = vmatprep.mubr.msk.f32.mxu0 %vm407_vm0, %v11446_v45 }
 0x18d   : > { %10075 = vmatprep.subr.mxu1 %v5345_v47 }
 0x18e   : > { %v11922_v57 = vpop.f32.mrb[18].mxu0  ;;  %v1720_v8 = vsel %vm1692_vm1, %v1718_v54, %v1719_v41  ;;  %v1722_v50 = vsel %vm1692_vm1, %v1719_v41, %v1721_v28  ;;  %v1931_v56 = vsel %vm1901_vm2, %v1928_v48, %v1930_v1  ;;  %v1929_v3 = vsel %vm1901_vm2, %v1927_v63, %v1928_v48  ;;  %v5298_v54 = vld [vmem:[#allocation4 + $0x8] sm:$0xff]  ;;  %10076 = vmatpush3.msra.mxu1 %v5345_v47 }
 0x18f   : > { %v1724_v31 = vrot.slane %v11922_v57, 1  ;;  %v1933_v39 = vrot.slane %v11922_v57, 2  ;;  %10046 = vmatmul.mubr.msk.f32.gmra.mrb[76].mxu0 %vm407_vm0, %v11454_v59  ;;  %1994 = vrot.lane.b32.xlu0 %v1919_v52, %s10479_s22  ;;  %v11933_v45 = vpop.f32.mrb[19].mxu0 }
 0x190   : > { %1998 = vrot.lane.b32.xlu1 %v1924_v49, %s10479_s22  ;;  %v1723_v28 = vrot.slane %v11933_v45, 1  ;;  %v1932_v1 = vrot.slane %v11933_v45, 2  ;;  %10048 = vmatprep.mubr.msk.f32.mxu0 %vm407_vm0, %v11458_v55 }
 0x191   : > { %10078 = vmatmul.mubr.msk.f32.vlgmr.msra.gmra.mrb[70].mxu1 %vm407_vm0, %v5298_v54 }
 0x192   : > { %v11941_v63 = vpop.f32.mrb[20].mxu0  ;;  %v1934_v59 = vsel %vm1901_vm2, %v1932_v1, %v1933_v39  ;;  %v1725_v52 = vsel %vm1692_vm1, %v1723_v28, %v1724_v31 }
 0x193   : > { %16227 = vst [vmem:[#allocation9_spill] sm:$0xff] %v11941_v63  ;;  %10049 = vmatmul.mubr.msk.f32.gmra.mrb[78].mxu0 %vm407_vm0, %v11466_v14  ;;  %1789 = vrot.lane.b32.xlu0 %v1715_v4, %s10478_s21  ;;  %v1505_v49 = vpop.f32.mrb[21].mxu0  ;;  %v1728_v4 = vrot.slane %v11941_v63, 1 }
 0x194   : > { %1793 = vrot.lane.b32.xlu1 %v1720_v8, %s10478_s21  ;;  %v1726_v55 = vrot.slane %v1505_v49, 1  ;;  %v1935_v41 = vrot.slane %v1505_v49, 2  ;;  %10051 = vmatprep.mubr.msk.f32.mxu0 %vm407_vm0, %v11470_v12  ;;  %v1937_v8 = vrot.slane %v11941_v63, 2 }
 0x196   : > { %v9742_v7 = vpop.f32.mrb[22].mxu0  ;;  %v1727_v48 = vsel %vm1692_vm1, %v1724_v31, %v1726_v55  ;;  %v1936_v47 = vsel %vm1901_vm2, %v1933_v39, %v1935_v41 }
 0x197   : > { %v1731_v28 = vrot.slane %v9742_v7, 1  ;;  %v1940_v1 = vrot.slane %v9742_v7, 2  ;;  %10052 = vmatmul.mubr.msk.f32.gmra.mrb[80].mxu0 %vm407_vm0, %v11478_v18  ;;  %1791 = vrot.lane.b32.xlu0 %v1717_v44, %s10478_s21  ;;  %v11957_v14 = vpop.f32.mrb[23].mxu0 }
 0x198   : > { %16228 = vst [vmem:[#allocation10_spill] sm:$0xff] %v11957_v14  ;;  %1795 = vrot.lane.b32.xlu1 %v1722_v50, %s10478_s21  ;;  %v1729_v12 = vrot.slane %v11957_v14, 1  ;;  %v1938_v31 = vrot.slane %v11957_v14, 2  ;;  %10054 = vmatprep.mubr.msk.f32.mxu0 %vm407_vm0, %v16211_v29 }
 0x19a   : > { %v11966_v39 = vpop.f32.mrb[24].mxu0  ;;  %v1730_v18 = vsel %vm1692_vm1, %v1728_v4, %v1729_v12  ;;  %v1732_v44 = vsel %vm1692_vm1, %v1729_v12, %v1731_v28  ;;  %v1941_v54 = vsel %vm1901_vm2, %v1938_v31, %v1940_v1  ;;  %v1939_v49 = vsel %vm1901_vm2, %v1937_v8, %v1938_v31 }
 0x19b   : > { %16229 = vst [vmem:[#allocation11_spill] sm:$0xff] %v11966_v39  ;;  %v1734_v55 = vrot.slane %v11966_v39, 1  ;;  %v1943_v50 = vrot.slane %v11966_v39, 2  ;;  %10055 = vmatmul.mubr.msk.f32.gmra.mrb[82].mxu0 %vm407_vm0, %v11490_v23  ;;  %2000 = vrot.lane.b32.xlu0 %v11905_v33, %s10479_s22  ;;  %v11978_v29 = vpop.f32.mrb[25].mxu0 }
 0x19c   : > { %16230 = vst [vmem:[#allocation12_spill] sm:$0xff] %v11978_v29  ;;  %2004 = vrot.lane.b32.xlu1 %v1931_v56, %s10479_s22  ;;  %v1733_v41 = vrot.slane %v11978_v29, 1  ;;  %v1942_v7 = vrot.slane %v11978_v29, 2  ;;  %10057 = vmatprep.mubr.msk.f32.mxu0 %vm407_vm0, %v16214_v42 }
 0x19e   : > { %v9748_v28 = vpop.f32.mrb[26].mxu0  ;;  %v1944_v1 = vsel %vm1901_vm2, %v1942_v7, %v1943_v50  ;;  %v1735_v4 = vsel %vm1692_vm1, %v1733_v41, %v1734_v55 }
 0x19f   : > { %v11988_v23 = vadd.f32 %v9748_v28, %v11683_v11  ;;  %10058 = vmatmul.mubr.msk.f32.gmra.mrb[84].mxu0 %vm407_vm0, %v11502_v27  ;;  %2002 = vrot.lane.b32.xlu0 %v1929_v3, %s10479_s22  ;;  %v1535_v33 = vpop.f32.mrb[27].mxu0 }
 0x1a0   : > { %2006 = vrot.lane.b32.xlu1 %v1934_v59, %s10479_s22  ;;  %v1536_v56 = vadd.f32 %v1535_v33, %v11689_v34  ;;  %10060 = vmatprep.mubr.msk.f32.mxu0 %vm407_vm0, %v11508_v16 }
 0x1a1   : > { %16231 = vst [vmem:[#allocation13_spill] sm:$0xff] %v11988_v23 }
 0x1a2   : > { %v1736_v42 = vrot.slane %v1536_v56, 1  ;;  %v1945_v8 = vrot.slane %v1536_v56, 2  ;;  %v9751_v12 = vpop.f32.mrb[28].mxu0 }
 0x1a3   : > { %v11998_v31 = vadd.f32 %v9751_v12, %v11695_v40  ;;  %10061 = vmatmul.mubr.msk.f32.gmra.mrb[86].mxu0 %vm407_vm0, %v11518_v9  ;;  %1797 = vrot.lane.b32.xlu0 %v1725_v52, %s10478_s21  ;;  %v1545_v27 = vpop.f32.mrb[29].mxu0 }
 0x1a4   : > { %1801 = vrot.lane.b32.xlu1 %v1730_v18, %s10478_s21  ;;  %v12005_v11 = vadd.f32 %v1545_v27, %v11701_v46  ;;  %10063 = vmatprep.mubr.msk.f32.mxu0 %vm407_vm0, %v11524_v20  ;;  %v1737_v16 = vsel %vm1692_vm1, %v1734_v55, %v1736_v42  ;;  %v1946_v34 = vsel %vm1901_vm2, %v1943_v50, %v1945_v8  ;;  %v1947_v8 = vrot.slane %v11988_v23, 2 }
 0x1a5   : > { %v1950_v50 = vrot.slane %v11998_v31, 2 }
 0x1a6   : > { %16232 = vst [vmem:[#allocation14_spill] sm:$0xff] %v12005_v11  ;;  %v9754_v40 = vpop.f32.mrb[30].mxu0  ;;  %v1948_v41 = vrot.slane %v12005_v11, 2 }
 0x1a7   : > { %v12012_v3 = vadd.f32 %v9754_v40, %v11707_v58  ;;  %10064 = vmatmul.mubr.msk.f32.gmra.mrb[88].mxu0 %vm407_vm0, %v11532_v24  ;;  %1799 = vrot.lane.b32.xlu0 %v1727_v48, %s10478_s21  ;;  %v1555_v9 = vpop.f32.mrb[31].mxu0 }
 0x1a8   : > { %1803 = vrot.lane.b32.xlu1 %v1732_v44, %s10478_s21  ;;  %v12019_v46 = vadd.f32 %v1555_v9, %v11713_v13  ;;  %10066 = vmatprep.mubr.msk.f32.mxu0 %vm407_vm0, %v11729_v21  ;;  %v3650_v13 = vld [vmem:[#allocation2 + $0x198] sm:$0xff]  ;;  %v3651_v21 = vld [vmem:[#allocation2 + $0x1a0] sm:$0xff]  ;;  %v1741_v44 = vrot.slane %v11998_v31, 1  ;;  %v1951_v42 = vsel %vm1901_vm2, %v1948_v41, %v1950_v50 }
 0x1a9   : > { %16233 = vst [vmem:[#allocation15_spill] sm:$0xff] %v12012_v3  ;;  %v1744_v12 = vrot.slane %v12012_v3, 1  ;;  %v16246_v50 = vld [vmem:[#allocation27_spill] sm:$0xff] }
 0x1aa   : > { %16234 = vst [vmem:[#allocation16_spill] sm:$0xff] %v12019_v46  ;;  %v9757_v20 = vpop.f32.mrb[32].mxu0  ;;  %v1952_v33 = vrot.slane %v12019_v46, 2  ;;  %v1743_v31 = vrot.slane %v12019_v46, 1  ;;  %v16250_v46 = vld [vmem:[#allocation7_spill] sm:$0xff] }
 0x1ab   : > { %v12024_v59 = vadd.f32 %v9757_v20, %v11719_v15  ;;  %10067 = vmatmul.mubr.msk.f32.gmra.mrb[90].mxu0 %vm407_vm0, %v11731_v22  ;;  %2008 = vrot.lane.b32.xlu0 %v1936_v47, %s10479_s22  ;;  %v1565_v24 = vpop.f32.mrb[33].mxu0  ;;  %v1739_v15 = vrot.slane %v12005_v11, 1  ;;  %v1738_v47 = vrot.slane %v11988_v23, 1 }
 0x1ac   : > { %2012 = vrot.lane.b32.xlu1 %v1941_v54, %s10479_s22  ;;  %v12031_v58 = vadd.f32 %v1565_v24, %v11725_v19  ;;  %10069 = vmatprep.mubr.msk.f32.mxu0 %vm407_vm0, %v11745_v32  ;;  %v3652_v32 = vld [vmem:[#allocation2 + $0x1a8] sm:$0xff] }
 0x1ad   : > { %16235 = vst [vmem:[#allocation17_spill] sm:$0xff] %v12024_v59  ;;  %v1742_v28 = vsel %vm1692_vm1, %v1739_v15, %v1741_v44  ;;  %v1748_v20 = vrot.slane %v12024_v59, 1 }
 0x1ae   : > { %v9760_v52 = vpop.f32.mrb[34].mxu0  ;;  %v1746_v24 = vrot.slane %v12031_v58, 1 }
 0x1af   : > { %v12037_v48 = vadd.f32 %v9760_v52, %v11735_v25  ;;  %10070 = vmatmul.mubr.msk.f32.gmra.mrb[92].mxu0 %vm407_vm0, %v3650_v13  ;;  %2010 = vrot.lane.b32.xlu0 %v1939_v49, %s10479_s22  ;;  %v1575_v22 = vpop.f32.mrb[35].mxu0  ;;  %v1740_v49 = vsel %vm1692_vm1, %v1738_v47, %v1739_v15  ;;  %v16243_v52 = vld [vmem:[#allocation28_spill] sm:$0xff] }
 0x1b0   : > { %2014 = vrot.lane.b32.xlu1 %v1944_v1, %s10479_s22  ;;  %v12043_v19 = vadd.f32 %v1575_v22, %v11741_v61  ;;  %10072 = vmatprep.mubr.msk.f32.mxu0 %vm407_vm0, %v3651_v21  ;;  %v1745_v21 = vsel %vm1692_vm1, %v1743_v31, %v1744_v12 }
 0x1b1   : > { %v1960_v44 = vrot.slane %v12037_v48, 2 }
 0x1b2   : > { %16236 = vst [vmem:[#allocation18_spill] sm:$0xff] %v12043_v19  ;;  %v9763_v18 = vpop.f32.mrb[36].mxu0 }
 0x1b3   : > { %v12049_v25 = vadd.f32 %v9763_v18, %v11748_v60  ;;  %10073 = vmatmul.mubr.msk.f32.gmra.mrb[94].mxu0 %vm407_vm0, %v3652_v32  ;;  %1805 = vrot.lane.b32.xlu0 %v1735_v4, %s10478_s21  ;;  %v1585_v54 = vpop.f32.mrb[37].mxu0  ;;  %v1953_v4 = vrot.slane %v12012_v3, 2  ;;  %v1955_v18 = vrot.slane %v12031_v58, 2 }
 0x1b4   : > { %v12055_v61 = vadd.f32 %v1585_v54, %v11753_v26  ;;  %1809 = vrot.lane.b32.xlu1 %v1740_v49, %s10478_s21  ;;  %v1958_v54 = vrot.slane %v12043_v19, 2 }
 0x1b5   : > { %16237 = vst [vmem:[#allocation19_spill] sm:$0xff] %v12049_v25  ;;  %v1954_v9 = vsel %vm1901_vm2, %v1952_v33, %v1953_v4  ;;  %v16247_v33 = vld [vmem:[#allocation5_spill] sm:$0xff] }
 0x1b6   : > { %16238 = vst [vmem:[#allocation29_spill] sm:$0xff] %v12055_v61  ;;  %v9766_v55 = vpop.f32.mrb[38].mxu0  ;;  %v1961_v31 = vsel %vm1901_vm2, %v1958_v54, %v1960_v44 }
 0x1b7   : > { %v12061_v60 = vadd.f32 %v9766_v55, %v11756_v51  ;;  %v1595_v7 = vpop.f32.mrb[39].mxu0  ;;  %1807 = vrot.lane.b32.xlu0 %v1737_v16, %s10478_s21  ;;  %v1749_v16 = vrot.slane %v12043_v19, 1  ;;  %v1747_v55 = vsel %vm1692_vm1, %v1744_v12, %v1746_v24  ;;  %v1957_v24 = vrot.slane %v12024_v59, 2 }
 0x1b8   : > { %v12066_v1 = vadd.f32 %v1595_v7, %v11760_v0  ;;  %1811 = vrot.lane.b32.xlu1 %v1742_v28, %s10478_s21 }
 0x1b9   : > { %16239 = vst [vmem:[#allocation20_spill] sm:$0xff] %v12061_v60  ;;  %v1750_v32 = vsel %vm1692_vm1, %v1748_v20, %v1749_v16 }
 0x1ba   : > { %v9769_v26 = vpop.f32.mrb[40].mxu0 }
 0x1bb   : > { %v12072_v56 = vadd.f32 %v9769_v26, %v11764_v37  ;;  %v1605_v51 = vpop.f32.mrb[41].mxu0  ;;  %2016 = vrot.lane.b32.xlu0 %v1946_v34, %s10479_s22  ;;  %v1949_v37 = vsel %vm1901_vm2, %v1947_v8, %v1948_v41 }
 0x1bc   : > { %v12078_v0 = vadd.f32 %v1605_v51, %v11768_v17  ;;  %2020 = vrot.lane.b32.xlu1 %v1951_v42, %s10479_s22 }
 0x1be   : > { %16240 = vst [vmem:[#allocation21_spill] sm:$0xff] %v12078_v0  ;;  %v9772_v27 = vpop.f32.mrb[42].mxu0 }
 0x1bf   : > { %v12086_v40 = vadd.f32 %v9772_v27, %v11772_v53  ;;  %v1615_v34 = vpop.f32.mrb[43].mxu0  ;;  %2018 = vrot.lane.b32.xlu0 %v1949_v37, %s10479_s22  ;;  %v1751_v53 = vrot.slane %v12037_v48, 1  ;;  %v1956_v27 = vsel %vm1901_vm2, %v1953_v4, %v1955_v18  ;;  %v1963_v37 = vrot.slane %v12049_v25, 2 }
 0x1c0   : > { %v12091_v17 = vadd.f32 %v1615_v34, %v11776_v35  ;;  %2022 = vrot.lane.b32.xlu1 %v1954_v9, %s10479_s22  ;;  %v16245_v35 = vld [vmem:[#allocation26_spill] sm:$0xff] }
 0x1c1   : > { %16241 = vst [vmem:[#allocation30_spill] sm:$0xff] %v12086_v40  ;;  %v1752_v26 = vsel %vm1692_vm1, %v1749_v16, %v1751_v53  ;;  %v1962_v16 = vrot.slane %v12055_v61, 2  ;;  %v1754_v53 = vrot.slane %v12049_v25, 1 }
 0x1c2   : > { %16242 = vst [vmem:[#allocation22_spill] sm:$0xff] %v12091_v17  ;;  %v9775_v13 = vpop.f32.mrb[44].mxu0 }
 0x1c3   : > { %v12099_v15 = vadd.f32 %v9775_v13, %v16243_v52  ;;  %v1625_v22 = vpop.f32.mrb[45].mxu0  ;;  %1813 = vrot.lane.b32.xlu0 %v1745_v21, %s10478_s21  ;;  %v1753_v52 = vrot.slane %v12055_v61, 1  ;;  %v1964_v18 = vsel %vm1901_vm2, %v1962_v16, %v1963_v37 }
 0x1c4   : > { %v12104_v47 = vadd.f32 %v1625_v22, %v16245_v35  ;;  %1817 = vrot.lane.b32.xlu1 %v1750_v32, %s10478_s21  ;;  %v1759_v22 = vrot.slane %v12078_v0, 1  ;;  %v1959_v32 = vsel %vm1901_vm2, %v1957_v24, %v1958_v54 }
 0x1c5   : > { %16244 = vst [vmem:[#allocation23_spill] sm:$0xff] %v12099_v15 }
 0x1c6   : > { %v9778_v49 = vpop.f32.mrb[46].mxu0  ;;  %v1975_v11 = vrot.slane %v12104_v47, 2 }
 0x1c7   : > { %v12112_v41 = vadd.f32 %v9778_v49, %v16246_v50  ;;  %v1635_v7 = vpop.f32.mrb[47].mxu0  ;;  %v12114_v28 = vpop.f32.mrb[22].mxu1  ;;  %1815 = vrot.lane.b32.xlu0 %v1747_v55, %s10478_s21  ;;  %v1758_v55 = vrot.slane %v12061_v60, 1 }
 0x1c8   : > { %v12119_v51 = vadd.f32 %v1635_v7, %v16247_v33  ;;  %v3189_v58 = vrot.slane %v12114_v28, 1  ;;  %v3397_v48 = vrot.slane %v12114_v28, 2  ;;  %1819 = vrot.lane.b32.xlu1 %v1752_v26, %s10478_s21  ;;  %v12124_v42 = vpop.f32.mrb[23].mxu1 }
 0x1c9   : > { %v3188_v8 = vrot.slane %v12124_v42, 1  ;;  %v3396_v12 = vrot.slane %v12124_v42, 2  ;;  %v1980_v29 = vrot.slane %v12112_v41, 2 }
 0x1ca   : > { %16248 = vst [vmem:[#allocation24_spill] sm:$0xff] %v12119_v51 }
 0x1cb   : > { %v12132_v34 = vpop.f32.mrb[24].mxu1  ;;  %2024 = vrot.lane.b32.xlu0 %v1956_v27, %s10479_s22  ;;  %v12136_v9 = vsel %vm1901_vm2, %v3396_v12, %v3397_v48  ;;  %v12139_v20 = vsel %vm1692_vm1, %v3188_v8, %v3189_v58  ;;  %v1756_v12 = vrot.slane %v12066_v1, 1  ;;  %v1755_v27 = vsel %vm1692_vm1, %v1753_v52, %v1754_v53 }
 0x1cc   : > { %2028 = vrot.lane.b32.xlu1 %v1961_v31, %s10479_s22  ;;  %v2879_v13 = vpop.f32.mrb[25].mxu1  ;;  %v3193_v54 = vrot.slane %v12132_v34, 1  ;;  %v3401_v33 = vrot.slane %v12132_v34, 2  ;;  %v1760_v31 = vsel %vm1692_vm1, %v1758_v55, %v1759_v22 }
 0x1cd   : > { %v3191_v4 = vrot.slane %v2879_v13, 1  ;;  %v3399_v21 = vrot.slane %v2879_v13, 2 }
 0x1cf   : > { %v9863_v35 = vpop.f32.mrb[26].mxu1  ;;  %2026 = vrot.lane.b32.xlu0 %v1959_v32, %s10479_s22  ;;  %v12150_v44 = vsel %vm1692_vm1, %v3189_v58, %v3191_v4  ;;  %v12153_v49 = vsel %vm1901_vm2, %v3397_v48, %v3399_v21  ;;  %v1761_v48 = vrot.slane %v12072_v56, 1 }
 0x1d0   : > { %v3196_v50 = vrot.slane %v9863_v35, 1  ;;  %v3404_v7 = vrot.slane %v9863_v35, 2  ;;  %2030 = vrot.lane.b32.xlu1 %v1964_v18, %s10479_s22  ;;  %v12157_v26 = vpop.f32.mrb[27].mxu1 }
 0x1d1   : > { %v3194_v8 = vrot.slane %v12157_v26, 1  ;;  %v3402_v58 = vrot.slane %v12157_v26, 2 }
 0x1d3   : > { %v12167_v16 = vpop.f32.mrb[28].mxu1  ;;  %1821 = vrot.lane.b32.xlu0 %v1755_v27, %s10478_s21  ;;  %v12171_v24 = vsel %vm1901_vm2, %v3401_v33, %v3402_v58  ;;  %v12174_v13 = vsel %vm1901_vm2, %v3402_v58, %v3404_v7  ;;  %v12177_v4 = vsel %vm1692_vm1, %v3193_v54, %v3194_v8  ;;  %v12180_v21 = vsel %vm1692_vm1, %v3194_v8, %v3196_v50 }
 0x1d4   : > { %v3199_v32 = vrot.slane %v12167_v16, 1  ;;  %v3407_v52 = vrot.slane %v12167_v16, 2  ;;  %1825 = vrot.lane.b32.xlu1 %v1760_v31, %s10478_s21  ;;  %v12185_v35 = vpop.f32.mrb[29].mxu1  ;;  %v1965_v7 = vrot.slane %v12066_v1, 2  ;;  %v1970_v54 = vrot.slane %v12072_v56, 2 }
 0x1d5   : > { %v3198_v18 = vrot.slane %v12185_v35, 1  ;;  %v3406_v55 = vrot.slane %v12185_v35, 2  ;;  %v1757_v33 = vsel %vm1692_vm1, %v1754_v53, %v1756_v12  ;;  %v1968_v50 = vrot.slane %v12078_v0, 2 }
 0x1d6   : > { %v1762_v58 = vsel %vm1692_vm1, %v1759_v22, %v1761_v48  ;;  %v1972_v12 = vrot.slane %v12091_v17, 2  ;;  %v1966_v0 = vsel %vm1901_vm2, %v1963_v37, %v1965_v7 }
 0x1d7   : > { %v12193_v8 = vpop.f32.mrb[30].mxu1  ;;  %1823 = vrot.lane.b32.xlu0 %v1757_v33, %s10478_s21  ;;  %v12198_v31 = vsel %vm1692_vm1, %v3198_v18, %v3199_v32  ;;  %v12201_v27 = vsel %vm1901_vm2, %v3406_v55, %v3407_v52  ;;  %v1971_v48 = vsel %vm1901_vm2, %v1968_v50, %v1970_v54  ;;  %v1967_v33 = vrot.slane %v12061_v60, 2 }
 0x1d8   : > { %1827 = vrot.lane.b32.xlu1 %v1762_v58, %s10478_s21  ;;  %v2909_v1 = vpop.f32.mrb[31].mxu1  ;;  %v3203_v37 = vrot.slane %v12193_v8, 1  ;;  %v3411_v7 = vrot.slane %v12193_v8, 2  ;;  %v1764_v54 = vrot.slane %v12086_v40, 1 }
 0x1d9   : > { %v3201_v56 = vrot.slane %v2909_v1, 1  ;;  %v3409_v61 = vrot.slane %v2909_v1, 2 }
 0x1db   : > { %v9872_v22 = vpop.f32.mrb[32].mxu1  ;;  %2032 = vrot.lane.b32.xlu0 %v1966_v0, %s10479_s22  ;;  %v12210_v18 = vsel %vm1692_vm1, %v3199_v32, %v3201_v56  ;;  %v12213_v55 = vsel %vm1901_vm2, %v3407_v52, %v3409_v61  ;;  %v1763_v61 = vrot.slane %v12091_v17, 1  ;;  %v16249_v52 = vrot.slane %v12086_v40, 2 }
 0x1dc   : > { %v3206_v58 = vrot.slane %v9872_v22, 1  ;;  %v3414_v1 = vrot.slane %v9872_v22, 2  ;;  %2036 = vrot.lane.b32.xlu1 %v1971_v48, %s10479_s22  ;;  %v12217_v53 = vpop.f32.mrb[33].mxu1  ;;  %v1969_v22 = vsel %vm1901_vm2, %v1967_v33, %v1968_v50 }
 0x1dd   : > { %v3204_v0 = vrot.slane %v12217_v53, 1  ;;  %v3412_v32 = vrot.slane %v12217_v53, 2  ;;  %v1974_v56 = vsel %vm1901_vm2, %v1972_v12, %v16249_v52 }
 0x1df   : > { %v12229_v48 = vpop.f32.mrb[34].mxu1  ;;  %2034 = vrot.lane.b32.xlu0 %v1969_v22, %s10479_s22  ;;  %v12233_v60 = vsel %vm1901_vm2, %v3411_v7, %v3412_v32  ;;  %v12236_v25 = vsel %vm1901_vm2, %v3412_v32, %v3414_v1  ;;  %v12239_v19 = vsel %vm1692_vm1, %v3203_v37, %v3204_v0  ;;  %v12242_v17 = vsel %vm1692_vm1, %v3204_v0, %v3206_v58 }
 0x1e0   : > { %v3209_v12 = vrot.slane %v12229_v48, 1  ;;  %v3417_v50 = vrot.slane %v12229_v48, 2  ;;  %2038 = vrot.lane.b32.xlu1 %v1974_v56, %s10479_s22  ;;  %v12247_v33 = vpop.f32.mrb[35].mxu1  ;;  %v1766_v32 = vrot.slane %v12104_v47, 1  ;;  %v1765_v37 = vsel %vm1692_vm1, %v1763_v61, %v1764_v54 }
 0x1e1   : > { %v3208_v7 = vrot.slane %v12247_v33, 1  ;;  %v3416_v52 = vrot.slane %v12247_v33, 2  ;;  %v1774_v1 = vpop.permute.xlu0 %1773  ;;  %v1771_v58 = vrot.slane %v12112_v41, 1 }
 0x1e2   : > { %v1869_v3 = vadd.f32 %v1774_v1, %v16250_v46  ;;  %v16251_v46 = vrot.slane %v12119_v51, 1 }
 0x1e3   : > { %v12255_v22 = vpop.f32.mrb[36].mxu1  ;;  %1829 = vrot.lane.b32.xlu0 %v1765_v37, %s10478_s21  ;;  %v12259_v56 = vsel %vm1692_vm1, %v3208_v7, %v3209_v12  ;;  %v12262_v59 = vsel %vm1901_vm2, %v3416_v52, %v3417_v50  ;;  %v16059_v37 = vrot.slane %v12119_v51, 2  ;;  %v1767_v52 = vsel %vm1692_vm1, %v1764_v54, %v1766_v32 }
 0x1e4   : > { %3476 = vrot.lane.b32.xlu1 %v12136_v9, %s10479_s22  ;;  %v2939_v61 = vpop.f32.mrb[37].mxu1  ;;  %v1772_v1 = vsel %vm1692_vm1, %v16251_v46, %v1771_v58  ;;  %v3213_v41 = vrot.slane %v12255_v22, 1  ;;  %v3421_v32 = vrot.slane %v12255_v22, 2  ;;  %v16253_v58 = vld [vmem:[#allocation6_spill] sm:$0xff]  ;;  %v16254_v46 = vrot.slane %v12086_v40, 2 }
 0x1e5   : > { %v3211_v23 = vrot.slane %v2939_v61, 1  ;;  %v3419_v0 = vrot.slane %v2939_v61, 2  ;;  %v1983_v39 = vpop.permute.xlu0 %1982 }
 0x1e6   : > { %v2078_v7 = vadd.f32 %v1983_v39, %v1869_v3  ;;  %v1776_v63 = vpop.permute.xlu1 %1775 }
 0x1e7   : > { %v9881_v14 = vpop.f32.mrb[38].mxu1  ;;  %1831 = vrot.lane.b32.xlu0 %v1767_v52, %s10478_s21  ;;  %v12276_v47 = vsel %vm1692_vm1, %v3209_v12, %v3211_v23  ;;  %v12279_v9 = vsel %vm1901_vm2, %v3417_v50, %v3419_v0  ;;  %v1870_v52 = vadd.f32 %v16253_v58, %v1776_v63 }
 0x1e8   : > { %v3216_v61 = vrot.slane %v9881_v14, 1  ;;  %v3424_v39 = vrot.slane %v9881_v14, 2  ;;  %1835 = vrot.lane.b32.xlu1 %v1772_v1, %s10478_s21  ;;  %v12283_v3 = vpop.f32.mrb[39].mxu1  ;;  %v12286_v54 = vadd.f32 %v12124_v42, %v2078_v7  ;;  %v1981_v14 = vsel %vm1901_vm2, %v16059_v37, %v1980_v29 }
 0x1e9   : > { %v3214_v23 = vrot.slane %v12283_v3, 1  ;;  %v3422_v12 = vrot.slane %v12283_v3, 2  ;;  %v1780_v50 = vpop.permute.xlu0 %1779  ;;  %v1976_v1 = vsel %vm1901_vm2, %v16254_v46, %v1975_v11 }
 0x1ea   : > { %16252 = vst [vmem:[#allocation25_spill] sm:$0xff] %v12286_v54  ;;  %v1985_v0 = vpop.permute.xlu1 %1984  ;;  %v1872_v40 = vadd.f32 %v1780_v50, %v11824_v2  ;;  %v1977_v50 = vrot.slane %v12099_v15, 2 }
 0x1eb   : > { %v2079_v42 = vadd.f32 %v1985_v0, %v1870_v52  ;;  %v12298_v7 = vpop.f32.mrb[40].mxu1  ;;  %2040 = vrot.lane.b32.xlu0 %v1976_v1, %s10479_s22  ;;  %v12302_v63 = vsel %vm1901_vm2, %v3421_v32, %v3422_v12  ;;  %v12305_v58 = vsel %vm1901_vm2, %v3422_v12, %v3424_v39  ;;  %v12308_v54 = vsel %vm1692_vm1, %v3213_v41, %v3214_v23 }
 0x1ec   : > { %16255 = vst [vmem:[#allocation31_spill] sm:$0xff] %v12298_v7  ;;  %v3219_v29 = vrot.slane %v12298_v7, 1  ;;  %v3427_v37 = vrot.slane %v12298_v7, 2  ;;  %2044 = vrot.lane.b32.xlu1 %v1981_v14, %s10479_s22  ;;  %v12313_v11 = vpop.f32.mrb[41].mxu1  ;;  %v12316_v52 = vsel %vm1692_vm1, %v3214_v23, %v3216_v61  ;;  %v1768_v23 = vrot.slane %v12099_v15, 1 }
 0x1ed   : > { %v3218_v32 = vrot.slane %v12313_v11, 1  ;;  %v3426_v0 = vrot.slane %v12313_v11, 2  ;;  %v1987_v39 = vpop.permute.xlu0 %1986  ;;  %v12321_v12 = vadd.f32 %v12114_v28, %v2079_v42 }
 0x1ee   : > { %v1778_v41 = vpop.permute.xlu1 %1777 }
 0x1ef   : > { %16256 = vst [vmem:[#allocation28_spill] sm:$0xff] %v12321_v12  ;;  %v1871_v46 = vadd.f32 %v11810_v5, %v1778_v41  ;;  %v12324_v1 = vpop.f32.mrb[42].mxu1  ;;  %3268 = vrot.lane.b32.xlu0 %v12139_v20, %s10478_s21  ;;  %v12329_v14 = vsel %vm1692_vm1, %v3218_v32, %v3219_v29  ;;  %v12332_v61 = vsel %vm1901_vm2, %v3426_v0, %v3427_v37  ;;  %v16259_v32 = vrot.slane %v12119_v51, 1 }
 0x1f0   : > { %16257 = vst [vmem:[#allocation26_spill] sm:$0xff] %v12329_v14  ;;  %16258 = vst [vmem:[#allocation27_spill] sm:$0xff] %v12332_v61  ;;  %3270 = vrot.lane.b32.xlu1 %v12150_v44, %s10478_s21  ;;  %v2969_v28 = vpop.f32.mrb[43].mxu1 }
 0x1f1   : > { %v2080_v5 = vadd.f32 %v1987_v39, %v1871_v46  ;;  %v3221_v42 = vrot.slane %v2969_v28, 1  ;;  %v3429_v41 = vrot.slane %v2969_v28, 2  ;;  %v1989_v12 = vpop.permute.xlu0 %1988  ;;  %v1770_v14 = vsel %vm1692_vm1, %v1768_v23, %v16259_v32 }
 0x1f2   : > { %v2081_v7 = vadd.f32 %v1989_v12, %v1872_v40  ;;  %v1991_v20 = vpop.permute.xlu1 %1990 }
 0x1f3   : > { %v9890_v0 = vpop.f32.mrb[44].mxu1  ;;  %1833 = vrot.lane.b32.xlu0 %v1770_v14, %s10478_s21  ;;  %v12343_v61 = vsel %vm1692_vm1, %v3219_v29, %v3221_v42  ;;  %v12346_v2 = vsel %vm1901_vm2, %v3427_v37, %v3429_v41  ;;  %v12349_v44 = vadd.f32 %v12132_v34, %v2080_v5  ;;  %v3223_v29 = vrot.slane %v12324_v1, 1 }
 0x1f4   : > { %v3226_v40 = vrot.slane %v9890_v0, 1  ;;  %v3434_v39 = vrot.slane %v9890_v0, 2  ;;  %3478 = vrot.lane.b32.xlu1 %v12153_v49, %s10479_s22  ;;  %v12354_v12 = vpop.f32.mrb[45].mxu1  ;;  %v12357_v46 = vadd.f32 %v12157_v26, %v2081_v7  ;;  %v3431_v37 = vrot.slane %v12324_v1, 2 }
 0x1f5   : > { %16260 = vst [vmem:[#allocation5_spill] sm:$0xff] %v12349_v44  ;;  %v3224_v14 = vrot.slane %v12354_v12, 1  ;;  %v3432_v34 = vrot.slane %v12354_v12, 2  ;;  %v1782_v23 = vpop.permute.xlu0 %1781  ;;  %v16262_v42 = vrot.slane %v12119_v51, 2 }
 0x1f6   : > { %16261 = vst [vmem:[#allocation7_spill] sm:$0xff] %v12357_v46  ;;  %v1873_v28 = vadd.f32 %v1782_v23, %v11844_v38  ;;  %v1786_v5 = vpop.permute.xlu1 %1785 }
 0x1f7   : > { %v1979_v49 = vsel %vm1901_vm2, %v1977_v50, %v16262_v42  ;;  %v12367_v41 = vpop.f32.mrb[46].mxu1  ;;  %v12371_v26 = vsel %vm1901_vm2, %v3431_v37, %v3432_v34  ;;  %v12374_v7 = vsel %vm1901_vm2, %v3432_v34, %v3434_v39  ;;  %v12377_v32 = vsel %vm1692_vm1, %v3223_v29, %v3224_v14 }
 0x1f8   : > { %2042 = vrot.lane.b32.xlu0 %v1979_v49, %s10479_s22  ;;  %v2082_v0 = vadd.f32 %v1991_v20, %v1873_v28  ;;  %v3229_v38 = vrot.slane %v12367_v41, 1  ;;  %v3437_v23 = vrot.slane %v12367_v41, 2  ;;  %3480 = vrot.lane.b32.xlu1 %v12171_v24, %s10479_s22  ;;  %v12383_v50 = vpop.f32.mrb[47].mxu1  ;;  %v12386_v42 = vsel %vm1692_vm1, %v3224_v14, %v3226_v40 }
 0x1f9   : > { %v3228_v37 = vrot.slane %v12383_v50, 1  ;;  %v3436_v39 = vrot.slane %v12383_v50, 2  ;;  %v1784_v34 = vpop.permute.xlu0 %1783 }
 0x1fa   : > { %v1788_v29 = vpop.permute.xlu1 %1787  ;;  %v12391_v20 = vadd.f32 %v12185_v35, %v2082_v0  ;;  %v1874_v14 = vadd.f32 %v11833_v62, %v1784_v34 }
 0x1fb   : > { %v12393_v28 = vpop.f32.mrb[48].mxu1  ;;  %v12398_v24 = vsel %vm1692_vm1, %v3228_v37, %v3229_v38  ;;  %v12401_v40 = vsel %vm1901_vm2, %v3436_v39, %v3437_v23  ;;  %v1876_v35 = vadd.f32 %v1788_v29, %v11866_v30 }
 0x1fc   : > { %16263 = vst [vmem:[#allocation6_spill] sm:$0xff] %v12391_v20  ;;  %16264 = vst [vmem:[#allocation32_spill] sm:$0xff] %v12393_v28  ;;  %3272 = vrot.lane.b32.xlu0 %v12177_v4, %s10478_s21  ;;  %3482 = vrot.lane.b32.xlu1 %v12174_v13, %s10479_s22  ;;  %v2999_v49 = vpop.f32.mrb[49].mxu1  ;;  %v1875_v4 = vadd.f32 %v11851_v10, %v1786_v5  ;;  %v3233_v30 = vrot.slane %v12393_v28, 1 }
 0x1fd   : > { %v3231_v0 = vrot.slane %v2999_v49, 1  ;;  %v3439_v51 = vrot.slane %v2999_v49, 2  ;;  %v1993_v15 = vpop.permute.xlu0 %1992 }
 0x1fe   : > { %v2083_v20 = vadd.f32 %v1993_v15, %v1874_v14  ;;  %v1997_v46 = vpop.permute.xlu1 %1996 }
 0x1ff   : > { %v2085_v37 = vadd.f32 %v1997_v46, %v1876_v35  ;;  %v9899_v44 = vpop.f32.mrb[50].mxu1  ;;  %v12411_v62 = vsel %vm1692_vm1, %v3229_v38, %v3231_v0  ;;  %v12414_v13 = vsel %vm1901_vm2, %v3437_v23, %v3439_v51 }
 0x200   : > { %3274 = vrot.lane.b32.xlu0 %v12180_v21, %s10478_s21  ;;  %v3236_v39 = vrot.slane %v9899_v44, 1  ;;  %v3444_v34 = vrot.slane %v9899_v44, 2  ;;  %3278 = vrot.lane.b32.xlu1 %v12210_v18, %s10478_s21  ;;  %v12419_v15 = vpop.f32.mrb[51].mxu1  ;;  %v12422_v10 = vadd.f32 %v12167_v16, %v2083_v20  ;;  %v3441_v21 = vrot.slane %v12393_v28, 2 }
 0x201   : > { %16265 = vst [vmem:[#allocation33_spill] sm:$0xff] %v12419_v15  ;;  %v3234_v46 = vrot.slane %v12419_v15, 1  ;;  %v3442_v5 = vrot.slane %v12419_v15, 2  ;;  %v1995_v51 = vpop.permute.xlu0 %1994  ;;  %v12428_v38 = vadd.f32 %v12217_v53, %v2085_v37 }
 0x202   : > { %v2084_v23 = vadd.f32 %v1995_v51, %v1875_v4  ;;  %v1999_v44 = vpop.permute.xlu1 %1998 }
 0x203   : > { %v12430_v29 = vpop.f32.mrb[52].mxu1  ;;  %v12435_v16 = vsel %vm1901_vm2, %v3441_v21, %v3442_v5  ;;  %v12438_v18 = vsel %vm1901_vm2, %v3442_v5, %v3444_v34  ;;  %v12441_v20 = vsel %vm1692_vm1, %v3233_v30, %v3234_v46  ;;  %v12444_v14 = vsel %vm1692_vm1, %v3234_v46, %v3236_v39 }
 0x204   : > { %16266 = vst [vmem:[#allocation34_spill] sm:$0xff] %v12430_v29  ;;  %3276 = vrot.lane.b32.xlu0 %v12198_v31, %s10478_s21  ;;  %v3239_v53 = vrot.slane %v12430_v29, 1  ;;  %v3447_v49 = vrot.slane %v12430_v29, 2  ;;  %3486 = vrot.lane.b32.xlu1 %v12213_v55, %s10479_s22  ;;  %v12450_v31 = vpop.f32.mrb[53].mxu1  ;;  %v12453_v35 = vadd.f32 %v12193_v8, %v2084_v23 }
 0x205   : > { %16267 = vst [vmem:[#allocation35_spill] sm:$0xff] %v12450_v31  ;;  %v3238_v0 = vrot.slane %v12450_v31, 1  ;;  %v3446_v4 = vrot.slane %v12450_v31, 2  ;;  %v1790_v37 = vpop.permute.xlu0 %1789 }
 0x206   : > { %v1877_v30 = vadd.f32 %v1790_v37, %v11886_v36  ;;  %v1794_v39 = vpop.permute.xlu1 %1793 }
 0x207   : > { %v12458_v34 = vpop.f32.mrb[54].mxu1  ;;  %v12463_v55 = vsel %vm1692_vm1, %v3238_v0, %v3239_v53  ;;  %v12466_v21 = vsel %vm1901_vm2, %v3446_v4, %v3447_v49 }
 0x208   : > { %16268 = vst [vmem:[#allocation36_spill] sm:$0xff] %v12458_v34  ;;  %3484 = vrot.lane.b32.xlu0 %v12201_v27, %s10479_s22  ;;  %v2086_v8 = vadd.f32 %v1999_v44, %v1877_v30  ;;  %3488 = vrot.lane.b32.xlu1 %v12233_v60, %s10479_s22  ;;  %v3029_v46 = vpop.f32.mrb[55].mxu1  ;;  %v3243_v60 = vrot.slane %v12458_v34, 1 }
 0x209   : > { %v3241_v5 = vrot.slane %v3029_v46, 1  ;;  %v3449_v51 = vrot.slane %v3029_v46, 2  ;;  %v1792_v36 = vpop.permute.xlu0 %1791 }
 0x20a   : > { %v1796_v23 = vpop.permute.xlu1 %1795  ;;  %v12471_v37 = vadd.f32 %v12247_v33, %v2086_v8  ;;  %v1878_v0 = vadd.f32 %v11875_v6, %v1792_v36  ;;  %v3451_v8 = vrot.slane %v12458_v34, 2 }
 0x20b   : > { %v9908_v31 = vpop.f32.mrb[56].mxu1  ;;  %v12476_v27 = vsel %vm1692_vm1, %v3239_v53, %v3241_v5  ;;  %v12479_v44 = vsel %vm1901_vm2, %v3447_v49, %v3449_v51  ;;  %v16270_v5 = vld [vmem:[#allocation8_spill] sm:$0xff] }
 0x20c   : > { %3280 = vrot.lane.b32.xlu0 %v12239_v19, %s10478_s21  ;;  %v3246_v4 = vrot.slane %v9908_v31, 1  ;;  %v3454_v30 = vrot.slane %v9908_v31, 2  ;;  %3490 = vrot.lane.b32.xlu1 %v12236_v25, %s10479_s22  ;;  %v12485_v33 = vpop.f32.mrb[57].mxu1  ;;  %v1880_v19 = vadd.f32 %v1796_v23, %v11910_v43  ;;  %v1879_v51 = vadd.f32 %v16270_v5, %v1794_v39 }
 0x20d   : > { %16269 = vst [vmem:[#allocation37_spill] sm:$0xff] %v12485_v33  ;;  %v3244_v53 = vrot.slane %v12485_v33, 1  ;;  %v3452_v49 = vrot.slane %v12485_v33, 2  ;;  %v2001_v46 = vpop.permute.xlu0 %2000 }
 0x20e   : > { %v2087_v29 = vadd.f32 %v2001_v46, %v1878_v0  ;;  %v2005_v6 = vpop.permute.xlu1 %2004 }
 0x20f   : > { %v2089_v36 = vadd.f32 %v2005_v6, %v1880_v19  ;;  %v12492_v31 = vpop.f32.mrb[58].mxu1  ;;  %v12497_v25 = vsel %vm1901_vm2, %v3451_v8, %v3452_v49  ;;  %v12500_v43 = vsel %vm1901_vm2, %v3452_v49, %v3454_v30  ;;  %v12503_v23 = vsel %vm1692_vm1, %v3243_v60, %v3244_v53 }
 0x210   : > { %16271 = vst [vmem:[#allocation8_spill] sm:$0xff] %v12492_v31  ;;  %3282 = vrot.lane.b32.xlu0 %v12242_v17, %s10478_s21  ;;  %v3249_v33 = vrot.slane %v12492_v31, 1  ;;  %v3457_v39 = vrot.slane %v12492_v31, 2  ;;  %3286 = vrot.lane.b32.xlu1 %v12276_v47, %s10478_s21  ;;  %v12509_v0 = vpop.f32.mrb[59].mxu1  ;;  %v12512_v17 = vsel %vm1692_vm1, %v3244_v53, %v3246_v4  ;;  %v12515_v8 = vadd.f32 %v12229_v48, %v2087_v29 }
 0x211   : > { %16272 = vst [vmem:[#allocation38_spill] sm:$0xff] %v12509_v0  ;;  %v3248_v30 = vrot.slane %v12509_v0, 1  ;;  %v3456_v60 = vrot.slane %v12509_v0, 2  ;;  %v2003_v19 = vpop.permute.xlu0 %2002  ;;  %v12520_v49 = vadd.f32 %v12283_v3, %v2089_v36 }
 0x212   : > { %v2088_v46 = vadd.f32 %v2003_v19, %v1879_v51  ;;  %v2007_v5 = vpop.permute.xlu1 %2006 }
 0x213   : > { %16273 = vst [vmem:[#allocation39_spill] sm:$0xff] %v12520_v49  ;;  %v12522_v6 = vpop.f32.mrb[60].mxu1  ;;  %v12527_v47 = vsel %vm1692_vm1, %v3248_v30, %v3249_v33  ;;  %v12530_v48 = vsel %vm1901_vm2, %v3456_v60, %v3457_v39 }
 0x214   : > { %16274 = vst [vmem:[#allocation40_spill] sm:$0xff] %v12522_v6  ;;  %3284 = vrot.lane.b32.xlu0 %v12259_v56, %s10478_s21  ;;  %3494 = vrot.lane.b32.xlu1 %v12279_v9, %s10479_s22  ;;  %v3059_v29 = vpop.f32.mrb[61].mxu1  ;;  %v12535_v3 = vadd.f32 %v12255_v22, %v2088_v46 }
 0x215   : > { %v3251_v4 = vrot.slane %v3059_v29, 1  ;;  %v3459_v53 = vrot.slane %v3059_v29, 2  ;;  %v1798_v51 = vpop.permute.xlu0 %1797  ;;  %v3461_v29 = vrot.slane %v12522_v6, 2 }
 0x216   : > { %16275 = vst [vmem:[#allocation41_spill] sm:$0xff] %v12535_v3  ;;  %v1881_v36 = vadd.f32 %v1798_v51, %v11933_v45  ;;  %v1802_v19 = vpop.permute.xlu1 %1801  ;;  %v3253_v45 = vrot.slane %v12522_v6, 1 }
 0x217   : > { %v9917_v56 = vpop.f32.mrb[62].mxu1  ;;  %v12541_v30 = vsel %vm1692_vm1, %v3249_v33, %v3251_v4  ;;  %v12544_v60 = vsel %vm1901_vm2, %v3457_v39, %v3459_v53 }
 0x218   : > { %3492 = vrot.lane.b32.xlu0 %v12262_v59, %s10479_s22  ;;  %v2090_v9 = vadd.f32 %v2007_v5, %v1881_v36  ;;  %v3256_v0 = vrot.slane %v9917_v56, 1  ;;  %v3464_v22 = vrot.slane %v9917_v56, 2  ;;  %3496 = vrot.lane.b32.xlu1 %v12302_v63, %s10479_s22  ;;  %v12548_v46 = vpop.f32.mrb[63].mxu1 }
 0x219   : > { %16276 = vst [vmem:[#allocation42_spill] sm:$0xff] %v12548_v46  ;;  %v3254_v59 = vrot.slane %v12548_v46, 1  ;;  %v3462_v33 = vrot.slane %v12548_v46, 2  ;;  %v1800_v4 = vpop.permute.xlu0 %1799 }
 0x21a   : > { %v1804_v51 = vpop.permute.xlu1 %1803  ;;  %v12555_v39 = vadd.f32 %v12313_v11, %v2090_v9  ;;  %v1882_v56 = vadd.f32 %v11922_v57, %v1800_v4 }
 0x21b   : > { %v12557_v5 = vpop.f32.mrb[64].mxu1  ;;  %v12562_v63 = vsel %vm1901_vm2, %v3461_v29, %v3462_v33  ;;  %v12565_v53 = vsel %vm1901_vm2, %v3462_v33, %v3464_v22  ;;  %v12568_v36 = vsel %vm1692_vm1, %v3253_v45, %v3254_v59  ;;  %v16280_v29 = vld [vmem:[#allocation10_spill] sm:$0xff] }
 0x21c   : > { %16277 = vst [vmem:[#allocation43_spill] sm:$0xff] %v12555_v39  ;;  %16278 = vst [vmem:[#allocation44_spill] sm:$0xff] %v12557_v5  ;;  %3288 = vrot.lane.b32.xlu0 %v12308_v54, %s10478_s21  ;;  %v3259_v46 = vrot.slane %v12557_v5, 1  ;;  %v3467_v11 = vrot.slane %v12557_v5, 2  ;;  %3498 = vrot.lane.b32.xlu1 %v12305_v58, %s10479_s22  ;;  %v12575_v9 = vpop.f32.mrb[65].mxu1  ;;  %v12578_v54 = vsel %vm1692_vm1, %v3254_v59, %v3256_v0  ;;  %v16282_v59 = vld [vmem:[#allocation9_spill] sm:$0xff] }
 0x21d   : > { %16279 = vst [vmem:[#allocation45_spill] sm:$0xff] %v12575_v9  ;;  %v1884_v22 = vadd.f32 %v1804_v51, %v16280_v29  ;;  %v3258_v33 = vrot.slane %v12575_v9, 1  ;;  %v3466_v45 = vrot.slane %v12575_v9, 2  ;;  %v2009_v6 = vpop.permute.xlu0 %2008  ;;  %v1883_v51 = vadd.f32 %v16282_v59, %v1802_v19 }
 0x21e   : > { %v2091_v57 = vadd.f32 %v2009_v6, %v1882_v56  ;;  %v2013_v4 = vpop.permute.xlu1 %2012  ;;  %v16283_v6 = vld [vmem:[#allocation31_spill] sm:$0xff] }
 0x21f   : > { %v2093_v31 = vadd.f32 %v2013_v4, %v1884_v22  ;;  %v12583_v34 = vpop.f32.mrb[66].mxu1  ;;  %v12588_v58 = vsel %vm1692_vm1, %v3258_v33, %v3259_v46  ;;  %v12591_v0 = vsel %vm1901_vm2, %v3466_v45, %v3467_v11  ;;  %v9126_v22 = vld [vmem:[%s16003_s6 + $0x10] sm:$0xff] }
 0x220   : > { %16281 = vst [vmem:[#allocation10_spill] sm:$0xff] %v12583_v34  ;;  %3290 = vrot.lane.b32.xlu0 %v12316_v52, %s10478_s21  ;;  %3294 = vrot.lane.b32.xlu1 %v12343_v61, %s10478_s21  ;;  %v3089_v29 = vpop.f32.mrb[67].mxu1  ;;  %v12597_v56 = vadd.f32 %v16283_v6, %v2091_v57  ;;  %v16286_v61 = vld [vmem:[#allocation26_spill] sm:$0xff] }
 0x221   : > { %v3261_v52 = vrot.slane %v3089_v29, 1  ;;  %v3469_v4 = vrot.slane %v3089_v29, 2  ;;  %v2011_v33 = vpop.permute.xlu0 %2010  ;;  %10223 = vmatprep.subr.mxu0 %v9126_v22  ;;  %v12603_v45 = vadd.f32 %v12354_v12, %v2093_v31 }
 0x222   : > { %16284 = vst [vmem:[#allocation9_spill] sm:$0xff] %v12597_v56  ;;  %v2092_v5 = vadd.f32 %v2011_v33, %v1883_v51  ;;  %v2015_v19 = vpop.permute.xlu1 %2014  ;;  %10224 = vmatpush3.msra.mxu0 %v9126_v22  ;;  %v3263_v51 = vrot.slane %v12583_v34, 1  ;;  %v3471_v22 = vrot.slane %v12583_v34, 2 }
 0x223   : > { %16285 = vst [vmem:[#allocation31_spill] sm:$0xff] %v12603_v45  ;;  %v9926_v59 = vpop.f32.mrb[68].mxu1  ;;  %v12608_v57 = vsel %vm1901_vm2, %v3467_v11, %v3469_v4  ;;  %v12611_v6 = vsel %vm1692_vm1, %v3259_v46, %v3261_v52  ;;  %v16289_v52 = vld [vmem:[#allocation12_spill] sm:$0xff] }
 0x224   : > { %3292 = vrot.lane.b32.xlu0 %v16286_v61, %s10478_s21  ;;  %v3266_v9 = vrot.slane %v9926_v59, 1  ;;  %v3474_v29 = vrot.slane %v9926_v59, 2  ;;  %3502 = vrot.lane.b32.xlu1 %v12346_v2, %s10479_s22  ;;  %v12615_v12 = vpop.f32.mrb[69].mxu1  ;;  %v12618_v31 = vadd.f32 %v12324_v1, %v2092_v5  ;;  %v16291_v2 = vld [vmem:[#allocation27_spill] sm:$0xff] }
 0x225   : > { %16287 = vst [vmem:[#allocation26_spill] sm:$0xff] %v12615_v12  ;;  %v3264_v11 = vrot.slane %v12615_v12, 1  ;;  %v3472_v4 = vrot.slane %v12615_v12, 2  ;;  %v1806_v46 = vpop.permute.xlu0 %1805 }
 0x226   : > { %16288 = vst [vmem:[#allocation46_spill] sm:$0xff] %v12618_v31  ;;  %v1885_v33 = vadd.f32 %v1806_v46, %v16289_v52  ;;  %v12625_v59 = vpop.permute.xlu1 %1809 }
 0x227   : > { %16290 = vst [vmem:[#allocation12_spill] sm:$0xff] %v12625_v59  ;;  %v12630_v61 = vsel %vm1692_vm1, %v3263_v51, %v3264_v11  ;;  %v12633_v1 = vsel %vm1692_vm1, %v3264_v11, %v3266_v9  ;;  %v12636_v5 = vsel %vm1901_vm2, %v3471_v22, %v3472_v4  ;;  %v12641_v46 = vsel %vm1901_vm2, %v3472_v4, %v3474_v29 }
 0x228   : > { %3500 = vrot.lane.b32.xlu0 %v16291_v2, %s10479_s22  ;;  %16292 = vst [vmem:[#allocation27_spill] sm:$0xff] %v12630_v61  ;;  %16293 = vst [vmem:[#allocation47_spill] sm:$0xff] %v12633_v1  ;;  %v2094_v34 = vadd.f32 %v2015_v19, %v1885_v33  ;;  %3504 = vrot.lane.b32.xlu1 %v12371_v26, %s10479_s22  ;;  %v16298_v26 = vld [vmem:[#allocation11_spill] sm:$0xff] }
 0x229   : > { %16294 = vst [vmem:[#allocation48_spill] sm:$0xff] %v12636_v5  ;;  %16295 = vst [vmem:[#allocation49_spill] sm:$0xff] %v12641_v46  ;;  %v1808_v52 = vpop.permute.xlu0 %1807 }
 0x22a   : > { %v12643_v12 = vpop.permute.xlu1 %1811  ;;  %v12645_v2 = vpop.f32.mrb[48].mxu0  ;;  %v12648_v51 = vadd.f32 %v12383_v50, %v2094_v34  ;;  %v1886_v19 = vadd.f32 %v16298_v26, %v1808_v52 }
 0x22b   : > { %16296 = vst [vmem:[#allocation50_spill] sm:$0xff] %v12643_v12  ;;  %v4685_v9 = vrot.slane %v12645_v2, 1  ;;  %v4893_v22 = vrot.slane %v12645_v2, 2  ;;  %v12652_v11 = vpop.f32.mrb[49].mxu0 }
 0x22c   : > { %16297 = vst [vmem:[#allocation51_spill] sm:$0xff] %v12648_v51  ;;  %3296 = vrot.lane.b32.xlu0 %v12377_v32, %s10478_s21  ;;  %v4684_v29 = vrot.slane %v12652_v11, 1  ;;  %v4892_v4 = vrot.slane %v12652_v11, 2  ;;  %3506 = vrot.lane.b32.xlu1 %v12374_v7, %s10479_s22 }
 0x22d   : > { %v2017_v50 = vpop.permute.xlu0 %2016 }
 0x22e   : > { %v12661_v34 = vpop.permute.xlu1 %2020  ;;  %v2095_v33 = vadd.f32 %v2017_v50, %v1886_v19  ;;  %v12663_v46 = vpop.f32.mrb[50].mxu0  ;;  %v12666_v1 = vsel %vm1692_vm1, %v4684_v29, %v4685_v9  ;;  %v12669_v32 = vsel %vm1901_vm2, %v4892_v4, %v4893_v22 }
 0x22f   : > { %16299 = vst [vmem:[#allocation11_spill] sm:$0xff] %v12661_v34  ;;  %v4375_v52 = vpop.f32.mrb[51].mxu0 }
 0x230   : > { %3298 = vrot.lane.b32.xlu0 %v12386_v42, %s10478_s21  ;;  %v4687_v26 = vrot.slane %v4375_v52, 1  ;;  %v4895_v5 = vrot.slane %v4375_v52, 2  ;;  %3302 = vrot.lane.b32.xlu1 %v12411_v62, %s10478_s21  ;;  %v12676_v7 = vadd.f32 %v12367_v41, %v2095_v33  ;;  %v4689_v41 = vrot.slane %v12663_v46, 1 }
 0x231   : > { %v12678_v19 = vpop.permute.xlu0 %2018  ;;  %v4897_v62 = vrot.slane %v12663_v46, 2 }
 0x232   : > { %16300 = vst [vmem:[#allocation52_spill] sm:$0xff] %v12676_v7  ;;  %16301 = vst [vmem:[#allocation53_spill] sm:$0xff] %v12678_v19  ;;  %v12680_v50 = vpop.permute.xlu1 %2022  ;;  %v10011_v29 = vpop.f32.mrb[52].mxu0  ;;  %v12683_v4 = vsel %vm1901_vm2, %v4893_v22, %v4895_v5  ;;  %v12686_v61 = vsel %vm1692_vm1, %v4685_v9, %v4687_v26 }
 0x233   : > { %16302 = vst [vmem:[#allocation54_spill] sm:$0xff] %v12680_v50  ;;  %v4692_v42 = vrot.slane %v10011_v29, 1  ;;  %v4900_v15 = vrot.slane %v10011_v29, 2  ;;  %v12688_v52 = vpop.f32.mrb[53].mxu0 }
 0x234   : > { %3300 = vrot.lane.b32.xlu0 %v12398_v24, %s10478_s21  ;;  %v4690_v33 = vrot.slane %v12688_v52, 1  ;;  %v4898_v50 = vrot.slane %v12688_v52, 2  ;;  %3510 = vrot.lane.b32.xlu1 %v12414_v13, %s10479_s22 }
 0x235   : > { %v12698_v5 = vpop.permute.xlu0 %1813 }
 0x236   : > { %16303 = vst [vmem:[#allocation55_spill] sm:$0xff] %v12698_v5  ;;  %v12700_v9 = vpop.permute.xlu1 %1817  ;;  %v12702_v22 = vpop.f32.mrb[54].mxu0  ;;  %v12705_v26 = vsel %vm1692_vm1, %v4690_v33, %v4692_v42  ;;  %v12708_v24 = vsel %vm1692_vm1, %v4689_v41, %v4690_v33  ;;  %v12711_v29 = vsel %vm1901_vm2, %v4897_v62, %v4898_v50 }
 0x237   : > { %16304 = vst [vmem:[#allocation56_spill] sm:$0xff] %v12700_v9  ;;  %v4695_v28 = vrot.slane %v12702_v22, 1  ;;  %v4903_v34 = vrot.slane %v12702_v22, 2  ;;  %v12715_v13 = vpop.f32.mrb[55].mxu0  ;;  %v12720_v9 = vsel %vm1901_vm2, %v4898_v50, %v4900_v15 }
 0x238   : > { %3508 = vrot.lane.b32.xlu0 %v12401_v40, %s10479_s22  ;;  %v4694_v42 = vrot.slane %v12715_v13, 1  ;;  %v4902_v41 = vrot.slane %v12715_v13, 2  ;;  %3512 = vrot.lane.b32.xlu1 %v12435_v16, %s10479_s22 }
 0x239   : > { %v12726_v62 = vpop.permute.xlu0 %1815 }
 0x23a   : > { %16305 = vst [vmem:[#allocation57_spill] sm:$0xff] %v12726_v62  ;;  %v12728_v33 = vpop.permute.xlu1 %1819  ;;  %v12730_v5 = vpop.f32.mrb[56].mxu0  ;;  %v12733_v12 = vsel %vm1692_vm1, %v4694_v42, %v4695_v28  ;;  %v12736_v40 = vsel %vm1901_vm2, %v4902_v41, %v4903_v34 }
 0x23b   : > { %16306 = vst [vmem:[#allocation58_spill] sm:$0xff] %v12728_v33  ;;  %v4405_v15 = vpop.f32.mrb[57].mxu0 }
 0x23c   : > { %3304 = vrot.lane.b32.xlu0 %v12441_v20, %s10478_s21  ;;  %v4697_v50 = vrot.slane %v4405_v15, 1  ;;  %v4905_v51 = vrot.slane %v4405_v15, 2  ;;  %3514 = vrot.lane.b32.xlu1 %v12438_v18, %s10479_s22  ;;  %v4699_v18 = vrot.slane %v12730_v5, 1  ;;  %v4907_v20 = vrot.slane %v12730_v5, 2 }
 0x23d   : > { %v12742_v16 = vpop.permute.xlu0 %2024 }
 0x23e   : > { %16307 = vst [vmem:[#allocation59_spill] sm:$0xff] %v12742_v16  ;;  %v12744_v33 = vpop.permute.xlu1 %2028  ;;  %v10020_v62 = vpop.f32.mrb[58].mxu0  ;;  %v12747_v42 = vsel %vm1901_vm2, %v4903_v34, %v4905_v51  ;;  %v12750_v41 = vsel %vm1692_vm1, %v4695_v28, %v4697_v50 }
 0x23f   : > { %16308 = vst [vmem:[#allocation60_spill] sm:$0xff] %v12744_v33  ;;  %v4702_v19 = vrot.slane %v10020_v62, 1  ;;  %v4910_v59 = vrot.slane %v10020_v62, 2  ;;  %v12752_v7 = vpop.f32.mrb[59].mxu0 }
 0x240   : > { %3306 = vrot.lane.b32.xlu0 %v12444_v14, %s10478_s21  ;;  %v4700_v15 = vrot.slane %v12752_v7, 1  ;;  %v4908_v33 = vrot.slane %v12752_v7, 2  ;;  %3310 = vrot.lane.b32.xlu1 %v12476_v27, %s10478_s21 }
 0x241   : > { %v12762_v28 = vpop.permute.xlu0 %2026 }
 0x242   : > { %16309 = vst [vmem:[#allocation61_spill] sm:$0xff] %v12762_v28  ;;  %v12764_v51 = vpop.permute.xlu1 %2030  ;;  %v12766_v34 = vpop.f32.mrb[60].mxu0  ;;  %v12769_v62 = vsel %vm1692_vm1, %v4700_v15, %v4702_v19  ;;  %v12772_v14 = vsel %vm1692_vm1, %v4699_v18, %v4700_v15  ;;  %v12775_v50 = vsel %vm1901_vm2, %v4907_v20, %v4908_v33 }
 0x243   : > { %16310 = vst [vmem:[#allocation62_spill] sm:$0xff] %v12764_v51  ;;  %v4705_v16 = vrot.slane %v12766_v34, 1  ;;  %v4913_v45 = vrot.slane %v12766_v34, 2  ;;  %v12779_v27 = vpop.f32.mrb[61].mxu0  ;;  %v12784_v51 = vsel %vm1901_vm2, %v4908_v33, %v4910_v59 }
 0x244   : > { %3308 = vrot.lane.b32.xlu0 %v12463_v55, %s10478_s21  ;;  %v4704_v19 = vrot.slane %v12779_v27, 1  ;;  %v4912_v18 = vrot.slane %v12779_v27, 2  ;;  %3518 = vrot.lane.b32.xlu1 %v12479_v44, %s10479_s22 }
 0x245   : > { %v12790_v20 = vpop.permute.xlu0 %1821 }
 0x246   : > { %16311 = vst [vmem:[#allocation63_spill] sm:$0xff] %v12790_v20  ;;  %v12792_v15 = vpop.permute.xlu1 %1825  ;;  %v12794_v28 = vpop.f32.mrb[62].mxu0  ;;  %v12797_v31 = vsel %vm1692_vm1, %v4704_v19, %v4705_v16  ;;  %v12800_v55 = vsel %vm1901_vm2, %v4912_v18, %v4913_v45 }
 0x247   : > { %16312 = vst [vmem:[#allocation64_spill] sm:$0xff] %v12792_v15  ;;  %v4435_v59 = vpop.f32.mrb[63].mxu0 }
 0x248   : > { %3516 = vrot.lane.b32.xlu0 %v12466_v21, %s10479_s22  ;;  %v4707_v33 = vrot.slane %v4435_v59, 1  ;;  %v4915_v39 = vrot.slane %v4435_v59, 2  ;;  %3520 = vrot.lane.b32.xlu1 %v12497_v25, %s10479_s22  ;;  %v4709_v21 = vrot.slane %v12794_v28, 1  ;;  %v4917_v25 = vrot.slane %v12794_v28, 2 }
 0x249   : > { %v12806_v44 = vpop.permute.xlu0 %1823 }
 0x24a   : > { %16313 = vst [vmem:[#allocation65_spill] sm:$0xff] %v12806_v44  ;;  %v12808_v15 = vpop.permute.xlu1 %1827  ;;  %v10029_v20 = vpop.f32.mrb[64].mxu0  ;;  %v12811_v19 = vsel %vm1901_vm2, %v4913_v45, %v4915_v39  ;;  %v12814_v18 = vsel %vm1692_vm1, %v4705_v16, %v4707_v33 }
 0x24b   : > { %16314 = vst [vmem:[#allocation66_spill] sm:$0xff] %v12808_v15  ;;  %v4712_v56 = vrot.slane %v10029_v20, 1  ;;  %v4920_v49 = vrot.slane %v10029_v20, 2  ;;  %v12816_v3 = vpop.f32.mrb[65].mxu0 }
 0x24c   : > { %16315 = vst [vmem:[#allocation67_spill] sm:$0xff] %v12816_v3  ;;  %3312 = vrot.lane.b32.xlu0 %v12503_v23, %s10478_s21  ;;  %v4710_v59 = vrot.slane %v12816_v3, 1  ;;  %v4918_v15 = vrot.slane %v12816_v3, 2  ;;  %3522 = vrot.lane.b32.xlu1 %v12500_v43, %s10479_s22 }
 0x24d   : > { %v12826_v39 = vpop.permute.xlu0 %2032 }
 0x24e   : > { %16316 = vst [vmem:[#allocation68_spill] sm:$0xff] %v12826_v39  ;;  %v12828_v45 = vpop.permute.xlu1 %2036  ;;  %v12830_v16 = vpop.f32.mrb[66].mxu0  ;;  %v12833_v20 = vsel %vm1692_vm1, %v4710_v59, %v4712_v56  ;;  %v12836_v23 = vsel %vm1692_vm1, %v4709_v21, %v4710_v59  ;;  %v12839_v33 = vsel %vm1901_vm2, %v4917_v25, %v4918_v15 }
 0x24f   : > { %16317 = vst [vmem:[#allocation69_spill] sm:$0xff] %v12828_v45  ;;  %16318 = vst [vmem:[#allocation70_spill] sm:$0xff] %v12830_v16  ;;  %v4715_v44 = vrot.slane %v12830_v16, 1  ;;  %v4923_v3 = vrot.slane %v12830_v16, 2  ;;  %v12843_v43 = vpop.f32.mrb[67].mxu0  ;;  %v12848_v45 = vsel %vm1901_vm2, %v4918_v15, %v4920_v49 }
 0x250   : > { %16319 = vst [vmem:[#allocation71_spill] sm:$0xff] %v12839_v33  ;;  %16320 = vst [vmem:[#allocation72_spill] sm:$0xff] %v12843_v43  ;;  %3314 = vrot.lane.b32.xlu0 %v12512_v17, %s10478_s21  ;;  %v4714_v56 = vrot.slane %v12843_v43, 1  ;;  %v4922_v21 = vrot.slane %v12843_v43, 2  ;;  %3318 = vrot.lane.b32.xlu1 %v12541_v30, %s10478_s21 }
 0x251   : > { %16321 = vst [vmem:[#allocation73_spill] sm:$0xff] %v12848_v45  ;;  %v12854_v25 = vpop.permute.xlu0 %2034 }
 0x252   : > { %16322 = vst [vmem:[#allocation74_spill] sm:$0xff] %v12854_v25  ;;  %v12856_v59 = vpop.permute.xlu1 %2038  ;;  %v12858_v39 = vpop.f32.mrb[68].mxu0  ;;  %v12861_v16 = vsel %vm1692_vm1, %v4714_v56, %v4715_v44  ;;  %v12864_v17 = vsel %vm1901_vm2, %v4922_v21, %v4923_v3 }
 0x253   : > { %16323 = vst [vmem:[#allocation75_spill] sm:$0xff] %v12856_v59  ;;  %16324 = vst [vmem:[#allocation76_spill] sm:$0xff] %v12858_v39  ;;  %v4465_v49 = vpop.f32.mrb[69].mxu0 }
 0x254   : > { %16325 = vst [vmem:[#allocation77_spill] sm:$0xff] %v12864_v17  ;;  %3316 = vrot.lane.b32.xlu0 %v12527_v47, %s10478_s21  ;;  %v4717_v15 = vrot.slane %v4465_v49, 1  ;;  %v4925_v43 = vrot.slane %v4465_v49, 2  ;;  %3526 = vrot.lane.b32.xlu1 %v12544_v60, %s10479_s22  ;;  %v4719_v47 = vrot.slane %v12858_v39, 1  ;;  %v4927_v60 = vrot.slane %v12858_v39, 2 }
 0x255   : > { %v12870_v30 = vpop.permute.xlu0 %1829 }
 0x256   : > { %16326 = vst [vmem:[#allocation78_spill] sm:$0xff] %v12870_v30  ;;  %v3477_v59 = vpop.permute.xlu1 %3476  ;;  %v10038_v25 = vpop.f32.mrb[70].mxu0  ;;  %v12873_v45 = vsel %vm1901_vm2, %v4923_v3, %v4925_v43  ;;  %v12876_v56 = vsel %vm1692_vm1, %v4715_v44, %v4717_v15 }
 0x257   : > { %v4722_v21 = vrot.slane %v10038_v25, 1  ;;  %v4930_v17 = vrot.slane %v10038_v25, 2  ;;  %v12878_v33 = vpop.f32.mrb[71].mxu0 }
 0x258   : > { %16327 = vst [vmem:[#allocation79_spill] sm:$0xff] %v12878_v33  ;;  %3524 = vrot.lane.b32.xlu0 %v12530_v48, %s10479_s22  ;;  %v4720_v49 = vrot.slane %v12878_v33, 1  ;;  %v4928_v30 = vrot.slane %v12878_v33, 2  ;;  %3528 = vrot.lane.b32.xlu1 %v12562_v63, %s10479_s22 }
 0x259   : > { %v12888_v3 = vpop.permute.xlu0 %1831 }
 0x25a   : > { %16328 = vst [vmem:[#allocation80_spill] sm:$0xff] %v12888_v3  ;;  %v12890_v44 = vpop.permute.xlu1 %1835  ;;  %v12892_v43 = vpop.f32.mrb[72].mxu0  ;;  %v12895_v25 = vsel %vm1692_vm1, %v4720_v49, %v4722_v21  ;;  %v12898_v48 = vsel %vm1692_vm1, %v4719_v47, %v4720_v49  ;;  %v12901_v15 = vsel %vm1901_vm2, %v4927_v60, %v4928_v30 }
 0x25b   : > { %16329 = vst [vmem:[#allocation81_spill] sm:$0xff] %v12890_v44  ;;  %16330 = vst [vmem:[#allocation82_spill] sm:$0xff] %v12892_v43  ;;  %v4725_v33 = vrot.slane %v12892_v43, 1  ;;  %v4933_v39 = vrot.slane %v12892_v43, 2  ;;  %v12905_v63 = vpop.f32.mrb[73].mxu0  ;;  %v12910_v44 = vsel %vm1901_vm2, %v4928_v30, %v4930_v17 }
 0x25c   : > { %16331 = vst [vmem:[#allocation83_spill] sm:$0xff] %v12898_v48  ;;  %16332 = vst [vmem:[#allocation84_spill] sm:$0xff] %v12901_v15  ;;  %3320 = vrot.lane.b32.xlu0 %v12568_v36, %s10478_s21  ;;  %v4724_v21 = vrot.slane %v12905_v63, 1  ;;  %v4932_v47 = vrot.slane %v12905_v63, 2  ;;  %3530 = vrot.lane.b32.xlu1 %v12565_v53, %s10479_s22 }
 0x25d   : > { %16333 = vst [vmem:[#allocation85_spill] sm:$0xff] %v12905_v63  ;;  %16334 = vst [vmem:[#allocation86_spill] sm:$0xff] %v12910_v44  ;;  %v12916_v60 = vpop.permute.xlu0 %2040 }
 0x25e   : > { %16335 = vst [vmem:[#allocation87_spill] sm:$0xff] %v12916_v60  ;;  %v12918_v49 = vpop.permute.xlu1 %2044  ;;  %v12920_v3 = vpop.f32.mrb[74].mxu0  ;;  %v12923_v43 = vsel %vm1692_vm1, %v4724_v21, %v4725_v33  ;;  %v12926_v36 = vsel %vm1901_vm2, %v4932_v47, %v4933_v39 }
 0x25f   : > { %16336 = vst [vmem:[#allocation88_spill] sm:$0xff] %v12918_v49  ;;  %16337 = vst [vmem:[#allocation89_spill] sm:$0xff] %v12923_v43  ;;  %v4495_v17 = vpop.f32.mrb[75].mxu0  ;;  %v16339_v49 = vld [vmem:[#allocation25_spill] sm:$0xff] }
 0x260   : > { %16338 = vst [vmem:[#allocation90_spill] sm:$0xff] %v12926_v36  ;;  %3322 = vrot.lane.b32.xlu0 %v12578_v54, %s10478_s21  ;;  %v4727_v30 = vrot.slane %v4495_v17, 1  ;;  %v4935_v63 = vrot.slane %v4495_v17, 2  ;;  %3534 = vrot.lane.b32.xlu1 %v12608_v57, %s10479_s22  ;;  %v4729_v36 = vrot.slane %v12920_v3, 1  ;;  %v4937_v57 = vrot.slane %v12920_v3, 2 }
 0x261   : > { %v3269_v53 = vpop.permute.xlu0 %3268 }
 0x262   : > { %v3271_v60 = vpop.permute.xlu1 %3270  ;;  %v3364_v44 = vadd.f32 %v3269_v53, %v16339_v49  ;;  %v10047_v15 = vpop.f32.mrb[76].mxu0  ;;  %v12934_v21 = vsel %vm1901_vm2, %v4933_v39, %v4935_v63  ;;  %v12937_v47 = vsel %vm1692_vm1, %v4725_v33, %v4727_v30  ;;  %v16342_v33 = vld [vmem:[#allocation28_spill] sm:$0xff] }
 0x263   : > { %16340 = vst [vmem:[#allocation25_spill] sm:$0xff] %v12937_v47  ;;  %v4732_v43 = vrot.slane %v10047_v15, 1  ;;  %v4940_v54 = vrot.slane %v10047_v15, 2  ;;  %v12940_v48 = vpop.f32.mrb[77].mxu0  ;;  %v3365_v63 = vadd.f32 %v3271_v60, %v16342_v33 }
 0x264   : > { %16341 = vst [vmem:[#allocation91_spill] sm:$0xff] %v12940_v48  ;;  %3324 = vrot.lane.b32.xlu0 %v12588_v58, %s10478_s21  ;;  %v3572_v17 = vadd.f32 %v3477_v59, %v3364_v44  ;;  %v4730_v49 = vrot.slane %v12940_v48, 1  ;;  %v4938_v39 = vrot.slane %v12940_v48, 2  ;;  %4764 = vrot.lane.b32.xlu1 %v12666_v1, %s10478_s21  ;;  %v12952_v15 = vpop.f32.mrb[70].mxu1 }
 0x265   : > { %v12950_v30 = vpop.permute.xlu0 %1833  ;;  %16344 = vst [vmem:[#allocation92_spill] sm:$0xff] %v12952_v15  ;;  %v5299_v15 = vld [vmem:[#allocation4 + $0x10] sm:$0xff] }
 0x266   : > { %16343 = vst [vmem:[#allocation28_spill] sm:$0xff] %v12950_v30  ;;  %v3479_v53 = vpop.permute.xlu1 %3478  ;;  %v12954_v47 = vpop.f32.mrb[78].mxu0  ;;  %v12957_v58 = vsel %vm1692_vm1, %v4730_v49, %v4732_v43  ;;  %v12960_v59 = vsel %vm1692_vm1, %v4729_v36, %v4730_v49  ;;  %v12963_v44 = vsel %vm1901_vm2, %v4937_v57, %v4938_v39  ;;  %v12972_v30 = vsel %vm1901_vm2, %v4938_v39, %v4940_v54 }
 0x267   : > { %v3573_v48 = vadd.f32 %v3479_v53, %v3365_v63  ;;  %v4735_v1 = vrot.slane %v12954_v47, 1  ;;  %v4943_v60 = vrot.slane %v12954_v47, 2  ;;  %v12967_v33 = vpop.f32.mrb[79].mxu0  ;;  %16346 = vst [vmem:[#allocation94_spill] sm:$0xff] %v12972_v30  ;;  %v12974_v43 = vpop.f32.mrb[71].mxu1  ;;  %v12981_v49 = vadd.f32 %v12652_v11, %v3572_v17  ;;  %10080 = vmatprep.mubr.msk.f32.mxu1 %vm407_vm0, %v5299_v15  ;;  %v16351_v17 = vld [vmem:[#allocation5_spill] sm:$0xff] }
 0x268   : > { %16345 = vst [vmem:[#allocation93_spill] sm:$0xff] %v12967_v33  ;;  %3532 = vrot.lane.b32.xlu0 %v12591_v0, %s10479_s22  ;;  %16347 = vst [vmem:[#allocation95_spill] sm:$0xff] %v12974_v43  ;;  %v4734_v36 = vrot.slane %v12967_v33, 1  ;;  %v4942_v57 = vrot.slane %v12967_v33, 2  ;;  %4972 = vrot.lane.b32.xlu1 %v12669_v32, %s10479_s22 }
 0x269   : > { %16348 = vst [vmem:[#allocation96_spill] sm:$0xff] %v12981_v49  ;;  %v12986_v53 = vadd.f32 %v12645_v2, %v3573_v48 }
 0x26a   : > { %v12983_v63 = vpop.permute.xlu0 %2042  ;;  %v3481_v0 = vpop.permute.xlu1 %3480  ;;  %v12991_v39 = vsel %vm1692_vm1, %v4734_v36, %v4735_v1  ;;  %v12994_v43 = vsel %vm1901_vm2, %v4942_v57, %v4943_v60 }
 0x26b   : > { %16349 = vst [vmem:[#allocation97_spill] sm:$0xff] %v12983_v63  ;;  %16350 = vst [vmem:[#allocation98_spill] sm:$0xff] %v12986_v53  ;;  %v12988_v54 = vpop.f32.mrb[80].mxu0 }
 0x26c   : > { %v4525_v33 = vpop.f32.mrb[81].mxu0  ;;  %3326 = vrot.lane.b32.xlu0 %v12611_v6, %s10478_s21  ;;  %4974 = vrot.lane.b32.xlu1 %v12683_v4, %s10479_s22  ;;  %v4739_v6 = vrot.slane %v12988_v54, 1  ;;  %v4947_v4 = vrot.slane %v12988_v54, 2 }
 0x26d   : > { %v4737_v11 = vrot.slane %v4525_v33, 1  ;;  %v4945_v32 = vrot.slane %v4525_v33, 2 }
 0x26e   : > { %v3273_v2 = vpop.permute.xlu0 %3272  ;;  %v3483_v48 = vpop.permute.xlu1 %3482 }
 0x26f   : > { %v3366_v36 = vadd.f32 %v3273_v2, %v16351_v17  ;;  %v10056_v63 = vpop.f32.mrb[82].mxu0  ;;  %v13003_v57 = vsel %vm1901_vm2, %v4943_v60, %v4945_v32  ;;  %v13006_v53 = vsel %vm1692_vm1, %v4735_v1, %v4737_v11  ;;  %v16354_v32 = vld [vmem:[#allocation7_spill] sm:$0xff] }
 0x270   : > { %16352 = vst [vmem:[#allocation5_spill] sm:$0xff] %v13006_v53  ;;  %v4742_v49 = vrot.slane %v10056_v63, 1  ;;  %v4950_v15 = vrot.slane %v10056_v63, 2  ;;  %v13009_v30 = vpop.f32.mrb[83].mxu0  ;;  %4766 = vrot.lane.b32.xlu0 %v12686_v61, %s10478_s21  ;;  %4770 = vrot.lane.b32.xlu1 %v12705_v26, %s10478_s21 }
 0x271   : > { %16353 = vst [vmem:[#allocation99_spill] sm:$0xff] %v13009_v30  ;;  %v3574_v33 = vadd.f32 %v3481_v0, %v3366_v36  ;;  %v4740_v2 = vrot.slane %v13009_v30, 1  ;;  %v4948_v60 = vrot.slane %v13009_v30, 2 }
 0x272   : > { %v3275_v1 = vpop.permute.xlu0 %3274  ;;  %v3279_v11 = vpop.permute.xlu1 %3278 }
 0x273   : > { %v3367_v17 = vadd.f32 %v3275_v1, %v16354_v32  ;;  %v13019_v63 = vpop.f32.mrb[84].mxu0  ;;  %v13022_v53 = vsel %vm1692_vm1, %v4740_v2, %v4742_v49  ;;  %v13025_v61 = vsel %vm1692_vm1, %v4739_v6, %v4740_v2  ;;  %v13028_v0 = vsel %vm1901_vm2, %v4947_v4, %v4948_v60 }
 0x274   : > { %16355 = vst [vmem:[#allocation7_spill] sm:$0xff] %v13019_v63  ;;  %16356 = vst [vmem:[#allocation100_spill] sm:$0xff] %v13025_v61  ;;  %v4745_v36 = vrot.slane %v13019_v63, 1  ;;  %v4953_v30 = vrot.slane %v13019_v63, 2  ;;  %v13032_v26 = vpop.f32.mrb[85].mxu0  ;;  %4768 = vrot.lane.b32.xlu0 %v12708_v24, %s10478_s21  ;;  %v13037_v1 = vsel %vm1901_vm2, %v4948_v60, %v4950_v15  ;;  %4772 = vrot.lane.b32.xlu1 %v12733_v12, %s10478_s21 }
 0x275   : > { %16357 = vst [vmem:[#allocation101_spill] sm:$0xff] %v13028_v0  ;;  %v3575_v49 = vadd.f32 %v3483_v48, %v3367_v17  ;;  %v4744_v32 = vrot.slane %v13032_v26, 1  ;;  %v4952_v6 = vrot.slane %v13032_v26, 2  ;;  %v13044_v4 = vadd.f32 %v12663_v46, %v3574_v33  ;;  %v16360_v46 = vld [vmem:[#allocation6_spill] sm:$0xff] }
 0x276   : > { %v3369_v2 = vadd.f32 %v3279_v11, %v12422_v10  ;;  %v3277_v63 = vpop.permute.xlu0 %3276  ;;  %v3487_v0 = vpop.permute.xlu1 %3486 }
 0x277   : > { %16358 = vst [vmem:[#allocation102_spill] sm:$0xff] %v13044_v4  ;;  %v13047_v61 = vpop.f32.mrb[86].mxu0  ;;  %v13050_v24 = vsel %vm1692_vm1, %v4744_v32, %v4745_v36  ;;  %v13053_v48 = vsel %vm1901_vm2, %v4952_v6, %v4953_v30  ;;  %v13056_v15 = vadd.f32 %v12688_v52, %v3575_v49  ;;  %v3368_v10 = vadd.f32 %v3277_v63, %v16360_v46 }
 0x278   : > { %v3577_v60 = vadd.f32 %v3487_v0, %v3369_v2  ;;  %v4555_v12 = vpop.f32.mrb[87].mxu0  ;;  %4976 = vrot.lane.b32.xlu0 %v12711_v29, %s10479_s22  ;;  %4980 = vrot.lane.b32.xlu1 %v12736_v40, %s10479_s22  ;;  %v4749_v40 = vrot.slane %v13047_v61, 1 }
 0x279   : > { %16359 = vst [vmem:[#allocation103_spill] sm:$0xff] %v13056_v15  ;;  %v4747_v33 = vrot.slane %v4555_v12, 1  ;;  %v4955_v11 = vrot.slane %v4555_v12, 2 }
 0x27a   : > { %v3485_v17 = vpop.permute.xlu0 %3484  ;;  %v13064_v32 = vadd.f32 %v12702_v22, %v3577_v60  ;;  %v3489_v6 = vpop.permute.xlu1 %3488 }
 0x27b   : > { %v3576_v4 = vadd.f32 %v3485_v17, %v3368_v10  ;;  %v10065_v52 = vpop.f32.mrb[88].mxu0  ;;  %v13067_v0 = vsel %vm1901_vm2, %v4953_v30, %v4955_v11  ;;  %v13070_v49 = vsel %vm1692_vm1, %v4745_v36, %v4747_v33  ;;  %v4957_v36 = vrot.slane %v13047_v61, 2 }
 0x27c   : > { %16361 = vst [vmem:[#allocation6_spill] sm:$0xff] %v13064_v32  ;;  %v4752_v29 = vrot.slane %v10065_v52, 1  ;;  %v4960_v63 = vrot.slane %v10065_v52, 2  ;;  %v13072_v2 = vpop.f32.mrb[89].mxu0  ;;  %4978 = vrot.lane.b32.xlu0 %v12720_v9, %s10479_s22  ;;  %4982 = vrot.lane.b32.xlu1 %v12747_v42, %s10479_s22 }
 0x27d   : > { %v4750_v22 = vrot.slane %v13072_v2, 1  ;;  %v4958_v60 = vrot.slane %v13072_v2, 2  ;;  %v13082_v30 = vadd.f32 %v12715_v13, %v3576_v4 }
 0x27e   : > { %v3281_v12 = vpop.permute.xlu0 %3280  ;;  %v3491_v46 = vpop.permute.xlu1 %3490 }
 0x27f   : > { %16362 = vst [vmem:[#allocation104_spill] sm:$0xff] %v13082_v30  ;;  %v3370_v10 = vadd.f32 %v3281_v12, %v12453_v35  ;;  %v13086_v33 = vpop.f32.mrb[90].mxu0  ;;  %v13089_v9 = vsel %vm1692_vm1, %v4749_v40, %v4750_v22  ;;  %v13092_v11 = vsel %vm1692_vm1, %v4750_v22, %v4752_v29  ;;  %v13095_v17 = vsel %vm1901_vm2, %v4958_v60, %v4960_v63 }
 0x280   : > { %v4755_v13 = vrot.slane %v13086_v33, 1  ;;  %v4963_v42 = vrot.slane %v13086_v33, 2  ;;  %v13099_v4 = vpop.f32.mrb[91].mxu0  ;;  %4774 = vrot.lane.b32.xlu0 %v12750_v41, %s10478_s21  ;;  %v13104_v35 = vsel %vm1901_vm2, %v4957_v36, %v4958_v60  ;;  %4778 = vrot.lane.b32.xlu1 %v12769_v62, %s10478_s21 }
 0x281   : > { %v3578_v52 = vadd.f32 %v3489_v6, %v3370_v10  ;;  %v4754_v40 = vrot.slane %v13099_v4, 1  ;;  %v4962_v29 = vrot.slane %v13099_v4, 2 }
 0x282   : > { %v3283_v63 = vpop.permute.xlu0 %3282  ;;  %v3287_v22 = vpop.permute.xlu1 %3286 }
 0x283   : > { %v3371_v12 = vadd.f32 %v3283_v63, %v12428_v38  ;;  %v13111_v32 = vpop.f32.mrb[92].mxu0  ;;  %v13114_v15 = vsel %vm1692_vm1, %v4754_v40, %v4755_v13  ;;  %v13117_v41 = vsel %vm1901_vm2, %v4962_v29, %v4963_v42  ;;  %v13120_v6 = vadd.f32 %v12730_v5, %v3578_v52 }
 0x284   : > { %16363 = vst [vmem:[#allocation105_spill] sm:$0xff] %v13111_v32  ;;  %v4585_v60 = vpop.f32.mrb[93].mxu0  ;;  %4776 = vrot.lane.b32.xlu0 %v12772_v14, %s10478_s21  ;;  %4780 = vrot.lane.b32.xlu1 %v12797_v31, %s10478_s21  ;;  %v3373_v38 = vadd.f32 %v3287_v22, %v12515_v8  ;;  %v4759_v14 = vrot.slane %v13111_v32, 1  ;;  %v4967_v8 = vrot.slane %v13111_v32, 2 }
 0x285   : > { %v3579_v62 = vadd.f32 %v3491_v46, %v3371_v12  ;;  %v4757_v36 = vrot.slane %v4585_v60, 1  ;;  %v4965_v10 = vrot.slane %v4585_v60, 2 }
 0x286   : > { %v3285_v40 = vpop.permute.xlu0 %3284  ;;  %v3495_v63 = vpop.permute.xlu1 %3494 }
 0x287   : > { %v10074_v30 = vpop.f32.mrb[94].mxu0  ;;  %v13128_v29 = vsel %vm1692_vm1, %v4755_v13, %v4757_v36  ;;  %v13131_v5 = vsel %vm1901_vm2, %v4963_v42, %v4965_v10  ;;  %v13134_v52 = vadd.f32 %v12752_v7, %v3579_v62  ;;  %v3581_v46 = vadd.f32 %v3495_v63, %v3373_v38  ;;  %v16365_v63 = vld [vmem:[#allocation41_spill] sm:$0xff] }
 0x288   : > { %v4762_v12 = vrot.slane %v10074_v30, 1  ;;  %v4970_v60 = vrot.slane %v10074_v30, 2  ;;  %v13137_v31 = vpop.f32.mrb[95].mxu0  ;;  %4984 = vrot.lane.b32.xlu0 %v12775_v50, %s10479_s22  ;;  %v3372_v13 = vadd.f32 %v3285_v40, %v12471_v37  ;;  %4988 = vrot.lane.b32.xlu1 %v12800_v55, %s10479_s22 }
 0x289   : > { %16364 = vst [vmem:[#allocation106_spill] sm:$0xff] %v13137_v31  ;;  %v4760_v42 = vrot.slane %v13137_v31, 1  ;;  %v4968_v22 = vrot.slane %v13137_v31, 2  ;;  %v13148_v62 = vadd.f32 %v12766_v34, %v3581_v46 }
 0x28a   : > { %v3493_v7 = vpop.permute.xlu0 %3492  ;;  %v3497_v30 = vpop.permute.xlu1 %3496 }
 0x28b   : > { %v3580_v36 = vadd.f32 %v3493_v7, %v3372_v13  ;;  %v13151_v10 = vsel %vm1692_vm1, %v4759_v14, %v4760_v42  ;;  %v13154_v50 = vsel %vm1692_vm1, %v4760_v42, %v4762_v12  ;;  %v13157_v37 = vsel %vm1901_vm2, %v4967_v8, %v4968_v22  ;;  %v16367_v13 = vld [vmem:[#allocation9_spill] sm:$0xff]  ;;  %v16368_v7 = vld [vmem:[#allocation67_spill] sm:$0xff] }
 0x28c   : > { %4986 = vrot.lane.b32.xlu0 %v12784_v51, %s10479_s22  ;;  %v13162_v55 = vsel %vm1901_vm2, %v4968_v22, %v4970_v60  ;;  %4990 = vrot.lane.b32.xlu1 %v12811_v19, %s10479_s22  ;;  %v16366_v60 = vld [vmem:[#allocation39_spill] sm:$0xff] }
 0x28d   : > { %v13167_v34 = vadd.f32 %v12779_v27, %v3580_v36  ;;  %v16369_v36 = vld [vmem:[#allocation71_spill] sm:$0xff] }
 0x28e   : > { %v3289_v38 = vpop.permute.xlu0 %3288  ;;  %v3499_v40 = vpop.permute.xlu1 %3498 }
 0x28f   : > { %v3374_v14 = vadd.f32 %v3289_v38, %v16365_v63  ;;  %v16371_v63 = vld [vmem:[#allocation77_spill] sm:$0xff] }
 0x290   : > { %4782 = vrot.lane.b32.xlu0 %v12814_v18, %s10478_s21  ;;  %4786 = vrot.lane.b32.xlu1 %v12833_v20, %s10478_s21 }
 0x291   : > { %v3582_v46 = vadd.f32 %v3497_v30, %v3374_v14 }
 0x292   : > { %v3291_v51 = vpop.permute.xlu0 %3290  ;;  %v3295_v12 = vpop.permute.xlu1 %3294 }
 0x293   : > { %v3375_v8 = vadd.f32 %v3291_v51, %v16366_v60  ;;  %v13176_v19 = vadd.f32 %v12794_v28, %v3582_v46  ;;  %v3377_v18 = vadd.f32 %v3295_v12, %v16367_v13  ;;  %v16370_v28 = vld [vmem:[#allocation43_spill] sm:$0xff]  ;;  %v16373_v51 = vld [vmem:[#allocation73_spill] sm:$0xff]  ;;  %v16374_v12 = vld [vmem:[#allocation72_spill] sm:$0xff] }
 0x294   : > { %4784 = vrot.lane.b32.xlu0 %v12836_v23, %s10478_s21  ;;  %4788 = vrot.lane.b32.xlu1 %v12861_v16, %s10478_s21  ;;  %v16375_v13 = vld [vmem:[#allocation46_spill] sm:$0xff] }
 0x295   : > { %v3583_v27 = vadd.f32 %v3499_v40, %v3375_v8  ;;  %v16372_v40 = vld [vmem:[#allocation70_spill] sm:$0xff] }
 0x296   : > { %v3293_v42 = vpop.permute.xlu0 %3292  ;;  %v3503_v22 = vpop.permute.xlu1 %3502 }
 0x297   : > { %v13184_v20 = vadd.f32 %v16368_v7, %v3583_v27  ;;  %v3585_v30 = vadd.f32 %v3503_v22, %v3377_v18  ;;  %v3376_v38 = vadd.f32 %v3293_v42, %v16370_v28  ;;  %v16377_v28 = vld [vmem:[#allocation76_spill] sm:$0xff] }
 0x298   : > { %4992 = vrot.lane.b32.xlu0 %v16369_v36, %s10479_s22  ;;  %4996 = vrot.lane.b32.xlu1 %v16371_v63, %s10479_s22 }
 0x299   : > { %v13192_v14 = vadd.f32 %v16372_v40, %v3585_v30  ;;  %v16376_v30 = vld [vmem:[#allocation31_spill] sm:$0xff]  ;;  %v16380_v40 = vld [vmem:[#allocation52_spill] sm:$0xff] }
 0x29a   : > { %v3501_v23 = vpop.permute.xlu0 %3500  ;;  %v3505_v16 = vpop.permute.xlu1 %3504 }
 0x29b   : > { %v3584_v46 = vadd.f32 %v3501_v23, %v3376_v38  ;;  %v16378_v38 = vld [vmem:[#allocation83_spill] sm:$0xff]  ;;  %v16379_v23 = vld [vmem:[#allocation89_spill] sm:$0xff] }
 0x29c   : > { %4994 = vrot.lane.b32.xlu0 %v16373_v51, %s10479_s22  ;;  %4998 = vrot.lane.b32.xlu1 %v12873_v45, %s10479_s22  ;;  %v16382_v51 = vld [vmem:[#allocation12_spill] sm:$0xff] }
 0x29d   : > { %v13199_v60 = vadd.f32 %v16374_v12, %v3584_v46  ;;  %v16381_v46 = vld [vmem:[#allocation13_spill] sm:$0xff] }
 0x29e   : > { %v3297_v8 = vpop.permute.xlu0 %3296  ;;  %v3507_v27 = vpop.permute.xlu1 %3506 }
 0x29f   : > { %v3378_v18 = vadd.f32 %v3297_v8, %v16375_v13  ;;  %v16383_v8 = vld [vmem:[#allocation79_spill] sm:$0xff] }
 0x2a0   : > { %4790 = vrot.lane.b32.xlu0 %v12876_v56, %s10478_s21  ;;  %4794 = vrot.lane.b32.xlu1 %v12895_v25, %s10478_s21  ;;  %v1887_v25 = vadd.f32 %v16382_v51, %v16381_v46  ;;  %v16391_v46 = vld [vmem:[#allocation50_spill] sm:$0xff] }
 0x2a1   : > { %v3586_v42 = vadd.f32 %v3505_v16, %v3378_v18 }
 0x2a2   : > { %v3299_v22 = vpop.permute.xlu0 %3298  ;;  %v3303_v7 = vpop.permute.xlu1 %3302 }
 0x2a3   : > { %v3379_v36 = vadd.f32 %v3299_v22, %v16376_v30  ;;  %v13208_v45 = vadd.f32 %v16377_v28, %v3586_v42  ;;  %v3381_v56 = vadd.f32 %v3303_v7, %v16380_v40  ;;  %v16384_v42 = vld [vmem:[#allocation84_spill] sm:$0xff]  ;;  %v16385_v22 = vld [vmem:[#allocation53_spill] sm:$0xff]  ;;  %v16387_v28 = vld [vmem:[#allocation90_spill] sm:$0xff] }
 0x2a4   : > { %4792 = vrot.lane.b32.xlu0 %v16378_v38, %s10478_s21  ;;  %4796 = vrot.lane.b32.xlu1 %v16379_v23, %s10478_s21  ;;  %v2096_v30 = vadd.f32 %v16385_v22, %v1887_v25  ;;  %v16388_v38 = vld [vmem:[#allocation82_spill] sm:$0xff]  ;;  %v16395_v22 = vld [vmem:[#allocation85_spill] sm:$0xff] }
 0x2a5   : > { %v3587_v63 = vadd.f32 %v3507_v27, %v3379_v36  ;;  %v16386_v27 = vld [vmem:[#allocation51_spill] sm:$0xff]  ;;  %v16390_v40 = vld [vmem:[#allocation14_spill] sm:$0xff] }
 0x2a6   : > { %v3301_v16 = vpop.permute.xlu0 %3300  ;;  %v3511_v12 = vpop.permute.xlu1 %3510  ;;  %v1888_v51 = vadd.f32 %v16391_v46, %v16390_v40  ;;  %v16398_v40 = vld [vmem:[#allocation16_spill] sm:$0xff]  ;;  %v16399_v46 = vld [vmem:[#allocation55_spill] sm:$0xff] }
 0x2a7   : > { %v13218_v13 = vadd.f32 %v16383_v8, %v3587_v63  ;;  %v3589_v18 = vadd.f32 %v3511_v12, %v3381_v56  ;;  %v3380_v36 = vadd.f32 %v3301_v16, %v16386_v27  ;;  %v16392_v56 = vld [vmem:[#allocation86_spill] sm:$0xff]  ;;  %v16393_v12 = vld [vmem:[#allocation11_spill] sm:$0xff]  ;;  %v16394_v16 = vld [vmem:[#allocation32_spill] sm:$0xff] }
 0x2a8   : > { %5000 = vrot.lane.b32.xlu0 %v16384_v42, %s10479_s22  ;;  %5004 = vrot.lane.b32.xlu1 %v16387_v28, %s10479_s22  ;;  %v2097_v42 = vadd.f32 %v16393_v12, %v1888_v51  ;;  %v3126_v25 = vadd.f32 %v16394_v16, %v2096_v30  ;;  %v16397_v28 = vld [vmem:[#allocation57_spill] sm:$0xff]  ;;  %v16403_v16 = vld [vmem:[#allocation54_spill] sm:$0xff] }
 0x2a9   : > { %v13227_v23 = vadd.f32 %v16388_v38, %v3589_v18  ;;  %v16396_v18 = vld [vmem:[#allocation15_spill] sm:$0xff]  ;;  %v16401_v51 = vld [vmem:[#allocation25_spill] sm:$0xff] }
 0x2aa   : > { %v3509_v7 = vpop.permute.xlu0 %3508  ;;  %v3513_v63 = vpop.permute.xlu1 %3512  ;;  %v1890_v38 = vadd.f32 %v16397_v28, %v16396_v18  ;;  %v16402_v30 = vld [vmem:[#allocation33_spill] sm:$0xff] }
 0x2ab   : > { %16389 = vst [vmem:[#allocation41_spill] sm:$0xff] %v13227_v23  ;;  %v3588_v8 = vadd.f32 %v3509_v7, %v3380_v36  ;;  %v1889_v36 = vadd.f32 %v16399_v46, %v16398_v40 }
 0x2ac   : > { %5002 = vrot.lane.b32.xlu0 %v16392_v56, %s10479_s22  ;;  %5006 = vrot.lane.b32.xlu1 %v12934_v21, %s10479_s22  ;;  %v16400_v56 = vld [vmem:[#allocation59_spill] sm:$0xff] }
 0x2ad   : > { %v13238_v27 = vadd.f32 %v16395_v22, %v3588_v8  ;;  %v2099_v23 = vadd.f32 %v16400_v56, %v1890_v38  ;;  %v3127_v8 = vadd.f32 %v16402_v30, %v2097_v42  ;;  %v2098_v22 = vadd.f32 %v16403_v16, %v1889_v36  ;;  %v16406_v42 = vld [vmem:[#allocation56_spill] sm:$0xff]  ;;  %v16407_v56 = vld [vmem:[#allocation35_spill] sm:$0xff]  ;;  %v16411_v16 = vld [vmem:[#allocation58_spill] sm:$0xff] }
 0x2ae   : > { %v3305_v31 = vpop.permute.xlu0 %3304  ;;  %v3515_v7 = vpop.permute.xlu1 %3514  ;;  %v16408_v30 = vld [vmem:[#allocation91_spill] sm:$0xff] }
 0x2af   : > { %v3382_v32 = vadd.f32 %v3305_v31, %v3126_v25  ;;  %v16404_v31 = vld [vmem:[#allocation34_spill] sm:$0xff] }
 0x2b0   : > { %4798 = vrot.lane.b32.xlu0 %v16401_v51, %s10478_s21  ;;  %4802 = vrot.lane.b32.xlu1 %v12957_v58, %s10478_s21  ;;  %v3129_v25 = vadd.f32 %v16404_v31, %v2099_v23  ;;  %v3128_v51 = vadd.f32 %v16407_v56, %v2098_v22  ;;  %v16412_v31 = vld [vmem:[#allocation94_spill] sm:$0xff]  ;;  %v16419_v56 = vld [vmem:[#allocation63_spill] sm:$0xff] }
 0x2b1   : > { %v3590_v21 = vadd.f32 %v3513_v63, %v3382_v32  ;;  %v16405_v63 = vld [vmem:[#allocation17_spill] sm:$0xff] }
 0x2b2   : > { %v3307_v12 = vpop.permute.xlu0 %3306  ;;  %v3311_v18 = vpop.permute.xlu1 %3310  ;;  %v1891_v46 = vadd.f32 %v16406_v42, %v16405_v63  ;;  %v16417_v63 = vld [vmem:[#allocation65_spill] sm:$0xff] }
 0x2b3   : > { %v3383_v28 = vadd.f32 %v3307_v12, %v3127_v8  ;;  %v13252_v40 = vadd.f32 %v12920_v3, %v3590_v21  ;;  %v3385_v58 = vadd.f32 %v3311_v18, %v3129_v25  ;;  %v16410_v12 = vld [vmem:[#allocation18_spill] sm:$0xff]  ;;  %v16413_v25 = vld [vmem:[#allocation60_spill] sm:$0xff] }
 0x2b4   : > { %4800 = vrot.lane.b32.xlu0 %v12960_v59, %s10478_s21  ;;  %4804 = vrot.lane.b32.xlu1 %v12991_v39, %s10478_s21  ;;  %v16409_v59 = vld [vmem:[#allocation61_spill] sm:$0xff]  ;;  %v1892_v22 = vadd.f32 %v16411_v16, %v16410_v12 }
 0x2b5   : > { %v3591_v38 = vadd.f32 %v3515_v7, %v3383_v28  ;;  %v2100_v23 = vadd.f32 %v16409_v59, %v1891_v46  ;;  %v16420_v59 = vld [vmem:[#allocation68_spill] sm:$0xff] }
 0x2b6   : > { %v3309_v32 = vpop.permute.xlu0 %3308  ;;  %v3519_v36 = vpop.permute.xlu1 %3518 }
 0x2b7   : > { %v13263_v3 = vadd.f32 %v16408_v30, %v3591_v38  ;;  %v3593_v21 = vadd.f32 %v3519_v36, %v3385_v58  ;;  %v3384_v7 = vadd.f32 %v3309_v32, %v3128_v51  ;;  %v16414_v38 = vld [vmem:[#allocation36_spill] sm:$0xff]  ;;  %v16418_v36 = vld [vmem:[#allocation29_spill] sm:$0xff] }
 0x2b8   : > { %5008 = vrot.lane.b32.xlu0 %v12963_v44, %s10479_s22  ;;  %5012 = vrot.lane.b32.xlu1 %v12994_v43, %s10479_s22  ;;  %v2101_v44 = vadd.f32 %v16413_v25, %v1892_v22  ;;  %v3130_v58 = vadd.f32 %v16414_v38, %v2100_v23  ;;  %v16415_v43 = vld [vmem:[#allocation93_spill] sm:$0xff]  ;;  %v1893_v51 = vadd.f32 %v16419_v56, %v16418_v36  ;;  %v16423_v22 = vld [vmem:[#allocation62_spill] sm:$0xff] }
 0x2b9   : > { %v13271_v8 = vadd.f32 %v12954_v47, %v3593_v21  ;;  %v16416_v47 = vld [vmem:[#allocation19_spill] sm:$0xff]  ;;  %v16422_v23 = vld [vmem:[#allocation37_spill] sm:$0xff]  ;;  %v16428_v56 = vld [vmem:[#allocation38_spill] sm:$0xff] }
 0x2ba   : > { %v3517_v39 = vpop.permute.xlu0 %3516  ;;  %v3521_v18 = vpop.permute.xlu1 %3520  ;;  %v1894_v42 = vadd.f32 %v16417_v63, %v16416_v47  ;;  %v3131_v12 = vadd.f32 %v16422_v23, %v2101_v44  ;;  %v16425_v47 = vld [vmem:[#allocation100_spill] sm:$0xff]  ;;  %v16432_v23 = vld [vmem:[#allocation7_spill] sm:$0xff] }
 0x2bb   : > { %v3592_v28 = vadd.f32 %v3517_v39, %v3384_v7  ;;  %v16421_v39 = vld [vmem:[#allocation5_spill] sm:$0xff]  ;;  %v16426_v44 = vld [vmem:[#allocation20_spill] sm:$0xff] }
 0x2bc   : > { %5010 = vrot.lane.b32.xlu0 %v16412_v31, %s10479_s22  ;;  %5014 = vrot.lane.b32.xlu1 %v13003_v57, %s10479_s22  ;;  %v2103_v7 = vadd.f32 %v16420_v59, %v1894_v42  ;;  %v16427_v42 = vld [vmem:[#allocation64_spill] sm:$0xff] }
 0x2bd   : > { %v13282_v32 = vadd.f32 %v16415_v43, %v3592_v28  ;;  %v2102_v28 = vadd.f32 %v16423_v22, %v1893_v51  ;;  %v16434_v22 = vld [vmem:[#allocation66_spill] sm:$0xff] }
 0x2be   : > { %v3313_v46 = vpop.permute.xlu0 %3312  ;;  %v3523_v30 = vpop.permute.xlu1 %3522 }
 0x2bf   : > { %v3386_v21 = vadd.f32 %v3313_v46, %v3130_v58  ;;  %v16424_v58 = vld [vmem:[#allocation8_spill] sm:$0xff]  ;;  %v1895_v46 = vadd.f32 %v16427_v42, %v16426_v44  ;;  %v3132_v51 = vadd.f32 %v16428_v56, %v2102_v28  ;;  %v16438_v44 = vld [vmem:[#allocation78_spill] sm:$0xff] }
 0x2c0   : > { %4806 = vrot.lane.b32.xlu0 %v16421_v39, %s10478_s21  ;;  %4810 = vrot.lane.b32.xlu1 %v13022_v53, %s10478_s21  ;;  %v3133_v43 = vadd.f32 %v16424_v58, %v2103_v7  ;;  %v16430_v7 = vld [vmem:[#allocation101_spill] sm:$0xff]  ;;  %v16431_v39 = vld [vmem:[#allocation74_spill] sm:$0xff] }
 0x2c1   : > { %v3594_v57 = vadd.f32 %v3521_v18, %v3386_v21  ;;  %v16429_v21 = vld [vmem:[#allocation99_spill] sm:$0xff]  ;;  %v16435_v58 = vld [vmem:[#allocation69_spill] sm:$0xff]  ;;  %v16439_v56 = vld [vmem:[#allocation42_spill] sm:$0xff] }
 0x2c2   : > { %v3315_v16 = vpop.permute.xlu0 %3314  ;;  %v3319_v31 = vpop.permute.xlu1 %3318 }
 0x2c3   : > { %v3387_v25 = vadd.f32 %v3315_v16, %v3131_v12  ;;  %v13296_v38 = vadd.f32 %v12988_v54, %v3594_v57  ;;  %v3389_v53 = vadd.f32 %v3319_v31, %v3133_v43  ;;  %v16433_v16 = vld [vmem:[#allocation21_spill] sm:$0xff] }
 0x2c4   : > { %4808 = vrot.lane.b32.xlu0 %v16425_v47, %s10478_s21  ;;  %4812 = vrot.lane.b32.xlu1 %v13050_v24, %s10478_s21  ;;  %v1896_v28 = vadd.f32 %v16434_v22, %v16433_v16  ;;  %v16436_v47 = vld [vmem:[#allocation40_spill] sm:$0xff]  ;;  %v16443_v16 = vld [vmem:[#allocation45_spill] sm:$0xff] }
 0x2c5   : > { %v3595_v63 = vadd.f32 %v3523_v30, %v3387_v25  ;;  %v2104_v30 = vadd.f32 %v16431_v39, %v1895_v46 }
 0x2c6   : > { %v3317_v18 = vpop.permute.xlu0 %3316  ;;  %v3527_v36 = vpop.permute.xlu1 %3526  ;;  %v2105_v43 = vadd.f32 %v16435_v58, %v1896_v28 }
 0x2c7   : > { %v13307_v54 = vadd.f32 %v16429_v21, %v3595_v63  ;;  %v3597_v59 = vadd.f32 %v3527_v36, %v3389_v53  ;;  %v3388_v57 = vadd.f32 %v3317_v18, %v3132_v51  ;;  %v3134_v63 = vadd.f32 %v16436_v47, %v2104_v30  ;;  %v16437_v18 = vld [vmem:[#allocation22_spill] sm:$0xff]  ;;  %v16440_v21 = vld [vmem:[#allocation75_spill] sm:$0xff] }
 0x2c8   : > { %5016 = vrot.lane.b32.xlu0 %v16430_v7, %s10479_s22  ;;  %5020 = vrot.lane.b32.xlu1 %v13053_v48, %s10479_s22  ;;  %v1897_v42 = vadd.f32 %v16438_v44, %v16437_v18 }
 0x2c9   : > { %v13315_v12 = vadd.f32 %v16432_v23, %v3597_v59 }
 0x2ca   : > { %v3525_v24 = vpop.permute.xlu0 %3524  ;;  %v3529_v31 = vpop.permute.xlu1 %3528  ;;  %v2106_v59 = vadd.f32 %v16440_v21, %v1897_v42 }
 0x2cb   : > { %v3596_v25 = vadd.f32 %v3525_v24, %v3388_v57  ;;  %v16441_v57 = vld [vmem:[#allocation30_spill] sm:$0xff] }
 0x2cc   : > { %5018 = vrot.lane.b32.xlu0 %v13037_v1, %s10479_s22  ;;  %5022 = vrot.lane.b32.xlu1 %v13067_v0, %s10479_s22  ;;  %v3135_v0 = vadd.f32 %v16439_v56, %v2105_v43  ;;  %v3136_v22 = vadd.f32 %v16443_v16, %v2106_v59  ;;  %v13358_v43 = vld [vmem:[%s16001_s4] ss:$0 sm:$0xff] }
 0x2cd   : > { %v13326_v48 = vadd.f32 %v13032_v26, %v3596_v25 }
 0x2ce   : > { %v3321_v53 = vpop.permute.xlu0 %3320  ;;  %v3531_v46 = vpop.permute.xlu1 %3530 }
 0x2cf   : > { %v3390_v36 = vadd.f32 %v3321_v53, %v3134_v63 }
 0x2d0   : > { %4814 = vrot.lane.b32.xlu0 %v13070_v49, %s10478_s21  ;;  %4816 = vrot.lane.b32.xlu1 %v13089_v9, %s10478_s21  ;;  %v16442_v9 = vld [vmem:[#allocation80_spill] sm:$0xff] }
 0x2d1   : > { %v3598_v1 = vadd.f32 %v3529_v31, %v3390_v36  ;;  %v1898_v24 = vadd.f32 %v16442_v9, %v16441_v57  ;;  %v16451_v9 = vld [vmem:[#allocation48_spill] sm:$0xff] }
 0x2d2   : > { %v3323_v51 = vpop.permute.xlu0 %3322  ;;  %v3535_v26 = vpop.permute.xlu1 %3534 }
 0x2d3   : > { %v3391_v7 = vadd.f32 %v3323_v51, %v3135_v0  ;;  %v13337_v39 = vadd.f32 %v13047_v61, %v3598_v1  ;;  %v16444_v61 = vld [vmem:[#allocation87_spill] sm:$0xff] }
 0x2d4   : > { %5026 = vrot.lane.b32.xlu0 %v13095_v17, %s10479_s22  ;;  %4818 = vrot.lane.b32.xlu1 %v13092_v11, %s10478_s21  ;;  %v2107_v31 = vadd.f32 %v16444_v61, %v1898_v24  ;;  %v16445_v11 = vld [vmem:[#allocation96_spill] sm:$0xff]  ;;  %v16447_v1 = vld [vmem:[#allocation27_spill] sm:$0xff] }
 0x2d5   : > { %v3599_v30 = vadd.f32 %v3531_v46, %v3391_v7  ;;  %v16449_v51 = vld [vmem:[#allocation95_spill] sm:$0xff] }
 0x2d6   : > { %v3325_v49 = vpop.permute.xlu0 %3324  ;;  %v4765_v23 = vpop.permute.xlu1 %4764  ;;  %v5843_v21 = vrot.slane %v16449_v51, 1  ;;  %v6051_v16 = vrot.slane %v16449_v51, 2 }
 0x2d7   : > { %v13347_v28 = vadd.f32 %v13072_v2, %v3599_v30  ;;  %v3392_v17 = vadd.f32 %v3325_v49, %v3136_v22  ;;  %v4860_v25 = vadd.f32 %v4765_v23, %v16445_v11  ;;  %v16450_v30 = vld [vmem:[#allocation98_spill] sm:$0xff] }
 0x2d8   : > { %4820 = vrot.lane.b32.xlu0 %v13114_v15, %s10478_s21  ;;  %5024 = vrot.lane.b32.xlu1 %v13104_v35, %s10479_s22  ;;  %v13365_v15 = vld [vmem:[%s16002_s5] ss:$0 sm:$0xff]  ;;  %v16446_v35 = vld [vmem:[#allocation44_spill] sm:$0xff]  ;;  %v16453_v11 = vld [vmem:[#allocation102_spill] sm:$0xff] }
 0x2d9   : > { %v3137_v53 = vadd.f32 %v16446_v35, %v2107_v31  ;;  %v9077_v31 = vld [vmem:[%s16003_s6 + $0x8] sm:$0xff] }
 0x2da   : > { %v3533_v58 = vpop.permute.xlu0 %3532  ;;  %v4973_v47 = vpop.permute.xlu1 %4972  ;;  %10149 = vmatprep.subr.mxu1 %v9077_v31 }
 0x2db   : > { %v3600_v2 = vadd.f32 %v3533_v58, %v3392_v17  ;;  %v5068_v63 = vadd.f32 %v4973_v47, %v4860_v25  ;;  %v16454_v58 = vld [vmem:[#allocation49_spill] sm:$0xff]  ;;  %10150 = vmatpush3.msra.mxu1 %v9077_v31  ;;  %v16455_v47 = vld [vmem:[#allocation104_spill] sm:$0xff] }
 0x2dc   : > { %4822 = vrot.lane.b32.xlu0 %v13128_v29, %s10478_s21  ;;  %5028 = vrot.lane.b32.xlu1 %v13117_v41, %s10479_s22  ;;  %v16448_v41 = vld [vmem:[#allocation92_spill] sm:$0xff] }
 0x2dd   : > { %v13371_v18 = vadd.f32 %v13099_v4, %v3600_v2  ;;  %v5106_v44 = vmul.f32 %v13358_v43, %v5068_v63  ;;  %v5844_v0 = vrot.slane %v16448_v41, 1  ;;  %v6052_v23 = vrot.slane %v16448_v41, 2 }
 0x2de   : > { %v3327_v42 = vpop.permute.xlu0 %3326  ;;  %v4975_v46 = vpop.permute.xlu1 %4974 }
 0x2df   : > { %v3393_v36 = vadd.f32 %v3327_v42, %v3137_v53  ;;  %v5144_v29 = vadd.f32 %v13365_v15, %v5106_v44  ;;  %v5845_v24 = vsel %vm1692_vm1, %v5843_v21, %v5844_v0  ;;  %v6053_v35 = vsel %vm1901_vm2, %v6051_v16, %v6052_v23 }
 0x2e0   : > { %3328 = vrot.lane.b32.xlu0 %v16447_v1, %s10478_s21  ;;  %5030 = vrot.lane.b32.xlu1 %v13131_v5, %s10479_s22  ;;  %v16452_v5 = vld [vmem:[#allocation47_spill] sm:$0xff]  ;;  %v16456_v53 = vmov 0.0  }
 0x2e1   : > { %v3601_v56 = vadd.f32 %v3535_v26, %v3393_v36  ;;  %v5176_v4 = vmax.f32 %v5144_v29, 0.0  ;;  %10297 = vmatprep.subr.mxu1 %v16456_v53  ;;  %v16457_v1 = vld [vmem:[#allocation103_spill] sm:$0xff] }
 0x2e2   : > { %v4767_v59 = vpop.permute.xlu0 %4766  ;;  %v4771_v7 = vpop.permute.xlu1 %4770 }
 0x2e3   : > { %v4861_v49 = vadd.f32 %v4767_v59, %v16450_v30  ;;  %v13383_v57 = vadd.f32 %v13086_v33, %v3601_v56  ;;  %5263 = vst.msk [vmem:[#allocation4 + $0x19] sm:$0xff] %vm407_vm0, %v5176_v4  ;;  %v4863_v56 = vadd.f32 %v4771_v7, %v16457_v1 }
 0x2e4   : > { %3536 = vrot.lane.b32.xlu0 %v16451_v9, %s10479_s22  ;;  %3330 = vrot.lane.b32.xlu1 %v16452_v5, %s10478_s21 }
 0x2e5   : > { %v5069_v26 = vadd.f32 %v4975_v46, %v4861_v49 }
 0x2e6   : > { %v4769_v22 = vpop.permute.xlu0 %4768  ;;  %v4773_v61 = vpop.permute.xlu1 %4772 }
 0x2e7   : > { %v5107_v33 = vmul.f32 %v13358_v43, %v5069_v26  ;;  %v4862_v25 = vadd.f32 %v4769_v22, %v16453_v11  ;;  %v4864_v2 = vadd.f32 %v4773_v61, %v16455_v47 }
 0x2e8   : > { %5923 = vrot.lane.b32.xlu0 %v5845_v24, %s10478_s21  ;;  %3538 = vrot.lane.b32.xlu1 %v16454_v58, %s10479_s22 }
 0x2e9   : > { %v5145_v17 = vadd.f32 %v13365_v15, %v5107_v33  ;;  %v16458_v33 = vld [vmem:[#allocation6_spill] sm:$0xff] }
 0x2ea   : > { %v4977_v63 = vpop.permute.xlu0 %4976  ;;  %v4981_v42 = vpop.permute.xlu1 %4980  ;;  %v13409_v36 = vld [vmem:[#allocation4 + $0x18] sm:$0xff] }
 0x2eb   : > { %v5177_v44 = vmax.f32 %v5145_v17, 0.0  ;;  %v5070_v46 = vadd.f32 %v4977_v63, %v4862_v25  ;;  %v5072_v29 = vadd.f32 %v4981_v42, %v4864_v2  ;;  %10081 = vmatmul.mubr.msk.f32.gmra.mrb[72].mxu1 %vm407_vm0, %v13409_v36 }
 0x2ec   : > { %4824 = vrot.lane.b32.xlu0 %v13151_v10, %s10478_s21  ;;  %6131 = vrot.lane.b32.xlu1 %v6053_v35, %s10479_s22 }
 0x2ed   : > { %5264 = vst.msk [vmem:[#allocation4 + $0x21] sm:$0xff] %vm407_vm0, %v5177_v44  ;;  %v5108_v21 = vmul.f32 %v13358_v43, %v5070_v46  ;;  %v5110_v4 = vmul.f32 %v13358_v43, %v5072_v29 }
 0x2ee   : > { %v4979_v59 = vpop.permute.xlu0 %4978  ;;  %v4983_v49 = vpop.permute.xlu1 %4982 }
 0x2ef   : > { %v5146_v30 = vadd.f32 %v13365_v15, %v5108_v21  ;;  %v5071_v9 = vadd.f32 %v4979_v59, %v4863_v56  ;;  %v5148_v26 = vadd.f32 %v13365_v15, %v5110_v4 }
 0x2f0   : > { %5032 = vrot.lane.b32.xlu0 %v13157_v37, %s10479_s22  ;;  %4826 = vrot.lane.b32.xlu1 %v13154_v50, %s10478_s21 }
 0x2f1   : > { %v5178_v10 = vmax.f32 %v5146_v30, 0.0  ;;  %v5109_v7 = vmul.f32 %v13358_v43, %v5071_v9  ;;  %v5180_v5 = vmax.f32 %v5148_v26, 0.0 }
 0x2f2   : > { %v4775_v24 = vpop.permute.xlu0 %4774  ;;  %v4779_v22 = vpop.permute.xlu1 %4778 }
 0x2f3   : > { %5265 = vst.msk [vmem:[#allocation4 + $0x31] sm:$0xff] %vm407_vm0, %v5178_v10  ;;  %v5147_v16 = vadd.f32 %v13365_v15, %v5109_v7  ;;  %v4865_v61 = vadd.f32 %v4775_v24, %v16458_v33  ;;  %5267 = vst.msk [vmem:[#allocation4 + $0x49] sm:$0xff] %vm407_vm0, %v5180_v5  ;;  %v4867_v1 = vadd.f32 %v4779_v22, %v13134_v52 }
 0x2f4   : > { %v13431_v31 = vld [vmem:[#allocation4 + $0x20] sm:$0xff]  ;;  %v13433_v37 = vld [vmem:[#allocation4 + $0x28] sm:$0xff]  ;;  %5034 = vrot.lane.b32.xlu1 %v13162_v55, %s10479_s22 }
 0x2f5   : > { %v5179_v17 = vmax.f32 %v5147_v16, 0.0  ;;  %v5073_v11 = vadd.f32 %v4983_v49, %v4865_v61  ;;  %10083 = vmatprep.mubr.msk.f32.mxu1 %vm407_vm0, %v13431_v31 }
 0x2f6   : > { %10084 = vmatmul.mubr.msk.f32.gmra.mrb[74].mxu1 %vm407_vm0, %v13433_v37  ;;  %v4777_v50 = vpop.permute.xlu0 %4776  ;;  %v4781_v58 = vpop.permute.xlu1 %4780 }
 0x2f7   : > { %5266 = vst.msk [vmem:[#allocation4 + $0x39] sm:$0xff] %vm407_vm0, %v5179_v17  ;;  %v5111_v25 = vmul.f32 %v13358_v43, %v5073_v11  ;;  %v4866_v2 = vadd.f32 %v4777_v50, %v13120_v6  ;;  %v4868_v63 = vadd.f32 %v4781_v58, %v13167_v34 }
 0x2f9   : > { %v5149_v47 = vadd.f32 %v13365_v15, %v5111_v25 }
 0x2fa   : > { %v4985_v35 = vpop.permute.xlu0 %4984  ;;  %v13446_v55 = vld [vmem:[#allocation4 + $0x30] sm:$0xff]  ;;  %v4989_v42 = vpop.permute.xlu1 %4988  ;;  %v13471_v5 = vld [vmem:[#allocation4 + $0x48] sm:$0xff] }
 0x2fb   : > { %v5181_v44 = vmax.f32 %v5149_v47, 0.0  ;;  %v5074_v46 = vadd.f32 %v4985_v35, %v4866_v2  ;;  %10086 = vmatprep.mubr.msk.f32.mxu1 %vm407_vm0, %v13446_v55  ;;  %10225 = vmatprep.mubr.msk.f32.mxu0 %vm407_vm0, %v13446_v55  ;;  %v5076_v29 = vadd.f32 %v4989_v42, %v4868_v63 }
 0x2fd   : > { %5268 = vst.msk [vmem:[#allocation4 + $0x51] sm:$0xff] %vm407_vm0, %v5181_v44  ;;  %v5112_v6 = vmul.f32 %v13358_v43, %v5074_v46  ;;  %v5114_v34 = vmul.f32 %v13358_v43, %v5076_v29 }
 0x2fe   : > { %v4987_v56 = vpop.permute.xlu0 %4986  ;;  %v13456_v21 = vld [vmem:[#allocation4 + $0x38] sm:$0xff]  ;;  %v13458_v4 = vld [vmem:[#allocation4 + $0x40] sm:$0xff]  ;;  %v4991_v30 = vpop.permute.xlu1 %4990 }
 0x2ff   : > { %v5150_v59 = vadd.f32 %v13365_v15, %v5112_v6  ;;  %v5075_v49 = vadd.f32 %v4987_v56, %v4867_v1  ;;  %10087 = vmatmul.mubr.msk.f32.gmra.mrb[76].mxu1 %vm407_vm0, %v13456_v21  ;;  %10226 = vmatmul.mubr.msk.f32.vlgmr.msra.gmra.mrb[96].mxu0 %vm407_vm0, %v13456_v21  ;;  %v5152_v52 = vadd.f32 %v13365_v15, %v5114_v34 }
 0x300   : > { %10089 = vmatprep.mubr.msk.f32.mxu1 %vm407_vm0, %v13458_v4  ;;  %10228 = vmatprep.mubr.msk.f32.mxu0 %vm407_vm0, %v13458_v4 }
 0x301   : > { %v5182_v9 = vmax.f32 %v5150_v59, 0.0  ;;  %v5113_v26 = vmul.f32 %v13358_v43, %v5075_v49  ;;  %v5184_v10 = vmax.f32 %v5152_v52, 0.0 }
 0x302   : > { %v4783_v7 = vpop.permute.xlu0 %4782  ;;  %v4787_v16 = vpop.permute.xlu1 %4786 }
 0x303   : > { %5269 = vst.msk [vmem:[#allocation4 + $0x61] sm:$0xff] %vm407_vm0, %v5182_v9  ;;  %v5151_v24 = vadd.f32 %v13365_v15, %v5113_v26  ;;  %v4869_v22 = vadd.f32 %v4783_v7, %v13148_v62  ;;  %10090 = vmatmul.mubr.msk.f32.gmra.mrb[78].mxu1 %vm407_vm0, %v13471_v5  ;;  %10229 = vmatmul.mubr.msk.f32.gmra.mrb[98].mxu0 %vm407_vm0, %v13471_v5  ;;  %5271 = vst.msk [vmem:[#allocation4 + $0x79] sm:$0xff] %vm407_vm0, %v5184_v10 }
 0x304   : > { %v13481_v33 = vld [vmem:[#allocation4 + $0x50] sm:$0xff]  ;;  %v13487_v62 = vld [vmem:[#allocation4 + $0x58] sm:$0xff]  ;;  %v4871_v1 = vadd.f32 %v4787_v16, %v13184_v20 }
 0x305   : > { %v5183_v61 = vmax.f32 %v5151_v24, 0.0  ;;  %v5077_v17 = vadd.f32 %v4991_v30, %v4869_v22  ;;  %10092 = vmatprep.mubr.msk.f32.mxu1 %vm407_vm0, %v13481_v33  ;;  %10231 = vmatprep.mubr.msk.f32.mxu0 %vm407_vm0, %v13481_v33 }
 0x306   : > { %v4785_v11 = vpop.permute.xlu0 %4784  ;;  %v4789_v25 = vpop.permute.xlu1 %4788 }
 0x307   : > { %5270 = vst.msk [vmem:[#allocation4 + $0x69] sm:$0xff] %vm407_vm0, %v5183_v61  ;;  %v5115_v50 = vmul.f32 %v13358_v43, %v5077_v17  ;;  %10093 = vmatmul.mubr.msk.f32.gmra.mrb[80].mxu1 %vm407_vm0, %v13487_v62  ;;  %10232 = vmatmul.mubr.msk.f32.gmra.mrb[100].mxu0 %vm407_vm0, %v13487_v62  ;;  %v4870_v47 = vadd.f32 %v4785_v11, %v13176_v19 }
 0x308   : > { %v4872_v2 = vadd.f32 %v4789_v25, %v13199_v60 }
 0x309   : > { %v5153_v58 = vadd.f32 %v13365_v15, %v5115_v50 }
 0x30a   : > { %v4993_v63 = vpop.permute.xlu0 %4992  ;;  %v13498_v35 = vld [vmem:[#allocation4 + $0x60] sm:$0xff]  ;;  %v4997_v42 = vpop.permute.xlu1 %4996  ;;  %v13523_v7 = vld [vmem:[#allocation4 + $0x78] sm:$0xff] }
 0x30b   : > { %v5185_v44 = vmax.f32 %v5153_v58, 0.0  ;;  %v5078_v46 = vadd.f32 %v4993_v63, %v4870_v47  ;;  %10095 = vmatprep.mubr.msk.f32.mxu1 %vm407_vm0, %v13498_v35  ;;  %10234 = vmatprep.mubr.msk.f32.mxu0 %vm407_vm0, %v13498_v35  ;;  %v5080_v29 = vadd.f32 %v4997_v42, %v4872_v2 }
 0x30d   : > { %5272 = vst.msk [vmem:[#allocation4 + $0x81] sm:$0xff] %vm407_vm0, %v5185_v44  ;;  %v5116_v19 = vmul.f32 %v13358_v43, %v5078_v46  ;;  %v5118_v60 = vmul.f32 %v13358_v43, %v5080_v29 }
 0x30e   : > { %v4995_v6 = vpop.permute.xlu0 %4994  ;;  %v13508_v34 = vld [vmem:[#allocation4 + $0x68] sm:$0xff]  ;;  %v13510_v56 = vld [vmem:[#allocation4 + $0x70] sm:$0xff]  ;;  %v4999_v30 = vpop.permute.xlu1 %4998 }
 0x30f   : > { %v5154_v59 = vadd.f32 %v13365_v15, %v5116_v19  ;;  %v5079_v49 = vadd.f32 %v4995_v6, %v4871_v1  ;;  %10096 = vmatmul.mubr.msk.f32.gmra.mrb[82].mxu1 %vm407_vm0, %v13508_v34  ;;  %10235 = vmatmul.mubr.msk.f32.gmra.mrb[102].mxu0 %vm407_vm0, %v13508_v34  ;;  %v5156_v20 = vadd.f32 %v13365_v15, %v5118_v60 }
 0x310   : > { %10098 = vmatprep.mubr.msk.f32.mxu1 %vm407_vm0, %v13510_v56  ;;  %10237 = vmatprep.mubr.msk.f32.mxu0 %vm407_vm0, %v13510_v56 }
 0x311   : > { %v5186_v52 = vmax.f32 %v5154_v59, 0.0  ;;  %v5117_v9 = vmul.f32 %v13358_v43, %v5079_v49  ;;  %v5188_v26 = vmax.f32 %v5156_v20, 0.0 }
 0x312   : > { %v4791_v10 = vpop.permute.xlu0 %4790  ;;  %v4795_v16 = vpop.permute.xlu1 %4794 }
 0x313   : > { %5273 = vst.msk [vmem:[#allocation4 + $0x91] sm:$0xff] %vm407_vm0, %v5186_v52  ;;  %v5155_v24 = vadd.f32 %v13365_v15, %v5117_v9  ;;  %v4873_v22 = vadd.f32 %v4791_v10, %v13192_v14  ;;  %10099 = vmatmul.mubr.msk.f32.gmra.mrb[84].mxu1 %vm407_vm0, %v13523_v7  ;;  %10238 = vmatmul.mubr.msk.f32.gmra.mrb[104].mxu0 %vm407_vm0, %v13523_v7  ;;  %5275 = vst.msk [vmem:[#allocation4 + $0xa9] sm:$0xff] %vm407_vm0, %v5188_v26 }
 0x314   : > { %v13533_v61 = vld [vmem:[#allocation4 + $0x80] sm:$0xff]  ;;  %v13539_v14 = vld [vmem:[#allocation4 + $0x88] sm:$0xff]  ;;  %v4875_v60 = vadd.f32 %v4795_v16, %v13218_v13 }
 0x315   : > { %v5187_v17 = vmax.f32 %v5155_v24, 0.0  ;;  %v5081_v11 = vadd.f32 %v4999_v30, %v4873_v22  ;;  %10101 = vmatprep.mubr.msk.f32.mxu1 %vm407_vm0, %v13533_v61  ;;  %10240 = vmatprep.mubr.msk.f32.mxu0 %vm407_vm0, %v13533_v61 }
 0x316   : > { %v4793_v50 = vpop.permute.xlu0 %4792  ;;  %v4797_v58 = vpop.permute.xlu1 %4796 }
 0x317   : > { %5274 = vst.msk [vmem:[#allocation4 + $0x99] sm:$0xff] %vm407_vm0, %v5187_v17  ;;  %v5119_v25 = vmul.f32 %v13358_v43, %v5081_v11  ;;  %10102 = vmatmul.mubr.msk.f32.gmra.mrb[86].mxu1 %vm407_vm0, %v13539_v14  ;;  %10241 = vmatmul.mubr.msk.f32.gmra.mrb[106].mxu0 %vm407_vm0, %v13539_v14  ;;  %v4874_v2 = vadd.f32 %v4793_v50, %v13208_v45  ;;  %v16459_v11 = vld [vmem:[#allocation41_spill] sm:$0xff] }
 0x318   : > { %v4876_v63 = vadd.f32 %v4797_v58, %v13238_v27 }
 0x319   : > { %v5157_v47 = vadd.f32 %v13365_v15, %v5119_v25 }
 0x31a   : > { %v5001_v44 = vpop.permute.xlu0 %5000  ;;  %v13550_v42 = vld [vmem:[#allocation4 + $0x90] sm:$0xff]  ;;  %v5005_v29 = vpop.permute.xlu1 %5004  ;;  %v13575_v16 = vld [vmem:[#allocation4 + $0xa8] sm:$0xff] }
 0x31b   : > { %v5189_v46 = vmax.f32 %v5157_v47, 0.0  ;;  %v5082_v1 = vadd.f32 %v5001_v44, %v4874_v2  ;;  %10104 = vmatprep.mubr.msk.f32.mxu1 %vm407_vm0, %v13550_v42  ;;  %10243 = vmatprep.mubr.msk.f32.mxu0 %vm407_vm0, %v13550_v42  ;;  %v5084_v19 = vadd.f32 %v5005_v29, %v4876_v63 }
 0x31d   : > { %5276 = vst.msk [vmem:[#allocation4 + $0xb1] sm:$0xff] %vm407_vm0, %v5189_v46  ;;  %v5120_v45 = vmul.f32 %v13358_v43, %v5082_v1  ;;  %v5122_v27 = vmul.f32 %v13358_v43, %v5084_v19 }
 0x31e   : > { %v5003_v6 = vpop.permute.xlu0 %5002  ;;  %v13560_v59 = vld [vmem:[#allocation4 + $0x98] sm:$0xff]  ;;  %v13562_v30 = vld [vmem:[#allocation4 + $0xa0] sm:$0xff]  ;;  %v5007_v20 = vpop.permute.xlu1 %5006 }
 0x31f   : > { %v5158_v49 = vadd.f32 %v13365_v15, %v5120_v45  ;;  %v5083_v52 = vadd.f32 %v5003_v6, %v4875_v60  ;;  %10105 = vmatmul.mubr.msk.f32.gmra.mrb[88].mxu1 %vm407_vm0, %v13560_v59  ;;  %10244 = vmatmul.mubr.msk.f32.gmra.mrb[108].mxu0 %vm407_vm0, %v13560_v59  ;;  %v5160_v13 = vadd.f32 %v13365_v15, %v5122_v27 }
 0x320   : > { %10107 = vmatprep.mubr.msk.f32.mxu1 %vm407_vm0, %v13562_v30  ;;  %10246 = vmatprep.mubr.msk.f32.mxu0 %vm407_vm0, %v13562_v30 }
 0x321   : > { %v5190_v9 = vmax.f32 %v5158_v49, 0.0  ;;  %v5121_v26 = vmul.f32 %v13358_v43, %v5083_v52  ;;  %v5192_v10 = vmax.f32 %v5160_v13, 0.0 }
 0x322   : > { %v4799_v24 = vpop.permute.xlu0 %4798  ;;  %v4803_v17 = vpop.permute.xlu1 %4802 }
 0x323   : > { %5277 = vst.msk [vmem:[#allocation4 + $0xc1] sm:$0xff] %vm407_vm0, %v5190_v9  ;;  %v5159_v22 = vadd.f32 %v13365_v15, %v5121_v26  ;;  %v4877_v50 = vadd.f32 %v4799_v24, %v16459_v11  ;;  %10108 = vmatmul.mubr.msk.f32.gmra.mrb[90].mxu1 %vm407_vm0, %v13575_v16  ;;  %10247 = vmatmul.mubr.msk.f32.gmra.mrb[110].mxu0 %vm407_vm0, %v13575_v16  ;;  %5279 = vst.msk [vmem:[#allocation4 + $0xd9] sm:$0xff] %vm407_vm0, %v5192_v10 }
 0x324   : > { %v13585_v25 = vld [vmem:[#allocation4 + $0xb0] sm:$0xff]  ;;  %v13591_v63 = vld [vmem:[#allocation4 + $0xb8] sm:$0xff]  ;;  %v4879_v52 = vadd.f32 %v4803_v17, %v13263_v3 }
 0x325   : > { %v5191_v58 = vmax.f32 %v5159_v22, 0.0  ;;  %v5085_v47 = vadd.f32 %v5007_v20, %v4877_v50  ;;  %10110 = vmatprep.mubr.msk.f32.mxu1 %vm407_vm0, %v13585_v25  ;;  %10249 = vmatprep.mubr.msk.f32.mxu0 %vm407_vm0, %v13585_v25 }
 0x326   : > { %v4801_v2 = vpop.permute.xlu0 %4800  ;;  %v4805_v46 = vpop.permute.xlu1 %4804 }
 0x327   : > { %5278 = vst.msk [vmem:[#allocation4 + $0xc9] sm:$0xff] %vm407_vm0, %v5191_v58  ;;  %v5123_v44 = vmul.f32 %v13358_v43, %v5085_v47  ;;  %10111 = vmatmul.mubr.msk.f32.gmra.mrb[92].mxu1 %vm407_vm0, %v13591_v63  ;;  %10250 = vmatmul.mubr.msk.f32.gmra.mrb[112].mxu0 %vm407_vm0, %v13591_v63  ;;  %v4878_v1 = vadd.f32 %v4801_v2, %v13252_v40 }
 0x328   : > { %v4880_v19 = vadd.f32 %v4805_v46, %v13282_v32 }
 0x329   : > { %v5161_v29 = vadd.f32 %v13365_v15, %v5123_v44 }
 0x32a   : > { %v5009_v60 = vpop.permute.xlu0 %5008  ;;  %v13602_v45 = vld [vmem:[#allocation4 + $0xc0] sm:$0xff]  ;;  %v5013_v6 = vpop.permute.xlu1 %5012  ;;  %v13627_v47 = vld [vmem:[#allocation4 + $0xd8] sm:$0xff] }
 0x32b   : > { %v5193_v27 = vmax.f32 %v5161_v29, 0.0  ;;  %v5086_v49 = vadd.f32 %v5009_v60, %v4878_v1  ;;  %10113 = vmatprep.mubr.msk.f32.mxu1 %vm407_vm0, %v13602_v45  ;;  %10252 = vmatprep.mubr.msk.f32.mxu0 %vm407_vm0, %v13602_v45  ;;  %v5088_v20 = vadd.f32 %v5013_v6, %v4880_v19 }
 0x32d   : > { %5280 = vst.msk [vmem:[#allocation4 + $0xe1] sm:$0xff] %vm407_vm0, %v5193_v27  ;;  %v5124_v40 = vmul.f32 %v13358_v43, %v5086_v49  ;;  %v5126_v32 = vmul.f32 %v13358_v43, %v5088_v20 }
 0x32e   : > { %v5011_v13 = vpop.permute.xlu0 %5010  ;;  %v13612_v9 = vld [vmem:[#allocation4 + $0xc8] sm:$0xff]  ;;  %v13614_v26 = vld [vmem:[#allocation4 + $0xd0] sm:$0xff]  ;;  %v5015_v24 = vpop.permute.xlu1 %5014 }
 0x32f   : > { %v5162_v10 = vadd.f32 %v13365_v15, %v5124_v40  ;;  %v5087_v22 = vadd.f32 %v5011_v13, %v4879_v52  ;;  %10114 = vmatmul.mubr.msk.f32.gmra.mrb[94].mxu1 %vm407_vm0, %v13612_v9  ;;  %10253 = vmatmul.mubr.msk.f32.gmra.mrb[114].mxu0 %vm407_vm0, %v13612_v9  ;;  %v5164_v3 = vadd.f32 %v13365_v15, %v5126_v32 }
 0x330   : > { %10116 = vmatprep.mubr.msk.f32.mxu1 %vm407_vm0, %v13614_v26  ;;  %10255 = vmatprep.mubr.msk.f32.mxu0 %vm407_vm0, %v13614_v26 }
 0x331   : > { %v5194_v17 = vmax.f32 %v5162_v10, 0.0  ;;  %v5125_v11 = vmul.f32 %v13358_v43, %v5087_v22  ;;  %v5196_v50 = vmax.f32 %v5164_v3, 0.0 }
 0x332   : > { %v4807_v58 = vpop.permute.xlu0 %4806  ;;  %v4811_v44 = vpop.permute.xlu1 %4810 }
 0x333   : > { %5281 = vst.msk [vmem:[#allocation4 + $0xf1] sm:$0xff] %vm407_vm0, %v5194_v17  ;;  %v5163_v2 = vadd.f32 %v13365_v15, %v5125_v11  ;;  %v4881_v46 = vadd.f32 %v4807_v58, %v13271_v8  ;;  %10117 = vmatmul.mubr.msk.f32.gmra.mrb[96].mxu1 %vm407_vm0, %v13627_v47  ;;  %10256 = vmatmul.mubr.msk.f32.gmra.mrb[116].mxu0 %vm407_vm0, %v13627_v47  ;;  %5283 = vst.msk [vmem:[#allocation4 + $0x109] sm:$0xff] %vm407_vm0, %v5196_v50 }
 0x334   : > { %v13637_v29 = vld [vmem:[#allocation4 + $0xe0] sm:$0xff]  ;;  %v13643_v8 = vld [vmem:[#allocation4 + $0xe8] sm:$0xff]  ;;  %v4883_v3 = vadd.f32 %v4811_v44, %v13307_v54 }
 0x335   : > { %v5195_v1 = vmax.f32 %v5163_v2, 0.0  ;;  %v5089_v19 = vadd.f32 %v5015_v24, %v4881_v46  ;;  %10119 = vmatprep.mubr.msk.f32.mxu1 %vm407_vm0, %v13637_v29  ;;  %10258 = vmatprep.mubr.msk.f32.mxu0 %vm407_vm0, %v13637_v29 }
 0x336   : > { %v4809_v60 = vpop.permute.xlu0 %4808  ;;  %v4813_v6 = vpop.permute.xlu1 %4812 }
 0x337   : > { %5282 = vst.msk [vmem:[#allocation4 + $0xf9] sm:$0xff] %vm407_vm0, %v5195_v1  ;;  %v5127_v27 = vmul.f32 %v13358_v43, %v5089_v19  ;;  %10120 = vmatmul.mubr.msk.f32.gmra.mrb[98].mxu1 %vm407_vm0, %v13643_v8  ;;  %10259 = vmatmul.mubr.msk.f32.gmra.mrb[118].mxu0 %vm407_vm0, %v13643_v8  ;;  %v4882_v20 = vadd.f32 %v4809_v60, %v13296_v38 }
 0x338   : > { %v4884_v52 = vadd.f32 %v4813_v6, %v13326_v48 }
 0x339   : > { %v5165_v49 = vadd.f32 %v13365_v15, %v5127_v27 }
 0x33a   : > { %v5017_v40 = vpop.permute.xlu0 %5016  ;;  %v13654_v32 = vld [vmem:[#allocation4 + $0xf0] sm:$0xff]  ;;  %v5021_v10 = vpop.permute.xlu1 %5020  ;;  %v13679_v27 = vld [vmem:[#allocation4 + $0x108] sm:$0xff] }
 0x33b   : > { %v5197_v13 = vmax.f32 %v5165_v49, 0.0  ;;  %v5090_v24 = vadd.f32 %v5017_v40, %v4882_v20  ;;  %10122 = vmatprep.mubr.msk.f32.mxu1 %vm407_vm0, %v13654_v32  ;;  %10261 = vmatprep.mubr.msk.f32.mxu0 %vm407_vm0, %v13654_v32  ;;  %v5092_v22 = vadd.f32 %v5021_v10, %v4884_v52 }
 0x33d   : > { %5284 = vst.msk [vmem:[#allocation4 + $0x111] sm:$0xff] %vm407_vm0, %v5197_v13  ;;  %v5128_v38 = vmul.f32 %v13358_v43, %v5090_v24  ;;  %v5130_v48 = vmul.f32 %v13358_v43, %v5092_v22 }
 0x33e   : > { %v5019_v17 = vpop.permute.xlu0 %5018  ;;  %v13664_v11 = vld [vmem:[#allocation4 + $0xf8] sm:$0xff]  ;;  %v13666_v50 = vld [vmem:[#allocation4 + $0x100] sm:$0xff]  ;;  %v5023_v2 = vpop.permute.xlu1 %5022 }
 0x33f   : > { %v5166_v58 = vadd.f32 %v13365_v15, %v5128_v38  ;;  %v5091_v46 = vadd.f32 %v5019_v17, %v4883_v3  ;;  %10123 = vmatmul.mubr.msk.f32.gmra.mrb[100].mxu1 %vm407_vm0, %v13664_v11  ;;  %10262 = vmatmul.mubr.msk.f32.gmra.mrb[120].mxu0 %vm407_vm0, %v13664_v11  ;;  %v5168_v54 = vadd.f32 %v13365_v15, %v5130_v48 }
 0x340   : > { %10125 = vmatprep.mubr.msk.f32.mxu1 %vm407_vm0, %v13666_v50  ;;  %10264 = vmatprep.mubr.msk.f32.mxu0 %vm407_vm0, %v13666_v50 }
 0x341   : > { %v5198_v44 = vmax.f32 %v5166_v58, 0.0  ;;  %v5129_v1 = vmul.f32 %v13358_v43, %v5091_v46  ;;  %v5200_v19 = vmax.f32 %v5168_v54, 0.0 }
 0x342   : > { %v4815_v60 = vpop.permute.xlu0 %4814  ;;  %v4817_v49 = vpop.permute.xlu1 %4816 }
 0x343   : > { %5285 = vst.msk [vmem:[#allocation4 + $0x121] sm:$0xff] %vm407_vm0, %v5198_v44  ;;  %v5167_v6 = vadd.f32 %v13365_v15, %v5129_v1  ;;  %v4885_v20 = vadd.f32 %v4815_v60, %v13315_v12  ;;  %10126 = vmatmul.mubr.msk.f32.gmra.mrb[102].mxu1 %vm407_vm0, %v13679_v27  ;;  %10265 = vmatmul.mubr.msk.f32.gmra.mrb[122].mxu0 %vm407_vm0, %v13679_v27  ;;  %5287 = vst.msk [vmem:[#allocation4 + $0x139] sm:$0xff] %vm407_vm0, %v5200_v19  ;;  %v16461_v19 = vld [vmem:[#allocation28_spill] sm:$0xff] }
 0x344   : > { %v13689_v52 = vld [vmem:[#allocation4 + $0x110] sm:$0xff]  ;;  %v13695_v12 = vld [vmem:[#allocation4 + $0x118] sm:$0xff]  ;;  %v4886_v48 = vadd.f32 %v4817_v49, %v13337_v39 }
 0x345   : > { %v5199_v40 = vmax.f32 %v5167_v6, 0.0  ;;  %v5093_v13 = vadd.f32 %v5023_v2, %v4885_v20  ;;  %10128 = vmatprep.mubr.msk.f32.mxu1 %vm407_vm0, %v13689_v52  ;;  %10267 = vmatprep.mubr.msk.f32.mxu0 %vm407_vm0, %v13689_v52 }
 0x346   : > { %v5027_v10 = vpop.permute.xlu0 %5026  ;;  %v4819_v22 = vpop.permute.xlu1 %4818 }
 0x347   : > { %5286 = vst.msk [vmem:[#allocation4 + $0x129] sm:$0xff] %vm407_vm0, %v5199_v40  ;;  %v5131_v24 = vmul.f32 %v13358_v43, %v5093_v13  ;;  %10129 = vmatmul.mubr.msk.f32.gmra.mrb[104].mxu1 %vm407_vm0, %v13695_v12  ;;  %10268 = vmatmul.mubr.msk.f32.gmra.mrb[124].mxu0 %vm407_vm0, %v13695_v12  ;;  %v4887_v3 = vadd.f32 %v4819_v22, %v13347_v28  ;;  %v16460_v28 = vld [vmem:[#allocation23_spill] sm:$0xff] }
 0x348   : > { %v1899_v60 = vadd.f32 %v16461_v19, %v16460_v28 }
 0x349   : > { %v5169_v38 = vadd.f32 %v13365_v15, %v5131_v24  ;;  %v5095_v17 = vadd.f32 %v5027_v10, %v4887_v3  ;;  %v16462_v10 = vld [vmem:[#allocation97_spill] sm:$0xff] }
 0x34a   : > { %v4821_v58 = vpop.permute.xlu0 %4820  ;;  %v13706_v2 = vld [vmem:[#allocation4 + $0x120] sm:$0xff]  ;;  %v5025_v54 = vpop.permute.xlu1 %5024  ;;  %v2108_v24 = vadd.f32 %v16462_v10, %v1899_v60  ;;  %v13738_v28 = vld [vmem:[#allocation4 + $0x138] sm:$0xff] }
 0x34b   : > { %v5201_v46 = vmax.f32 %v5169_v38, 0.0  ;;  %10131 = vmatprep.mubr.msk.f32.mxu1 %vm407_vm0, %v13706_v2  ;;  %10270 = vmatprep.mubr.msk.f32.mxu0 %vm407_vm0, %v13706_v2  ;;  %v5133_v44 = vmul.f32 %v13358_v43, %v5095_v17  ;;  %v5094_v1 = vadd.f32 %v5025_v54, %v4886_v48  ;;  %v4888_v49 = vadd.f32 %v4821_v58, %v13371_v18  ;;  %v16463_v18 = vld [vmem:[#allocation24_spill] sm:$0xff]  ;;  %v16464_v17 = vld [vmem:[#allocation81_spill] sm:$0xff]  ;;  %v16465_v60 = vld [vmem:[#allocation10_spill] sm:$0xff] }
 0x34c   : > { %v1900_v58 = vadd.f32 %v16464_v17, %v16463_v18 }
 0x34d   : > { %5288 = vst.msk [vmem:[#allocation4 + $0x141] sm:$0xff] %vm407_vm0, %v5201_v46  ;;  %v5171_v39 = vadd.f32 %v13365_v15, %v5133_v44  ;;  %v5132_v6 = vmul.f32 %v13358_v43, %v5094_v1 }
 0x34e   : > { %v4823_v20 = vpop.permute.xlu0 %4822  ;;  %v13719_v40 = vld [vmem:[#allocation4 + $0x128] sm:$0xff]  ;;  %v13721_v13 = vld [vmem:[#allocation4 + $0x130] sm:$0xff]  ;;  %v5029_v22 = vpop.permute.xlu1 %5028 }
 0x34f   : > { %10132 = vmatmul.mubr.msk.f32.gmra.mrb[106].mxu1 %vm407_vm0, %v13719_v40  ;;  %10271 = vmatmul.mubr.msk.f32.gmra.mrb[126].mxu0 %vm407_vm0, %v13719_v40  ;;  %v5203_v3 = vmax.f32 %v5171_v39, 0.0  ;;  %v5170_v38 = vadd.f32 %v13365_v15, %v5132_v6  ;;  %v5096_v48 = vadd.f32 %v5029_v22, %v4888_v49  ;;  %v4889_v44 = vadd.f32 %v4823_v20, %v13383_v57  ;;  %v16466_v6 = vld [vmem:[#allocation88_spill] sm:$0xff] }
 0x350   : > { %10134 = vmatprep.mubr.msk.f32.mxu1 %vm407_vm0, %v13721_v13  ;;  %10273 = vmatprep.mubr.msk.f32.mxu0 %vm407_vm0, %v13721_v13  ;;  %v3138_v39 = vadd.f32 %v16465_v60, %v2108_v24  ;;  %v2109_v49 = vadd.f32 %v16466_v6, %v1900_v58 }
 0x351   : > { %5290 = vst.msk [vmem:[#allocation4 + $0x159] sm:$0xff] %vm407_vm0, %v5203_v3  ;;  %v5202_v46 = vmax.f32 %v5170_v38, 0.0  ;;  %v5134_v54 = vmul.f32 %v13358_v43, %v5096_v48 }
 0x352   : > { %v3329_v1 = vpop.permute.xlu0 %3328  ;;  %v5031_v19 = vpop.permute.xlu1 %5030 }
 0x353   : > { %10135 = vmatmul.mubr.msk.f32.gmra.mrb[108].mxu1 %vm407_vm0, %v13738_v28  ;;  %10274 = vmatmul.mubr.msk.f32.gmra.mrb[128].mxu0 %vm407_vm0, %v13738_v28  ;;  %5289 = vst.msk [vmem:[#allocation4 + $0x151] sm:$0xff] %vm407_vm0, %v5202_v46  ;;  %v5172_v10 = vadd.f32 %v13365_v15, %v5134_v54  ;;  %v5097_v22 = vadd.f32 %v5031_v19, %v4889_v44  ;;  %v16467_v46 = vld [vmem:[#allocation26_spill] sm:$0xff]  ;;  %v16468_v44 = vld [vmem:[#allocation105_spill] sm:$0xff] }
 0x354   : > { %v13748_v57 = vld [vmem:[#allocation4 + $0x140] sm:$0xff]  ;;  %v3394_v20 = vadd.f32 %v3329_v1, %v3138_v39  ;;  %v13755_v48 = vld [vmem:[#allocation4 + $0x148] sm:$0xff]  ;;  %v3139_v54 = vadd.f32 %v16467_v46, %v2109_v49 }
 0x355   : > { %10137 = vmatprep.mubr.msk.f32.mxu1 %vm407_vm0, %v13748_v57  ;;  %10276 = vmatprep.mubr.msk.f32.mxu0 %vm407_vm0, %v13748_v57  ;;  %v5204_v24 = vmax.f32 %v5172_v10, 0.0  ;;  %v5135_v3 = vmul.f32 %v13358_v43, %v5097_v22 }
 0x356   : > { %v3537_v38 = vpop.permute.xlu0 %3536  ;;  %v3331_v18 = vpop.permute.xlu1 %3330 }
 0x357   : > { %v3602_v17 = vadd.f32 %v3537_v38, %v3394_v20  ;;  %10138 = vmatmul.mubr.msk.f32.gmra.mrb[110].mxu1 %vm407_vm0, %v13755_v48  ;;  %10277 = vmatmul.mubr.msk.f32.gmra.mrb[130].mxu0 %vm407_vm0, %v13755_v48  ;;  %5291 = vst.msk [vmem:[#allocation4 + $0x169] sm:$0xff] %vm407_vm0, %v5204_v24  ;;  %v5173_v58 = vadd.f32 %v13365_v15, %v5135_v3  ;;  %v16469_v3 = vld [vmem:[#allocation106_spill] sm:$0xff] }
 0x358   : > { %v3395_v60 = vadd.f32 %v3331_v18, %v3139_v54  ;;  %v13780_v49 = vld [vmem:[#allocation4 + $0x160] sm:$0xff] }
 0x359   : > { %v4634_v1 = vadd.f32 %v16468_v44, %v3602_v17  ;;  %v5205_v19 = vmax.f32 %v5173_v58, 0.0 }
 0x35a   : > { %v13765_v39 = vpop.permute.xlu0 %5923  ;;  %v3539_v6 = vpop.permute.xlu1 %3538  ;;  %v13767_v10 = vld [vmem:[#allocation4 + $0x150] sm:$0xff]  ;;  %v13769_v22 = vld [vmem:[#allocation4 + $0x158] sm:$0xff] }
 0x35b   : > { %5292 = vst.msk [vmem:[#allocation4 + $0x171] sm:$0xff] %vm407_vm0, %v5205_v19  ;;  %v3603_v20 = vadd.f32 %v3539_v6, %v3395_v60  ;;  %10140 = vmatprep.mubr.msk.f32.mxu1 %vm407_vm0, %v13767_v10  ;;  %10279 = vmatprep.mubr.msk.f32.mxu0 %vm407_vm0, %v13767_v10 }
 0x35c   : > { %10141 = vmatmul.mubr.msk.f32.gmra.mrb[112].mxu1 %vm407_vm0, %v13769_v22  ;;  %10280 = vmatmul.mubr.msk.f32.gmra.mrb[132].mxu0 %vm407_vm0, %v13769_v22 }
 0x35d   : > { %10143 = vmatprep.mubr.msk.f32.mxu1 %vm407_vm0, %v13780_v49  ;;  %10282 = vmatprep.mubr.msk.f32.mxu0 %vm407_vm0, %v13780_v49  ;;  %v4635_v38 = vadd.f32 %v16469_v3, %v3603_v20 }
 0x35e   : > { %v4825_v24 = vpop.permute.xlu0 %4824  ;;  %v13787_v18 = vpop.permute.xlu1 %6131  ;;  %v13789_v17 = vld [vmem:[#allocation4 + $0x168] sm:$0xff] }
 0x35f   : > { %v4890_v58 = vadd.f32 %v4825_v24, %v4634_v1 }
 0x360   : > { %10144 = vmatmul.mubr.msk.f32.gmra.mrb[114].mxu1 %vm407_vm0, %v13789_v17  ;;  %10283 = vmatmul.mubr.msk.f32.gmra.mrb[134].mxu0 %vm407_vm0, %v13789_v17 }
 0x362   : > { %v5033_v46 = vpop.permute.xlu0 %5032  ;;  %v4827_v54 = vpop.permute.xlu1 %4826  ;;  %v13795_v19 = vld [vmem:[#allocation4 + $0x170] sm:$0xff]  ;;  %v13797_v60 = vld [vmem:[#allocation4 + $0x178] sm:$0xff] }
 0x363   : > { %v5098_v44 = vadd.f32 %v5033_v46, %v4890_v58  ;;  %10146 = vmatprep.mubr.msk.f32.mxu1 %vm407_vm0, %v13795_v19  ;;  %10285 = vmatprep.mubr.msk.f32.mxu0 %vm407_vm0, %v13795_v19  ;;  %v4891_v6 = vadd.f32 %v4827_v54, %v4635_v38 }
 0x364   : > { %10147 = vmatmul.mubr.msk.f32.gmra.mrb[116].mxu1 %vm407_vm0, %v13797_v60  ;;  %10286 = vmatmul.mubr.msk.f32.gmra.mrb[136].mxu0 %vm407_vm0, %v13797_v60 }
 0x365   : > { %v5136_v1 = vmul.f32 %v13358_v43, %v5098_v44  ;;  %10151 = vmatprep.mubr.msk.f32.mxu1 %vm407_vm0, %v13409_v36 }
 0x366   : > { %v5035_v24 = vpop.permute.xlu1 %5034 }
 0x367   : > { %v5174_v20 = vadd.f32 %v13365_v15, %v5136_v1  ;;  %v5099_v3 = vadd.f32 %v5035_v24, %v4891_v6 }
 0x368   : > { %10152 = vmatmul.mubr.msk.f32.vlgmr.msra.gmra.mrb[118].mxu1 %vm407_vm0, %v13431_v31 }
 0x369   : > { %v5206_v58 = vmax.f32 %v5174_v20, 0.0  ;;  %v5137_v46 = vmul.f32 %v13358_v43, %v5099_v3  ;;  %10154 = vmatprep.mubr.msk.f32.mxu1 %vm407_vm0, %v13433_v37  ;;  %v7300_v37 = vld [vmem:[#allocation4 + $0x198] sm:$0xff] }
 0x36b   : > { %5293 = vst.msk [vmem:[#allocation4 + $0x181] sm:$0xff] %vm407_vm0, %v5206_v58  ;;  %v5175_v38 = vadd.f32 %v13365_v15, %v5137_v46 }
 0x36c   : > { %10155 = vmatmul.mubr.msk.f32.gmra.mrb[120].mxu1 %vm407_vm0, %v13446_v55  ;;  %v7301_v55 = vld [vmem:[#allocation4 + $0x1a0] sm:$0xff] }
 0x36d   : > { %v5207_v36 = vmax.f32 %v5175_v38, 0.0  ;;  %10157 = vmatprep.mubr.msk.f32.mxu1 %vm407_vm0, %v13456_v21  ;;  %v7302_v21 = vld [vmem:[#allocation4 + $0x1a8] sm:$0xff] }
 0x36f   : > { %5294 = vst.msk [vmem:[#allocation4 + $0x189] sm:$0xff] %vm407_vm0, %v5207_v36 }
 0x370   : > { %10158 = vmatmul.mubr.msk.f32.gmra.mrb[122].mxu1 %vm407_vm0, %v13458_v4 }
 0x371   : > { %10160 = vmatprep.mubr.msk.f32.mxu1 %vm407_vm0, %v13471_v5 }
 0x372   : > { %v7297_v43 = vld [vmem:[#allocation4 + $0x180] sm:$0xff] }
 0x373   : > { %10288 = vmatprep.mubr.msk.f32.mxu0 %vm407_vm0, %v7297_v43 }
 0x374   : > { %10161 = vmatmul.mubr.msk.f32.gmra.mrb[124].mxu1 %vm407_vm0, %v13481_v33 }
 0x375   : > { %10163 = vmatprep.mubr.msk.f32.mxu1 %vm407_vm0, %v13487_v62 }
 0x376   : > { %v7298_v15 = vld [vmem:[#allocation4 + $0x188] sm:$0xff]  ;;  %v7299_v31 = vld [vmem:[#allocation4 + $0x190] sm:$0xff] }
 0x377   : > { %10289 = vmatmul.mubr.msk.f32.gmra.mrb[138].mxu0 %vm407_vm0, %v7298_v15 }
 0x378   : > { %10164 = vmatmul.mubr.msk.f32.gmra.mrb[126].mxu1 %vm407_vm0, %v13498_v35  ;;  %10291 = vmatprep.mubr.msk.f32.mxu0 %vm407_vm0, %v7299_v31 }
 0x379   : > { %10166 = vmatprep.mubr.msk.f32.mxu1 %vm407_vm0, %v13508_v34 }
 0x37b   : > { %10292 = vmatmul.mubr.msk.f32.gmra.mrb[140].mxu0 %vm407_vm0, %v7300_v37 }
 0x37c   : > { %10167 = vmatmul.mubr.msk.f32.gmra.mrb[128].mxu1 %vm407_vm0, %v13510_v56  ;;  %10294 = vmatprep.mubr.msk.f32.mxu0 %vm407_vm0, %v7301_v55 }
 0x37d   : > { %10169 = vmatprep.mubr.msk.f32.mxu1 %vm407_vm0, %v13523_v7 }
 0x37f   : > { %10295 = vmatmul.mubr.msk.f32.gmra.mrb[142].mxu0 %vm407_vm0, %v7302_v21 }
 0x380   : > { %10170 = vmatmul.mubr.msk.f32.gmra.mrb[130].mxu1 %vm407_vm0, %v13533_v61 }
 0x381   : > { %10172 = vmatprep.mubr.msk.f32.mxu1 %vm407_vm0, %v13539_v14 }
 0x384   : > { %10173 = vmatmul.mubr.msk.f32.gmra.mrb[132].mxu1 %vm407_vm0, %v13550_v42 }
 0x385   : > { %10175 = vmatprep.mubr.msk.f32.mxu1 %vm407_vm0, %v13560_v59 }
 0x388   : > { %10176 = vmatmul.mubr.msk.f32.gmra.mrb[134].mxu1 %vm407_vm0, %v13562_v30 }
 0x389   : > { %10178 = vmatprep.mubr.msk.f32.mxu1 %vm407_vm0, %v13575_v16 }
 0x38c   : > { %10179 = vmatmul.mubr.msk.f32.gmra.mrb[136].mxu1 %vm407_vm0, %v13585_v25 }
 0x38d   : > { %10181 = vmatprep.mubr.msk.f32.mxu1 %vm407_vm0, %v13591_v63 }
 0x390   : > { %10182 = vmatmul.mubr.msk.f32.gmra.mrb[138].mxu1 %vm407_vm0, %v13602_v45 }
 0x391   : > { %10184 = vmatprep.mubr.msk.f32.mxu1 %vm407_vm0, %v13612_v9 }
 0x394   : > { %10185 = vmatmul.mubr.msk.f32.gmra.mrb[140].mxu1 %vm407_vm0, %v13614_v26 }
 0x395   : > { %10187 = vmatprep.mubr.msk.f32.mxu1 %vm407_vm0, %v13627_v47 }
 0x398   : > { %10188 = vmatmul.mubr.msk.f32.gmra.mrb[142].mxu1 %vm407_vm0, %v13637_v29 }
 0x399   : > { %10190 = vmatprep.mubr.msk.f32.mxu1 %vm407_vm0, %v13643_v8 }
 0x39c   : > { %10191 = vmatmul.mubr.msk.f32.gmra.mrb[144].mxu1 %vm407_vm0, %v13654_v32 }
 0x39d   : > { %10193 = vmatprep.mubr.msk.f32.mxu1 %vm407_vm0, %v13664_v11 }
 0x3a0   : > { %10194 = vmatmul.mubr.msk.f32.gmra.mrb[146].mxu1 %vm407_vm0, %v13666_v50 }
 0x3a1   : > { %10196 = vmatprep.mubr.msk.f32.mxu1 %vm407_vm0, %v13679_v27 }
 0x3a4   : > { %10197 = vmatmul.mubr.msk.f32.gmra.mrb[148].mxu1 %vm407_vm0, %v13689_v52 }
 0x3a5   : > { %10199 = vmatprep.mubr.msk.f32.mxu1 %vm407_vm0, %v13695_v12 }
 0x3a8   : > { %10200 = vmatmul.mubr.msk.f32.gmra.mrb[150].mxu1 %vm407_vm0, %v13706_v2 }
 0x3a9   : > { %10202 = vmatprep.mubr.msk.f32.mxu1 %vm407_vm0, %v13719_v40 }
 0x3ac   : > { %10203 = vmatmul.mubr.msk.f32.gmra.mrb[152].mxu1 %vm407_vm0, %v13721_v13 }
 0x3ad   : > { %10205 = vmatprep.mubr.msk.f32.mxu1 %vm407_vm0, %v13738_v28 }
 0x3b0   : > { %10206 = vmatmul.mubr.msk.f32.gmra.mrb[154].mxu1 %vm407_vm0, %v13748_v57 }
 0x3b1   : > { %10208 = vmatprep.mubr.msk.f32.mxu1 %vm407_vm0, %v13755_v48 }
 0x3b4   : > { %10209 = vmatmul.mubr.msk.f32.gmra.mrb[156].mxu1 %vm407_vm0, %v13767_v10 }
 0x3b5   : > { %10211 = vmatprep.mubr.msk.f32.mxu1 %vm407_vm0, %v13769_v22 }
 0x3b8   : > { %10212 = vmatmul.mubr.msk.f32.gmra.mrb[158].mxu1 %vm407_vm0, %v13780_v49 }
 0x3b9   : > { %10214 = vmatprep.mubr.msk.f32.mxu1 %vm407_vm0, %v13789_v17 }
 0x3bc   : > { %10215 = vmatmul.mubr.msk.f32.gmra.mrb[160].mxu1 %vm407_vm0, %v13795_v19 }
 0x3bd   : > { %10217 = vmatprep.mubr.msk.f32.mxu1 %vm407_vm0, %v13797_v60 }
 0x3be   : > { %v13909_v4 = vpop.f32.mrb[72].mxu1 }
 0x3bf   : > { %v5566_v5 = vpop.f32.mrb[73].mxu1  ;;  %v5848_v42 = vrot.slane %v13909_v4, 1  ;;  %v6056_v59 = vrot.slane %v13909_v4, 2 }
 0x3c0   : > { %v5846_v33 = vrot.slane %v5566_v5, 1  ;;  %v6054_v62 = vrot.slane %v5566_v5, 2  ;;  %10218 = vmatmul.mubr.msk.f32.gmra.mrb[162].mxu1 %vm407_vm0, %v7297_v43 }
 0x3c1   : > { %10220 = vmatprep.mubr.msk.f32.mxu1 %vm407_vm0, %v7298_v15 }
 0x3c2   : > { %v5847_v35 = vsel %vm1692_vm1, %v5844_v0, %v5846_v33  ;;  %v6055_v34 = vsel %vm1901_vm2, %v6052_v23, %v6054_v62 }
 0x3c3   : > { %5925 = vrot.lane.b32.xlu1 %v5847_v35, %s10478_s21  ;;  %6133 = vrot.lane.b32.xlu0 %v6055_v34, %s10479_s22 }
 0x3c4   : > { %10221 = vmatmul.mubr.msk.f32.gmra.mrb[164].mxu1 %vm407_vm0, %v7299_v31 }
 0x3c9   : > { %v10085_v56 = vpop.f32.mrb[74].mxu1 }
 0x3ca   : > { %v5851_v7 = vrot.slane %v10085_v56, 1  ;;  %v6059_v61 = vrot.slane %v10085_v56, 2  ;;  %v13922_v14 = vpop.f32.mrb[75].mxu1 }
 0x3cb   : > { %v5849_v0 = vrot.slane %v13922_v14, 1  ;;  %v6057_v30 = vrot.slane %v13922_v14, 2 }
 0x3cd   : > { %v5852_v23 = vsel %vm1692_vm1, %v5849_v0, %v5851_v7  ;;  %v5850_v16 = vsel %vm1692_vm1, %v5848_v42, %v5849_v0  ;;  %v6058_v25 = vsel %vm1901_vm2, %v6056_v59, %v6057_v30  ;;  %v6060_v63 = vsel %vm1901_vm2, %v6057_v30, %v6059_v61 }
 0x3ce   : > { %5929 = vrot.lane.b32.xlu1 %v5852_v23, %s10478_s21  ;;  %5927 = vrot.lane.b32.xlu0 %v5850_v16, %s10478_s21 }
 0x3d2   : > { %6135 = vrot.lane.b32.xlu0 %v6058_v25, %s10479_s22  ;;  %v13935_v45 = vpop.f32.mrb[76].mxu1  ;;  %v13937_v9 = vpop.f32.mrb[96].mxu0 }
 0x3d3   : > { %16470 = vst [vmem:[#allocation39_spill] sm:$0xff] %v13937_v9  ;;  %v5854_v26 = vrot.slane %v13935_v45, 1  ;;  %v6062_v47 = vrot.slane %v13935_v45, 2  ;;  %v7835_v29 = vrot.slane %v13937_v9, 1  ;;  %v8043_v8 = vrot.slane %v13937_v9, 2  ;;  %v13943_v32 = vpop.f32.mrb[77].mxu1 }
 0x3d4   : > { %v13945_v11 = vpop.f32.mrb[97].mxu0  ;;  %v5853_v50 = vrot.slane %v13943_v32, 1  ;;  %v6061_v27 = vrot.slane %v13943_v32, 2 }
 0x3d5   : > { %16471 = vst [vmem:[#allocation9_spill] sm:$0xff] %v13945_v11  ;;  %v7834_v52 = vrot.slane %v13945_v11, 1  ;;  %v8042_v12 = vrot.slane %v13945_v11, 2 }
 0x3d6   : > { %6137 = vrot.lane.b32.xlu0 %v6060_v63, %s10479_s22  ;;  %v13952_v2 = vpop.f32.mrb[78].mxu1  ;;  %v13954_v40 = vpop.f32.mrb[98].mxu0  ;;  %v5855_v13 = vsel %vm1692_vm1, %v5853_v50, %v5854_v26  ;;  %v6063_v28 = vsel %vm1901_vm2, %v6061_v27, %v6062_v47 }
 0x3d7   : > { %16472 = vst [vmem:[#allocation67_spill] sm:$0xff] %v13954_v40  ;;  %v8044_v57 = vsel %vm1901_vm2, %v8042_v12, %v8043_v8  ;;  %v7836_v48 = vsel %vm1692_vm1, %v7834_v52, %v7835_v29  ;;  %v7525_v10 = vpop.f32.mrb[99].mxu0  ;;  %5931 = vrot.lane.b32.xlu1 %v5855_v13, %s10478_s21  ;;  %v5596_v22 = vpop.f32.mrb[79].mxu1  ;;  %v5858_v19 = vrot.slane %v13952_v2, 1  ;;  %v6066_v60 = vrot.slane %v13952_v2, 2 }
 0x3d8   : > { %v7837_v49 = vrot.slane %v7525_v10, 1  ;;  %v8045_v17 = vrot.slane %v7525_v10, 2  ;;  %v5856_v54 = vrot.slane %v5596_v22, 1  ;;  %v6064_v44 = vrot.slane %v5596_v22, 2 }
 0x3d9   : > { %v7839_v1 = vrot.slane %v13954_v40, 1  ;;  %v8047_v62 = vrot.slane %v13954_v40, 2 }
 0x3da   : > { %6139 = vrot.lane.b32.xlu0 %v6063_v28, %s10479_s22  ;;  %v10094_v6 = vpop.f32.mrb[80].mxu1  ;;  %v10233_v20 = vpop.f32.mrb[100].mxu0  ;;  %v5857_v24 = vsel %vm1692_vm1, %v5854_v26, %v5856_v54  ;;  %v8046_v3 = vsel %vm1901_vm2, %v8043_v8, %v8045_v17  ;;  %v6065_v58 = vsel %vm1901_vm2, %v6062_v47, %v6064_v44  ;;  %v7838_v46 = vsel %vm1692_vm1, %v7835_v29, %v7837_v49 }
 0x3db   : > { %v5861_v38 = vrot.slane %v10094_v6, 1  ;;  %v6069_v36 = vrot.slane %v10094_v6, 2  ;;  %v7842_v43 = vrot.slane %v10233_v20, 1  ;;  %v8050_v15 = vrot.slane %v10233_v20, 2  ;;  %8122 = vrot.lane.b32.xlu1 %v8044_v57, %s10479_s22  ;;  %v13970_v31 = vpop.f32.mrb[81].mxu1  ;;  %v13972_v37 = vpop.f32.mrb[101].mxu0 }
 0x3dc   : > { %16473 = vst [vmem:[#allocation71_spill] sm:$0xff] %v13970_v31  ;;  %16474 = vst [vmem:[#allocation43_spill] sm:$0xff] %v13972_v37  ;;  %v5859_v55 = vrot.slane %v13970_v31, 1  ;;  %v6067_v21 = vrot.slane %v13970_v31, 2  ;;  %v7840_v5 = vrot.slane %v13972_v37, 1  ;;  %v8048_v33 = vrot.slane %v13972_v37, 2 }
 0x3de   : > { %7914 = vrot.lane.b32.xlu0 %v7836_v48, %s10478_s21  ;;  %v5860_v35 = vsel %vm1692_vm1, %v5858_v19, %v5859_v55  ;;  %v5862_v34 = vsel %vm1692_vm1, %v5859_v55, %v5861_v38  ;;  %v6068_v56 = vsel %vm1901_vm2, %v6066_v60, %v6067_v21  ;;  %v7841_v7 = vsel %vm1692_vm1, %v7839_v1, %v7840_v5 }
 0x3df   : > { %5933 = vrot.lane.b32.xlu1 %v5857_v24, %s10478_s21  ;;  %v6070_v61 = vsel %vm1901_vm2, %v6067_v21, %v6069_v36  ;;  %v13987_v42 = vsel %vm1901_vm2, %v8047_v62, %v8048_v33  ;;  %v13990_v59 = vsel %vm1692_vm1, %v7840_v5, %v7842_v43  ;;  %v13993_v0 = vsel %vm1901_vm2, %v8048_v33, %v8050_v15 }
 0x3e2   : > { %8124 = vrot.lane.b32.xlu0 %v8046_v3, %s10479_s22  ;;  %v13996_v30 = vpop.f32.mrb[82].mxu1  ;;  %v13998_v23 = vpop.f32.mrb[102].mxu0 }
 0x3e3   : > { %16475 = vst [vmem:[#allocation77_spill] sm:$0xff] %v13996_v30  ;;  %16476 = vst [vmem:[#allocation70_spill] sm:$0xff] %v13998_v23  ;;  %v5864_v16 = vrot.slane %v13996_v30, 1  ;;  %v6072_v25 = vrot.slane %v13996_v30, 2  ;;  %v7845_v63 = vrot.slane %v13998_v23, 1  ;;  %v8053_v26 = vrot.slane %v13998_v23, 2  ;;  %6141 = vrot.lane.b32.xlu1 %v6065_v58, %s10479_s22 }
 0x3e4   : > { %v14005_v47 = vpop.f32.mrb[83].mxu1  ;;  %v14007_v29 = vpop.f32.mrb[103].mxu0 }
 0x3e5   : > { %16477 = vst [vmem:[#allocation73_spill] sm:$0xff] %v14005_v47  ;;  %16478 = vst [vmem:[#allocation72_spill] sm:$0xff] %v14007_v29  ;;  %v5863_v8 = vrot.slane %v14005_v47, 1  ;;  %v6071_v50 = vrot.slane %v14005_v47, 2  ;;  %v7844_v27 = vrot.slane %v14007_v29, 1  ;;  %v8052_v52 = vrot.slane %v14007_v29, 2 }
 0x3e6   : > { %5935 = vrot.lane.b32.xlu0 %v5860_v35, %s10478_s21  ;;  %v14014_v12 = vpop.f32.mrb[84].mxu1  ;;  %v14016_v13 = vpop.f32.mrb[104].mxu0 }
 0x3e7   : > { %16479 = vst [vmem:[#allocation46_spill] sm:$0xff] %v14014_v12  ;;  %16480 = vst [vmem:[#allocation31_spill] sm:$0xff] %v14016_v13  ;;  %v14019_v28 = vsel %vm1692_vm1, %v7844_v27, %v7845_v63  ;;  %v14022_v57 = vsel %vm1692_vm1, %v5863_v8, %v5864_v16  ;;  %v14025_v48 = vsel %vm1901_vm2, %v6071_v50, %v6072_v25  ;;  %7916 = vrot.lane.b32.xlu1 %v7838_v46, %s10478_s21  ;;  %v5626_v22 = vpop.f32.mrb[85].mxu1  ;;  %v7555_v49 = vpop.f32.mrb[105].mxu0 }
 0x3e8   : > { %v14028_v10 = vsel %vm1901_vm2, %v8052_v52, %v8053_v26  ;;  %v5866_v17 = vrot.slane %v5626_v22, 1  ;;  %v6074_v54 = vrot.slane %v5626_v22, 2  ;;  %v7847_v44 = vrot.slane %v7555_v49, 1 }
 0x3e9   : > { %v8055_v19 = vrot.slane %v7555_v49, 2  ;;  %v5868_v60 = vrot.slane %v14014_v12, 1  ;;  %v6076_v1 = vrot.slane %v14014_v12, 2  ;;  %v7849_v6 = vrot.slane %v14016_v13, 1 }
 0x3ea   : > { %5937 = vrot.lane.b32.xlu0 %v5862_v34, %s10478_s21  ;;  %v10103_v20 = vpop.f32.mrb[86].mxu1  ;;  %v10242_v24 = vpop.f32.mrb[106].mxu0  ;;  %v14036_v3 = vsel %vm1692_vm1, %v5864_v16, %v5866_v17  ;;  %v14039_v58 = vsel %vm1692_vm1, %v7845_v63, %v7847_v44  ;;  %v14042_v46 = vsel %vm1901_vm2, %v6072_v25, %v6074_v54  ;;  %v8057_v16 = vrot.slane %v14016_v13, 2 }
 0x3eb   : > { %v14045_v38 = vsel %vm1901_vm2, %v8053_v26, %v8055_v19  ;;  %v5871_v36 = vrot.slane %v10103_v20, 1  ;;  %v6079_v43 = vrot.slane %v10103_v20, 2  ;;  %v7852_v15 = vrot.slane %v10242_v24, 1  ;;  %6143 = vrot.lane.b32.xlu1 %v6068_v56, %s10479_s22  ;;  %v14048_v21 = vpop.f32.mrb[87].mxu1  ;;  %v14050_v5 = vpop.f32.mrb[107].mxu0 }
 0x3ec   : > { %v8060_v55 = vrot.slane %v10242_v24, 2  ;;  %16481 = vst [vmem:[#allocation76_spill] sm:$0xff] %v14048_v21  ;;  %16482 = vst [vmem:[#allocation83_spill] sm:$0xff] %v14050_v5  ;;  %v5869_v33 = vrot.slane %v14048_v21, 1  ;;  %v6077_v62 = vrot.slane %v14048_v21, 2  ;;  %v7850_v35 = vrot.slane %v14050_v5, 1 }
 0x3ed   : > { %v8058_v34 = vrot.slane %v14050_v5, 2 }
 0x3ee   : > { %7918 = vrot.lane.b32.xlu0 %v7841_v7, %s10478_s21  ;;  %v14059_v25 = vsel %vm1692_vm1, %v5868_v60, %v5869_v33  ;;  %v14062_v56 = vsel %vm1692_vm1, %v5869_v33, %v5871_v36  ;;  %v14065_v63 = vsel %vm1692_vm1, %v7849_v6, %v7850_v35  ;;  %v14068_v26 = vsel %vm1901_vm2, %v6076_v1, %v6077_v62 }
 0x3ef   : > { %6145 = vrot.lane.b32.xlu1 %v6070_v61, %s10479_s22  ;;  %v14072_v8 = vsel %vm1692_vm1, %v7850_v35, %v7852_v15  ;;  %v14075_v50 = vsel %vm1901_vm2, %v6077_v62, %v6079_v43  ;;  %v14078_v7 = vsel %vm1901_vm2, %v8057_v16, %v8058_v34  ;;  %v14081_v27 = vsel %vm1901_vm2, %v8058_v34, %v8060_v55 }
 0x3f2   : > { %8126 = vrot.lane.b32.xlu0 %v13987_v42, %s10479_s22  ;;  %v14085_v52 = vpop.f32.mrb[88].mxu1  ;;  %v14087_v22 = vpop.f32.mrb[108].mxu0 }
 0x3f3   : > { %16483 = vst [vmem:[#allocation89_spill] sm:$0xff] %v14085_v52  ;;  %16484 = vst [vmem:[#allocation52_spill] sm:$0xff] %v14087_v22  ;;  %v5874_v61 = vrot.slane %v14085_v52, 1  ;;  %v6082_v49 = vrot.slane %v14085_v52, 2  ;;  %v7855_v17 = vrot.slane %v14087_v22, 1  ;;  %v8063_v54 = vrot.slane %v14087_v22, 2  ;;  %7920 = vrot.lane.b32.xlu1 %v13990_v59, %s10478_s21 }
 0x3f4   : > { %v14095_v44 = vpop.f32.mrb[89].mxu1  ;;  %v14097_v19 = vpop.f32.mrb[109].mxu0 }
 0x3f5   : > { %16485 = vst [vmem:[#allocation13_spill] sm:$0xff] %v14095_v44  ;;  %16486 = vst [vmem:[#allocation12_spill] sm:$0xff] %v14097_v19  ;;  %v5873_v42 = vrot.slane %v14095_v44, 1  ;;  %v6081_v60 = vrot.slane %v14095_v44, 2  ;;  %v7854_v1 = vrot.slane %v14097_v19, 1  ;;  %v8062_v6 = vrot.slane %v14097_v19, 2 }
 0x3f6   : > { %8128 = vrot.lane.b32.xlu0 %v13993_v0, %s10479_s22  ;;  %v14105_v20 = vpop.f32.mrb[90].mxu1  ;;  %v14107_v24 = vpop.f32.mrb[110].mxu0 }
 0x3f7   : > { %16487 = vst [vmem:[#allocation79_spill] sm:$0xff] %v14105_v20  ;;  %16488 = vst [vmem:[#allocation84_spill] sm:$0xff] %v14107_v24  ;;  %v14110_v59 = vsel %vm1692_vm1, %v5873_v42, %v5874_v61  ;;  %v14113_v36 = vsel %vm1692_vm1, %v7854_v1, %v7855_v17  ;;  %v14116_v43 = vsel %vm1901_vm2, %v6081_v60, %v6082_v49  ;;  %7922 = vrot.lane.b32.xlu1 %v14019_v28, %s10478_s21  ;;  %v5656_v0 = vpop.f32.mrb[91].mxu1  ;;  %v7585_v55 = vpop.f32.mrb[111].mxu0 }
 0x3f8   : > { %v14119_v15 = vsel %vm1901_vm2, %v8062_v6, %v8063_v54  ;;  %v5876_v33 = vrot.slane %v5656_v0, 1  ;;  %v6084_v62 = vrot.slane %v5656_v0, 2  ;;  %v7857_v35 = vrot.slane %v7585_v55, 1 }
 0x3f9   : > { %v8065_v34 = vrot.slane %v7585_v55, 2  ;;  %v5878_v16 = vrot.slane %v14105_v20, 1  ;;  %v6086_v42 = vrot.slane %v14105_v20, 2  ;;  %v7859_v1 = vrot.slane %v14107_v24, 1 }
 0x3fa   : > { %5939 = vrot.lane.b32.xlu0 %v14022_v57, %s10478_s21  ;;  %v10112_v60 = vpop.f32.mrb[92].mxu1  ;;  %v10251_v6 = vpop.f32.mrb[112].mxu0  ;;  %v14129_v22 = vsel %vm1692_vm1, %v5874_v61, %v5876_v33  ;;  %v14132_v28 = vsel %vm1692_vm1, %v7855_v17, %v7857_v35  ;;  %v14135_v0 = vsel %vm1901_vm2, %v6082_v49, %v6084_v62  ;;  %v8067_v62 = vrot.slane %v14107_v24, 2 }
 0x3fb   : > { %v14138_v55 = vsel %vm1901_vm2, %v8063_v54, %v8065_v34  ;;  %v5881_v19 = vrot.slane %v10112_v60, 1  ;;  %v6089_v5 = vrot.slane %v10112_v60, 2  ;;  %v7862_v13 = vrot.slane %v10251_v6, 1  ;;  %5941 = vrot.lane.b32.xlu1 %v14036_v3, %s10478_s21  ;;  %v14142_v57 = vpop.f32.mrb[93].mxu1  ;;  %v14144_v61 = vpop.f32.mrb[113].mxu0 }
 0x3fc   : > { %v8070_v29 = vrot.slane %v10251_v6, 2  ;;  %16489 = vst [vmem:[#allocation53_spill] sm:$0xff] %v14142_v57  ;;  %16490 = vst [vmem:[#allocation51_spill] sm:$0xff] %v14144_v61  ;;  %v5879_v17 = vrot.slane %v14142_v57, 1  ;;  %v6087_v33 = vrot.slane %v14142_v57, 2  ;;  %v7860_v49 = vrot.slane %v14144_v61, 1 }
 0x3fd   : > { %v8068_v54 = vrot.slane %v14144_v61, 2 }
 0x3fe   : > { %6147 = vrot.lane.b32.xlu0 %v14025_v48, %s10479_s22  ;;  %v14154_v35 = vsel %vm1692_vm1, %v5878_v16, %v5879_v17  ;;  %v14157_v3 = vsel %vm1692_vm1, %v5879_v17, %v5881_v19  ;;  %v14160_v34 = vsel %vm1692_vm1, %v7859_v1, %v7860_v49  ;;  %v14163_v60 = vsel %vm1901_vm2, %v6086_v42, %v6087_v33 }
 0x3ff   : > { %7924 = vrot.lane.b32.xlu1 %v14039_v58, %s10478_s21  ;;  %v14168_v6 = vsel %vm1692_vm1, %v7860_v49, %v7862_v13  ;;  %v14171_v48 = vsel %vm1901_vm2, %v6087_v33, %v6089_v5  ;;  %v14174_v16 = vsel %vm1901_vm2, %v8067_v62, %v8068_v54  ;;  %v14177_v19 = vsel %vm1901_vm2, %v8068_v54, %v8070_v29 }
 0x402   : > { %8130 = vrot.lane.b32.xlu0 %v14028_v10, %s10479_s22  ;;  %v14181_v42 = vpop.f32.mrb[94].mxu1  ;;  %v14183_v1 = vpop.f32.mrb[114].mxu0 }
 0x403   : > { %16491 = vst [vmem:[#allocation90_spill] sm:$0xff] %v14181_v42  ;;  %16492 = vst [vmem:[#allocation82_spill] sm:$0xff] %v14183_v1  ;;  %v5884_v58 = vrot.slane %v14181_v42, 1  ;;  %v6092_v13 = vrot.slane %v14181_v42, 2  ;;  %v7865_v5 = vrot.slane %v14183_v1, 1  ;;  %v8073_v17 = vrot.slane %v14183_v1, 2  ;;  %5943 = vrot.lane.b32.xlu1 %v14059_v25, %s10478_s21 }
 0x404   : > { %v14191_v29 = vpop.f32.mrb[95].mxu1  ;;  %v14193_v33 = vpop.f32.mrb[115].mxu0 }
 0x405   : > { %16493 = vst [vmem:[#allocation14_spill] sm:$0xff] %v14191_v29  ;;  %16494 = vst [vmem:[#allocation50_spill] sm:$0xff] %v14193_v33  ;;  %v5883_v10 = vrot.slane %v14191_v29, 1  ;;  %v6091_v49 = vrot.slane %v14191_v29, 2  ;;  %v7864_v54 = vrot.slane %v14193_v33, 1  ;;  %v8072_v62 = vrot.slane %v14193_v33, 2 }
 0x406   : > { %6149 = vrot.lane.b32.xlu0 %v14042_v46, %s10479_s22  ;;  %v14201_v61 = vpop.f32.mrb[96].mxu1  ;;  %v14203_v1 = vpop.f32.mrb[116].mxu0 }
 0x407   : > { %16495 = vst [vmem:[#allocation86_spill] sm:$0xff] %v14201_v61  ;;  %16496 = vst [vmem:[#allocation11_spill] sm:$0xff] %v14203_v1  ;;  %v14206_v25 = vsel %vm1692_vm1, %v5883_v10, %v5884_v58  ;;  %v14209_v24 = vsel %vm1692_vm1, %v7864_v54, %v7865_v5  ;;  %v14212_v23 = vsel %vm1901_vm2, %v6091_v49, %v6092_v13  ;;  %5945 = vrot.lane.b32.xlu1 %v14062_v56, %s10478_s21  ;;  %v5686_v46 = vpop.f32.mrb[97].mxu1  ;;  %v7615_v33 = vpop.f32.mrb[117].mxu0 }
 0x408   : > { %v14215_v37 = vsel %vm1901_vm2, %v8072_v62, %v8073_v17  ;;  %v5886_v40 = vrot.slane %v5686_v46, 1  ;;  %v6094_v9 = vrot.slane %v5686_v46, 2  ;;  %v7867_v11 = vrot.slane %v7615_v33, 1 }
 0x409   : > { %v8075_v53 = vrot.slane %v7615_v33, 2  ;;  %v5888_v10 = vrot.slane %v14201_v61, 1  ;;  %v6096_v54 = vrot.slane %v14201_v61, 2  ;;  %v7869_v42 = vrot.slane %v14203_v1, 1 }
 0x40a   : > { %8132 = vrot.lane.b32.xlu0 %v14045_v38, %s10479_s22  ;;  %v10121_v49 = vpop.f32.mrb[98].mxu1  ;;  %v10260_v62 = vpop.f32.mrb[118].mxu0  ;;  %v14225_v29 = vsel %vm1692_vm1, %v5884_v58, %v5886_v40  ;;  %v14228_v56 = vsel %vm1692_vm1, %v7865_v5, %v7867_v11  ;;  %v14231_v46 = vsel %vm1901_vm2, %v6092_v13, %v6094_v9  ;;  %v8077_v13 = vrot.slane %v14203_v1, 2 }
 0x40b   : > { %v14234_v33 = vsel %vm1901_vm2, %v8073_v17, %v8075_v53  ;;  %v5891_v61 = vrot.slane %v10121_v49, 1  ;;  %v6099_v57 = vrot.slane %v10121_v49, 2  ;;  %v7872_v20 = vrot.slane %v10260_v62, 1  ;;  %7926 = vrot.lane.b32.xlu1 %v14065_v63, %s10478_s21  ;;  %v14238_v38 = vpop.f32.mrb[99].mxu1  ;;  %v14240_v40 = vpop.f32.mrb[119].mxu0 }
 0x40c   : > { %v8080_v52 = vrot.slane %v10260_v62, 2  ;;  %16497 = vst [vmem:[#allocation32_spill] sm:$0xff] %v14238_v38  ;;  %16498 = vst [vmem:[#allocation85_spill] sm:$0xff] %v14240_v40  ;;  %v5889_v11 = vrot.slane %v14238_v38, 1  ;;  %v6097_v58 = vrot.slane %v14238_v38, 2  ;;  %v7870_v9 = vrot.slane %v14240_v40, 1 }
 0x40d   : > { %v8078_v53 = vrot.slane %v14240_v40, 2 }
 0x40e   : > { %6151 = vrot.lane.b32.xlu0 %v14068_v26, %s10479_s22  ;;  %v14250_v5 = vsel %vm1692_vm1, %v5888_v10, %v5889_v11  ;;  %v14253_v63 = vsel %vm1692_vm1, %v5889_v11, %v5891_v61  ;;  %v14256_v17 = vsel %vm1692_vm1, %v7869_v42, %v7870_v9  ;;  %v14259_v49 = vsel %vm1901_vm2, %v6096_v54, %v6097_v58 }
 0x40f   : > { %7928 = vrot.lane.b32.xlu1 %v14072_v8, %s10478_s21  ;;  %v14264_v62 = vsel %vm1692_vm1, %v7870_v9, %v7872_v20  ;;  %v14267_v26 = vsel %vm1901_vm2, %v6097_v58, %v6099_v57  ;;  %v14270_v10 = vsel %vm1901_vm2, %v8077_v13, %v8078_v53  ;;  %v14273_v61 = vsel %vm1901_vm2, %v8078_v53, %v8080_v52 }
 0x412   : > { %6153 = vrot.lane.b32.xlu0 %v14075_v50, %s10479_s22  ;;  %v14277_v42 = vpop.f32.mrb[100].mxu1  ;;  %v14279_v54 = vpop.f32.mrb[120].mxu0 }
 0x413   : > { %16499 = vst [vmem:[#allocation15_spill] sm:$0xff] %v14277_v42  ;;  %16500 = vst [vmem:[#allocation57_spill] sm:$0xff] %v14279_v54  ;;  %v5894_v8 = vrot.slane %v14277_v42, 1  ;;  %v6102_v20 = vrot.slane %v14277_v42, 2  ;;  %v7875_v57 = vrot.slane %v14279_v54, 1  ;;  %v8083_v11 = vrot.slane %v14279_v54, 2  ;;  %5947 = vrot.lane.b32.xlu1 %v14110_v59, %s10478_s21 }
 0x414   : > { %v14287_v52 = vpop.f32.mrb[101].mxu1  ;;  %v14289_v58 = vpop.f32.mrb[121].mxu0 }
 0x415   : > { %16501 = vst [vmem:[#allocation16_spill] sm:$0xff] %v14287_v52  ;;  %16502 = vst [vmem:[#allocation55_spill] sm:$0xff] %v14289_v58  ;;  %v5893_v50 = vrot.slane %v14287_v52, 1  ;;  %v6101_v9 = vrot.slane %v14287_v52, 2  ;;  %v7874_v53 = vrot.slane %v14289_v58, 1  ;;  %v8082_v13 = vrot.slane %v14289_v58, 2 }
 0x416   : > { %8134 = vrot.lane.b32.xlu0 %v14078_v7, %s10479_s22  ;;  %v14297_v40 = vpop.f32.mrb[102].mxu1  ;;  %v14299_v54 = vpop.f32.mrb[122].mxu0 }
 0x417   : > { %16503 = vst [vmem:[#allocation59_spill] sm:$0xff] %v14297_v40  ;;  %16504 = vst [vmem:[#allocation25_spill] sm:$0xff] %v14299_v54  ;;  %v14302_v59 = vsel %vm1692_vm1, %v5893_v50, %v5894_v8  ;;  %v14305_v1 = vsel %vm1692_vm1, %v7874_v53, %v7875_v57  ;;  %v14308_v42 = vsel %vm1901_vm2, %v6101_v9, %v6102_v20  ;;  %7930 = vrot.lane.b32.xlu1 %v14113_v36, %s10478_s21  ;;  %v5716_v7 = vpop.f32.mrb[103].mxu1  ;;  %v7645_v58 = vpop.f32.mrb[123].mxu0 }
 0x418   : > { %16505 = vst [vmem:[#allocation33_spill] sm:$0xff] %v14308_v42  ;;  %v14311_v52 = vsel %vm1901_vm2, %v8082_v13, %v8083_v11  ;;  %v5896_v38 = vrot.slane %v5716_v7, 1  ;;  %v6104_v44 = vrot.slane %v5716_v7, 2  ;;  %v7877_v21 = vrot.slane %v7645_v58, 1 }
 0x419   : > { %16506 = vst [vmem:[#allocation54_spill] sm:$0xff] %v14311_v52  ;;  %v8085_v12 = vrot.slane %v7645_v58, 2  ;;  %v5898_v50 = vrot.slane %v14297_v40, 1  ;;  %v6106_v53 = vrot.slane %v14297_v40, 2  ;;  %v7879_v30 = vrot.slane %v14299_v54, 1 }
 0x41a   : > { %8136 = vrot.lane.b32.xlu0 %v14081_v27, %s10479_s22  ;;  %v10130_v9 = vpop.f32.mrb[104].mxu1  ;;  %v10269_v13 = vpop.f32.mrb[124].mxu0  ;;  %v14321_v47 = vsel %vm1692_vm1, %v5894_v8, %v5896_v38  ;;  %v14324_v36 = vsel %vm1692_vm1, %v7875_v57, %v7877_v21  ;;  %v14327_v7 = vsel %vm1901_vm2, %v6102_v20, %v6104_v44  ;;  %v8087_v20 = vrot.slane %v14299_v54, 2 }
 0x41b   : > { %v14330_v58 = vsel %vm1901_vm2, %v8083_v11, %v8085_v12  ;;  %v5901_v40 = vrot.slane %v10130_v9, 1  ;;  %v6109_v52 = vrot.slane %v10130_v9, 2  ;;  %v7882_v31 = vrot.slane %v10269_v13, 1  ;;  %5949 = vrot.lane.b32.xlu1 %v14129_v22, %s10478_s21  ;;  %v14334_v27 = vpop.f32.mrb[105].mxu1  ;;  %v14336_v38 = vpop.f32.mrb[125].mxu0 }
 0x41c   : > { %v8090_v42 = vrot.slane %v10269_v13, 2  ;;  %16507 = vst [vmem:[#allocation34_spill] sm:$0xff] %v14334_v27  ;;  %16508 = vst [vmem:[#allocation17_spill] sm:$0xff] %v14336_v38  ;;  %v5899_v21 = vrot.slane %v14334_v27, 1  ;;  %v6107_v8 = vrot.slane %v14334_v27, 2  ;;  %v7880_v44 = vrot.slane %v14336_v38, 1 }
 0x41d   : > { %v8088_v12 = vrot.slane %v14336_v38, 2 }
 0x41e   : > { %6155 = vrot.lane.b32.xlu0 %v14116_v43, %s10479_s22  ;;  %v14346_v57 = vsel %vm1692_vm1, %v5898_v50, %v5899_v21  ;;  %v14349_v22 = vsel %vm1692_vm1, %v5899_v21, %v5901_v40  ;;  %v14352_v11 = vsel %vm1692_vm1, %v7879_v30, %v7880_v44  ;;  %v14355_v9 = vsel %vm1901_vm2, %v6106_v53, %v6107_v8 }
 0x41f   : > { %7932 = vrot.lane.b32.xlu1 %v14132_v28, %s10478_s21  ;;  %v14360_v13 = vsel %vm1692_vm1, %v7880_v44, %v7882_v31  ;;  %v14363_v43 = vsel %vm1901_vm2, %v6107_v8, %v6109_v52  ;;  %v14366_v50 = vsel %vm1901_vm2, %v8087_v20, %v8088_v12  ;;  %v14369_v40 = vsel %vm1901_vm2, %v8088_v12, %v8090_v42 }
 0x420   : > { %16509 = vst [vmem:[#allocation56_spill] sm:$0xff] %v14360_v13  ;;  %16510 = vst [vmem:[#allocation35_spill] sm:$0xff] %v14363_v43 }
 0x421   : > { %16511 = vst [vmem:[#allocation91_spill] sm:$0xff] %v14366_v50  ;;  %16512 = vst [vmem:[#allocation61_spill] sm:$0xff] %v14369_v40 }
 0x422   : > { %8138 = vrot.lane.b32.xlu0 %v14119_v15, %s10479_s22  ;;  %v14373_v30 = vpop.f32.mrb[106].mxu1  ;;  %v14375_v53 = vpop.f32.mrb[126].mxu0 }
 0x423   : > { %16513 = vst [vmem:[#allocation18_spill] sm:$0xff] %v14373_v30  ;;  %16514 = vst [vmem:[#allocation58_spill] sm:$0xff] %v14375_v53  ;;  %v5904_v28 = vrot.slane %v14373_v30, 1  ;;  %v6112_v31 = vrot.slane %v14373_v30, 2  ;;  %v7885_v52 = vrot.slane %v14375_v53, 1  ;;  %v8093_v21 = vrot.slane %v14375_v53, 2  ;;  %5951 = vrot.lane.b32.xlu1 %v14154_v35, %s10478_s21 }
 0x424   : > { %v14383_v42 = vpop.f32.mrb[107].mxu1  ;;  %v14385_v8 = vpop.f32.mrb[127].mxu0 }
 0x425   : > { %16515 = vst [vmem:[#allocation94_spill] sm:$0xff] %v14383_v42  ;;  %16516 = vst [vmem:[#allocation60_spill] sm:$0xff] %v14385_v8  ;;  %v5903_v15 = vrot.slane %v14383_v42, 1  ;;  %v6111_v44 = vrot.slane %v14383_v42, 2  ;;  %v7884_v12 = vrot.slane %v14385_v8, 1  ;;  %v8092_v20 = vrot.slane %v14385_v8, 2 }
 0x426   : > { %6157 = vrot.lane.b32.xlu0 %v14135_v0, %s10479_s22  ;;  %v14393_v38 = vpop.f32.mrb[108].mxu1  ;;  %v14395_v53 = vpop.f32.mrb[128].mxu0 }
 0x427   : > { %16517 = vst [vmem:[#allocation36_spill] sm:$0xff] %v14393_v38  ;;  %16518 = vst [vmem:[#allocation93_spill] sm:$0xff] %v14395_v53  ;;  %v14398_v35 = vsel %vm1692_vm1, %v5903_v15, %v5904_v28  ;;  %v14401_v54 = vsel %vm1692_vm1, %v7884_v12, %v7885_v52  ;;  %v14404_v30 = vsel %vm1901_vm2, %v6111_v44, %v6112_v31  ;;  %5953 = vrot.lane.b32.xlu1 %v14157_v3, %s10478_s21  ;;  %v5746_v0 = vpop.f32.mrb[109].mxu1  ;;  %v7675_v8 = vpop.f32.mrb[129].mxu0 }
 0x428   : > { %16519 = vst [vmem:[#allocation19_spill] sm:$0xff] %v14398_v35  ;;  %16520 = vst [vmem:[#allocation65_spill] sm:$0xff] %v14401_v54  ;;  %v14407_v42 = vsel %vm1901_vm2, %v8092_v20, %v8093_v21  ;;  %v5906_v27 = vrot.slane %v5746_v0, 1  ;;  %v6114_v40 = vrot.slane %v5746_v0, 2  ;;  %v7887_v50 = vrot.slane %v7675_v8, 1 }
 0x429   : > { %16521 = vst [vmem:[#allocation29_spill] sm:$0xff] %v14404_v30  ;;  %16522 = vst [vmem:[#allocation63_spill] sm:$0xff] %v14407_v42  ;;  %v8095_v43 = vrot.slane %v7675_v8, 2  ;;  %v5908_v15 = vrot.slane %v14393_v38, 1  ;;  %v6116_v12 = vrot.slane %v14393_v38, 2  ;;  %v7889_v54 = vrot.slane %v14395_v53, 1 }
 0x42a   : > { %8140 = vrot.lane.b32.xlu0 %v14138_v55, %s10479_s22  ;;  %v10139_v44 = vpop.f32.mrb[110].mxu1  ;;  %v10278_v20 = vpop.f32.mrb[130].mxu0  ;;  %v14417_v42 = vsel %vm1692_vm1, %v5904_v28, %v5906_v27  ;;  %v14420_v3 = vsel %vm1692_vm1, %v7885_v52, %v7887_v50  ;;  %v14423_v0 = vsel %vm1901_vm2, %v6112_v31, %v6114_v40  ;;  %v8097_v31 = vrot.slane %v14395_v53, 2 }
 0x42b   : > { %v14426_v8 = vsel %vm1901_vm2, %v8093_v21, %v8095_v43  ;;  %v5911_v38 = vrot.slane %v10139_v44, 1  ;;  %v6119_v30 = vrot.slane %v10139_v44, 2  ;;  %v7892_v35 = vrot.slane %v10278_v20, 1  ;;  %7934 = vrot.lane.b32.xlu1 %v14160_v34, %s10478_s21  ;;  %v14430_v55 = vpop.f32.mrb[111].mxu1  ;;  %v14432_v27 = vpop.f32.mrb[131].mxu0 }
 0x42c   : > { %v8100_v13 = vrot.slane %v10278_v20, 2  ;;  %16523 = vst [vmem:[#allocation68_spill] sm:$0xff] %v14430_v55  ;;  %16524 = vst [vmem:[#allocation5_spill] sm:$0xff] %v14432_v27  ;;  %v5909_v50 = vrot.slane %v14430_v55, 1  ;;  %v6117_v28 = vrot.slane %v14430_v55, 2  ;;  %v7890_v40 = vrot.slane %v14432_v27, 1 }
 0x42d   : > { %v8098_v43 = vrot.slane %v14432_v27, 2 }
 0x42e   : > { %6159 = vrot.lane.b32.xlu0 %v14163_v60, %s10479_s22  ;;  %v14442_v52 = vsel %vm1692_vm1, %v5908_v15, %v5909_v50  ;;  %v14445_v34 = vsel %vm1692_vm1, %v5909_v50, %v5911_v38  ;;  %v14448_v21 = vsel %vm1692_vm1, %v7889_v54, %v7890_v40  ;;  %v14451_v44 = vsel %vm1901_vm2, %v6116_v12, %v6117_v28 }
 0x42f   : > { %16525 = vst [vmem:[#allocation37_spill] sm:$0xff] %v14451_v44  ;;  %7936 = vrot.lane.b32.xlu1 %v14168_v6, %s10478_s21  ;;  %v14456_v20 = vsel %vm1692_vm1, %v7890_v40, %v7892_v35  ;;  %v14459_v60 = vsel %vm1901_vm2, %v6117_v28, %v6119_v30  ;;  %v14462_v15 = vsel %vm1901_vm2, %v8097_v31, %v8098_v43  ;;  %v14467_v54 = vpop.f32.mrb[112].mxu1  ;;  %v14469_v50 = vpop.f32.mrb[132].mxu0 }
 0x430   : > { %16526 = vst [vmem:[#allocation62_spill] sm:$0xff] %v14456_v20  ;;  %16527 = vst [vmem:[#allocation8_spill] sm:$0xff] %v14459_v60  ;;  %v14465_v38 = vsel %vm1901_vm2, %v8098_v43, %v8100_v13  ;;  %v5914_v12 = vrot.slane %v14467_v54, 1  ;;  %v6122_v6 = vrot.slane %v14467_v54, 2  ;;  %v7895_v35 = vrot.slane %v14469_v50, 1  ;;  %v14475_v30 = vpop.f32.mrb[113].mxu1 }
 0x431   : > { %16528 = vst [vmem:[#allocation100_spill] sm:$0xff] %v14462_v15  ;;  %16529 = vst [vmem:[#allocation20_spill] sm:$0xff] %v14465_v38  ;;  %v8103_v40 = vrot.slane %v14469_v50, 2  ;;  %v14477_v28 = vpop.f32.mrb[133].mxu0  ;;  %v5913_v31 = vrot.slane %v14475_v30, 1  ;;  %v6121_v13 = vrot.slane %v14475_v30, 2 }
 0x432   : > { %16530 = vst [vmem:[#allocation64_spill] sm:$0xff] %v14467_v54  ;;  %16531 = vst [vmem:[#allocation38_spill] sm:$0xff] %v14469_v50  ;;  %v7894_v43 = vrot.slane %v14477_v28, 1  ;;  %v8102_v27 = vrot.slane %v14477_v28, 2  ;;  %6161 = vrot.lane.b32.xlu0 %v14171_v48, %s10479_s22 }
 0x433   : > { %16532 = vst [vmem:[#allocation99_spill] sm:$0xff] %v14475_v30  ;;  %16533 = vst [vmem:[#allocation101_spill] sm:$0xff] %v14477_v28  ;;  %5955 = vrot.lane.b32.xlu1 %v14206_v25, %s10478_s21  ;;  %v14487_v53 = vpop.f32.mrb[114].mxu1  ;;  %v14489_v50 = vpop.f32.mrb[134].mxu0  ;;  %v14492_v54 = vsel %vm1692_vm1, %v5913_v31, %v5914_v12  ;;  %v14498_v30 = vsel %vm1901_vm2, %v6121_v13, %v6122_v6  ;;  %v6019_v31 = vadd.f32 %v13765_v39, %v16449_v51 }
 0x434   : > { %16534 = vst [vmem:[#allocation74_spill] sm:$0xff] %v14487_v53  ;;  %16535 = vst [vmem:[#allocation7_spill] sm:$0xff] %v14489_v50  ;;  %v14495_v55 = vsel %vm1692_vm1, %v7894_v43, %v7895_v35  ;;  %v14501_v28 = vsel %vm1901_vm2, %v8102_v27, %v8103_v40  ;;  %v5776_v48 = vpop.f32.mrb[115].mxu1  ;;  %v7705_v38 = vpop.f32.mrb[135].mxu0  ;;  %v5918_v43 = vrot.slane %v14487_v53, 1  ;;  %v6126_v13 = vrot.slane %v14487_v53, 2 }
 0x435   : > { %16536 = vst [vmem:[#allocation21_spill] sm:$0xff] %v14495_v55  ;;  %16537 = vst [vmem:[#allocation66_spill] sm:$0xff] %v14498_v30  ;;  %v5916_v15 = vrot.slane %v5776_v48, 1  ;;  %v6124_v25 = vrot.slane %v5776_v48, 2  ;;  %v7897_v60 = vrot.slane %v7705_v38, 1  ;;  %v8105_v20 = vrot.slane %v7705_v38, 2  ;;  %v5926_v44 = vpop.permute.xlu1 %5925 }
 0x436   : > { %16538 = vst [vmem:[#allocation69_spill] sm:$0xff] %v14501_v28  ;;  %8142 = vrot.lane.b32.xlu0 %v14174_v16, %s10479_s22  ;;  %v6020_v27 = vadd.f32 %v16448_v41, %v5926_v44  ;;  %v7899_v39 = vrot.slane %v14489_v50, 1 }
 0x437   : > { %7938 = vrot.lane.b32.xlu1 %v14209_v24, %s10478_s21  ;;  %v10148_v28 = vpop.f32.mrb[116].mxu1  ;;  %v10287_v48 = vpop.f32.mrb[136].mxu0  ;;  %v14513_v38 = vsel %vm1692_vm1, %v5914_v12, %v5916_v15  ;;  %v14516_v30 = vsel %vm1692_vm1, %v7895_v35, %v7897_v60  ;;  %v14519_v16 = vsel %vm1901_vm2, %v8103_v40, %v8105_v20  ;;  %v14522_v51 = vsel %vm1901_vm2, %v6122_v6, %v6124_v25 }
 0x438   : > { %16539 = vst [vmem:[#allocation40_spill] sm:$0xff] %v14519_v16  ;;  %16540 = vst [vmem:[#allocation22_spill] sm:$0xff] %v14522_v51  ;;  %v5921_v41 = vrot.slane %v10148_v28, 1  ;;  %v6129_v44 = vrot.slane %v10148_v28, 2  ;;  %v7902_v53 = vrot.slane %v10287_v48, 1  ;;  %v14525_v24 = vpop.f32.mrb[117].mxu1  ;;  %v6134_v15 = vpop.permute.xlu0 %6133  ;;  %v6227_v6 = vadd.f32 %v13787_v18, %v6019_v31 }
 0x439   : > { %16541 = vst [vmem:[#allocation78_spill] sm:$0xff] %v14525_v24  ;;  %v14527_v55 = vpop.f32.mrb[137].mxu0  ;;  %v8110_v12 = vrot.slane %v10287_v48, 2  ;;  %v5919_v60 = vrot.slane %v14525_v24, 1  ;;  %v6127_v35 = vrot.slane %v14525_v24, 2  ;;  %v8107_v40 = vrot.slane %v14489_v50, 2 }
 0x43a   : > { %16542 = vst [vmem:[#allocation42_spill] sm:$0xff] %v14527_v55  ;;  %v7900_v20 = vrot.slane %v14527_v55, 1  ;;  %8144 = vrot.lane.b32.xlu0 %v14177_v19, %s10479_s22  ;;  %v6228_v28 = vadd.f32 %v6134_v15, %v6020_v27  ;;  %v8108_v25 = vrot.slane %v14527_v55, 2 }
 0x43b   : > { %5957 = vrot.lane.b32.xlu1 %v14225_v29, %s10478_s21  ;;  %v10153_v48 = vpop.f32.mrb[118].mxu1  ;;  %v14540_v51 = vsel %vm1692_vm1, %v5918_v43, %v5919_v60  ;;  %v14543_v24 = vsel %vm1901_vm2, %v6126_v13, %v6127_v35  ;;  %v14546_v16 = vsel %vm1692_vm1, %v5919_v60, %v5921_v41  ;;  %v14552_v15 = vsel %vm1901_vm2, %v6127_v35, %v6129_v44 }
 0x43c   : > { %v14549_v18 = vsel %vm1692_vm1, %v7899_v39, %v7900_v20  ;;  %v6839_v19 = vrot.slane %v10153_v48, 1  ;;  %v7047_v31 = vrot.slane %v10153_v48, 2  ;;  %v6519_v27 = vpop.f32.mrb[119].mxu1  ;;  %v14555_v29 = vsel %vm1692_vm1, %v7900_v20, %v7902_v53 }
 0x43d   : > { %v6838_v43 = vrot.slane %v6519_v27, 1  ;;  %v7046_v55 = vrot.slane %v6519_v27, 2  ;;  %v14560_v13 = vsel %vm1901_vm2, %v8107_v40, %v8108_v25  ;;  %v14563_v39 = vsel %vm1901_vm2, %v8108_v25, %v8110_v12 }
 0x43e   : > { %6163 = vrot.lane.b32.xlu0 %v14212_v23, %s10479_s22  ;;  %v14567_v41 = vadd.f32 %v6519_v27, %v6227_v6  ;;  %v14569_v44 = vadd.f32 %v10153_v48, %v6228_v28 }
 0x43f   : > { %7940 = vrot.lane.b32.xlu1 %v14228_v56, %s10478_s21  ;;  %v10156_v53 = vpop.f32.mrb[120].mxu1  ;;  %v14572_v60 = vsel %vm1901_vm2, %v7046_v55, %v7047_v31  ;;  %v14575_v35 = vsel %vm1692_vm1, %v6838_v43, %v6839_v19 }
 0x440   : > { %16543 = vst [vmem:[#allocation75_spill] sm:$0xff] %v14567_v41  ;;  %16544 = vst [vmem:[#allocation30_spill] sm:$0xff] %v14569_v44  ;;  %v6529_v23 = vpop.f32.mrb[121].mxu1  ;;  %v5928_v20 = vpop.permute.xlu0 %5927  ;;  %v6843_v25 = vrot.slane %v10156_v53, 1  ;;  %v7051_v44 = vrot.slane %v10156_v53, 2 }
 0x441   : > { %16545 = vst [vmem:[#allocation80_spill] sm:$0xff] %v14575_v35  ;;  %v6841_v40 = vrot.slane %v6529_v23, 1  ;;  %v7049_v50 = vrot.slane %v6529_v23, 2  ;;  %v5930_v56 = vpop.permute.xlu1 %5929  ;;  %v6021_v12 = vadd.f32 %v13909_v4, %v5928_v20 }
 0x442   : > { %8146 = vrot.lane.b32.xlu0 %v14215_v37, %s10479_s22  ;;  %v6022_v4 = vadd.f32 %v5930_v56, %v13922_v14 }
 0x443   : > { %5959 = vrot.lane.b32.xlu1 %v14250_v5, %s10478_s21  ;;  %v10159_v6 = vpop.f32.mrb[122].mxu1  ;;  %v14583_v55 = vsel %vm1901_vm2, %v7047_v31, %v7049_v50  ;;  %v14586_v28 = vsel %vm1692_vm1, %v6839_v19, %v6841_v40 }
 0x444   : > { %16546 = vst [vmem:[#allocation45_spill] sm:$0xff] %v14586_v28  ;;  %v6846_v48 = vrot.slane %v10159_v6, 1  ;;  %v7054_v27 = vrot.slane %v10159_v6, 2  ;;  %v6539_v43 = vpop.f32.mrb[123].mxu1  ;;  %v6136_v23 = vpop.permute.xlu0 %6135 }
 0x445   : > { %v6844_v37 = vrot.slane %v6539_v43, 1  ;;  %v7052_v41 = vrot.slane %v6539_v43, 2  ;;  %v6229_v35 = vadd.f32 %v6136_v23, %v6021_v12 }
 0x446   : > { %6165 = vrot.lane.b32.xlu0 %v14231_v46, %s10479_s22 }
 0x447   : > { %5961 = vrot.lane.b32.xlu1 %v14253_v63, %s10478_s21  ;;  %v14593_v5 = vpop.f32.mrb[124].mxu1  ;;  %v14596_v50 = vsel %vm1692_vm1, %v6843_v25, %v6844_v37  ;;  %v14599_v19 = vsel %vm1692_vm1, %v6844_v37, %v6846_v48  ;;  %v14602_v31 = vsel %vm1901_vm2, %v7051_v44, %v7052_v41  ;;  %v14605_v20 = vsel %vm1901_vm2, %v7052_v41, %v7054_v27 }
 0x448   : > { %16547 = vst [vmem:[#allocation87_spill] sm:$0xff] %v14596_v50  ;;  %16548 = vst [vmem:[#allocation96_spill] sm:$0xff] %v14599_v19  ;;  %v6849_v46 = vrot.slane %v14593_v5, 1  ;;  %v7057_v14 = vrot.slane %v14593_v5, 2  ;;  %v6549_v40 = vpop.f32.mrb[125].mxu1  ;;  %v6138_v63 = vpop.permute.xlu0 %6137  ;;  %v14609_v56 = vadd.f32 %v10156_v53, %v6229_v35 }
 0x449   : > { %16549 = vst [vmem:[#allocation44_spill] sm:$0xff] %v14602_v31  ;;  %16550 = vst [vmem:[#allocation27_spill] sm:$0xff] %v14605_v20  ;;  %v6848_v12 = vrot.slane %v6549_v40, 1  ;;  %v7056_v6 = vrot.slane %v6549_v40, 2  ;;  %v6230_v25 = vadd.f32 %v6138_v63, %v6022_v4  ;;  %v5932_v23 = vpop.permute.xlu1 %5931 }
 0x44a   : > { %16551 = vst [vmem:[#allocation92_spill] sm:$0xff] %v14609_v56  ;;  %8148 = vrot.lane.b32.xlu0 %v14234_v33, %s10479_s22  ;;  %v6023_v44 = vadd.f32 %v5932_v23, %v13943_v32  ;;  %v14614_v48 = vpop.f32.mrb[138].mxu0 }
 0x44b   : > { %16552 = vst [vmem:[#allocation95_spill] sm:$0xff] %v14614_v48  ;;  %7942 = vrot.lane.b32.xlu1 %v14256_v17, %s10478_s21  ;;  %v7905_v41 = vrot.slane %v14614_v48, 1  ;;  %v8113_v27 = vrot.slane %v14614_v48, 2  ;;  %v14620_v53 = vpop.f32.mrb[126].mxu1  ;;  %v14622_v35 = vpop.f32.mrb[139].mxu0  ;;  %v14625_v37 = vsel %vm1692_vm1, %v6848_v12, %v6849_v46  ;;  %v14628_v33 = vsel %vm1901_vm2, %v7056_v6, %v7057_v14 }
 0x44c   : > { %16553 = vst [vmem:[#allocation98_spill] sm:$0xff] %v14622_v35  ;;  %16554 = vst [vmem:[#allocation48_spill] sm:$0xff] %v14625_v37  ;;  %v7904_v32 = vrot.slane %v14622_v35, 1  ;;  %v8112_v4 = vrot.slane %v14622_v35, 2  ;;  %v6559_v63 = vpop.f32.mrb[127].mxu1  ;;  %v6140_v17 = vpop.permute.xlu0 %6139  ;;  %v14636_v31 = vadd.f32 %v6539_v43, %v6230_v25 }
 0x44d   : > { %16555 = vst [vmem:[#allocation47_spill] sm:$0xff] %v14628_v33  ;;  %v6851_v23 = vrot.slane %v6559_v63, 1  ;;  %v7059_v56 = vrot.slane %v6559_v63, 2  ;;  %v6231_v20 = vadd.f32 %v6140_v17, %v6023_v44  ;;  %v14632_v48 = vpop.permute.xlu1 %8122  ;;  %v6853_v44 = vrot.slane %v14620_v53, 1 }
 0x44e   : > { %16556 = vst [vmem:[#allocation102_spill] sm:$0xff] %v14632_v48  ;;  %6167 = vrot.lane.b32.xlu0 %v14259_v49, %s10479_s22  ;;  %16557 = vst [vmem:[#allocation49_spill] sm:$0xff] %v14636_v31  ;;  %v14638_v12 = vpop.f32.mrb[140].mxu0  ;;  %v14643_v6 = vsel %vm1692_vm1, %v7904_v32, %v7905_v41  ;;  %v14646_v35 = vsel %vm1901_vm2, %v8112_v4, %v8113_v27  ;;  %v7061_v63 = vrot.slane %v14620_v53, 2 }
 0x44f   : > { %16558 = vst [vmem:[#allocation104_spill] sm:$0xff] %v14638_v12  ;;  %7944 = vrot.lane.b32.xlu1 %v14264_v62, %s10478_s21  ;;  %v10168_v17 = vpop.f32.mrb[128].mxu1  ;;  %v7735_v48 = vpop.f32.mrb[141].mxu0  ;;  %v14651_v49 = vsel %vm1692_vm1, %v6849_v46, %v6851_v23  ;;  %v14654_v43 = vsel %vm1901_vm2, %v7057_v14, %v7059_v56  ;;  %v7909_v62 = vrot.slane %v14638_v12, 1  ;;  %v14665_v46 = vadd.f32 %v6549_v40, %v6231_v20 }
 0x450   : > { %16559 = vst [vmem:[#allocation103_spill] sm:$0xff] %v14654_v43  ;;  %v6856_v25 = vrot.slane %v10168_v17, 1  ;;  %v7907_v32 = vrot.slane %v7735_v48, 1  ;;  %v8115_v31 = vrot.slane %v7735_v48, 2  ;;  %v14657_v33 = vpop.f32.mrb[129].mxu1  ;;  %v14659_v4 = vpop.permute.xlu0 %7914  ;;  %v7064_v37 = vrot.slane %v10168_v17, 2 }
 0x451   : > { %16560 = vst [vmem:[#allocation6_spill] sm:$0xff] %v14659_v4  ;;  %v6854_v19 = vrot.slane %v14657_v33, 1  ;;  %v7062_v50 = vrot.slane %v14657_v33, 2  ;;  %v5934_v28 = vpop.permute.xlu1 %5933  ;;  %16561 = vst [vmem:[#allocation41_spill] sm:$0xff] %v14665_v46  ;;  %v8117_v14 = vrot.slane %v14638_v12, 2 }
 0x452   : > { %6169 = vrot.lane.b32.xlu0 %v14267_v26, %s10479_s22  ;;  %v6024_v56 = vadd.f32 %v13935_v45, %v5934_v28  ;;  %v10296_v48 = vpop.f32.mrb[142].mxu0  ;;  %v14672_v23 = vsel %vm1692_vm1, %v7905_v41, %v7907_v32  ;;  %v14675_v17 = vsel %vm1901_vm2, %v8113_v27, %v8115_v31 }
 0x453   : > { %5963 = vrot.lane.b32.xlu1 %v14302_v59, %s10478_s21  ;;  %v14677_v4 = vpop.f32.mrb[130].mxu1  ;;  %v7912_v43 = vrot.slane %v10296_v48, 1  ;;  %v8120_v26 = vrot.slane %v10296_v48, 2  ;;  %v14679_v20 = vpop.f32.mrb[143].mxu0  ;;  %v14682_v40 = vsel %vm1901_vm2, %v7061_v63, %v7062_v50  ;;  %v14685_v45 = vsel %vm1692_vm1, %v6853_v44, %v6854_v19 }
 0x454   : > { %16562 = vst [vmem:[#allocation23_spill] sm:$0xff] %v14679_v20  ;;  %16563 = vst [vmem:[#allocation28_spill] sm:$0xff] %v14682_v40  ;;  %v6859_v59 = vrot.slane %v14677_v4, 1  ;;  %v7067_v28 = vrot.slane %v14677_v4, 2  ;;  %v14689_v41 = vpop.f32.mrb[131].mxu1  ;;  %v14691_v31 = vpop.permute.xlu0 %8124  ;;  %v7910_v27 = vrot.slane %v14679_v20, 1  ;;  %v14700_v44 = vsel %vm1901_vm2, %v7062_v50, %v7064_v37 }
 0x455   : > { %16564 = vst [vmem:[#allocation97_spill] sm:$0xff] %v14685_v45  ;;  %16565 = vst [vmem:[#allocation24_spill] sm:$0xff] %v14691_v31  ;;  %v8118_v32 = vrot.slane %v14679_v20, 2  ;;  %v6858_v48 = vrot.slane %v14689_v41, 1  ;;  %v7066_v63 = vrot.slane %v14689_v41, 2  ;;  %v6142_v12 = vpop.permute.xlu1 %6141  ;;  %v14703_v46 = vsel %vm1692_vm1, %v6854_v19, %v6856_v25 }
 0x456   : > { %8150 = vrot.lane.b32.xlu0 %v14270_v10, %s10479_s22  ;;  %v6232_v45 = vadd.f32 %v6142_v12, %v6024_v56  ;;  %v14708_v20 = vsel %vm1692_vm1, %v7909_v62, %v7910_v27  ;;  %v14714_v40 = vsel %vm1692_vm1, %v7910_v27, %v7912_v43 }
 0x457   : > { %7946 = vrot.lane.b32.xlu1 %v14305_v1, %s10478_s21  ;;  %v14711_v31 = vsel %vm1901_vm2, %v8117_v14, %v8118_v32  ;;  %16567 = vst [vmem:[#allocation10_spill] sm:$0xff] %v14714_v40  ;;  %v14716_v10 = vpop.f32.mrb[132].mxu1  ;;  %v14719_v50 = vsel %vm1901_vm2, %v7066_v63, %v7067_v28  ;;  %v14722_v19 = vsel %vm1692_vm1, %v6858_v48, %v6859_v59 }
 0x458   : > { %16566 = vst [vmem:[#allocation81_spill] sm:$0xff] %v14711_v31  ;;  %v14725_v37 = vsel %vm1901_vm2, %v8118_v32, %v8120_v26  ;;  %v6589_v1 = vpop.f32.mrb[133].mxu1  ;;  %v5936_v12 = vpop.permute.xlu0 %5935  ;;  %v14728_v62 = vadd.f32 %v14593_v5, %v6232_v45 }
 0x459   : > { %16568 = vst [vmem:[#allocation88_spill] sm:$0xff] %v14725_v37  ;;  %v6861_v25 = vrot.slane %v6589_v1, 1  ;;  %v7069_v14 = vrot.slane %v6589_v1, 2  ;;  %v14730_v43 = vpop.permute.xlu1 %7916  ;;  %v6025_v5 = vadd.f32 %v13952_v2, %v5936_v12  ;;  %v6863_v1 = vrot.slane %v14716_v10, 1  ;;  %v16574_v37 = vld [vmem:[#allocation71_spill] sm:$0xff] }
 0x45a   : > { %16569 = vst [vmem:[#allocation26_spill] sm:$0xff] %v14728_v62  ;;  %16570 = vst [vmem:[#allocation105_spill] sm:$0xff] %v14730_v43  ;;  %8152 = vrot.lane.b32.xlu0 %v14273_v61, %s10479_s22  ;;  %v7071_v61 = vrot.slane %v14716_v10, 2 }
 0x45b   : > { %5965 = vrot.lane.b32.xlu1 %v14321_v47, %s10478_s21  ;;  %v10177_v56 = vpop.f32.mrb[134].mxu1  ;;  %v14737_v27 = vsel %vm1901_vm2, %v7067_v28, %v7069_v14  ;;  %v14740_v26 = vsel %vm1692_vm1, %v6859_v59, %v6861_v25  ;;  %v16571_v14 = vld [vmem:[#allocation33_spill] sm:$0xff] }
 0x45c   : > { %v6866_v45 = vrot.slane %v10177_v56, 1  ;;  %v7074_v32 = vrot.slane %v10177_v56, 2  ;;  %v14743_v48 = vpop.f32.mrb[135].mxu1  ;;  %v5938_v63 = vpop.permute.xlu0 %5937 }
 0x45d   : > { %v6864_v47 = vrot.slane %v14743_v48, 1  ;;  %v7072_v43 = vrot.slane %v14743_v48, 2  ;;  %v6144_v28 = vpop.permute.xlu1 %6143 }
 0x45e   : > { %6171 = vrot.lane.b32.xlu0 %v16571_v14, %s10479_s22  ;;  %v6233_v59 = vadd.f32 %v6144_v28, %v6025_v5  ;;  %v6026_v14 = vadd.f32 %v5938_v63, %v16574_v37 }
 0x45f   : > { %7948 = vrot.lane.b32.xlu1 %v14324_v36, %s10478_s21  ;;  %v14753_v2 = vpop.f32.mrb[136].mxu1  ;;  %v14756_v12 = vsel %vm1901_vm2, %v7071_v61, %v7072_v43  ;;  %v14759_v25 = vsel %vm1692_vm1, %v6863_v1, %v6864_v47  ;;  %v14762_v56 = vsel %vm1901_vm2, %v7072_v43, %v7074_v32  ;;  %v14765_v62 = vsel %vm1692_vm1, %v6864_v47, %v6866_v45  ;;  %v16577_v45 = vld [vmem:[#allocation54_spill] sm:$0xff] }
 0x460   : > { %16572 = vst [vmem:[#allocation106_spill] sm:$0xff] %v14762_v56  ;;  %16573 = vst [vmem:[#allocation33_spill] sm:$0xff] %v14765_v62  ;;  %v6869_v5 = vrot.slane %v14753_v2, 1  ;;  %v7077_v36 = vrot.slane %v14753_v2, 2  ;;  %v14770_v28 = vpop.f32.mrb[137].mxu1  ;;  %v14772_v40 = vpop.permute.xlu0 %7918  ;;  %v14775_v61 = vadd.f32 %v14620_v53, %v6233_v59 }
 0x461   : > { %16575 = vst [vmem:[#allocation71_spill] sm:$0xff] %v14772_v40  ;;  %v6868_v1 = vrot.slane %v14770_v28, 1  ;;  %v7076_v43 = vrot.slane %v14770_v28, 2  ;;  %v6146_v32 = vpop.permute.xlu1 %6145 }
 0x462   : > { %16576 = vst [vmem:[#allocation107_spill] sm:$0xff] %v14775_v61  ;;  %8154 = vrot.lane.b32.xlu0 %v16577_v45, %s10479_s22  ;;  %v6234_v37 = vadd.f32 %v6146_v32, %v6026_v14 }
 0x463   : > { %5967 = vrot.lane.b32.xlu1 %v14346_v57, %s10478_s21  ;;  %v14783_v63 = vpop.f32.mrb[138].mxu1  ;;  %v14786_v47 = vsel %vm1901_vm2, %v7076_v43, %v7077_v36  ;;  %v14789_v53 = vsel %vm1692_vm1, %v6868_v1, %v6869_v5 }
 0x464   : > { %16578 = vst [vmem:[#allocation54_spill] sm:$0xff] %v14786_v47  ;;  %16579 = vst [vmem:[#allocation108_spill] sm:$0xff] %v14789_v53  ;;  %v6619_v59 = vpop.f32.mrb[139].mxu1  ;;  %v14791_v40 = vpop.permute.xlu0 %8126  ;;  %v14794_v61 = vadd.f32 %v14657_v33, %v6234_v37 }
 0x465   : > { %16580 = vst [vmem:[#allocation109_spill] sm:$0xff] %v14791_v40  ;;  %v6871_v31 = vrot.slane %v6619_v59, 1  ;;  %v7079_v45 = vrot.slane %v6619_v59, 2  ;;  %v14796_v14 = vpop.permute.xlu1 %7920  ;;  %v6873_v40 = vrot.slane %v14783_v63, 1 }
 0x466   : > { %16581 = vst [vmem:[#allocation110_spill] sm:$0xff] %v14794_v61  ;;  %16582 = vst [vmem:[#allocation111_spill] sm:$0xff] %v14796_v14  ;;  %6173 = vrot.lane.b32.xlu0 %v14327_v7, %s10479_s22  ;;  %v7081_v7 = vrot.slane %v14783_v63, 2 }
 0x467   : > { %5969 = vrot.lane.b32.xlu1 %v14349_v22, %s10478_s21  ;;  %v10186_v57 = vpop.f32.mrb[140].mxu1  ;;  %v14803_v1 = vsel %vm1901_vm2, %v7077_v36, %v7079_v45  ;;  %v14806_v43 = vsel %vm1692_vm1, %v6869_v5, %v6871_v31 }
 0x468   : > { %16583 = vst [vmem:[#allocation112_spill] sm:$0xff] %v14803_v1  ;;  %16584 = vst [vmem:[#allocation113_spill] sm:$0xff] %v14806_v43  ;;  %v6876_v32 = vrot.slane %v10186_v57, 1  ;;  %v7084_v33 = vrot.slane %v10186_v57, 2  ;;  %v14808_v37 = vpop.f32.mrb[141].mxu1  ;;  %v14810_v59 = vpop.permute.xlu0 %8128 }
 0x469   : > { %16585 = vst [vmem:[#allocation114_spill] sm:$0xff] %v14810_v59  ;;  %v6874_v14 = vrot.slane %v14808_v37, 1  ;;  %v7082_v22 = vrot.slane %v14808_v37, 2  ;;  %v14816_v61 = vpop.permute.xlu1 %7922 }
 0x46a   : > { %16586 = vst [vmem:[#allocation115_spill] sm:$0xff] %v14816_v61  ;;  %8156 = vrot.lane.b32.xlu0 %v14330_v58, %s10479_s22 }
 0x46b   : > { %7950 = vrot.lane.b32.xlu1 %v14352_v11, %s10478_s21  ;;  %v14822_v31 = vpop.f32.mrb[142].mxu1  ;;  %v14825_v5 = vsel %vm1901_vm2, %v7081_v7, %v7082_v22  ;;  %v14828_v36 = vsel %vm1692_vm1, %v6873_v40, %v6874_v14  ;;  %v14831_v45 = vsel %vm1901_vm2, %v7082_v22, %v7084_v33  ;;  %v14834_v57 = vsel %vm1692_vm1, %v6874_v14, %v6876_v32  ;;  %v16591_v40 = vld [vmem:[#allocation56_spill] sm:$0xff]  ;;  %v16592_v14 = vld [vmem:[#allocation73_spill] sm:$0xff] }
 0x46c   : > { %16587 = vst [vmem:[#allocation116_spill] sm:$0xff] %v14825_v5  ;;  %16588 = vst [vmem:[#allocation117_spill] sm:$0xff] %v14828_v36  ;;  %v6879_v59 = vrot.slane %v14822_v31, 1  ;;  %v7087_v58 = vrot.slane %v14822_v31, 2  ;;  %v14838_v61 = vpop.f32.mrb[143].mxu1  ;;  %v5940_v11 = vpop.permute.xlu0 %5939 }
 0x46d   : > { %16589 = vst [vmem:[#allocation118_spill] sm:$0xff] %v14831_v45  ;;  %16590 = vst [vmem:[#allocation119_spill] sm:$0xff] %v14834_v57  ;;  %v6878_v43 = vrot.slane %v14838_v61, 1  ;;  %v7086_v7 = vrot.slane %v14838_v61, 2  ;;  %v5942_v5 = vpop.permute.xlu1 %5941  ;;  %v6027_v32 = vadd.f32 %v5940_v11, %v16592_v14  ;;  %v16597_v11 = vld [vmem:[#allocation19_spill] sm:$0xff] }
 0x46e   : > { %6175 = vrot.lane.b32.xlu0 %v14355_v9, %s10479_s22  ;;  %v16596_v9 = vld [vmem:[#allocation35_spill] sm:$0xff] }
 0x46f   : > { %7952 = vrot.lane.b32.xlu1 %v16591_v40, %s10478_s21  ;;  %v14847_v33 = vpop.f32.mrb[144].mxu1  ;;  %v14850_v22 = vsel %vm1901_vm2, %v7086_v7, %v7087_v58  ;;  %v14853_v57 = vsel %vm1692_vm1, %v6878_v43, %v6879_v59 }
 0x470   : > { %16593 = vst [vmem:[#allocation56_spill] sm:$0xff] %v14850_v22  ;;  %16594 = vst [vmem:[#allocation73_spill] sm:$0xff] %v14853_v57  ;;  %v6649_v45 = vpop.f32.mrb[145].mxu1  ;;  %v6148_v36 = vpop.permute.xlu0 %6147 }
 0x471   : > { %v6881_v1 = vrot.slane %v6649_v45, 1  ;;  %v7089_v53 = vrot.slane %v6649_v45, 2  ;;  %v6235_v47 = vadd.f32 %v6148_v36, %v6027_v32  ;;  %v14855_v62 = vpop.permute.xlu1 %7924 }
 0x472   : > { %16595 = vst [vmem:[#allocation120_spill] sm:$0xff] %v14855_v62  ;;  %6177 = vrot.lane.b32.xlu0 %v16596_v9, %s10479_s22  ;;  %v6883_v9 = vrot.slane %v14847_v33, 1 }
 0x473   : > { %5971 = vrot.lane.b32.xlu1 %v16597_v11, %s10478_s21  ;;  %v10195_v40 = vpop.f32.mrb[146].mxu1  ;;  %v14862_v7 = vsel %vm1901_vm2, %v7087_v58, %v7089_v53  ;;  %v14865_v43 = vsel %vm1692_vm1, %v6879_v59, %v6881_v1  ;;  %v14868_v14 = vadd.f32 %v14689_v41, %v6235_v47  ;;  %v7091_v11 = vrot.slane %v14847_v33, 2  ;;  %v16602_v1 = vld [vmem:[#allocation91_spill] sm:$0xff]  ;;  %v16603_v41 = vld [vmem:[#allocation77_spill] sm:$0xff] }
 0x474   : > { %16598 = vst [vmem:[#allocation35_spill] sm:$0xff] %v14862_v7  ;;  %16599 = vst [vmem:[#allocation19_spill] sm:$0xff] %v14865_v43  ;;  %v6886_v45 = vrot.slane %v10195_v40, 1  ;;  %v7094_v36 = vrot.slane %v10195_v40, 2  ;;  %v14870_v32 = vpop.f32.mrb[147].mxu1  ;;  %v14872_v62 = vpop.permute.xlu0 %8130  ;;  %v6028_v47 = vadd.f32 %v16603_v41, %v5942_v5  ;;  %v16604_v59 = vld [vmem:[#allocation65_spill] sm:$0xff] }
 0x475   : > { %16600 = vst [vmem:[#allocation121_spill] sm:$0xff] %v14868_v14  ;;  %16601 = vst [vmem:[#allocation122_spill] sm:$0xff] %v14872_v62  ;;  %v6884_v57 = vrot.slane %v14870_v32, 1  ;;  %v7092_v53 = vrot.slane %v14870_v32, 2  ;;  %v5944_v58 = vpop.permute.xlu1 %5943 }
 0x476   : > { %8158 = vrot.lane.b32.xlu0 %v16602_v1, %s10479_s22 }
 0x477   : > { %7954 = vrot.lane.b32.xlu1 %v16604_v59, %s10478_s21  ;;  %v14883_v40 = vpop.f32.mrb[148].mxu1  ;;  %v14886_v62 = vsel %vm1901_vm2, %v7091_v11, %v7092_v53  ;;  %v14889_v14 = vsel %vm1692_vm1, %v6883_v9, %v6884_v57  ;;  %v14892_v43 = vsel %vm1901_vm2, %v7092_v53, %v7094_v36  ;;  %v14895_v7 = vsel %vm1692_vm1, %v6884_v57, %v6886_v45 }
 0x478   : > { %16605 = vst [vmem:[#allocation91_spill] sm:$0xff] %v14886_v62  ;;  %16606 = vst [vmem:[#allocation77_spill] sm:$0xff] %v14889_v14  ;;  %v6889_v1 = vrot.slane %v14883_v40, 1  ;;  %v7097_v5 = vrot.slane %v14883_v40, 2  ;;  %v14899_v41 = vpop.f32.mrb[149].mxu1  ;;  %v6150_v59 = vpop.permute.xlu0 %6149  ;;  %v16609_v14 = vld [vmem:[#allocation61_spill] sm:$0xff] }
 0x479   : > { %16607 = vst [vmem:[#allocation65_spill] sm:$0xff] %v14892_v43  ;;  %16608 = vst [vmem:[#allocation123_spill] sm:$0xff] %v14895_v7  ;;  %v6888_v22 = vrot.slane %v14899_v41, 1  ;;  %v7096_v11 = vrot.slane %v14899_v41, 2  ;;  %v6236_v62 = vadd.f32 %v6150_v59, %v6028_v47  ;;  %v5946_v9 = vpop.permute.xlu1 %5945 }
 0x47a   : > { %8160 = vrot.lane.b32.xlu0 %v16609_v14, %s10479_s22 }
 0x47b   : > { %5973 = vrot.lane.b32.xlu1 %v14417_v42, %s10478_s21  ;;  %v14907_v57 = vpop.f32.mrb[150].mxu1  ;;  %v14910_v45 = vsel %vm1901_vm2, %v7096_v11, %v7097_v5  ;;  %v14913_v36 = vsel %vm1692_vm1, %v6888_v22, %v6889_v1  ;;  %v14916_v53 = vadd.f32 %v14677_v4, %v6236_v62  ;;  %v16615_v42 = vld [vmem:[#allocation29_spill] sm:$0xff]  ;;  %v16616_v11 = vld [vmem:[#allocation46_spill] sm:$0xff] }
 0x47c   : > { %16610 = vst [vmem:[#allocation61_spill] sm:$0xff] %v14910_v45  ;;  %16611 = vst [vmem:[#allocation124_spill] sm:$0xff] %v14913_v36  ;;  %v6679_v7 = vpop.f32.mrb[151].mxu1  ;;  %v14918_v47 = vpop.permute.xlu0 %8132  ;;  %v6029_v45 = vadd.f32 %v16616_v11, %v5944_v58  ;;  %v6893_v62 = vrot.slane %v14907_v57, 1 }
 0x47d   : > { %16612 = vst [vmem:[#allocation125_spill] sm:$0xff] %v14916_v53  ;;  %16613 = vst [vmem:[#allocation126_spill] sm:$0xff] %v14918_v47  ;;  %v6891_v59 = vrot.slane %v6679_v7, 1  ;;  %v7099_v43 = vrot.slane %v6679_v7, 2  ;;  %v14920_v14 = vpop.permute.xlu1 %7926 }
 0x47e   : > { %16614 = vst [vmem:[#allocation127_spill] sm:$0xff] %v14920_v14  ;;  %6179 = vrot.lane.b32.xlu0 %v16615_v42, %s10479_s22  ;;  %v7101_v42 = vrot.slane %v14907_v57, 2 }
 0x47f   : > { %7956 = vrot.lane.b32.xlu1 %v14420_v3, %s10478_s21  ;;  %v10204_v22 = vpop.f32.mrb[152].mxu1  ;;  %v14928_v36 = vsel %vm1901_vm2, %v7097_v5, %v7099_v43  ;;  %v14931_v4 = vsel %vm1692_vm1, %v6889_v1, %v6891_v59  ;;  %v16619_v43 = vld [vmem:[#allocation63_spill] sm:$0xff]  ;;  %v16620_v1 = vld [vmem:[#allocation76_spill] sm:$0xff] }
 0x480   : > { %16617 = vst [vmem:[#allocation29_spill] sm:$0xff] %v14931_v4  ;;  %v6896_v7 = vrot.slane %v10204_v22, 1  ;;  %v7104_v47 = vrot.slane %v10204_v22, 2  ;;  %v14934_v14 = vpop.f32.mrb[153].mxu1  ;;  %v6152_v53 = vpop.permute.xlu0 %6151  ;;  %v6030_v5 = vadd.f32 %v5946_v9, %v16620_v1 }
 0x481   : > { %v6894_v3 = vrot.slane %v14934_v14, 1  ;;  %v7102_v58 = vrot.slane %v14934_v14, 2  ;;  %v6237_v11 = vadd.f32 %v6152_v53, %v6029_v45  ;;  %v14939_v56 = vpop.permute.xlu1 %7928 }
 0x482   : > { %16618 = vst [vmem:[#allocation46_spill] sm:$0xff] %v14939_v56  ;;  %8162 = vrot.lane.b32.xlu0 %v16619_v43, %s10479_s22 }
 0x483   : > { %5975 = vrot.lane.b32.xlu1 %v14442_v52, %s10478_s21  ;;  %v14946_v59 = vpop.f32.mrb[154].mxu1  ;;  %v14949_v22 = vsel %vm1901_vm2, %v7101_v42, %v7102_v58  ;;  %v14952_v4 = vsel %vm1692_vm1, %v6893_v62, %v6894_v3  ;;  %v14955_v45 = vsel %vm1901_vm2, %v7102_v58, %v7104_v47  ;;  %v14958_v53 = vsel %vm1692_vm1, %v6894_v3, %v6896_v7 }
 0x484   : > { %16621 = vst [vmem:[#allocation63_spill] sm:$0xff] %v14952_v4  ;;  %16622 = vst [vmem:[#allocation76_spill] sm:$0xff] %v14955_v45  ;;  %v6899_v43 = vrot.slane %v14946_v59, 1  ;;  %v7107_v9 = vrot.slane %v14946_v59, 2  ;;  %v14962_v1 = vpop.f32.mrb[155].mxu1  ;;  %v6154_v52 = vpop.permute.xlu0 %6153  ;;  %v14965_v56 = vadd.f32 %v14716_v10, %v6237_v11 }
 0x485   : > { %16623 = vst [vmem:[#allocation128_spill] sm:$0xff] %v14958_v53  ;;  %v6898_v42 = vrot.slane %v14962_v1, 1  ;;  %v7106_v62 = vrot.slane %v14962_v1, 2  ;;  %v6238_v4 = vadd.f32 %v6154_v52, %v6030_v5  ;;  %v5948_v47 = vpop.permute.xlu1 %5947 }
 0x486   : > { %16624 = vst [vmem:[#allocation129_spill] sm:$0xff] %v14965_v56  ;;  %6181 = vrot.lane.b32.xlu0 %v14423_v0, %s10479_s22 }
 0x487   : > { %5977 = vrot.lane.b32.xlu1 %v14445_v34, %s10478_s21  ;;  %v14973_v7 = vpop.f32.mrb[156].mxu1  ;;  %v14976_v3 = vsel %vm1901_vm2, %v7106_v62, %v7107_v9  ;;  %v14979_v10 = vsel %vm1692_vm1, %v6898_v42, %v6899_v43  ;;  %v14982_v58 = vadd.f32 %v14743_v48, %v6238_v4 }
 0x488   : > { %16625 = vst [vmem:[#allocation130_spill] sm:$0xff] %v14976_v3  ;;  %16626 = vst [vmem:[#allocation131_spill] sm:$0xff] %v14979_v10  ;;  %v6709_v11 = vpop.f32.mrb[157].mxu1  ;;  %v14984_v5 = vpop.permute.xlu0 %8134 }
 0x489   : > { %16627 = vst [vmem:[#allocation132_spill] sm:$0xff] %v14982_v58  ;;  %16628 = vst [vmem:[#allocation133_spill] sm:$0xff] %v14984_v5  ;;  %v6901_v52 = vrot.slane %v6709_v11, 1  ;;  %v7109_v56 = vrot.slane %v6709_v11, 2  ;;  %v14986_v0 = vpop.permute.xlu1 %7930 }
 0x48a   : > { %16629 = vst [vmem:[#allocation134_spill] sm:$0xff] %v14986_v0  ;;  %8164 = vrot.lane.b32.xlu0 %v14426_v8, %s10479_s22  ;;  %v6903_v0 = vrot.slane %v14973_v7, 1  ;;  %v7111_v8 = vrot.slane %v14973_v7, 2 }
 0x48b   : > { %7958 = vrot.lane.b32.xlu1 %v14448_v21, %s10478_s21  ;;  %v10213_v34 = vpop.f32.mrb[158].mxu1  ;;  %v14993_v42 = vsel %vm1901_vm2, %v7107_v9, %v7109_v56  ;;  %v14996_v48 = vsel %vm1692_vm1, %v6899_v43, %v6901_v52  ;;  %v16633_v56 = vld [vmem:[#allocation37_spill] sm:$0xff]  ;;  %v16635_v52 = vld [vmem:[#allocation62_spill] sm:$0xff] }
 0x48c   : > { %16630 = vst [vmem:[#allocation135_spill] sm:$0xff] %v14993_v42  ;;  %16631 = vst [vmem:[#allocation136_spill] sm:$0xff] %v14996_v48  ;;  %v6906_v4 = vrot.slane %v10213_v34, 1  ;;  %v7114_v62 = vrot.slane %v10213_v34, 2  ;;  %v14998_v5 = vpop.f32.mrb[159].mxu1  ;;  %v15000_v11 = vpop.permute.xlu0 %8136  ;;  %v16634_v43 = vld [vmem:[#allocation13_spill] sm:$0xff] }
 0x48d   : > { %16632 = vst [vmem:[#allocation137_spill] sm:$0xff] %v15000_v11  ;;  %v6904_v58 = vrot.slane %v14998_v5, 1  ;;  %v7112_v21 = vrot.slane %v14998_v5, 2  ;;  %v5950_v10 = vpop.permute.xlu1 %5949  ;;  %v6031_v9 = vadd.f32 %v5948_v47, %v16634_v43 }
 0x48e   : > { %6183 = vrot.lane.b32.xlu0 %v16633_v56, %s10479_s22 }
 0x48f   : > { %7960 = vrot.lane.b32.xlu1 %v16635_v52, %s10478_s21  ;;  %v15011_v34 = vpop.f32.mrb[160].mxu1  ;;  %v15014_v11 = vsel %vm1901_vm2, %v7111_v8, %v7112_v21  ;;  %v15017_v48 = vsel %vm1692_vm1, %v6903_v0, %v6904_v58  ;;  %v15020_v42 = vsel %vm1901_vm2, %v7112_v21, %v7114_v62  ;;  %v15023_v3 = vsel %vm1692_vm1, %v6904_v58, %v6906_v4  ;;  %v16642_v62 = vld [vmem:[#allocation8_spill] sm:$0xff] }
 0x490   : > { %16636 = vst [vmem:[#allocation37_spill] sm:$0xff] %v15011_v34  ;;  %16637 = vst [vmem:[#allocation13_spill] sm:$0xff] %v15014_v11  ;;  %v6909_v56 = vrot.slane %v15011_v34, 1  ;;  %v7117_v47 = vrot.slane %v15011_v34, 2  ;;  %v15027_v43 = vpop.f32.mrb[161].mxu1  ;;  %v6156_v52 = vpop.permute.xlu0 %6155 }
 0x491   : > { %16638 = vst [vmem:[#allocation62_spill] sm:$0xff] %v15017_v48  ;;  %16639 = vst [vmem:[#allocation138_spill] sm:$0xff] %v15020_v42  ;;  %v6908_v53 = vrot.slane %v15027_v43, 1  ;;  %v7116_v8 = vrot.slane %v15027_v43, 2  ;;  %v6239_v11 = vadd.f32 %v6156_v52, %v6031_v9  ;;  %v15031_v0 = vpop.permute.xlu1 %7932  ;;  %v16647_v48 = vld [vmem:[#allocation100_spill] sm:$0xff] }
 0x492   : > { %16640 = vst [vmem:[#allocation139_spill] sm:$0xff] %v15023_v3  ;;  %16641 = vst [vmem:[#allocation140_spill] sm:$0xff] %v15031_v0  ;;  %6185 = vrot.lane.b32.xlu0 %v16642_v62, %s10479_s22 }
 0x493   : > { %5979 = vrot.lane.b32.xlu1 %v14492_v54, %s10478_s21  ;;  %v15037_v58 = vpop.f32.mrb[162].mxu1  ;;  %v15040_v4 = vsel %vm1692_vm1, %v6908_v53, %v6909_v56  ;;  %v15043_v21 = vsel %vm1901_vm2, %v7116_v8, %v7117_v47  ;;  %v15046_v3 = vadd.f32 %v14770_v28, %v6239_v11  ;;  %v16648_v54 = vld [vmem:[#allocation21_spill] sm:$0xff] }
 0x494   : > { %16643 = vst [vmem:[#allocation8_spill] sm:$0xff] %v15040_v4  ;;  %16644 = vst [vmem:[#allocation141_spill] sm:$0xff] %v15043_v21  ;;  %v6739_v9 = vpop.f32.mrb[163].mxu1  ;;  %v15048_v52 = vpop.permute.xlu0 %8138  ;;  %v16649_v53 = vld [vmem:[#allocation89_spill] sm:$0xff]  ;;  %v6913_v11 = vrot.slane %v15037_v58, 1 }
 0x495   : > { %16645 = vst [vmem:[#allocation142_spill] sm:$0xff] %v15046_v3  ;;  %16646 = vst [vmem:[#allocation143_spill] sm:$0xff] %v15048_v52  ;;  %v6911_v0 = vrot.slane %v6739_v9, 1  ;;  %v7119_v42 = vrot.slane %v6739_v9, 2  ;;  %v5952_v62 = vpop.permute.xlu1 %5951  ;;  %v6032_v4 = vadd.f32 %v16649_v53, %v5950_v10 }
 0x496   : > { %8166 = vrot.lane.b32.xlu0 %v16647_v48, %s10479_s22  ;;  %v7121_v48 = vrot.slane %v15037_v58, 2 }
 0x497   : > { %7962 = vrot.lane.b32.xlu1 %v16648_v54, %s10478_s21  ;;  %v10222_v45 = vpop.f32.mrb[164].mxu1  ;;  %v15056_v8 = vsel %vm1692_vm1, %v6909_v56, %v6911_v0  ;;  %v15059_v28 = vsel %vm1901_vm2, %v7117_v47, %v7119_v42  ;;  %v16650_v56 = vld [vmem:[#allocation20_spill] sm:$0xff] }
 0x498   : > { %v6916_v52 = vrot.slane %v10222_v45, 1  ;;  %v7124_v9 = vrot.slane %v10222_v45, 2  ;;  %v15062_v3 = vpop.f32.mrb[165].mxu1  ;;  %v6158_v21 = vpop.permute.xlu0 %6157 }
 0x499   : > { %v6914_v54 = vrot.slane %v15062_v3, 1  ;;  %v7122_v10 = vrot.slane %v15062_v3, 2  ;;  %v6240_v53 = vadd.f32 %v6158_v21, %v6032_v4  ;;  %v5954_v34 = vpop.permute.xlu1 %5953 }
 0x49a   : > { %8168 = vrot.lane.b32.xlu0 %v16650_v56, %s10479_s22 }
 0x49b   : > { %5981 = vrot.lane.b32.xlu1 %v14513_v38, %s10478_s21  ;;  %v15072_v42 = vsel %vm1692_vm1, %v6913_v11, %v6914_v54  ;;  %v15075_v45 = vsel %vm1692_vm1, %v6914_v54, %v6916_v52  ;;  %v15078_v47 = vsel %vm1901_vm2, %v7122_v10, %v7124_v9  ;;  %v15081_v0 = vsel %vm1901_vm2, %v7121_v48, %v7122_v10  ;;  %v16654_v38 = vld [vmem:[#allocation66_spill] sm:$0xff]  ;;  %v16655_v52 = vld [vmem:[#allocation79_spill] sm:$0xff]  ;;  %v16656_v48 = vld [vmem:[#allocation69_spill] sm:$0xff] }
 0x49c   : > { %16651 = vst [vmem:[#allocation100_spill] sm:$0xff] %v15078_v47  ;;  %v15083_v4 = vpop.permute.xlu0 %8140  ;;  %v15086_v21 = vadd.f32 %v14753_v2, %v6240_v53  ;;  %v6033_v11 = vadd.f32 %v16655_v52, %v5952_v62  ;;  %v16657_v2 = vld [vmem:[#allocation40_spill] sm:$0xff]  ;;  %v16658_v10 = vld [vmem:[#allocation53_spill] sm:$0xff]  ;;  %v16659_v62 = vld [vmem:[#allocation22_spill] sm:$0xff] }
 0x49d   : > { %16652 = vst [vmem:[#allocation21_spill] sm:$0xff] %v15083_v4  ;;  %v15088_v56 = vpop.permute.xlu1 %7934  ;;  %v6034_v53 = vadd.f32 %v5954_v34, %v16658_v10 }
 0x49e   : > { %16653 = vst [vmem:[#allocation89_spill] sm:$0xff] %v15088_v56  ;;  %6187 = vrot.lane.b32.xlu0 %v16654_v38, %s10479_s22 }
 0x49f   : > { %7964 = vrot.lane.b32.xlu1 %v14516_v30, %s10478_s21 }
 0x4a0   : > { %v6160_v9 = vpop.permute.xlu0 %6159 }
 0x4a1   : > { %v6241_v54 = vadd.f32 %v6160_v9, %v6033_v11  ;;  %v15095_v47 = vpop.permute.xlu1 %7936 }
 0x4a2   : > { %8170 = vrot.lane.b32.xlu0 %v16656_v48, %s10479_s22 }
 0x4a3   : > { %8172 = vrot.lane.b32.xlu1 %v16657_v2, %s10479_s22  ;;  %v15103_v4 = vadd.f32 %v14783_v63, %v6241_v54 }
 0x4a4   : > { %v6162_v38 = vpop.permute.xlu0 %6161 }
 0x4a5   : > { %v6242_v56 = vadd.f32 %v6162_v38, %v6034_v53  ;;  %v5956_v30 = vpop.permute.xlu1 %5955 }
 0x4a6   : > { %6189 = vrot.lane.b32.xlu0 %v16659_v62, %s10479_s22 }
 0x4a7   : > { %5983 = vrot.lane.b32.xlu1 %v14540_v51, %s10478_s21  ;;  %v15110_v52 = vadd.f32 %v14808_v37, %v6242_v56  ;;  %v16660_v51 = vld [vmem:[#allocation14_spill] sm:$0xff] }
 0x4a8   : > { %v15112_v11 = vpop.permute.xlu0 %8142  ;;  %v6035_v37 = vadd.f32 %v5956_v30, %v16660_v51  ;;  %v16664_v51 = vld [vmem:[#allocation45_spill] sm:$0xff] }
 0x4a9   : > { %v15114_v9 = vpop.permute.xlu1 %7938 }
 0x4aa   : > { %6191 = vrot.lane.b32.xlu0 %v14543_v24, %s10479_s22 }
 0x4ab   : > { %5985 = vrot.lane.b32.xlu1 %v14546_v16, %s10478_s21 }
 0x4ac   : > { %v15120_v63 = vpop.permute.xlu0 %8144 }
 0x4ad   : > { %v5958_v34 = vpop.permute.xlu1 %5957 }
 0x4ae   : > { %7966 = vrot.lane.b32.xlu0 %v14549_v18, %s10478_s21 }
 0x4af   : > { %6193 = vrot.lane.b32.xlu1 %v14552_v15, %s10479_s22  ;;  %v16661_v15 = vld [vmem:[#allocation90_spill] sm:$0xff] }
 0x4b0   : > { %v6164_v56 = vpop.permute.xlu0 %6163  ;;  %v6036_v2 = vadd.f32 %v16661_v15, %v5958_v34 }
 0x4b1   : > { %v6243_v54 = vadd.f32 %v6164_v56, %v6035_v37  ;;  %v15127_v48 = vpop.permute.xlu1 %7940 }
 0x4b2   : > { %7968 = vrot.lane.b32.xlu0 %v14555_v29, %s10478_s21 }
 0x4b3   : > { %8174 = vrot.lane.b32.xlu1 %v14560_v13, %s10479_s22  ;;  %v15134_v16 = vadd.f32 %v14838_v61, %v6243_v54  ;;  %v16662_v13 = vld [vmem:[#allocation80_spill] sm:$0xff] }
 0x4b4   : > { %v15136_v24 = vpop.permute.xlu0 %8146 }
 0x4b5   : > { %v5960_v18 = vpop.permute.xlu1 %5959 }
 0x4b6   : > { %7126 = vrot.lane.b32.xlu0 %v14572_v60, %s10479_s22 }
 0x4b7   : > { %8176 = vrot.lane.b32.xlu1 %v14563_v39, %s10479_s22  ;;  %v16663_v39 = vld [vmem:[#allocation86_spill] sm:$0xff] }
 0x4b8   : > { %v6166_v10 = vpop.permute.xlu0 %6165  ;;  %v6037_v30 = vadd.f32 %v16663_v39, %v5960_v18  ;;  %v16666_v18 = vld [vmem:[#allocation87_spill] sm:$0xff] }
 0x4b9   : > { %v6244_v53 = vadd.f32 %v6166_v10, %v6036_v2  ;;  %v5962_v29 = vpop.permute.xlu1 %5961  ;;  %v16667_v10 = vld [vmem:[#allocation96_spill] sm:$0xff] }
 0x4ba   : > { %7970 = vrot.lane.b32.xlu0 %v14643_v6, %s10478_s21 }
 0x4bb   : > { %6918 = vrot.lane.b32.xlu1 %v16662_v13, %s10478_s21  ;;  %v15148_v61 = vadd.f32 %v14822_v31, %v6244_v53  ;;  %v16665_v31 = vld [vmem:[#allocation32_spill] sm:$0xff]  ;;  %v16670_v13 = vld [vmem:[#allocation27_spill] sm:$0xff] }
 0x4bc   : > { %v15150_v38 = vpop.permute.xlu0 %8148  ;;  %v6038_v37 = vadd.f32 %v5962_v29, %v16665_v31 }
 0x4bd   : > { %v15152_v60 = vpop.permute.xlu1 %7942 }
 0x4be   : > { %8178 = vrot.lane.b32.xlu0 %v14646_v35, %s10479_s22 }
 0x4bf   : > { %7128 = vrot.lane.b32.xlu1 %v14583_v55, %s10479_s22 }
 0x4c0   : > { %v6168_v62 = vpop.permute.xlu0 %6167 }
 0x4c1   : > { %v6245_v6 = vadd.f32 %v6168_v62, %v6037_v30  ;;  %v15159_v34 = vpop.permute.xlu1 %7944 }
 0x4c2   : > { %6920 = vrot.lane.b32.xlu0 %v16664_v51, %s10478_s21 }
 0x4c3   : > { %7972 = vrot.lane.b32.xlu1 %v14672_v23, %s10478_s21  ;;  %v15167_v56 = vadd.f32 %v14847_v33, %v6245_v6  ;;  %v16668_v33 = vld [vmem:[#allocation44_spill] sm:$0xff] }
 0x4c4   : > { %v6170_v35 = vpop.permute.xlu0 %6169 }
 0x4c5   : > { %v6246_v54 = vadd.f32 %v6170_v35, %v6038_v37  ;;  %v5964_v55 = vpop.permute.xlu1 %5963  ;;  %v16672_v35 = vld [vmem:[#allocation103_spill] sm:$0xff] }
 0x4c6   : > { %8180 = vrot.lane.b32.xlu0 %v14675_v17, %s10479_s22  ;;  %v16669_v17 = vld [vmem:[#allocation48_spill] sm:$0xff] }
 0x4c7   : > { %6922 = vrot.lane.b32.xlu1 %v16666_v18, %s10478_s21  ;;  %v15174_v15 = vadd.f32 %v14870_v32, %v6246_v54  ;;  %v16671_v32 = vld [vmem:[#allocation16_spill] sm:$0xff]  ;;  %v16673_v54 = vld [vmem:[#allocation47_spill] sm:$0xff] }
 0x4c8   : > { %v15176_v2 = vpop.permute.xlu0 %8150  ;;  %v6039_v39 = vadd.f32 %v5964_v55, %v16671_v32  ;;  %v16674_v55 = vld [vmem:[#allocation15_spill] sm:$0xff] }
 0x4c9   : > { %v15178_v23 = vpop.permute.xlu1 %7946 }
 0x4ca   : > { %6924 = vrot.lane.b32.xlu0 %v16667_v10, %s10478_s21 }
 0x4cb   : > { %7130 = vrot.lane.b32.xlu1 %v16668_v33, %s10479_s22 }
 0x4cc   : > { %v15184_v53 = vpop.permute.xlu0 %8152 }
 0x4cd   : > { %v5966_v29 = vpop.permute.xlu1 %5965 }
 0x4ce   : > { %6926 = vrot.lane.b32.xlu0 %v16669_v17, %s10478_s21  ;;  %v6040_v18 = vadd.f32 %v16674_v55, %v5966_v29  ;;  %v16675_v17 = vld [vmem:[#allocation28_spill] sm:$0xff]  ;;  %v16677_v29 = vld [vmem:[#allocation59_spill] sm:$0xff] }
 0x4cf   : > { %7132 = vrot.lane.b32.xlu1 %v16670_v13, %s10479_s22 }
 0x4d0   : > { %v6172_v30 = vpop.permute.xlu0 %6171 }
 0x4d1   : > { %v6247_v62 = vadd.f32 %v6172_v30, %v6039_v39  ;;  %v15191_v6 = vpop.permute.xlu1 %7948 }
 0x4d2   : > { %6928 = vrot.lane.b32.xlu0 %v14651_v49, %s10478_s21 }
 0x4d3   : > { %7974 = vrot.lane.b32.xlu1 %v14708_v20, %s10478_s21  ;;  %v15198_v51 = vadd.f32 %v14899_v41, %v6247_v62  ;;  %v16676_v20 = vld [vmem:[#allocation97_spill] sm:$0xff] }
 0x4d4   : > { %v15200_v31 = vpop.permute.xlu0 %8154 }
 0x4d5   : > { %v5968_v37 = vpop.permute.xlu1 %5967 }
 0x4d6   : > { %7136 = vrot.lane.b32.xlu0 %v16672_v35, %s10479_s22  ;;  %v6041_v39 = vadd.f32 %v16677_v29, %v5968_v37 }
 0x4d7   : > { %7134 = vrot.lane.b32.xlu1 %v16673_v54, %s10479_s22 }
 0x4d8   : > { %v6174_v10 = vpop.permute.xlu0 %6173 }
 0x4d9   : > { %v6248_v33 = vadd.f32 %v6174_v10, %v6040_v18  ;;  %v5970_v49 = vpop.permute.xlu1 %5969 }
 0x4da   : > { %7138 = vrot.lane.b32.xlu0 %v16675_v17, %s10479_s22 }
 0x4db   : > { %6930 = vrot.lane.b32.xlu1 %v16676_v20, %s10478_s21  ;;  %v15212_v41 = vadd.f32 %v14883_v40, %v6248_v33  ;;  %v16678_v40 = vld [vmem:[#allocation34_spill] sm:$0xff] }
 0x4dc   : > { %v15214_v13 = vpop.permute.xlu0 %8156  ;;  %v6042_v54 = vadd.f32 %v5970_v49, %v16678_v40  ;;  %v16687_v40 = vld [vmem:[#allocation113_spill] sm:$0xff] }
 0x4dd   : > { %v15216_v32 = vpop.permute.xlu1 %7950 }
 0x4de   : > { %7140 = vrot.lane.b32.xlu0 %v14700_v44, %s10479_s22 }
 0x4df   : > { %6932 = vrot.lane.b32.xlu1 %v14703_v46, %s10478_s21 }
 0x4e0   : > { %v6176_v30 = vpop.permute.xlu0 %6175 }
 0x4e1   : > { %v6249_v62 = vadd.f32 %v6176_v30, %v6041_v39  ;;  %v15223_v35 = vpop.permute.xlu1 %7952 }
 0x4e2   : > { %7142 = vrot.lane.b32.xlu0 %v14719_v50, %s10479_s22 }
 0x4e3   : > { %6934 = vrot.lane.b32.xlu1 %v14722_v19, %s10478_s21  ;;  %v15231_v55 = vadd.f32 %v14907_v57, %v6249_v62  ;;  %v16686_v62 = vld [vmem:[#allocation112_spill] sm:$0xff] }
 0x4e4   : > { %v6178_v44 = vpop.permute.xlu0 %6177 }
 0x4e5   : > { %v6250_v18 = vadd.f32 %v6178_v44, %v6042_v54  ;;  %v5972_v46 = vpop.permute.xlu1 %5971  ;;  %v16688_v54 = vld [vmem:[#allocation18_spill] sm:$0xff] }
 0x4e6   : > { %7144 = vrot.lane.b32.xlu0 %v14737_v27, %s10479_s22  ;;  %v16679_v27 = vld [vmem:[#allocation106_spill] sm:$0xff] }
 0x4e7   : > { %6936 = vrot.lane.b32.xlu1 %v14740_v26, %s10478_s21  ;;  %v15238_v37 = vadd.f32 %v14934_v14, %v6250_v18  ;;  %v16680_v26 = vld [vmem:[#allocation33_spill] sm:$0xff]  ;;  %v16681_v14 = vld [vmem:[#allocation94_spill] sm:$0xff] }
 0x4e8   : > { %v15240_v50 = vpop.permute.xlu0 %8158  ;;  %v6043_v33 = vadd.f32 %v5972_v46, %v16681_v14  ;;  %v16690_v14 = vld [vmem:[#allocation68_spill] sm:$0xff] }
 0x4e9   : > { %v15242_v19 = vpop.permute.xlu1 %7954 }
 0x4ea   : > { %7146 = vrot.lane.b32.xlu0 %v14756_v12, %s10479_s22  ;;  %v16683_v12 = vld [vmem:[#allocation54_spill] sm:$0xff] }
 0x4eb   : > { %6938 = vrot.lane.b32.xlu1 %v14759_v25, %s10478_s21  ;;  %v16684_v25 = vld [vmem:[#allocation108_spill] sm:$0xff] }
 0x4ec   : > { %v15248_v57 = vpop.permute.xlu0 %8160 }
 0x4ed   : > { %v5974_v10 = vpop.permute.xlu1 %5973 }
 0x4ee   : > { %7148 = vrot.lane.b32.xlu0 %v16679_v27, %s10479_s22  ;;  %v6044_v44 = vadd.f32 %v16688_v54, %v5974_v10  ;;  %v16695_v10 = vld [vmem:[#allocation118_spill] sm:$0xff] }
 0x4ef   : > { %6940 = vrot.lane.b32.xlu1 %v16680_v26, %s10478_s21  ;;  %v16689_v26 = vld [vmem:[#allocation116_spill] sm:$0xff] }
 0x4f0   : > { %v6180_v49 = vpop.permute.xlu0 %6179 }
 0x4f1   : > { %v6251_v17 = vadd.f32 %v6180_v49, %v6043_v33  ;;  %v15255_v20 = vpop.permute.xlu1 %7956  ;;  %v16691_v33 = vld [vmem:[#allocation117_spill] sm:$0xff] }
 0x4f2   : > { %16682 = vst [vmem:[#allocation20_spill] sm:$0xff] %v15255_v20  ;;  %7150 = vrot.lane.b32.xlu0 %v16683_v12, %s10479_s22 }
 0x4f3   : > { %6942 = vrot.lane.b32.xlu1 %v16684_v25, %s10478_s21  ;;  %v15262_v29 = vadd.f32 %v14962_v1, %v6251_v17  ;;  %v16696_v25 = vld [vmem:[#allocation119_spill] sm:$0xff] }
 0x4f4   : > { %v15264_v39 = vpop.permute.xlu0 %8162 }
 0x4f5   : > { %16685 = vst [vmem:[#allocation66_spill] sm:$0xff] %v15264_v39  ;;  %v5976_v30 = vpop.permute.xlu1 %5975 }
 0x4f6   : > { %7152 = vrot.lane.b32.xlu0 %v16686_v62, %s10479_s22  ;;  %v16697_v62 = vld [vmem:[#allocation36_spill] sm:$0xff] }
 0x4f7   : > { %6944 = vrot.lane.b32.xlu1 %v16687_v40, %s10478_s21  ;;  %v6045_v40 = vadd.f32 %v16697_v62, %v5976_v30  ;;  %v16704_v62 = vld [vmem:[#allocation99_spill] sm:$0xff] }
 0x4f8   : > { %v6182_v18 = vpop.permute.xlu0 %6181 }
 0x4f9   : > { %v6252_v46 = vadd.f32 %v6182_v18, %v6044_v44  ;;  %v5978_v27 = vpop.permute.xlu1 %5977 }
 0x4fa   : > { %7154 = vrot.lane.b32.xlu0 %v16689_v26, %s10479_s22  ;;  %v6046_v1 = vadd.f32 %v5978_v27, %v16690_v14  ;;  %v16699_v27 = vld [vmem:[#allocation56_spill] sm:$0xff] }
 0x4fb   : > { %6946 = vrot.lane.b32.xlu1 %v16691_v33, %s10478_s21  ;;  %v15277_v49 = vadd.f32 %v14946_v59, %v6252_v46  ;;  %v16700_v59 = vld [vmem:[#allocation73_spill] sm:$0xff]  ;;  %v8429_v46 = vld [vmem:[%s16006_s9] sm:$0xff] }
 0x4fc   : > { %v15279_v17 = vpop.permute.xlu0 %8164  ;;  %10298 = vmatpush3.msra.mxu1 %v8429_v46 }
 0x4fd   : > { %16692 = vst [vmem:[#allocation79_spill] sm:$0xff] %v15277_v49  ;;  %16693 = vst [vmem:[#allocation69_spill] sm:$0xff] %v15279_v17  ;;  %v15281_v12 = vpop.permute.xlu1 %7958  ;;  %v16767_v17 = vld [vmem:[#allocation31_spill] sm:$0xff] }
 0x4fe   : > { %16694 = vst [vmem:[#allocation40_spill] sm:$0xff] %v15281_v12  ;;  %7156 = vrot.lane.b32.xlu0 %v16695_v10, %s10479_s22  ;;  %v16702_v10 = vld [vmem:[#allocation35_spill] sm:$0xff] }
 0x4ff   : > { %6948 = vrot.lane.b32.xlu1 %v16696_v25, %s10478_s21  ;;  %v16703_v25 = vmov 0.0  }
 0x500   : > { %v6184_v54 = vpop.permute.xlu0 %6183  ;;  %10302 = vmatprep.subr.mxu1 %v16703_v25  ;;  %10299 = vmatprep.mubr.msk.f32.mxu1 %vm10480_vm3, %v16703_v25  ;;  %v16773_v25 = vld [vmem:[#allocation52_spill] sm:$0xff] }
 0x501   : > { %v6253_v44 = vadd.f32 %v6184_v54, %v6045_v40  ;;  %v15288_v18 = vpop.permute.xlu1 %7960  ;;  %v16705_v54 = vld [vmem:[#allocation19_spill] sm:$0xff] }
 0x502   : > { %16698 = vst [vmem:[#allocation53_spill] sm:$0xff] %v15288_v18  ;;  %7158 = vrot.lane.b32.xlu0 %v16699_v27, %s10479_s22 }
 0x503   : > { %6950 = vrot.lane.b32.xlu1 %v16700_v59, %s10478_s21  ;;  %v15298_v26 = vadd.f32 %v14973_v7, %v6253_v44  ;;  %v16710_v44 = vld [vmem:[#allocation77_spill] sm:$0xff] }
 0x504   : > { %v6186_v14 = vpop.permute.xlu0 %6185 }
 0x505   : > { %16701 = vst [vmem:[#allocation22_spill] sm:$0xff] %v15298_v26  ;;  %v6254_v30 = vadd.f32 %v6186_v14, %v6046_v1  ;;  %v5980_v33 = vpop.permute.xlu1 %5979  ;;  %v16709_v1 = vld [vmem:[#allocation91_spill] sm:$0xff] }
 0x506   : > { %7160 = vrot.lane.b32.xlu0 %v16702_v10, %s10479_s22  ;;  %v6047_v40 = vadd.f32 %v5980_v33, %v16704_v62  ;;  %v16712_v33 = vld [vmem:[#allocation65_spill] sm:$0xff]  ;;  %v16713_v10 = vld [vmem:[#allocation64_spill] sm:$0xff] }
 0x507   : > { %6952 = vrot.lane.b32.xlu1 %v16705_v54, %s10478_s21  ;;  %v15307_v27 = vadd.f32 %v14998_v5, %v6254_v30  ;;  %v16714_v5 = vld [vmem:[#allocation123_spill] sm:$0xff] }
 0x508   : > { %v15309_v59 = vpop.permute.xlu0 %8166 }
 0x509   : > { %16706 = vst [vmem:[#allocation14_spill] sm:$0xff] %v15307_v27  ;;  %16707 = vst [vmem:[#allocation90_spill] sm:$0xff] %v15309_v59  ;;  %v15311_v7 = vpop.permute.xlu1 %7962 }
 0x50a   : > { %16708 = vst [vmem:[#allocation80_spill] sm:$0xff] %v15311_v7  ;;  %7162 = vrot.lane.b32.xlu0 %v16709_v1, %s10479_s22  ;;  %v16716_v1 = vld [vmem:[#allocation61_spill] sm:$0xff] }
 0x50b   : > { %6954 = vrot.lane.b32.xlu1 %v16710_v44, %s10478_s21  ;;  %v16717_v44 = vld [vmem:[#allocation124_spill] sm:$0xff] }
 0x50c   : > { %v15317_v46 = vpop.permute.xlu0 %8168 }
 0x50d   : > { %16711 = vst [vmem:[#allocation86_spill] sm:$0xff] %v15317_v46  ;;  %v5982_v14 = vpop.permute.xlu1 %5981 }
 0x50e   : > { %7164 = vrot.lane.b32.xlu0 %v16712_v33, %s10479_s22  ;;  %v6048_v62 = vadd.f32 %v16713_v10, %v5982_v14 }
 0x50f   : > { %6956 = vrot.lane.b32.xlu1 %v16714_v5, %s10478_s21 }
 0x510   : > { %v6188_v30 = vpop.permute.xlu0 %6187 }
 0x511   : > { %v6255_v54 = vadd.f32 %v6188_v30, %v6047_v40  ;;  %v15324_v27 = vpop.permute.xlu1 %7964  ;;  %v16721_v40 = vld [vmem:[#allocation29_spill] sm:$0xff]  ;;  %v16722_v30 = vld [vmem:[#allocation74_spill] sm:$0xff] }
 0x512   : > { %16715 = vst [vmem:[#allocation45_spill] sm:$0xff] %v15324_v27  ;;  %7166 = vrot.lane.b32.xlu0 %v16716_v1, %s10479_s22  ;;  %v16766_v27 = vld [vmem:[#allocation107_spill] sm:$0xff] }
 0x513   : > { %6958 = vrot.lane.b32.xlu1 %v16717_v44, %s10478_s21  ;;  %v15331_v46 = vadd.f32 %v15027_v43, %v6255_v54  ;;  %v16723_v43 = vld [vmem:[#allocation63_spill] sm:$0xff]  ;;  %v16724_v54 = vld [vmem:[#allocation37_spill] sm:$0xff] }
 0x514   : > { %v15333_v26 = vpop.permute.xlu0 %8170 }
 0x515   : > { %16718 = vst [vmem:[#allocation32_spill] sm:$0xff] %v15331_v46  ;;  %16719 = vst [vmem:[#allocation87_spill] sm:$0xff] %v15333_v26  ;;  %v15335_v33 = vpop.permute.xlu1 %8172  ;;  %v16726_v26 = vld [vmem:[#allocation76_spill] sm:$0xff] }
 0x516   : > { %16720 = vst [vmem:[#allocation96_spill] sm:$0xff] %v15335_v33  ;;  %7168 = vrot.lane.b32.xlu0 %v14928_v36, %s10479_s22 }
 0x517   : > { %6960 = vrot.lane.b32.xlu1 %v16721_v40, %s10478_s21  ;;  %v16727_v40 = vld [vmem:[#allocation78_spill] sm:$0xff] }
 0x518   : > { %v6190_v14 = vpop.permute.xlu0 %6189 }
 0x519   : > { %v6256_v10 = vadd.f32 %v6190_v14, %v6048_v62  ;;  %v5984_v5 = vpop.permute.xlu1 %5983  ;;  %v16728_v14 = vld [vmem:[#allocation128_spill] sm:$0xff] }
 0x51a   : > { %7170 = vrot.lane.b32.xlu0 %v14949_v22, %s10479_s22  ;;  %v6049_v1 = vadd.f32 %v16722_v30, %v5984_v5 }
 0x51b   : > { %6962 = vrot.lane.b32.xlu1 %v16723_v43, %s10478_s21  ;;  %v15347_v44 = vadd.f32 %v16724_v54, %v6256_v10  ;;  %v16731_v10 = vld [vmem:[#allocation130_spill] sm:$0xff] }
 0x51c   : > { %v6192_v46 = vpop.permute.xlu0 %6191 }
 0x51d   : > { %16725 = vst [vmem:[#allocation44_spill] sm:$0xff] %v15347_v44  ;;  %v6257_v33 = vadd.f32 %v6192_v46, %v6049_v1  ;;  %v5986_v36 = vpop.permute.xlu1 %5985  ;;  %v16732_v46 = vld [vmem:[#allocation131_spill] sm:$0xff] }
 0x51e   : > { %7172 = vrot.lane.b32.xlu0 %v16726_v26, %s10479_s22  ;;  %v6050_v62 = vadd.f32 %v5986_v36, %v16727_v40 }
 0x51f   : > { %6964 = vrot.lane.b32.xlu1 %v16728_v14, %s10478_s21  ;;  %v15355_v22 = vadd.f32 %v15037_v58, %v6257_v33  ;;  %v16736_v58 = vld [vmem:[#allocation135_spill] sm:$0xff]  ;;  %v16737_v33 = vld [vmem:[#allocation136_spill] sm:$0xff]  ;;  %v16740_v14 = vld [vmem:[#allocation62_spill] sm:$0xff] }
 0x520   : > { %v15357_v5 = vpop.permute.xlu0 %7966 }
 0x521   : > { %16729 = vst [vmem:[#allocation48_spill] sm:$0xff] %v15355_v22  ;;  %16730 = vst [vmem:[#allocation27_spill] sm:$0xff] %v15357_v5  ;;  %v6194_v30 = vpop.permute.xlu1 %6193 }
 0x522   : > { %7174 = vrot.lane.b32.xlu0 %v16731_v10, %s10479_s22  ;;  %v6258_v43 = vadd.f32 %v6194_v30, %v6050_v62  ;;  %v16739_v62 = vld [vmem:[#allocation13_spill] sm:$0xff]  ;;  %v16742_v10 = vld [vmem:[#allocation138_spill] sm:$0xff] }
 0x523   : > { %6966 = vrot.lane.b32.xlu1 %v16732_v46, %s10478_s21 }
 0x524   : > { %v15363_v1 = vpop.permute.xlu0 %7968  ;;  %v15366_v26 = vadd.f32 %v15062_v3, %v6258_v43  ;;  %v16743_v43 = vld [vmem:[#allocation75_spill] sm:$0xff] }
 0x525   : > { %16733 = vst [vmem:[#allocation16_spill] sm:$0xff] %v15363_v1  ;;  %v15368_v54 = vpop.permute.xlu1 %8174 }
 0x526   : > { %16734 = vst [vmem:[#allocation103_spill] sm:$0xff] %v15366_v26  ;;  %16735 = vst [vmem:[#allocation47_spill] sm:$0xff] %v15368_v54  ;;  %7176 = vrot.lane.b32.xlu0 %v16736_v58, %s10479_s22  ;;  %v16744_v58 = vld [vmem:[#allocation139_spill] sm:$0xff] }
 0x527   : > { %6968 = vrot.lane.b32.xlu1 %v16737_v33, %s10478_s21 }
 0x528   : > { %v7127_v36 = vpop.permute.xlu0 %7126 }
 0x529   : > { %v15374_v40 = vpop.permute.xlu1 %8176 }
 0x52a   : > { %16738 = vst [vmem:[#allocation15_spill] sm:$0xff] %v15374_v40  ;;  %7178 = vrot.lane.b32.xlu0 %v16739_v62, %s10479_s22  ;;  %v16746_v62 = vld [vmem:[#allocation9_spill] sm:$0xff] }
 0x52b   : > { %6970 = vrot.lane.b32.xlu1 %v16740_v14, %s10478_s21 }
 0x52c   : > { %v15380_v30 = vpop.permute.xlu0 %7970 }
 0x52d   : > { %16741 = vst [vmem:[#allocation28_spill] sm:$0xff] %v15380_v30  ;;  %v6919_v3 = vpop.permute.xlu1 %6918  ;;  %v16747_v30 = vld [vmem:[#allocation8_spill] sm:$0xff] }
 0x52e   : > { %7180 = vrot.lane.b32.xlu0 %v16742_v10, %s10479_s22  ;;  %v7014_v46 = vadd.f32 %v6919_v3, %v16743_v43  ;;  %v16748_v10 = vld [vmem:[#allocation30_spill] sm:$0xff] }
 0x52f   : > { %6972 = vrot.lane.b32.xlu1 %v16744_v58, %s10478_s21 }
 0x530   : > { %v7222_v33 = vadd.f32 %v7127_v36, %v7014_v46  ;;  %v15387_v22 = vpop.permute.xlu0 %8178  ;;  %v16750_v36 = vld [vmem:[#allocation141_spill] sm:$0xff] }
 0x531   : > { %16745 = vst [vmem:[#allocation97_spill] sm:$0xff] %v15387_v22  ;;  %v7129_v26 = vpop.permute.xlu1 %7128 }
 0x532   : > { %6976 = vrot.lane.b32.xlu0 %v15056_v8, %s10478_s21  ;;  %v15392_v14 = vadd.f32 %v16746_v62, %v7222_v33  ;;  %v16752_v8 = vld [vmem:[#allocation39_spill] sm:$0xff] }
 0x533   : > { %6974 = vrot.lane.b32.xlu1 %v16747_v30, %s10478_s21 }
 0x534   : > { %v6921_v44 = vpop.permute.xlu0 %6920 }
 0x535   : > { %v7015_v40 = vadd.f32 %v6921_v44, %v16748_v10  ;;  %v15397_v3 = vpop.permute.xlu1 %7972  ;;  %v16753_v44 = vld [vmem:[#allocation92_spill] sm:$0xff] }
 0x536   : > { %16749 = vst [vmem:[#allocation59_spill] sm:$0xff] %v15397_v3  ;;  %6978 = vrot.lane.b32.xlu0 %v15072_v42, %s10478_s21  ;;  %v16754_v10 = vld [vmem:[#allocation100_spill] sm:$0xff]  ;;  %v16757_v3 = vld [vmem:[#allocation81_spill] sm:$0xff] }
 0x537   : > { %7182 = vrot.lane.b32.xlu1 %v16750_v36, %s10479_s22  ;;  %v7223_v43 = vadd.f32 %v7129_v26, %v7015_v40  ;;  %v16755_v40 = vld [vmem:[#allocation49_spill] sm:$0xff] }
 0x538   : > { %v15403_v46 = vpop.permute.xlu0 %8180 }
 0x539   : > { %16751 = vst [vmem:[#allocation34_spill] sm:$0xff] %v15403_v46  ;;  %v15406_v58 = vadd.f32 %v16752_v8, %v7223_v43  ;;  %v6923_v33 = vpop.permute.xlu1 %6922  ;;  %v16756_v43 = vld [vmem:[#allocation67_spill] sm:$0xff] }
 0x53a   : > { %6980 = vrot.lane.b32.xlu0 %v15075_v45, %s10478_s21  ;;  %v7016_v30 = vadd.f32 %v6923_v33, %v16753_v44  ;;  %v16758_v33 = vld [vmem:[#allocation10_spill] sm:$0xff]  ;;  %v16759_v44 = vld [vmem:[#allocation43_spill] sm:$0xff] }
 0x53b   : > { %7184 = vrot.lane.b32.xlu1 %v15059_v28, %s10479_s22 }
 0x53c   : > { %v6925_v62 = vpop.permute.xlu0 %6924 }
 0x53d   : > { %v7131_v42 = vpop.permute.xlu1 %7130  ;;  %v7017_v36 = vadd.f32 %v6925_v62, %v16755_v40  ;;  %v16762_v62 = vld [vmem:[#allocation26_spill] sm:$0xff] }
 0x53e   : > { %7188 = vrot.lane.b32.xlu0 %v16754_v10, %s10479_s22  ;;  %v7224_v26 = vadd.f32 %v7131_v42, %v7016_v30 }
 0x53f   : > { %7186 = vrot.lane.b32.xlu1 %v15081_v0, %s10479_s22  ;;  %v16761_v0 = vld [vmem:[#allocation88_spill] sm:$0xff] }
 0x540   : > { %v7756_v8 = vadd.f32 %v16756_v43, %v7224_v26  ;;  %v6927_v46 = vpop.permute.xlu0 %6926  ;;  %v16763_v26 = vld [vmem:[#allocation41_spill] sm:$0xff] }
 0x541   : > { %v7133_v45 = vpop.permute.xlu1 %7132  ;;  %v7018_v40 = vadd.f32 %v6927_v46, %v16763_v26  ;;  %v16768_v46 = vld [vmem:[#allocation110_spill] sm:$0xff]  ;;  %v16769_v26 = vld [vmem:[#allocation83_spill] sm:$0xff] }
 0x542   : > { %8182 = vrot.lane.b32.xlu0 %v16757_v3, %s10479_s22  ;;  %v7225_v28 = vadd.f32 %v7133_v45, %v7017_v36  ;;  %v16764_v36 = vld [vmem:[#allocation70_spill] sm:$0xff] }
 0x543   : > { %7976 = vrot.lane.b32.xlu1 %v16758_v33, %s10478_s21  ;;  %v16765_v33 = vld [vmem:[#allocation72_spill] sm:$0xff] }
 0x544   : > { %v7757_v22 = vadd.f32 %v16759_v44, %v7225_v28  ;;  %v6929_v10 = vpop.permute.xlu0 %6928 }
 0x545   : > { %v15424_v30 = vpop.permute.xlu1 %7974  ;;  %v7019_v42 = vadd.f32 %v6929_v10, %v16762_v62 }
 0x546   : > { %16760 = vst [vmem:[#allocation106_spill] sm:$0xff] %v15424_v30 }
 0x547   : > { %8184 = vrot.lane.b32.xlu1 %v16761_v0, %s10479_s22 }
 0x548   : > { %v7137_v43 = vpop.permute.xlu0 %7136 }
 0x549   : > { %v7227_v1 = vadd.f32 %v7137_v43, %v7019_v42  ;;  %v7135_v54 = vpop.permute.xlu1 %7134  ;;  %v16770_v43 = vld [vmem:[#allocation121_spill] sm:$0xff] }
 0x54a   : > { %v7226_v3 = vadd.f32 %v7135_v54, %v7018_v40 }
 0x54b   : > { %v15431_v45 = vadd.f32 %v16764_v36, %v7227_v1 }
 0x54c   : > { %v7758_v5 = vadd.f32 %v16765_v33, %v7226_v3  ;;  %v7139_v28 = vpop.permute.xlu0 %7138  ;;  %v16771_v33 = vld [vmem:[#allocation12_spill] sm:$0xff] }
 0x54d   : > { %v6931_v44 = vpop.permute.xlu1 %6930 }
 0x54e   : > { %v7020_v30 = vadd.f32 %v6931_v44, %v16766_v27 }
 0x550   : > { %v7228_v59 = vadd.f32 %v7139_v28, %v7020_v30  ;;  %v7141_v7 = vpop.permute.xlu0 %7140 }
 0x551   : > { %v6933_v0 = vpop.permute.xlu1 %6932 }
 0x552   : > { %v15436_v10 = vadd.f32 %v16767_v17, %v7228_v59  ;;  %v7021_v62 = vadd.f32 %v6933_v0, %v16768_v46  ;;  %v16772_v59 = vld [vmem:[#allocation125_spill] sm:$0xff] }
 0x554   : > { %v7229_v1 = vadd.f32 %v7141_v7, %v7021_v62  ;;  %v7143_v54 = vpop.permute.xlu0 %7142  ;;  %v16774_v62 = vld [vmem:[#allocation129_spill] sm:$0xff] }
 0x555   : > { %v6935_v42 = vpop.permute.xlu1 %6934 }
 0x556   : > { %v15442_v40 = vadd.f32 %v16769_v26, %v7229_v1  ;;  %v7022_v27 = vadd.f32 %v6935_v42, %v16770_v43  ;;  %v16775_v42 = vld [vmem:[#allocation132_spill] sm:$0xff] }
 0x557   : > { %v16776_v43 = vld [vmem:[#allocation84_spill] sm:$0xff] }
 0x558   : > { %v7230_v30 = vadd.f32 %v7143_v54, %v7022_v27  ;;  %v7145_v3 = vpop.permute.xlu0 %7144 }
 0x559   : > { %v6937_v36 = vpop.permute.xlu1 %6936 }
 0x55a   : > { %v15446_v17 = vadd.f32 %v16771_v33, %v7230_v30  ;;  %v7023_v28 = vadd.f32 %v6937_v36, %v16772_v59  ;;  %v16777_v36 = vld [vmem:[#allocation51_spill] sm:$0xff]  ;;  %v16778_v59 = vld [vmem:[#allocation142_spill] sm:$0xff] }
 0x55c   : > { %v7231_v44 = vadd.f32 %v7145_v3, %v7023_v28  ;;  %v7147_v0 = vpop.permute.xlu0 %7146 }
 0x55d   : > { %v6939_v46 = vpop.permute.xlu1 %6938 }
 0x55e   : > { %v15450_v7 = vadd.f32 %v16773_v25, %v7231_v44  ;;  %v7024_v18 = vadd.f32 %v6939_v46, %v16774_v62  ;;  %v16779_v25 = vld [vmem:[#allocation105_spill] sm:$0xff] }
 0x55f   : > { %v8011_v44 = vadd.f32 %v16779_v25, %v15406_v58  ;;  %v16786_v25 = vld [vmem:[#allocation82_spill] sm:$0xff] }
 0x560   : > { %v7149_v1 = vpop.permute.xlu0 %7148  ;;  %v7232_v26 = vadd.f32 %v7147_v0, %v7024_v18  ;;  %v16780_v18 = vld [vmem:[#allocation6_spill] sm:$0xff] }
 0x561   : > { %v6941_v49 = vpop.permute.xlu1 %6940  ;;  %v8010_v0 = vadd.f32 %v16780_v18, %v15392_v14  ;;  %v16785_v14 = vld [vmem:[#allocation111_spill] sm:$0xff] }
 0x562   : > { %v7025_v54 = vadd.f32 %v6941_v49, %v16775_v42  ;;  %v15455_v27 = vadd.f32 %v16776_v43, %v7232_v26  ;;  %v16781_v42 = vld [vmem:[#allocation50_spill] sm:$0xff]  ;;  %v16788_v18 = vld [vmem:[#allocation115_spill] sm:$0xff] }
 0x564   : > { %v7233_v30 = vadd.f32 %v7149_v1, %v7025_v54  ;;  %v7151_v33 = vpop.permute.xlu0 %7150  ;;  %v16782_v54 = vld [vmem:[#allocation24_spill] sm:$0xff] }
 0x565   : > { %v6943_v12 = vpop.permute.xlu1 %6942  ;;  %v8219_v43 = vadd.f32 %v16782_v54, %v8011_v44 }
 0x566   : > { %v15458_v3 = vadd.f32 %v16777_v36, %v7233_v30  ;;  %v7026_v28 = vadd.f32 %v6943_v12, %v16778_v59  ;;  %v16783_v30 = vld [vmem:[#allocation71_spill] sm:$0xff]  ;;  %v16784_v59 = vld [vmem:[#allocation102_spill] sm:$0xff] }
 0x567   : > { %v8012_v36 = vadd.f32 %v16783_v30, %v7756_v8  ;;  %v8218_v20 = vadd.f32 %v16784_v59, %v8010_v0  ;;  %v16787_v8 = vld [vmem:[#allocation109_spill] sm:$0xff] }
 0x568   : > { %v7234_v46 = vadd.f32 %v7151_v33, %v7026_v28  ;;  %v7153_v62 = vpop.permute.xlu0 %7152  ;;  %v15475_v33 = vld [vmem:[%s16004_s7] ss:$0 sm:$0xff]  ;;  %v8013_v28 = vadd.f32 %v16785_v14, %v7757_v22 }
 0x569   : > { %v6945_v49 = vpop.permute.xlu1 %6944  ;;  %v8257_v44 = vmul.f32 %v15475_v33, %v8219_v43  ;;  %v15489_v22 = vld [vmem:[%s16005_s8] ss:$0 sm:$0xff] }
 0x56a   : > { %v15466_v26 = vadd.f32 %v16781_v42, %v7234_v46  ;;  %v7027_v1 = vadd.f32 %v6945_v49, %v15086_v21  ;;  %v8014_v49 = vadd.f32 %v16788_v18, %v7758_v5  ;;  %v8256_v42 = vmul.f32 %v15475_v33, %v8218_v20  ;;  %v16791_v20 = vld [vmem:[#allocation122_spill] sm:$0xff] }
 0x56b   : > { %v15494_v43 = vadd.f32 %v15489_v22, %v8257_v44 }
 0x56c   : > { %v7235_v39 = vadd.f32 %v7153_v62, %v7027_v1  ;;  %v7155_v12 = vpop.permute.xlu0 %7154  ;;  %v8220_v62 = vadd.f32 %v16787_v8, %v8012_v36  ;;  %v16790_v36 = vld [vmem:[#allocation11_spill] sm:$0xff] }
 0x56d   : > { %v6947_v58 = vpop.permute.xlu1 %6946 }
 0x56e   : > { %v15479_v46 = vadd.f32 %v16786_v25, %v7235_v39  ;;  %v7028_v21 = vadd.f32 %v6947_v58, %v15103_v4  ;;  %v16789_v39 = vld [vmem:[#allocation114_spill] sm:$0xff]  ;;  %v8258_v5 = vmul.f32 %v15475_v33, %v8220_v62  ;;  %v15502_v25 = vadd.f32 %v15489_v22, %v8256_v42 }
 0x56f   : > { %v8221_v30 = vadd.f32 %v16789_v39, %v8013_v28 }
 0x570   : > { %v7157_v0 = vpop.permute.xlu0 %7156  ;;  %v7236_v1 = vadd.f32 %v7155_v12, %v7028_v21  ;;  %v8222_v12 = vadd.f32 %v16791_v20, %v8014_v49  ;;  %v16792_v21 = vld [vmem:[#allocation120_spill] sm:$0xff]  ;;  %v16152_v49 = vmax.f32 %v15494_v43, 0.0 }
 0x571   : > { %v6949_v54 = vpop.permute.xlu1 %6948  ;;  %v8015_v28 = vadd.f32 %v16792_v21, %v15431_v45  ;;  %v8259_v18 = vmul.f32 %v15475_v33, %v8221_v30  ;;  %v16795_v45 = vld [vmem:[#allocation46_spill] sm:$0xff] }
 0x572   : > { %v7029_v4 = vadd.f32 %v6949_v54, %v15110_v52  ;;  %v15497_v59 = vadd.f32 %v16790_v36, %v7236_v1  ;;  %v16793_v52 = vld [vmem:[#allocation127_spill] sm:$0xff]  ;;  %v16794_v1 = vld [vmem:[#allocation85_spill] sm:$0xff]  ;;  %v8260_v42 = vmul.f32 %v15475_v33, %v8222_v12  ;;  %v8017_v39 = vadd.f32 %v16795_v45, %v15442_v40  ;;  %v16796_v30 = vld [vmem:[#allocation126_spill] sm:$0xff] }
 0x573   : > { %v8016_v8 = vadd.f32 %v16793_v52, %v15436_v10  ;;  %v16153_v36 = vmax.f32 %v15502_v25, 0.0  ;;  %v8223_v20 = vadd.f32 %v16796_v30, %v8015_v28  ;;  %v16803_v28 = vld [vmem:[#allocation57_spill] sm:$0xff] }
 0x574   : > { %v7237_v58 = vadd.f32 %v7157_v0, %v7029_v4  ;;  %v7159_v14 = vpop.permute.xlu0 %7158  ;;  %v15515_v0 = vadd.f32 %v15489_v22, %v8258_v5  ;;  %v15526_v5 = vadd.f32 %v15489_v22, %v8259_v18 }
 0x575   : > { %v6951_v44 = vpop.permute.xlu1 %6950  ;;  %v8358_v18 = vsel %vm407_vm0, %v16153_v36, 0.0 }
 0x576   : > { %v15510_v54 = vadd.f32 %v16794_v1, %v7237_v58  ;;  %v7030_v62 = vadd.f32 %v6951_v44, %v15134_v16  ;;  %v16797_v58 = vld [vmem:[#allocation133_spill] sm:$0xff]  ;;  %v16798_v16 = vld [vmem:[#allocation134_spill] sm:$0xff]  ;;  %v16799_v1 = vld [vmem:[#allocation55_spill] sm:$0xff] }
 0x577   : > { %v8224_v21 = vadd.f32 %v16797_v58, %v8016_v8  ;;  %v8018_v52 = vadd.f32 %v16798_v16, %v15446_v17  ;;  %v15537_v8 = vadd.f32 %v15489_v22, %v8260_v42  ;;  %v16801_v58 = vld [vmem:[#allocation143_spill] sm:$0xff]  ;;  %v16802_v42 = vld [vmem:[#allocation140_spill] sm:$0xff] }
 0x578   : > { %v7238_v4 = vadd.f32 %v7159_v14, %v7030_v62  ;;  %v7161_v10 = vpop.permute.xlu0 %7160  ;;  %v8359_v14 = vsel %vm407_vm0, %v16152_v49, 0.0  ;;  %v16800_v62 = vld [vmem:[#allocation137_spill] sm:$0xff]  ;;  %v8019_v49 = vadd.f32 %v16802_v42, %v15450_v7 }
 0x579   : > { %v6953_v44 = vpop.permute.xlu1 %6952  ;;  %v8225_v17 = vadd.f32 %v16800_v62, %v8017_v39  ;;  %v8226_v16 = vadd.f32 %v16801_v58, %v8018_v52  ;;  %v16804_v62 = vmax.f32 %v15515_v0, 0.0  ;;  %v16805_v58 = vld [vmem:[#allocation89_spill] sm:$0xff] }
 0x57a   : > { %v15529_v12 = vadd.f32 %v16799_v1, %v7238_v4  ;;  %v7031_v40 = vadd.f32 %v6953_v44, %v15148_v61  ;;  %v8261_v4 = vmul.f32 %v15475_v33, %v8223_v20  ;;  %v8262_v61 = vmul.f32 %v15475_v33, %v8224_v21  ;;  %v16807_v42 = vld [vmem:[#allocation21_spill] sm:$0xff] }
 0x57b   : > { %v8361_v20 = vsel %vm407_vm0, %v16804_v62, 0.0  ;;  %v8263_v52 = vmul.f32 %v15475_v33, %v8225_v17  ;;  %v8020_v36 = vadd.f32 %v16805_v58, %v15455_v27  ;;  %v8227_v17 = vadd.f32 %v16807_v42, %v8019_v49  ;;  %v16808_v58 = vld [vmem:[#allocation25_spill] sm:$0xff] }
 0x57c   : > { %v7239_v45 = vadd.f32 %v7161_v10, %v7031_v40  ;;  %v7163_v30 = vpop.permute.xlu0 %7162  ;;  %v8360_v40 = vadd.f32 %v8359_v14, %v8358_v18  ;;  %v15561_v7 = vadd.f32 %v15489_v22, %v8261_v4  ;;  %v16806_v18 = vmax.f32 %v15526_v5, 0.0 }
 0x57d   : > { %v6955_v44 = vpop.permute.xlu1 %6954  ;;  %v8021_v27 = vadd.f32 %v15095_v47, %v15458_v3  ;;  %v8228_v49 = vadd.f32 %v15112_v11, %v8020_v36 }
 0x57e   : > { %v15550_v39 = vadd.f32 %v16803_v28, %v7239_v45  ;;  %v7032_v10 = vadd.f32 %v6955_v44, %v15167_v56  ;;  %v15564_v28 = vadd.f32 %v15489_v22, %v8262_v61  ;;  %v8264_v56 = vmul.f32 %v15475_v33, %v8226_v16 }
 0x57f   : > { %v8363_v44 = vsel %vm407_vm0, %v16806_v18, 0.0  ;;  %v8362_v4 = vadd.f32 %v8361_v20, %v8360_v40  ;;  %v8022_v61 = vadd.f32 %v15114_v9, %v15466_v26  ;;  %v8265_v40 = vmul.f32 %v15475_v33, %v8227_v17 }
 0x580   : > { %v7165_v1 = vpop.permute.xlu0 %7164  ;;  %v7240_v14 = vadd.f32 %v7163_v30, %v7032_v10  ;;  %v16809_v30 = vmax.f32 %v15537_v8, 0.0  ;;  %v15581_v10 = vadd.f32 %v15489_v22, %v8263_v52  ;;  %v8332_v3 = vmax.f32 %v15564_v28, 0.0 }
 0x581   : > { %v6957_v45 = vpop.permute.xlu1 %6956  ;;  %v8364_v47 = vadd.f32 %v8363_v44, %v8362_v4  ;;  %v15587_v9 = vadd.f32 %v15489_v22, %v8264_v56  ;;  %v8229_v20 = vadd.f32 %v15120_v63, %v8021_v27  ;;  %v8230_v36 = vadd.f32 %v15136_v24, %v8022_v61  ;;  %v16811_v61 = vld [vmem:[#allocation60_spill] sm:$0xff] }
 0x582   : > { %v7033_v62 = vadd.f32 %v6957_v45, %v15174_v15  ;;  %v7772_v21 = vadd.f32 %v16808_v58, %v7240_v14  ;;  %v8365_v16 = vsel %vm407_vm0, %v16809_v30, 0.0  ;;  %v8331_v15 = vmax.f32 %v15561_v7, 0.0  ;;  %v16810_v14 = vld [vmem:[#allocation17_spill] sm:$0xff] }
 0x583   : > { %v8366_v11 = vadd.f32 %v8365_v16, %v8364_v47  ;;  %v8333_v44 = vmax.f32 %v15581_v10, 0.0  ;;  %v8266_v56 = vmul.f32 %v15475_v33, %v8228_v49  ;;  %v8334_v17 = vmax.f32 %v15587_v9, 0.0 }
 0x584   : > { %v7241_v18 = vadd.f32 %v7165_v1, %v7033_v62  ;;  %v7167_v42 = vpop.permute.xlu0 %7166  ;;  %v8023_v1 = vadd.f32 %v15127_v48, %v15479_v46  ;;  %v8367_v63 = vsel %vm407_vm0, %v8331_v15, 0.0  ;;  %v8024_v24 = vadd.f32 %v15152_v60, %v15497_v59 }
 0x585   : > { %v6959_v26 = vpop.permute.xlu1 %6958  ;;  %v15608_v46 = vadd.f32 %v15489_v22, %v8265_v40  ;;  %v8267_v27 = vmul.f32 %v15475_v33, %v8229_v20  ;;  %v8368_v16 = vadd.f32 %v8367_v63, %v8366_v11  ;;  %v8268_v49 = vmul.f32 %v15475_v33, %v8230_v36 }
 0x586   : > { %v7773_v52 = vadd.f32 %v16810_v14, %v7241_v18  ;;  %v7034_v45 = vadd.f32 %v6959_v26, %v15198_v51  ;;  %v8369_v51 = vsel %vm407_vm0, %v8332_v3, 0.0  ;;  %v8231_v18 = vadd.f32 %v15150_v38, %v8023_v1 }
 0x587   : > { %v8371_v60 = vsel %vm407_vm0, %v8333_v44, 0.0  ;;  %v15621_v59 = vadd.f32 %v15489_v22, %v8266_v56  ;;  %v8370_v40 = vadd.f32 %v8369_v51, %v8368_v16  ;;  %v8232_v20 = vadd.f32 %v15176_v2, %v8024_v24 }
 0x588   : > { %v7242_v62 = vadd.f32 %v7167_v42, %v7034_v45  ;;  %v7169_v4 = vpop.permute.xlu0 %7168  ;;  %v8025_v42 = vadd.f32 %v15159_v34, %v15510_v54  ;;  %v8026_v38 = vadd.f32 %v15178_v23, %v15529_v12  ;;  %v8335_v54 = vmax.f32 %v15608_v46, 0.0  ;;  %v16812_v45 = vld [vmem:[#allocation58_spill] sm:$0xff] }
 0x589   : > { %v6961_v48 = vpop.permute.xlu1 %6960  ;;  %v15631_v14 = vadd.f32 %v15489_v22, %v8267_v27  ;;  %v8372_v1 = vadd.f32 %v8371_v60, %v8370_v40  ;;  %v15636_v56 = vadd.f32 %v15489_v22, %v8268_v49  ;;  %v8336_v23 = vmax.f32 %v15621_v59, 0.0 }
 0x58a   : > { %v7774_v58 = vadd.f32 %v16811_v61, %v7242_v62  ;;  %v7035_v30 = vadd.f32 %v6961_v48, %v15212_v41  ;;  %v8373_v41 = vsel %vm407_vm0, %v8334_v17, 0.0  ;;  %v8269_v62 = vmul.f32 %v15475_v33, %v8231_v18 }
 0x58b   : > { %v8233_v2 = vadd.f32 %v15184_v53, %v8025_v42  ;;  %v8027_v12 = vadd.f32 %v15191_v6, %v15550_v39  ;;  %v8374_v63 = vadd.f32 %v8373_v41, %v8372_v1  ;;  %v8270_v51 = vmul.f32 %v15475_v33, %v8232_v20 }
 0x58c   : > { %v7243_v47 = vadd.f32 %v7169_v4, %v7035_v30  ;;  %v7171_v26 = vpop.permute.xlu0 %7170  ;;  %v8234_v24 = vadd.f32 %v15200_v31, %v8026_v38  ;;  %v8375_v27 = vsel %vm407_vm0, %v8335_v54, 0.0  ;;  %v8337_v61 = vmax.f32 %v15631_v14, 0.0  ;;  %v16813_v31 = vld [vmem:[#allocation93_spill] sm:$0xff] }
 0x58d   : > { %v6963_v34 = vpop.permute.xlu1 %6962  ;;  %v8028_v53 = vadd.f32 %v15216_v32, %v7772_v21  ;;  %v8338_v6 = vmax.f32 %v15636_v56, 0.0  ;;  %v15653_v39 = vadd.f32 %v15489_v22, %v8269_v62  ;;  %v8271_v16 = vmul.f32 %v15475_v33, %v8233_v2  ;;  %v16815_v62 = vld [vmem:[#allocation20_spill] sm:$0xff] }
 0x58e   : > { %v7775_v11 = vadd.f32 %v16812_v45, %v7243_v47  ;;  %v7036_v36 = vadd.f32 %v6963_v34, %v15231_v55  ;;  %v8377_v18 = vsel %vm407_vm0, %v8336_v23, 0.0  ;;  %v8235_v42 = vadd.f32 %v15214_v13, %v8027_v12  ;;  %v16814_v13 = vld [vmem:[#allocation5_spill] sm:$0xff] }
 0x58f   : > { %v8029_v60 = vadd.f32 %v15223_v35, %v7773_v52  ;;  %v15663_v47 = vadd.f32 %v15489_v22, %v8270_v51  ;;  %v8030_v40 = vadd.f32 %v15242_v19, %v7774_v58  ;;  %v8379_v20 = vsel %vm407_vm0, %v8337_v61, 0.0  ;;  %v16816_v51 = vld [vmem:[#allocation66_spill] sm:$0xff] }
 0x590   : > { %v7173_v4 = vpop.permute.xlu0 %7172  ;;  %v7244_v55 = vadd.f32 %v7171_v26, %v7036_v36  ;;  %v8272_v26 = vmul.f32 %v15475_v33, %v8234_v24  ;;  %v8236_v38 = vadd.f32 %v15240_v50, %v8028_v53  ;;  %v8381_v45 = vsel %vm407_vm0, %v8338_v6, 0.0 }
 0x591   : > { %v6965_v48 = vpop.permute.xlu1 %6964  ;;  %v8339_v36 = vmax.f32 %v15653_v39, 0.0  ;;  %v15678_v19 = vadd.f32 %v15489_v22, %v8271_v16  ;;  %v8273_v58 = vmul.f32 %v15475_v33, %v8235_v42  ;;  %v8237_v1 = vadd.f32 %v15248_v57, %v8029_v60  ;;  %v16819_v57 = vld [vmem:[#allocation79_spill] sm:$0xff]  ;;  %v16820_v60 = vld [vmem:[#allocation53_spill] sm:$0xff] }
 0x592   : > { %v7037_v30 = vadd.f32 %v6965_v48, %v15238_v37  ;;  %v7776_v49 = vadd.f32 %v16813_v31, %v7244_v55  ;;  %v8376_v37 = vadd.f32 %v8375_v27, %v8374_v63  ;;  %v8031_v50 = vadd.f32 %v16815_v62, %v7775_v11  ;;  %v16817_v27 = vld [vmem:[#allocation40_spill] sm:$0xff]  ;;  %v16824_v62 = vld [vmem:[#allocation38_spill] sm:$0xff] }
 0x593   : > { %v15685_v63 = vadd.f32 %v15489_v22, %v8272_v26  ;;  %v8238_v24 = vadd.f32 %v16816_v51, %v8030_v40  ;;  %v8274_v48 = vmul.f32 %v15475_v33, %v8236_v38  ;;  %v16161_v42 = vmax.f32 %v15678_v19, 0.0  ;;  %v16821_v26 = vld [vmem:[#allocation69_spill] sm:$0xff] }
 0x594   : > { %v7245_v32 = vadd.f32 %v7173_v4, %v7037_v30  ;;  %v7175_v21 = vpop.permute.xlu0 %7174  ;;  %v8378_v52 = vadd.f32 %v8377_v18, %v8376_v37  ;;  %v8032_v53 = vadd.f32 %v16817_v27, %v7776_v49  ;;  %v16818_v30 = vld [vmem:[#allocation101_spill] sm:$0xff]  ;;  %v8383_v18 = vsel %vm407_vm0, %v8339_v36, 0.0 }
 0x595   : > { %v6967_v41 = vpop.permute.xlu1 %6966  ;;  %v8275_v37 = vmul.f32 %v15475_v33, %v8237_v1  ;;  %v8239_v49 = vadd.f32 %v16821_v26, %v8031_v50  ;;  %v16158_v38 = vmax.f32 %v15685_v63, 0.0  ;;  %v8387_v51 = vsel %vm407_vm0, %v16161_v42, 0.0  ;;  %v16844_v42 = vld [vmem:[#allocation95_spill] sm:$0xff] }
 0x596   : > { %v7777_v34 = vadd.f32 %v16814_v13, %v7245_v32  ;;  %v7038_v35 = vadd.f32 %v6967_v41, %v15262_v29  ;;  %v8380_v4 = vadd.f32 %v8379_v20, %v8378_v52  ;;  %v16162_v29 = vmax.f32 %v15663_v47, 0.0 }
 0x597   : > { %v8276_v13 = vmul.f32 %v15475_v33, %v8238_v24  ;;  %v16857_v9 = vmax.f32 %v15678_v19, 0.0 }
 0x598   : > { %v7246_v2 = vadd.f32 %v7175_v21, %v7038_v35  ;;  %v7177_v12 = vpop.permute.xlu0 %7176  ;;  %v8382_v11 = vadd.f32 %v8381_v45, %v8380_v4  ;;  %v8033_v32 = vadd.f32 %v16820_v60, %v7777_v34  ;;  %v15698_v21 = vadd.f32 %v15489_v22, %v8273_v58  ;;  %v16822_v35 = vld [vmem:[#allocation80_spill] sm:$0xff]  ;;  %v16823_v58 = vld [vmem:[#allocation90_spill] sm:$0xff] }
 0x599   : > { %v6969_v55 = vpop.permute.xlu1 %6968  ;;  %v8385_v20 = vsel %vm407_vm0, %v16162_v29, 0.0  ;;  %v15709_v45 = vadd.f32 %v15489_v22, %v8274_v48  ;;  %v8240_v1 = vadd.f32 %v16823_v58, %v8032_v53  ;;  %v8277_v48 = vmul.f32 %v15475_v33, %v8239_v49  ;;  %v16829_v49 = vld [vmem:[#allocation14_spill] sm:$0xff] }
 0x59a   : > { %v7778_v16 = vadd.f32 %v16818_v30, %v7246_v2  ;;  %v7039_v31 = vadd.f32 %v6969_v55, %v16819_v57  ;;  %v16825_v2 = vld [vmem:[#allocation22_spill] sm:$0xff]  ;;  %v8384_v4 = vadd.f32 %v8383_v18, %v8382_v11  ;;  %v16157_v24 = vmax.f32 %v15698_v21, 0.0  ;;  %v16828_v11 = vld [vmem:[#allocation87_spill] sm:$0xff] }
 0x59b   : > { %v16826_v55 = vld [vmem:[#allocation86_spill] sm:$0xff]  ;;  %v15720_v30 = vadd.f32 %v15489_v22, %v8275_v37  ;;  %v15725_v60 = vadd.f32 %v15489_v22, %v8276_v13  ;;  %v16154_v37 = vmax.f32 %v15709_v45, 0.0  ;;  %v16859_v59 = vmax.f32 %v15698_v21, 0.0 }
 0x59c   : > { %v7247_v40 = vadd.f32 %v7177_v12, %v7039_v31  ;;  %v7179_v41 = vpop.permute.xlu0 %7178  ;;  %v8034_v52 = vadd.f32 %v16822_v35, %v7778_v16  ;;  %v8241_v27 = vadd.f32 %v16826_v55, %v8033_v32  ;;  %v16827_v16 = vld [vmem:[#allocation45_spill] sm:$0xff]  ;;  %v8386_v31 = vadd.f32 %v8385_v20, %v8384_v4 }
 0x59d   : > { %v6971_v34 = vpop.permute.xlu1 %6970  ;;  %v8389_v32 = vsel %vm407_vm0, %v16158_v38, 0.0  ;;  %v8278_v35 = vmul.f32 %v15475_v33, %v8240_v1  ;;  %v16860_v14 = vmax.f32 %v15709_v45, 0.0 }
 0x59e   : > { %v7779_v50 = vadd.f32 %v16824_v62, %v7247_v40  ;;  %v7040_v12 = vadd.f32 %v6971_v34, %v16825_v2  ;;  %v8242_v18 = vadd.f32 %v16828_v11, %v8034_v52  ;;  %v8388_v58 = vadd.f32 %v8387_v51, %v8386_v31  ;;  %v16830_v62 = vld [vmem:[#allocation96_spill] sm:$0xff] }
 0x59f   : > { %v8279_v20 = vmul.f32 %v15475_v33, %v8241_v27  ;;  %v16155_v52 = vmax.f32 %v15720_v30, 0.0  ;;  %v16156_v51 = vmax.f32 %v15725_v60, 0.0  ;;  %v8393_v11 = vsel %vm407_vm0, %v16154_v37, 0.0 }
 0x5a0   : > { %v8035_v53 = vadd.f32 %v16827_v16, %v7779_v50  ;;  %v7181_v57 = vpop.permute.xlu0 %7180  ;;  %v7248_v26 = vadd.f32 %v7179_v41, %v7040_v12  ;;  %v16831_v50 = vld [vmem:[#allocation7_spill] sm:$0xff]  ;;  %v8391_v41 = vsel %vm407_vm0, %v16157_v24, 0.0  ;;  %v15742_v12 = vadd.f32 %v15489_v22, %v8277_v48 }
 0x5a1   : > { %v6973_v40 = vpop.permute.xlu1 %6972  ;;  %v8390_v55 = vadd.f32 %v8389_v32, %v8388_v58  ;;  %v8280_v27 = vmul.f32 %v15475_v33, %v8242_v18  ;;  %v16832_v16 = vld [vmem:[#allocation27_spill] sm:$0xff]  ;;  %v8395_v58 = vsel %vm407_vm0, %v16155_v52, 0.0 }
 0x5a2   : > { %v7041_v34 = vadd.f32 %v6973_v40, %v16829_v49  ;;  %v8243_v13 = vadd.f32 %v16830_v62, %v8035_v53  ;;  %v7780_v2 = vadd.f32 %v16831_v50, %v7248_v26  ;;  %v15751_v26 = vadd.f32 %v15489_v22, %v8278_v35  ;;  %v16833_v40 = vld [vmem:[#allocation42_spill] sm:$0xff]  ;;  %v16835_v50 = vld [vmem:[#allocation16_spill] sm:$0xff] }
 0x5a3   : > { %v8392_v49 = vadd.f32 %v8391_v41, %v8390_v55  ;;  %v16160_v62 = vmax.f32 %v15742_v12, 0.0  ;;  %v16836_v35 = vld [vmem:[#allocation32_spill] sm:$0xff] }
 0x5a4   : > { %v7249_v4 = vadd.f32 %v7181_v57, %v7041_v34  ;;  %v6977_v1 = vpop.permute.xlu0 %6976  ;;  %v8036_v53 = vadd.f32 %v16832_v16, %v7780_v2  ;;  %v15755_v57 = vadd.f32 %v15489_v22, %v8279_v20  ;;  %v8281_v32 = vmul.f32 %v15475_v33, %v8243_v13  ;;  %v16834_v34 = vld [vmem:[#allocation47_spill] sm:$0xff] }
 0x5a5   : > { %v6975_v31 = vpop.permute.xlu1 %6974  ;;  %v8397_v20 = vsel %vm407_vm0, %v16156_v51, 0.0  ;;  %v15769_v13 = vadd.f32 %v15489_v22, %v8280_v27  ;;  %v16159_v55 = vmax.f32 %v15751_v26, 0.0  ;;  %v16839_v51 = vld [vmem:[#allocation98_spill] sm:$0xff]  ;;  %v16864_v19 = vmax.f32 %v15751_v26, 0.0 }
 0x5a6   : > { %v7781_v48 = vadd.f32 %v16833_v40, %v7249_v4  ;;  %v8244_v18 = vadd.f32 %v16834_v34, %v8036_v53  ;;  %v7042_v16 = vadd.f32 %v6975_v31, %v16836_v35  ;;  %v8394_v4 = vadd.f32 %v8393_v11, %v8392_v49  ;;  %v16837_v40 = vld [vmem:[#allocation15_spill] sm:$0xff] }
 0x5a7   : > { %v16163_v31 = vmax.f32 %v15755_v57, 0.0  ;;  %v15776_v11 = vadd.f32 %v15489_v22, %v8281_v32  ;;  %v8399_v49 = vsel %vm407_vm0, %v16160_v62, 0.0  ;;  %v8401_v32 = vsel %vm407_vm0, %v16159_v55, 0.0  ;;  %v16843_v62 = vld [vmem:[#allocation97_spill] sm:$0xff] }
 0x5a8   : > { %v8037_v2 = vadd.f32 %v16835_v50, %v7781_v48  ;;  %v6979_v37 = vpop.permute.xlu0 %6978  ;;  %v8282_v53 = vmul.f32 %v15475_v33, %v8244_v18  ;;  %v8396_v48 = vadd.f32 %v8395_v58, %v8394_v4  ;;  %v16838_v50 = vld [vmem:[#allocation44_spill] sm:$0xff]  ;;  %v16865_v21 = vmax.f32 %v15755_v57, 0.0 }
 0x5a9   : > { %v7183_v41 = vpop.permute.xlu1 %7182  ;;  %v7043_v35 = vadd.f32 %v6977_v1, %v16838_v50  ;;  %v16840_v4 = vld [vmem:[#allocation28_spill] sm:$0xff]  ;;  %v8351_v1 = vmax.f32 %v15776_v11, 0.0 }
 0x5aa   : > { %v8245_v34 = vadd.f32 %v16837_v40, %v8037_v2  ;;  %v7250_v52 = vadd.f32 %v7183_v41, %v7042_v16  ;;  %v8398_v38 = vadd.f32 %v8397_v20, %v8396_v48  ;;  %v16164_v2 = vmax.f32 %v15769_v13, 0.0  ;;  %v16842_v50 = vld [vmem:[#allocation48_spill] sm:$0xff] }
 0x5ab   : > { %v15789_v16 = vadd.f32 %v15489_v22, %v8282_v53  ;;  %v7044_v55 = vadd.f32 %v6979_v37, %v16842_v50  ;;  %v16848_v50 = vld [vmem:[#allocation104_spill] sm:$0xff] }
 0x5ac   : > { %v8283_v27 = vmul.f32 %v15475_v33, %v8245_v34  ;;  %v7782_v24 = vadd.f32 %v16839_v51, %v7250_v52  ;;  %v6981_v18 = vpop.permute.xlu0 %6980  ;;  %v8400_v34 = vadd.f32 %v8399_v49, %v8398_v38  ;;  %v8403_v52 = vsel %vm407_vm0, %v16163_v31, 0.0  ;;  %v16841_v51 = vld [vmem:[#allocation103_spill] sm:$0xff] }
 0x5ad   : > { %v7185_v58 = vpop.permute.xlu1 %7184  ;;  %v7045_v20 = vadd.f32 %v6981_v18, %v16841_v51  ;;  %v8405_v38 = vsel %vm407_vm0, %v16164_v2, 0.0 }
 0x5ae   : > { %v8038_v41 = vadd.f32 %v16840_v4, %v7782_v24  ;;  %v7251_v40 = vadd.f32 %v7185_v58, %v7043_v35  ;;  %v15798_v48 = vadd.f32 %v15489_v22, %v8283_v27  ;;  %v8402_v35 = vadd.f32 %v8401_v32, %v8400_v34  ;;  %v16845_v27 = vld [vmem:[#allocation59_spill] sm:$0xff]  ;;  %v16847_v34 = vld [vmem:[#allocation34_spill] sm:$0xff] }
 0x5af   : > { %v8352_v4 = vmax.f32 %v15789_v16, 0.0 }
 0x5b0   : > { %v8246_v53 = vadd.f32 %v16843_v62, %v8038_v41  ;;  %v7783_v29 = vadd.f32 %v16844_v42, %v7251_v40  ;;  %v7189_v24 = vpop.permute.xlu0 %7188  ;;  %v8404_v37 = vadd.f32 %v8403_v52, %v8402_v35  ;;  %v8407_v42 = vsel %vm407_vm0, %v8351_v1, 0.0  ;;  %v16846_v62 = vld [vmem:[#allocation23_spill] sm:$0xff]  ;;  %v16849_v35 = vld [vmem:[#allocation106_spill] sm:$0xff] }
 0x5b1   : > { %v7253_v49 = vadd.f32 %v7189_v24, %v7045_v20  ;;  %v7187_v58 = vpop.permute.xlu1 %7186  ;;  %v8353_v41 = vmax.f32 %v15798_v48, 0.0 }
 0x5b2   : > { %v8284_v18 = vmul.f32 %v15475_v33, %v8246_v53  ;;  %v8039_v51 = vadd.f32 %v16845_v27, %v7783_v29  ;;  %v7252_v31 = vadd.f32 %v7187_v58, %v7044_v55  ;;  %v8406_v53 = vadd.f32 %v8405_v38, %v8404_v37 }
 0x5b3   : > { %v7785_v32 = vadd.f32 %v16846_v62, %v7253_v49  ;;  %v8409_v29 = vsel %vm407_vm0, %v8352_v4, 0.0 }
 0x5b4   : > { %v15815_v40 = vadd.f32 %v15489_v22, %v8284_v18  ;;  %v8247_v20 = vadd.f32 %v16847_v34, %v8039_v51  ;;  %v7784_v24 = vadd.f32 %v16848_v50, %v7252_v31  ;;  %v8408_v58 = vadd.f32 %v8407_v42, %v8406_v53  ;;  %v8183_v27 = vpop.permute.xlu0 %8182 }
 0x5b5   : > { %v7977_v2 = vpop.permute.xlu1 %7976  ;;  %v8411_v31 = vsel %vm407_vm0, %v8353_v41, 0.0 }
 0x5b6   : > { %v8354_v55 = vmax.f32 %v15815_v40, 0.0  ;;  %v8285_v52 = vmul.f32 %v15475_v33, %v8247_v20  ;;  %v8040_v49 = vadd.f32 %v16849_v35, %v7784_v24  ;;  %v8041_v51 = vadd.f32 %v7977_v2, %v7785_v32 }
 0x5b7   : > { %v8410_v37 = vadd.f32 %v8409_v29, %v8408_v58 }
 0x5b8   : > { %v15826_v18 = vadd.f32 %v15489_v22, %v8285_v52  ;;  %v8248_v38 = vadd.f32 %v8183_v27, %v8040_v49  ;;  %v8413_v20 = vsel %vm407_vm0, %v8354_v55, 0.0 }
 0x5b9   : > { %v8185_v62 = vpop.permute.xlu1 %8184  ;;  %v8412_v24 = vadd.f32 %v8411_v31, %v8410_v37 }
 0x5ba   : > { %v8355_v34 = vmax.f32 %v15826_v18, 0.0  ;;  %v8286_v42 = vmul.f32 %v15475_v33, %v8248_v38  ;;  %v8249_v50 = vadd.f32 %v8185_v62, %v8041_v51 }
 0x5bb   : > { %v8414_v32 = vadd.f32 %v8413_v20, %v8412_v24  ;;  %v8504_v24 = vld [vmem:[%s16007_s10] sm:$0x3] }
 0x5bc   : > { %v8415_v53 = vsel %vm407_vm0, %v8355_v34, 0.0  ;;  %v15840_v52 = vadd.f32 %v15489_v22, %v8286_v42  ;;  %v8287_v2 = vmul.f32 %v15475_v33, %v8249_v50 }
 0x5bd   : > { %v8416_v49 = vadd.f32 %v8415_v53, %v8414_v32  ;;  %v16850_v53 = vmov 0.0  }
 0x5be   : > { %v8356_v29 = vmax.f32 %v15840_v52, 0.0  ;;  %v15845_v35 = vadd.f32 %v15489_v22, %v8287_v2 }
 0x5c0   : > { %v8417_v58 = vsel %vm407_vm0, %v8356_v29, 0.0  ;;  %v8357_v27 = vmax.f32 %v15845_v35, 0.0 }
 0x5c1   : > { %v8418_v31 = vadd.f32 %v8417_v58, %v8416_v49 }
 0x5c2   : > { %v8419_v38 = vsel %vm407_vm0, %v8357_v27, 0.0 }
 0x5c3   : > { %v8420_v51 = vadd.f32 %v8419_v38, %v8418_v31 }
 0x5c5   : > { %v8421_v33 = vrot.slane %v8420_v51, 4 }
 0x5c7   : > { %v8422_v37 = vadd.f32 %v8421_v33, %v8420_v51 }
 0x5c9   : > { %v8423_v62 = vrot.slane %v8422_v37, 2 }
 0x5cb   : > { %v8424_v20 = vadd.f32 %v8423_v62, %v8422_v37  ;;  %v8589_v37 = vlaneseq }
 0x5cd   : > { %v8425_v42 = vrot.slane %v8424_v20, 1  ;;  %v8590_v62 = vshrl.u32 %v8589_v37, 7 }
 0x5cf   : > { %v8426_v22 = vadd.f32 %v8425_v42, %v8424_v20  ;;  %v8591_v20 = vsub.s32 0, %v8590_v62 }
 0x5d1   : > { %v8428_v50 = vmul.f32 0.00390625, %v8426_v22 }
 0x5d3   : > { %10300 = vmatmul.mubr.msk.f32.vlgmr.msra.gmra.mrb[166].mxu1 %vm407_vm0, %v8428_v50  ;;  %v16851_v50 = vmax.f32 %v15502_v25, 0.0 }
 0x5d4   : > { %10303 = vmatpush3.msk.msra.mxu1 %vm8509_vm4, %v8504_v24  ;;  %10304 = vmatprep.mubr.msk.f32.mxu1 %vm10480_vm3, %v16850_v53  ;;  %v16852_v53 = vmax.f32 %v15494_v43, 0.0 }
 0x6a6   : > { %v8499_v2 = vpop.f32.mrb[166].mxu1 }
 0x6a7   : > { %v8503_v32 = vmax.f32 %v8499_v2, 0.0  ;;  %v10301_v49 = vpop.f32.mrb[167].mxu1 }
 0x6a9   : > { %10305 = vmatmul.mubr.msk.f32.vlgmr.msra.gmra.mrb[168].mxu1 %vm8505_vm5, %v8503_v32  ;;  %v16853_v32 = vmax.f32 %v15515_v0, 0.0 }
 0x77c   : > { %v8579_v58 = vpop.f32.mrb[168].mxu1 }
 0x77d   : > { %v9180_v31 = vmul.f32 -1.442695, %v8579_v58  ;;  %v10306_v38 = vpop.f32.mrb[169].mxu1  ;;  %v16854_v58 = vmax.f32 %v15526_v5, 0.0 }
 0x77e   : > { %v16855_v38 = vmax.f32 %v15537_v8, 0.0 }
 0x77f   : > { %10465 = vpow2.f32 %v9180_v31 }
 0x789   : > { %v10466_v51 = vpop.eup %10465 }
 0x78a   : > { %v8586_v33 = vadd.f32 1.0, %v10466_v51 }
 0x78c   : > { %10467 = vrcp.f32 %v8586_v33 }
 0x796   : > { %v10468_v42 = vpop.eup %10467 }
 0x797   : > { %v8592_v22 = vrot.slane %v10468_v42, %v8591_v20 }
 0x799   : > { %v8593_v24 = vmul.f32 %v8592_v22, %v16851_v50  ;;  %v8594_v2 = vmul.f32 %v8592_v22, %v16852_v53  ;;  %v8595_v49 = vmul.f32 %v8592_v22, %v16853_v32  ;;  %v8596_v31 = vmul.f32 %v8592_v22, %v16854_v58 }
 0x79a   : > { %v8597_v51 = vmul.f32 %v8592_v22, %v16855_v38  ;;  %v8598_v25 = vmul.f32 %v8592_v22, %v8331_v15  ;;  %v8599_v33 = vmul.f32 %v8592_v22, %v8332_v3  ;;  %v8600_v43 = vmul.f32 %v8592_v22, %v8333_v44 }
 0x79b   : > { %v8601_v0 = vmul.f32 %v8592_v22, %v8334_v17  ;;  %v8602_v5 = vmul.f32 %v8592_v22, %v8335_v54  ;;  %v8603_v8 = vmul.f32 %v8592_v22, %v8336_v23  ;;  %v8604_v7 = vmul.f32 %v8592_v22, %v8337_v61  ;;  %8625 = vst.msk [vmem:[%s15864_s27] sm:$0xff] %vm407_vm0, %v8593_v24 }
 0x79c   : > { %8626 = vst.msk [vmem:[%s15864_s27 + $0x8] sm:$0xff] %vm407_vm0, %v8594_v2  ;;  %8627 = vst.msk [vmem:[%s15864_s27 + $0x10] sm:$0xff] %vm407_vm0, %v8595_v49  ;;  %v8605_v28 = vmul.f32 %v8592_v22, %v8338_v6  ;;  %v8606_v10 = vmul.f32 %v8592_v22, %v8339_v36  ;;  %v16856_v15 = vmax.f32 %v15663_v47, 0.0  ;;  %v8608_v44 = vmul.f32 %v8592_v22, %v16857_v9 }
 0x79d   : > { %8628 = vst.msk [vmem:[%s15864_s27 + $0x18] sm:$0xff] %vm407_vm0, %v8596_v31  ;;  %8629 = vst.msk [vmem:[%s15864_s27 + $0x20] sm:$0xff] %vm407_vm0, %v8597_v51  ;;  %v16858_v17 = vmax.f32 %v15685_v63, 0.0  ;;  %v8610_v54 = vmul.f32 %v8592_v22, %v16859_v59  ;;  %v8611_v56 = vmul.f32 %v8592_v22, %v16860_v14  ;;  %v16861_v23 = vmax.f32 %v15720_v30, 0.0 }
 0x79e   : > { %v8607_v3 = vmul.f32 %v8592_v22, %v16856_v15  ;;  %8630 = vst.msk [vmem:[%s15864_s27 + $0x28] sm:$0xff] %vm407_vm0, %v8598_v25  ;;  %8631 = vst.msk [vmem:[%s15864_s27 + $0x30] sm:$0xff] %vm407_vm0, %v8599_v33  ;;  %v16862_v6 = vmax.f32 %v15725_v60, 0.0  ;;  %v16863_v47 = vmax.f32 %v15742_v12, 0.0  ;;  %v8615_v63 = vmul.f32 %v8592_v22, %v16864_v19 }
 0x79f   : > { %8632 = vst.msk [vmem:[%s15864_s27 + $0x38] sm:$0xff] %vm407_vm0, %v8600_v43  ;;  %v8609_v46 = vmul.f32 %v8592_v22, %v16858_v17  ;;  %v8612_v61 = vmul.f32 %v8592_v22, %v16861_v23  ;;  %8633 = vst.msk [vmem:[%s15864_s27 + $0x40] sm:$0xff] %vm407_vm0, %v8601_v0  ;;  %v8616_v45 = vmul.f32 %v8592_v22, %v16865_v21  ;;  %v16866_v30 = vmax.f32 %v15769_v13, 0.0 }
 0x7a0   : > { %8634 = vst.msk [vmem:[%s15864_s27 + $0x48] sm:$0xff] %vm407_vm0, %v8602_v5  ;;  %8635 = vst.msk [vmem:[%s15864_s27 + $0x50] sm:$0xff] %vm407_vm0, %v8603_v8  ;;  %v8613_v39 = vmul.f32 %v8592_v22, %v16862_v6  ;;  %v8614_v36 = vmul.f32 %v8592_v22, %v16863_v47  ;;  %v8618_v12 = vmul.f32 %v8592_v22, %v8351_v1 }
 0x7a1   : > { %8636 = vst.msk [vmem:[%s15864_s27 + $0x58] sm:$0xff] %vm407_vm0, %v8604_v7  ;;  %8637 = vst.msk [vmem:[%s15864_s27 + $0x60] sm:$0xff] %vm407_vm0, %v8605_v28  ;;  %v8617_v60 = vmul.f32 %v8592_v22, %v16866_v30  ;;  %v8619_v26 = vmul.f32 %v8592_v22, %v8352_v4  ;;  %v8620_v57 = vmul.f32 %v8592_v22, %v8353_v41 }
 0x7a2   : > { %8638 = vst.msk [vmem:[%s15864_s27 + $0x68] sm:$0xff] %vm407_vm0, %v8606_v10  ;;  %8639 = vst.msk [vmem:[%s15864_s27 + $0x70] sm:$0xff] %vm407_vm0, %v8607_v3  ;;  %v8621_v13 = vmul.f32 %v8592_v22, %v8354_v55  ;;  %v8622_v11 = vmul.f32 %v8592_v22, %v8355_v34  ;;  %v8623_v16 = vmul.f32 %v8592_v22, %v8356_v29 }
 0x7a3   : > { %8640 = vst.msk [vmem:[%s15864_s27 + $0x78] sm:$0xff] %vm407_vm0, %v8608_v44  ;;  %8641 = vst.msk [vmem:[%s15864_s27 + $0x80] sm:$0xff] %vm407_vm0, %v8609_v46  ;;  %v8624_v1 = vmul.f32 %v8592_v22, %v8357_v27 }
 0x7a4   : > { %8642 = vst.msk [vmem:[%s15864_s27 + $0x88] sm:$0xff] %vm407_vm0, %v8610_v54  ;;  %8643 = vst.msk [vmem:[%s15864_s27 + $0x90] sm:$0xff] %vm407_vm0, %v8611_v56 }
 0x7a5   : > { %8644 = vst.msk [vmem:[%s15864_s27 + $0x98] sm:$0xff] %vm407_vm0, %v8612_v61  ;;  %8645 = vst.msk [vmem:[%s15864_s27 + $0xa0] sm:$0xff] %vm407_vm0, %v8613_v39 }
 0x7a6   : > { %8646 = vst.msk [vmem:[%s15864_s27 + $0xa8] sm:$0xff] %vm407_vm0, %v8614_v36  ;;  %8647 = vst.msk [vmem:[%s15864_s27 + $0xb0] sm:$0xff] %vm407_vm0, %v8615_v63 }
 0x7a7   : > { %8648 = vst.msk [vmem:[%s15864_s27 + $0xb8] sm:$0xff] %vm407_vm0, %v8616_v45  ;;  %8649 = vst.msk [vmem:[%s15864_s27 + $0xc0] sm:$0xff] %vm407_vm0, %v8617_v60 }
 0x7a8   : > { %8650 = vst.msk [vmem:[%s15864_s27 + $0xc8] sm:$0xff] %vm407_vm0, %v8618_v12  ;;  %8651 = vst.msk [vmem:[%s15864_s27 + $0xd0] sm:$0xff] %vm407_vm0, %v8619_v26 }
 0x7a9   : > { %8652 = vst.msk [vmem:[%s15864_s27 + $0xd8] sm:$0xff] %vm407_vm0, %v8620_v57  ;;  %8653 = vst.msk [vmem:[%s15864_s27 + $0xe0] sm:$0xff] %vm407_vm0, %v8621_v13 }
 0x7aa   : > { %8654 = vst.msk [vmem:[%s15864_s27 + $0xe8] sm:$0xff] %vm407_vm0, %v8622_v11  ;;  %8655 = vst.msk [vmem:[%s15864_s27 + $0xf0] sm:$0xff] %vm407_vm0, %v8623_v16 }
 0x7ab   : > { %8656 = vst.msk [vmem:[%s15864_s27 + $0xf8] sm:$0xff] %vm407_vm0, %v8624_v1 }
 0x7ac PF: > { %s21_s17 = sadd.s32 1, %s10475_s17  }
 0x7ad   : > { %p18_p4 = scmp.ge.s32.totalorder %s21_s17, 4  }
 0x7af   :  { %20 = sbr.rel (!%p18_p4) target bundleno = 1 (0x1), region = 109 }

</bundles_post_ra>
